<compile_context>
chip_gen: v6e
topology: v6e:2x2x1
jax: 0.10.0
libtpu: 0.0.40
codegen_flags: <defaults>
</compile_context>

<pallas_src>
import jax
import jax.numpy as jnp
from jax.experimental import pallas as pl
from jax.experimental.pallas import tpu as pltpu


# ----------------------------- Pallas kernel -------------------------------

def _mish(z):
    # mish(z) = z * tanh(softplus(z)) = z * t / (t + 2),  t = e^z (e^z + 2).
    # Single exp; clamp at 20 so t stays finite (factor is 1.0 there anyway).
    u = jnp.exp(jnp.minimum(z, 20.0))
    t = u * (u + 2.0)
    return z * t / (t + 2.0)


def _downsample1_kernel(p_ref,                       # [1, 4, A, A, 3] f32 input phases
                        w1_ref, b1_ref,              # [9, 3, 32] bf16, [1, 32] f32
                        w2_ref, b2_ref,              # [9, 32, 64] bf16, [1, 64] f32
                        w3_ref, b3_ref,              # [64, 64] bf16,  [1, 64] f32
                        w4_ref, b4_ref,              # [64, 64],  [1, 64]
                        w5_ref, b5_ref,              # [64, 32],  [1, 32]
                        w6_ref, b6_ref,              # [9, 32, 64], [1, 64]
                        w7_ref, b7_ref,              # [64, 64],  [1, 64]
                        w8a_ref, w8b_ref, b8_ref,    # [64, 64], [64, 64], [1, 64]
                        o_ref,                       # [1, S*S, 64] f32
                        qp_ref,                      # scratch [4, A, A, 32] f32 (padded x1 phases)
                        x5p_ref):                    # scratch [S+2, S+2, 32] f32 (padded x5)
    S = x5p_ref.shape[0] - 2          # post-conv2 spatial extent (H // 2)
    M = S * S                         # rows of every 1x1 matmul

    def mm(lhs_f32, w_bf16):
        # bf16 x bf16 MXU matmul with f32 accumulation.
        return jnp.dot(lhs_f32.astype(jnp.bfloat16), w_bf16,
                       preferred_element_type=jnp.float32)

    # --- conv1 (3x3, s=1): computed per output phase; every tap is a contiguous
    # slice of an input phase.  Results (BN shift + Mish applied) are written
    # into the zero-padded x1 phase scratch used by conv2. ---
    qp_ref[...] = jnp.zeros(qp_ref.shape, qp_ref.dtype)
    for qy in range(2):
        for qx in range(2):
            acc = jnp.zeros((M, 32), jnp.float32)
            for dy in range(3):
                for dx in range(3):
                    py, px = (qy + dy) % 2, (qx + dx) % 2
                    a0, b0 = (qy + dy) // 2, (qx + dx) // 2
                    patch = p_ref[0, 2 * py + px, a0:a0 + S, b0:b0 + S, :]
                    acc = acc + mm(patch.reshape(M, 3), w1_ref[dy * 3 + dx])
            q = _mish(acc + b1_ref[...])                     # x1 phase, [M, 32]
            qp_ref[2 * (1 - qy) + (1 - qx),
                   qy:qy + S, qx:qx + S, :] = q.reshape(S, S, 32)

    # --- conv2 (3x3, s=2): 9 taps, each a contiguous slice of a padded x1 phase. ---
    acc = jnp.zeros((M, 64), jnp.float32)
    for dy in range(3):
        for dx in range(3):
            patch = qp_ref[2 * (dy % 2) + (dx % 2),
                           dy // 2:dy // 2 + S, dx // 2:dx // 2 + S, :]
            acc = acc + mm(patch.reshape(M, 32), w2_ref[dy * 3 + dx])
    x2 = _mish(acc + b2_ref[...])                            # [M, 64]

    # --- 1x1 chain, fully resident in VMEM / registers (no HBM round trips). ---
    x3 = _mish(mm(x2, w3_ref[...]) + b3_ref[...])            # [M, 64]
    x4 = _mish(mm(x2, w4_ref[...]) + b4_ref[...])            # [M, 64]
    x5 = _mish(mm(x4, w5_ref[...]) + b5_ref[...])            # [M, 32]

    # --- conv6 (3x3, s=1) on x5 via zero-padded VMEM scratch, then residual. ---
    x5p_ref[...] = jnp.zeros(x5p_ref.shape, x5p_ref.dtype)
    x5p_ref[1:S + 1, 1:S + 1, :] = x5.reshape(S, S, 32)
    acc = jnp.zeros((M, 64), jnp.float32)
    for dy in range(3):
        for dx in range(3):
            patch = x5p_ref[dy:dy + S, dx:dx + S, :]
            acc = acc + mm(patch.reshape(M, 32), w6_ref[dy * 3 + dx])
    x6 = _mish(acc + b6_ref[...]) + x4                       # x6 = conv6(x5) + x4

    # --- conv7 -> concat -> conv8 fused: x8 = mish(x7a@W8a + x3@W8b + b8). ---
    x7a = _mish(mm(x6, w7_ref[...]) + b7_ref[...])
    x8 = _mish(mm(x7a, w8a_ref[...]) + mm(x3, w8b_ref[...]) + b8_ref[...])
    o_ref[0, :, :] = x8.astype(o_ref.dtype)


# ------------------------------- JAX glue -----------------------------------

def _init_conv_bn(key, cin, cout, k):
    """Deterministic Conv2d(bias=False)+BatchNorm2d params, BN fully folded:
    scale folded into the bf16 weights, shift kept separately in f32."""
    kw, kg, kb, km, kv = jax.random.split(key, 5)
    fan_in = cin * k * k
    w = jax.random.normal(kw, (k, k, cin, cout), jnp.float32) * (2.0 / fan_in) ** 0.5
    gamma = 1.0 + 0.1 * jax.random.normal(kg, (cout,), jnp.float32)
    beta = 0.05 * jax.random.normal(kb, (cout,), jnp.float32)
    mean = 0.05 * jax.random.normal(km, (cout,), jnp.float32)
    var = 1.0 + 0.1 * jax.random.uniform(kv, (cout,), jnp.float32)
    scale = gamma / jnp.sqrt(var + 1e-5)
    shift = (beta - mean * scale).reshape(1, cout).astype(jnp.float32)
    wf = w * scale[None, None, None, :]
    if k == 1:
        w_out = wf.reshape(cin, cout).astype(jnp.bfloat16)
    else:
        w_out = wf.reshape(k * k, cin, cout).astype(jnp.bfloat16)   # tap-major (dy, dx)
    return w_out, shift


def init_downsample1_params(key):
    cfgs = {"conv1": (3, 32, 3), "conv2": (32, 64, 3), "conv3": (64, 64, 1),
            "conv4": (64, 64, 1), "conv5": (64, 32, 1), "conv6": (32, 64, 3),
            "conv7": (64, 64, 1), "conv8": (128, 64, 1)}
    keys = jax.random.split(key, len(cfgs))
    return {name: _init_conv_bn(k, *cfg) for k, (name, cfg) in zip(keys, cfgs.items())}


def downsample1_forward(x_nchw, params):
    N, C, H, W = x_nchw.shape
    assert C == 3 and H == W and H % 2 == 0
    S = H // 2           # post-conv2 spatial extent
    A = S + 1            # phase extent of the padded (H+2) input / padded x1
    M = S * S

    # NCHW -> NHWC, pad=1, then space-to-depth phases:
    # phases[n, 2*py+px, a, b, c] = xpad[n, 2a+py, 2b+px, c].
    # Same total bytes as the input (no 9x im2col amplification).
    x = jnp.transpose(x_nchw, (0, 2, 3, 1)).astype(jnp.float32)
    xp = jnp.pad(x, ((0, 0), (1, 1), (1, 1), (0, 0)))
    phases = (xp.reshape(N, A, 2, A, 2, 3)
                .transpose(0, 2, 4, 1, 3, 5)
                .reshape(N, 4, A, A, 3))

    w1, b1 = params["conv1"]; w2, b2 = params["conv2"]
    w3, b3 = params["conv3"]; w4, b4 = params["conv4"]
    w5, b5 = params["conv5"]; w6, b6 = params["conv6"]
    w7, b7 = params["conv7"]; w8, b8 = params["conv8"]
    w8a, w8b = w8[:64], w8[64:]          # concat order is [conv7_out, x3]

    out = pl.pallas_call(
        _downsample1_kernel,
        out_shape=jax.ShapeDtypeStruct((N, M, 64), jnp.float32),
        grid=(N,),
        in_specs=[
            pl.BlockSpec((1, 4, A, A, 3), lambda n: (n, 0, 0, 0, 0)),   # input phases
            pl.BlockSpec((9, 3, 32), lambda n: (0, 0, 0)),              # w1
            pl.BlockSpec((1, 32), lambda n: (0, 0)),                    # b1
            pl.BlockSpec((9, 32, 64), lambda n: (0, 0, 0)),             # w2
            pl.BlockSpec((1, 64), lambda n: (0, 0)),                    # b2
            pl.BlockSpec((64, 64), lambda n: (0, 0)),                   # w3
            pl.BlockSpec((1, 64), lambda n: (0, 0)),                    # b3
            pl.BlockSpec((64, 64), lambda n: (0, 0)),                   # w4
            pl.BlockSpec((1, 64), lambda n: (0, 0)),                    # b4
            pl.BlockSpec((64, 32), lambda n: (0, 0)),                   # w5
            pl.BlockSpec((1, 32), lambda n: (0, 0)),                    # b5
            pl.BlockSpec((9, 32, 64), lambda n: (0, 0, 0)),             # w6
            pl.BlockSpec((1, 64), lambda n: (0, 0)),                    # b6
            pl.BlockSpec((64, 64), lambda n: (0, 0)),                   # w7
            pl.BlockSpec((1, 64), lambda n: (0, 0)),                    # b7
            pl.BlockSpec((64, 64), lambda n: (0, 0)),                   # w8a
            pl.BlockSpec((64, 64), lambda n: (0, 0)),                   # w8b
            pl.BlockSpec((1, 64), lambda n: (0, 0)),                    # b8
        ],
        out_specs=pl.BlockSpec((1, M, 64), lambda n: (n, 0, 0)),
        scratch_shapes=[
            pltpu.VMEM((4, A, A, 32), jnp.float32),        # zero-padded x1 phases
            pltpu.VMEM((S + 2, S + 2, 32), jnp.float32),   # zero-padded x5
        ],
        compiler_params=pltpu.CompilerParams(
            dimension_semantics=("parallel",),
            vmem_limit_bytes=32 * 1024 * 1024),
    )(phases, w1, b1, w2, b2, w3, b3, w4, b4, w5, b5, w6, b6, w7, b7,
      w8a, w8b, b8)

    out = out.reshape(N, S, S, 64)
    return jnp.transpose(out, (0, 3, 1, 2)).astype(jnp.float32)   # NHWC -> NCHW


# --------------------------------- main --------------------------------------

if __name__ == "__main__":
    key = jax.random.PRNGKey(0)
    k_params, k_input = jax.random.split(key)
    params = init_downsample1_params(k_params)

    x = jax.random.normal(k_input, (2, 3, 16, 16), jnp.float32)   # NCHW, like PyTorch

    fwd = jax.jit(lambda xx: downsample1_forward(xx, params))
    out = jax.block_until_ready(fwd(x))

    assert out.shape == (2, 64, 8, 8), out.shape
    assert jnp.all(jnp.isfinite(out))
    print("KERNEL_OK")
</pallas_src>

<mosaic_0001>
module attributes {stable_mosaic.version = 11 : i64} {
  func.func @_downsample1_kernel(%arg0: i32, %arg1: memref<1x4x9x9x3xf32, #tpu.memory_space<vmem>>, %arg2: memref<9x3x32xbf16, #tpu.memory_space<vmem>>, %arg3: memref<1x32xf32, #tpu.memory_space<vmem>>, %arg4: memref<9x32x64xbf16, #tpu.memory_space<vmem>>, %arg5: memref<1x64xf32, #tpu.memory_space<vmem>>, %arg6: memref<64x64xbf16, #tpu.memory_space<vmem>>, %arg7: memref<1x64xf32, #tpu.memory_space<vmem>>, %arg8: memref<64x64xbf16, #tpu.memory_space<vmem>>, %arg9: memref<1x64xf32, #tpu.memory_space<vmem>>, %arg10: memref<64x32xbf16, #tpu.memory_space<vmem>>, %arg11: memref<1x32xf32, #tpu.memory_space<vmem>>, %arg12: memref<9x32x64xbf16, #tpu.memory_space<vmem>>, %arg13: memref<1x64xf32, #tpu.memory_space<vmem>>, %arg14: memref<64x64xbf16, #tpu.memory_space<vmem>>, %arg15: memref<1x64xf32, #tpu.memory_space<vmem>>, %arg16: memref<64x64xbf16, #tpu.memory_space<vmem>>, %arg17: memref<64x64xbf16, #tpu.memory_space<vmem>>, %arg18: memref<1x64xf32, #tpu.memory_space<vmem>>, %arg19: memref<1x64x64xf32, #tpu.memory_space<vmem>>, %arg20: memref<4x9x9x32xf32, #tpu.memory_space<vmem>>, %arg21: memref<10x10x32xf32, #tpu.memory_space<vmem>>) attributes {dimension_semantics = [#tpu.dimension_semantics<parallel>], iteration_bounds = array<i64: 2>, scalar_prefetch = 0 : i64, scratch_operands = 2 : i64, tpu.core_type = #tpu.core_type<tc>, window_params = [{transform_indices = @transform_0, window_bounds = array<i64: 1, 4, 9, 9, 3>}, {pipeline_mode = #tpu.pipeline_mode<synchronous>, transform_indices = @transform_1, window_bounds = array<i64: 9, 3, 32>}, {pipeline_mode = #tpu.pipeline_mode<synchronous>, transform_indices = @transform_2, window_bounds = array<i64: 1, 32>}, {pipeline_mode = #tpu.pipeline_mode<synchronous>, transform_indices = @transform_3, window_bounds = array<i64: 9, 32, 64>}, {pipeline_mode = #tpu.pipeline_mode<synchronous>, transform_indices = @transform_4, window_bounds = array<i64: 1, 64>}, {pipeline_mode = #tpu.pipeline_mode<synchronous>, transform_indices = @transform_5, window_bounds = array<i64: 64, 64>}, {pipeline_mode = #tpu.pipeline_mode<synchronous>, transform_indices = @transform_6, window_bounds = array<i64: 1, 64>}, {pipeline_mode = #tpu.pipeline_mode<synchronous>, transform_indices = @transform_7, window_bounds = array<i64: 64, 64>}, {pipeline_mode = #tpu.pipeline_mode<synchronous>, transform_indices = @transform_8, window_bounds = array<i64: 1, 64>}, {pipeline_mode = #tpu.pipeline_mode<synchronous>, transform_indices = @transform_9, window_bounds = array<i64: 64, 32>}, {pipeline_mode = #tpu.pipeline_mode<synchronous>, transform_indices = @transform_10, window_bounds = array<i64: 1, 32>}, {pipeline_mode = #tpu.pipeline_mode<synchronous>, transform_indices = @transform_11, window_bounds = array<i64: 9, 32, 64>}, {pipeline_mode = #tpu.pipeline_mode<synchronous>, transform_indices = @transform_12, window_bounds = array<i64: 1, 64>}, {pipeline_mode = #tpu.pipeline_mode<synchronous>, transform_indices = @transform_13, window_bounds = array<i64: 64, 64>}, {pipeline_mode = #tpu.pipeline_mode<synchronous>, transform_indices = @transform_14, window_bounds = array<i64: 1, 64>}, {pipeline_mode = #tpu.pipeline_mode<synchronous>, transform_indices = @transform_15, window_bounds = array<i64: 64, 64>}, {pipeline_mode = #tpu.pipeline_mode<synchronous>, transform_indices = @transform_16, window_bounds = array<i64: 64, 64>}, {pipeline_mode = #tpu.pipeline_mode<synchronous>, transform_indices = @transform_17, window_bounds = array<i64: 1, 64>}, {transform_indices = @transform_18, window_bounds = array<i64: 1, 64, 64>}]} {
    %cst = arith.constant 0.000000e+00 : f32
    %0 = vector.broadcast %cst : f32 to vector<4x9x9x32xf32>
    %c0 = arith.constant 0 : index
    %c0_0 = arith.constant 0 : index
    %c0_1 = arith.constant 0 : index
    %c0_2 = arith.constant 0 : index
    %1 = vector.load %arg20[%c0, %c0_0, %c0_1, %c0_2] : memref<4x9x9x32xf32, #tpu.memory_space<vmem>>, vector<4x9x9x32xf32>
    tpu.vector_store %arg20[%c0, %c0_0, %c0_1, %c0_2], %0 {strides = array<i32>} : memref<4x9x9x32xf32, #tpu.memory_space<vmem>>, vector<4x9x9x32xf32>,
    %cst_3 = arith.constant 0.000000e+00 : f32
    %2 = vector.broadcast %cst_3 : f32 to vector<64x32xf32>
    %c0_4 = arith.constant 0 : index
    %c0_5 = arith.constant 0 : index
    %c0_6 = arith.constant 0 : index
    %c0_7 = arith.constant 0 : index
    %c0_8 = arith.constant 0 : index
    %3 = vector.load %arg1[%c0_4, %c0_5, %c0_6, %c0_7, %c0_8] : memref<1x4x9x9x3xf32, #tpu.memory_space<vmem>>, vector<1x1x8x8x3xf32>
    %4 = vector.shape_cast %3 : vector<1x1x8x8x3xf32> to vector<8x8x3xf32>
    %5 = vector.shape_cast %4 : vector<8x8x3xf32> to vector<64x3xf32>
    %c0_9 = arith.constant 0 : index
    %c0_10 = arith.constant 0 : index
    %c0_11 = arith.constant 0 : index
    %6 = vector.load %arg2[%c0_9, %c0_10, %c0_11] : memref<9x3x32xbf16, #tpu.memory_space<vmem>>, vector<1x3x32xbf16>
    %7 = vector.shape_cast %6 : vector<1x3x32xbf16> to vector<3x32xbf16>
    %8 = arith.truncf %5 : vector<64x3xf32> to vector<64x3xbf16>
    %cst_12 = arith.constant dense<0.000000e+00> : vector<64x32xf32>
    %9 = tpu.matmul %8, %7, %cst_12 {dimension_numbers = #tpu.dot_dimension_numbers<[1], [0], [0], [1], [0, 0, 1, 1], [], []>} : vector<64x3xbf16>, vector<3x32xbf16>, vector<64x32xf32> -> vector<64x32xf32>
    %10 = arith.addf %2, %9 : vector<64x32xf32>
    %c0_13 = arith.constant 0 : index
    %c1 = arith.constant 1 : index
    %c0_14 = arith.constant 0 : index
    %c0_15 = arith.constant 0 : index
    %c0_16 = arith.constant 0 : index
    %11 = vector.load %arg1[%c0_13, %c1, %c0_14, %c0_15, %c0_16] : memref<1x4x9x9x3xf32, #tpu.memory_space<vmem>>, vector<1x1x8x8x3xf32>
    %12 = vector.shape_cast %11 : vector<1x1x8x8x3xf32> to vector<8x8x3xf32>
    %13 = vector.shape_cast %12 : vector<8x8x3xf32> to vector<64x3xf32>
    %c1_17 = arith.constant 1 : index
    %c0_18 = arith.constant 0 : index
    %c0_19 = arith.constant 0 : index
    %14 = vector.load %arg2[%c1_17, %c0_18, %c0_19] : memref<9x3x32xbf16, #tpu.memory_space<vmem>>, vector<1x3x32xbf16>
    %15 = vector.shape_cast %14 : vector<1x3x32xbf16> to vector<3x32xbf16>
    %16 = arith.truncf %13 : vector<64x3xf32> to vector<64x3xbf16>
    %cst_20 = arith.constant dense<0.000000e+00> : vector<64x32xf32>
    %17 = tpu.matmul %16, %15, %cst_20 {dimension_numbers = #tpu.dot_dimension_numbers<[1], [0], [0], [1], [0, 0, 1, 1], [], []>} : vector<64x3xbf16>, vector<3x32xbf16>, vector<64x32xf32> -> vector<64x32xf32>
    %18 = arith.addf %10, %17 : vector<64x32xf32>
    %c0_21 = arith.constant 0 : index
    %c0_22 = arith.constant 0 : index
    %c0_23 = arith.constant 0 : index
    %c1_24 = arith.constant 1 : index
    %c0_25 = arith.constant 0 : index
    %19 = vector.load %arg1[%c0_21, %c0_22, %c0_23, %c1_24, %c0_25] : memref<1x4x9x9x3xf32, #tpu.memory_space<vmem>>, vector<1x1x8x8x3xf32>
    %20 = vector.shape_cast %19 : vector<1x1x8x8x3xf32> to vector<8x8x3xf32>
    %21 = vector.shape_cast %20 : vector<8x8x3xf32> to vector<64x3xf32>
    %c2 = arith.constant 2 : index
    %c0_26 = arith.constant 0 : index
    %c0_27 = arith.constant 0 : index
    %22 = vector.load %arg2[%c2, %c0_26, %c0_27] : memref<9x3x32xbf16, #tpu.memory_space<vmem>>, vector<1x3x32xbf16>
    %23 = vector.shape_cast %22 : vector<1x3x32xbf16> to vector<3x32xbf16>
    %24 = arith.truncf %21 : vector<64x3xf32> to vector<64x3xbf16>
    %cst_28 = arith.constant dense<0.000000e+00> : vector<64x32xf32>
    %25 = tpu.matmul %24, %23, %cst_28 {dimension_numbers = #tpu.dot_dimension_numbers<[1], [0], [0], [1], [0, 0, 1, 1], [], []>} : vector<64x3xbf16>, vector<3x32xbf16>, vector<64x32xf32> -> vector<64x32xf32>
    %26 = arith.addf %18, %25 : vector<64x32xf32>
    %c0_29 = arith.constant 0 : index
    %c2_30 = arith.constant 2 : index
    %c0_31 = arith.constant 0 : index
    %c0_32 = arith.constant 0 : index
    %c0_33 = arith.constant 0 : index
    %27 = vector.load %arg1[%c0_29, %c2_30, %c0_31, %c0_32, %c0_33] : memref<1x4x9x9x3xf32, #tpu.memory_space<vmem>>, vector<1x1x8x8x3xf32>
    %28 = vector.shape_cast %27 : vector<1x1x8x8x3xf32> to vector<8x8x3xf32>
    %29 = vector.shape_cast %28 : vector<8x8x3xf32> to vector<64x3xf32>
    %c3 = arith.constant 3 : index
    %c0_34 = arith.constant 0 : index
    %c0_35 = arith.constant 0 : index
    %30 = vector.load %arg2[%c3, %c0_34, %c0_35] : memref<9x3x32xbf16, #tpu.memory_space<vmem>>, vector<1x3x32xbf16>
    %31 = vector.shape_cast %30 : vector<1x3x32xbf16> to vector<3x32xbf16>
    %32 = arith.truncf %29 : vector<64x3xf32> to vector<64x3xbf16>
    %cst_36 = arith.constant dense<0.000000e+00> : vector<64x32xf32>
    %33 = tpu.matmul %32, %31, %cst_36 {dimension_numbers = #tpu.dot_dimension_numbers<[1], [0], [0], [1], [0, 0, 1, 1], [], []>} : vector<64x3xbf16>, vector<3x32xbf16>, vector<64x32xf32> -> vector<64x32xf32>
    %34 = arith.addf %26, %33 : vector<64x32xf32>
    %c0_37 = arith.constant 0 : index
    %c3_38 = arith.constant 3 : index
    %c0_39 = arith.constant 0 : index
    %c0_40 = arith.constant 0 : index
    %c0_41 = arith.constant 0 : index
    %35 = vector.load %arg1[%c0_37, %c3_38, %c0_39, %c0_40, %c0_41] : memref<1x4x9x9x3xf32, #tpu.memory_space<vmem>>, vector<1x1x8x8x3xf32>
    %36 = vector.shape_cast %35 : vector<1x1x8x8x3xf32> to vector<8x8x3xf32>
    %37 = vector.shape_cast %36 : vector<8x8x3xf32> to vector<64x3xf32>
    %c4 = arith.constant 4 : index
    %c0_42 = arith.constant 0 : index
    %c0_43 = arith.constant 0 : index
    %38 = vector.load %arg2[%c4, %c0_42, %c0_43] : memref<9x3x32xbf16, #tpu.memory_space<vmem>>, vector<1x3x32xbf16>
    %39 = vector.shape_cast %38 : vector<1x3x32xbf16> to vector<3x32xbf16>
    %40 = arith.truncf %37 : vector<64x3xf32> to vector<64x3xbf16>
    %cst_44 = arith.constant dense<0.000000e+00> : vector<64x32xf32>
    %41 = tpu.matmul %40, %39, %cst_44 {dimension_numbers = #tpu.dot_dimension_numbers<[1], [0], [0], [1], [0, 0, 1, 1], [], []>} : vector<64x3xbf16>, vector<3x32xbf16>, vector<64x32xf32> -> vector<64x32xf32>
    %42 = arith.addf %34, %41 : vector<64x32xf32>
    %c0_45 = arith.constant 0 : index
    %c2_46 = arith.constant 2 : index
    %c0_47 = arith.constant 0 : index
    %c1_48 = arith.constant 1 : index
    %c0_49 = arith.constant 0 : index
    %43 = vector.load %arg1[%c0_45, %c2_46, %c0_47, %c1_48, %c0_49] : memref<1x4x9x9x3xf32, #tpu.memory_space<vmem>>, vector<1x1x8x8x3xf32>
    %44 = vector.shape_cast %43 : vector<1x1x8x8x3xf32> to vector<8x8x3xf32>
    %45 = vector.shape_cast %44 : vector<8x8x3xf32> to vector<64x3xf32>
    %c5 = arith.constant 5 : index
    %c0_50 = arith.constant 0 : index
    %c0_51 = arith.constant 0 : index
    %46 = vector.load %arg2[%c5, %c0_50, %c0_51] : memref<9x3x32xbf16, #tpu.memory_space<vmem>>, vector<1x3x32xbf16>
    %47 = vector.shape_cast %46 : vector<1x3x32xbf16> to vector<3x32xbf16>
    %48 = arith.truncf %45 : vector<64x3xf32> to vector<64x3xbf16>
    %cst_52 = arith.constant dense<0.000000e+00> : vector<64x32xf32>
    %49 = tpu.matmul %48, %47, %cst_52 {dimension_numbers = #tpu.dot_dimension_numbers<[1], [0], [0], [1], [0, 0, 1, 1], [], []>} : vector<64x3xbf16>, vector<3x32xbf16>, vector<64x32xf32> -> vector<64x32xf32>
    %50 = arith.addf %42, %49 : vector<64x32xf32>
    %c0_53 = arith.constant 0 : index
    %c0_54 = arith.constant 0 : index
    %c1_55 = arith.constant 1 : index
    %c0_56 = arith.constant 0 : index
    %c0_57 = arith.constant 0 : index
    %51 = vector.load %arg1[%c0_53, %c0_54, %c1_55, %c0_56, %c0_57] : memref<1x4x9x9x3xf32, #tpu.memory_space<vmem>>, vector<1x1x8x8x3xf32>
    %52 = vector.shape_cast %51 : vector<1x1x8x8x3xf32> to vector<8x8x3xf32>
    %53 = vector.shape_cast %52 : vector<8x8x3xf32> to vector<64x3xf32>
    %c6 = arith.constant 6 : index
    %c0_58 = arith.constant 0 : index
    %c0_59 = arith.constant 0 : index
    %54 = vector.load %arg2[%c6, %c0_58, %c0_59] : memref<9x3x32xbf16, #tpu.memory_space<vmem>>, vector<1x3x32xbf16>
    %55 = vector.shape_cast %54 : vector<1x3x32xbf16> to vector<3x32xbf16>
    %56 = arith.truncf %53 : vector<64x3xf32> to vector<64x3xbf16>
    %cst_60 = arith.constant dense<0.000000e+00> : vector<64x32xf32>
    %57 = tpu.matmul %56, %55, %cst_60 {dimension_numbers = #tpu.dot_dimension_numbers<[1], [0], [0], [1], [0, 0, 1, 1], [], []>} : vector<64x3xbf16>, vector<3x32xbf16>, vector<64x32xf32> -> vector<64x32xf32>
    %58 = arith.addf %50, %57 : vector<64x32xf32>
    %c0_61 = arith.constant 0 : index
    %c1_62 = arith.constant 1 : index
    %c1_63 = arith.constant 1 : index
    %c0_64 = arith.constant 0 : index
    %c0_65 = arith.constant 0 : index
    %59 = vector.load %arg1[%c0_61, %c1_62, %c1_63, %c0_64, %c0_65] : memref<1x4x9x9x3xf32, #tpu.memory_space<vmem>>, vector<1x1x8x8x3xf32>
    %60 = vector.shape_cast %59 : vector<1x1x8x8x3xf32> to vector<8x8x3xf32>
    %61 = vector.shape_cast %60 : vector<8x8x3xf32> to vector<64x3xf32>
    %c7 = arith.constant 7 : index
    %c0_66 = arith.constant 0 : index
    %c0_67 = arith.constant 0 : index
    %62 = vector.load %arg2[%c7, %c0_66, %c0_67] : memref<9x3x32xbf16, #tpu.memory_space<vmem>>, vector<1x3x32xbf16>
    %63 = vector.shape_cast %62 : vector<1x3x32xbf16> to vector<3x32xbf16>
    %64 = arith.truncf %61 : vector<64x3xf32> to vector<64x3xbf16>
    %cst_68 = arith.constant dense<0.000000e+00> : vector<64x32xf32>
    %65 = tpu.matmul %64, %63, %cst_68 {dimension_numbers = #tpu.dot_dimension_numbers<[1], [0], [0], [1], [0, 0, 1, 1], [], []>} : vector<64x3xbf16>, vector<3x32xbf16>, vector<64x32xf32> -> vector<64x32xf32>
    %66 = arith.addf %58, %65 : vector<64x32xf32>
    %c0_69 = arith.constant 0 : index
    %c0_70 = arith.constant 0 : index
    %c1_71 = arith.constant 1 : index
    %c1_72 = arith.constant 1 : index
    %c0_73 = arith.constant 0 : index
    %67 = vector.load %arg1[%c0_69, %c0_70, %c1_71, %c1_72, %c0_73] : memref<1x4x9x9x3xf32, #tpu.memory_space<vmem>>, vector<1x1x8x8x3xf32>
    %68 = vector.shape_cast %67 : vector<1x1x8x8x3xf32> to vector<8x8x3xf32>
    %69 = vector.shape_cast %68 : vector<8x8x3xf32> to vector<64x3xf32>
    %c8 = arith.constant 8 : index
    %c0_74 = arith.constant 0 : index
    %c0_75 = arith.constant 0 : index
    %70 = vector.load %arg2[%c8, %c0_74, %c0_75] : memref<9x3x32xbf16, #tpu.memory_space<vmem>>, vector<1x3x32xbf16>
    %71 = vector.shape_cast %70 : vector<1x3x32xbf16> to vector<3x32xbf16>
    %72 = arith.truncf %69 : vector<64x3xf32> to vector<64x3xbf16>
    %cst_76 = arith.constant dense<0.000000e+00> : vector<64x32xf32>
    %73 = tpu.matmul %72, %71, %cst_76 {dimension_numbers = #tpu.dot_dimension_numbers<[1], [0], [0], [1], [0, 0, 1, 1], [], []>} : vector<64x3xbf16>, vector<3x32xbf16>, vector<64x32xf32> -> vector<64x32xf32>
    %74 = arith.addf %66, %73 : vector<64x32xf32>
    %c0_77 = arith.constant 0 : index
    %c0_78 = arith.constant 0 : index
    %75 = vector.load %arg3[%c0_77, %c0_78] : memref<1x32xf32, #tpu.memory_space<vmem>>, vector<1x32xf32>
    %76 = vector.broadcast %75 : vector<1x32xf32> to vector<64x32xf32>
    %77 = arith.addf %74, %76 : vector<64x32xf32>
    %cst_79 = arith.constant 2.000000e+01 : f32
    %78 = vector.broadcast %cst_79 : f32 to vector<64x32xf32>
    %79 = arith.minimumf %77, %78 : vector<64x32xf32>
    %80 = math.exp %79 : vector<64x32xf32>
    %cst_80 = arith.constant 2.000000e+00 : f32
    %81 = vector.broadcast %cst_80 : f32 to vector<64x32xf32>
    %82 = arith.addf %80, %81 : vector<64x32xf32>
    %83 = arith.mulf %80, %82 : vector<64x32xf32>
    %84 = arith.mulf %77, %83 : vector<64x32xf32>
    %cst_81 = arith.constant 2.000000e+00 : f32
    %85 = vector.broadcast %cst_81 : f32 to vector<64x32xf32>
    %86 = arith.addf %83, %85 : vector<64x32xf32>
    %87 = arith.divf %84, %86 : vector<64x32xf32>
    %88 = vector.shape_cast %87 : vector<64x32xf32> to vector<8x8x32xf32>
    %c3_82 = arith.constant 3 : index
    %c0_83 = arith.constant 0 : index
    %c0_84 = arith.constant 0 : index
    %c0_85 = arith.constant 0 : index
    %89 = vector.load %arg20[%c3_82, %c0_83, %c0_84, %c0_85] : memref<4x9x9x32xf32, #tpu.memory_space<vmem>>, vector<1x8x8x32xf32>
    %90 = vector.shape_cast %89 : vector<1x8x8x32xf32> to vector<8x8x32xf32>
    %91 = vector.shape_cast %88 : vector<8x8x32xf32> to vector<1x8x8x32xf32>
    tpu.vector_store %arg20[%c3_82, %c0_83, %c0_84, %c0_85], %91 {strides = array<i32>} : memref<4x9x9x32xf32, #tpu.memory_space<vmem>>, vector<1x8x8x32xf32>,
    %cst_86 = arith.constant 0.000000e+00 : f32
    %92 = vector.broadcast %cst_86 : f32 to vector<64x32xf32>
    %c0_87 = arith.constant 0 : index
    %c1_88 = arith.constant 1 : index
    %c0_89 = arith.constant 0 : index
    %c0_90 = arith.constant 0 : index
    %c0_91 = arith.constant 0 : index
    %93 = vector.load %arg1[%c0_87, %c1_88, %c0_89, %c0_90, %c0_91] : memref<1x4x9x9x3xf32, #tpu.memory_space<vmem>>, vector<1x1x8x8x3xf32>
    %94 = vector.shape_cast %93 : vector<1x1x8x8x3xf32> to vector<8x8x3xf32>
    %95 = vector.shape_cast %94 : vector<8x8x3xf32> to vector<64x3xf32>
    %c0_92 = arith.constant 0 : index
    %c0_93 = arith.constant 0 : index
    %c0_94 = arith.constant 0 : index
    %96 = vector.load %arg2[%c0_92, %c0_93, %c0_94] : memref<9x3x32xbf16, #tpu.memory_space<vmem>>, vector<1x3x32xbf16>
    %97 = vector.shape_cast %96 : vector<1x3x32xbf16> to vector<3x32xbf16>
    %98 = arith.truncf %95 : vector<64x3xf32> to vector<64x3xbf16>
    %cst_95 = arith.constant dense<0.000000e+00> : vector<64x32xf32>
    %99 = tpu.matmul %98, %97, %cst_95 {dimension_numbers = #tpu.dot_dimension_numbers<[1], [0], [0], [1], [0, 0, 1, 1], [], []>} : vector<64x3xbf16>, vector<3x32xbf16>, vector<64x32xf32> -> vector<64x32xf32>
    %100 = arith.addf %92, %99 : vector<64x32xf32>
    %c0_96 = arith.constant 0 : index
    %c0_97 = arith.constant 0 : index
    %c0_98 = arith.constant 0 : index
    %c1_99 = arith.constant 1 : index
    %c0_100 = arith.constant 0 : index
    %101 = vector.load %arg1[%c0_96, %c0_97, %c0_98, %c1_99, %c0_100] : memref<1x4x9x9x3xf32, #tpu.memory_space<vmem>>, vector<1x1x8x8x3xf32>
    %102 = vector.shape_cast %101 : vector<1x1x8x8x3xf32> to vector<8x8x3xf32>
    %103 = vector.shape_cast %102 : vector<8x8x3xf32> to vector<64x3xf32>
    %c1_101 = arith.constant 1 : index
    %c0_102 = arith.constant 0 : index
    %c0_103 = arith.constant 0 : index
    %104 = vector.load %arg2[%c1_101, %c0_102, %c0_103] : memref<9x3x32xbf16, #tpu.memory_space<vmem>>, vector<1x3x32xbf16>
    %105 = vector.shape_cast %104 : vector<1x3x32xbf16> to vector<3x32xbf16>
    %106 = arith.truncf %103 : vector<64x3xf32> to vector<64x3xbf16>
    %cst_104 = arith.constant dense<0.000000e+00> : vector<64x32xf32>
    %107 = tpu.matmul %106, %105, %cst_104 {dimension_numbers = #tpu.dot_dimension_numbers<[1], [0], [0], [1], [0, 0, 1, 1], [], []>} : vector<64x3xbf16>, vector<3x32xbf16>, vector<64x32xf32> -> vector<64x32xf32>
    %108 = arith.addf %100, %107 : vector<64x32xf32>
    %c0_105 = arith.constant 0 : index
    %c1_106 = arith.constant 1 : index
    %c0_107 = arith.constant 0 : index
    %c1_108 = arith.constant 1 : index
    %c0_109 = arith.constant 0 : index
    %109 = vector.load %arg1[%c0_105, %c1_106, %c0_107, %c1_108, %c0_109] : memref<1x4x9x9x3xf32, #tpu.memory_space<vmem>>, vector<1x1x8x8x3xf32>
    %110 = vector.shape_cast %109 : vector<1x1x8x8x3xf32> to vector<8x8x3xf32>
    %111 = vector.shape_cast %110 : vector<8x8x3xf32> to vector<64x3xf32>
    %c2_110 = arith.constant 2 : index
    %c0_111 = arith.constant 0 : index
    %c0_112 = arith.constant 0 : index
    %112 = vector.load %arg2[%c2_110, %c0_111, %c0_112] : memref<9x3x32xbf16, #tpu.memory_space<vmem>>, vector<1x3x32xbf16>
    %113 = vector.shape_cast %112 : vector<1x3x32xbf16> to vector<3x32xbf16>
    %114 = arith.truncf %111 : vector<64x3xf32> to vector<64x3xbf16>
    %cst_113 = arith.constant dense<0.000000e+00> : vector<64x32xf32>
    %115 = tpu.matmul %114, %113, %cst_113 {dimension_numbers = #tpu.dot_dimension_numbers<[1], [0], [0], [1], [0, 0, 1, 1], [], []>} : vector<64x3xbf16>, vector<3x32xbf16>, vector<64x32xf32> -> vector<64x32xf32>
    %116 = arith.addf %108, %115 : vector<64x32xf32>
    %c0_114 = arith.constant 0 : index
    %c3_115 = arith.constant 3 : index
    %c0_116 = arith.constant 0 : index
    %c0_117 = arith.constant 0 : index
    %c0_118 = arith.constant 0 : index
    %117 = vector.load %arg1[%c0_114, %c3_115, %c0_116, %c0_117, %c0_118] : memref<1x4x9x9x3xf32, #tpu.memory_space<vmem>>, vector<1x1x8x8x3xf32>
    %118 = vector.shape_cast %117 : vector<1x1x8x8x3xf32> to vector<8x8x3xf32>
    %119 = vector.shape_cast %118 : vector<8x8x3xf32> to vector<64x3xf32>
    %c3_119 = arith.constant 3 : index
    %c0_120 = arith.constant 0 : index
    %c0_121 = arith.constant 0 : index
    %120 = vector.load %arg2[%c3_119, %c0_120, %c0_121] : memref<9x3x32xbf16, #tpu.memory_space<vmem>>, vector<1x3x32xbf16>
    %121 = vector.shape_cast %120 : vector<1x3x32xbf16> to vector<3x32xbf16>
    %122 = arith.truncf %119 : vector<64x3xf32> to vector<64x3xbf16>
    %cst_122 = arith.constant dense<0.000000e+00> : vector<64x32xf32>
    %123 = tpu.matmul %122, %121, %cst_122 {dimension_numbers = #tpu.dot_dimension_numbers<[1], [0], [0], [1], [0, 0, 1, 1], [], []>} : vector<64x3xbf16>, vector<3x32xbf16>, vector<64x32xf32> -> vector<64x32xf32>
    %124 = arith.addf %116, %123 : vector<64x32xf32>
    %c0_123 = arith.constant 0 : index
    %c2_124 = arith.constant 2 : index
    %c0_125 = arith.constant 0 : index
    %c1_126 = arith.constant 1 : index
    %c0_127 = arith.constant 0 : index
    %125 = vector.load %arg1[%c0_123, %c2_124, %c0_125, %c1_126, %c0_127] : memref<1x4x9x9x3xf32, #tpu.memory_space<vmem>>, vector<1x1x8x8x3xf32>
    %126 = vector.shape_cast %125 : vector<1x1x8x8x3xf32> to vector<8x8x3xf32>
    %127 = vector.shape_cast %126 : vector<8x8x3xf32> to vector<64x3xf32>
    %c4_128 = arith.constant 4 : index
    %c0_129 = arith.constant 0 : index
    %c0_130 = arith.constant 0 : index
    %128 = vector.load %arg2[%c4_128, %c0_129, %c0_130] : memref<9x3x32xbf16, #tpu.memory_space<vmem>>, vector<1x3x32xbf16>
    %129 = vector.shape_cast %128 : vector<1x3x32xbf16> to vector<3x32xbf16>
    %130 = arith.truncf %127 : vector<64x3xf32> to vector<64x3xbf16>
    %cst_131 = arith.constant dense<0.000000e+00> : vector<64x32xf32>
    %131 = tpu.matmul %130, %129, %cst_131 {dimension_numbers = #tpu.dot_dimension_numbers<[1], [0], [0], [1], [0, 0, 1, 1], [], []>} : vector<64x3xbf16>, vector<3x32xbf16>, vector<64x32xf32> -> vector<64x32xf32>
    %132 = arith.addf %124, %131 : vector<64x32xf32>
    %c0_132 = arith.constant 0 : index
    %c3_133 = arith.constant 3 : index
    %c0_134 = arith.constant 0 : index
    %c1_135 = arith.constant 1 : index
    %c0_136 = arith.constant 0 : index
    %133 = vector.load %arg1[%c0_132, %c3_133, %c0_134, %c1_135, %c0_136] : memref<1x4x9x9x3xf32, #tpu.memory_space<vmem>>, vector<1x1x8x8x3xf32>
    %134 = vector.shape_cast %133 : vector<1x1x8x8x3xf32> to vector<8x8x3xf32>
    %135 = vector.shape_cast %134 : vector<8x8x3xf32> to vector<64x3xf32>
    %c5_137 = arith.constant 5 : index
    %c0_138 = arith.constant 0 : index
    %c0_139 = arith.constant 0 : index
    %136 = vector.load %arg2[%c5_137, %c0_138, %c0_139] : memref<9x3x32xbf16, #tpu.memory_space<vmem>>, vector<1x3x32xbf16>
    %137 = vector.shape_cast %136 : vector<1x3x32xbf16> to vector<3x32xbf16>
    %138 = arith.truncf %135 : vector<64x3xf32> to vector<64x3xbf16>
    %cst_140 = arith.constant dense<0.000000e+00> : vector<64x32xf32>
    %139 = tpu.matmul %138, %137, %cst_140 {dimension_numbers = #tpu.dot_dimension_numbers<[1], [0], [0], [1], [0, 0, 1, 1], [], []>} : vector<64x3xbf16>, vector<3x32xbf16>, vector<64x32xf32> -> vector<64x32xf32>
    %140 = arith.addf %132, %139 : vector<64x32xf32>
    %c0_141 = arith.constant 0 : index
    %c1_142 = arith.constant 1 : index
    %c1_143 = arith.constant 1 : index
    %c0_144 = arith.constant 0 : index
    %c0_145 = arith.constant 0 : index
    %141 = vector.load %arg1[%c0_141, %c1_142, %c1_143, %c0_144, %c0_145] : memref<1x4x9x9x3xf32, #tpu.memory_space<vmem>>, vector<1x1x8x8x3xf32>
    %142 = vector.shape_cast %141 : vector<1x1x8x8x3xf32> to vector<8x8x3xf32>
    %143 = vector.shape_cast %142 : vector<8x8x3xf32> to vector<64x3xf32>
    %c6_146 = arith.constant 6 : index
    %c0_147 = arith.constant 0 : index
    %c0_148 = arith.constant 0 : index
    %144 = vector.load %arg2[%c6_146, %c0_147, %c0_148] : memref<9x3x32xbf16, #tpu.memory_space<vmem>>, vector<1x3x32xbf16>
    %145 = vector.shape_cast %144 : vector<1x3x32xbf16> to vector<3x32xbf16>
    %146 = arith.truncf %143 : vector<64x3xf32> to vector<64x3xbf16>
    %cst_149 = arith.constant dense<0.000000e+00> : vector<64x32xf32>
    %147 = tpu.matmul %146, %145, %cst_149 {dimension_numbers = #tpu.dot_dimension_numbers<[1], [0], [0], [1], [0, 0, 1, 1], [], []>} : vector<64x3xbf16>, vector<3x32xbf16>, vector<64x32xf32> -> vector<64x32xf32>
    %148 = arith.addf %140, %147 : vector<64x32xf32>
    %c0_150 = arith.constant 0 : index
    %c0_151 = arith.constant 0 : index
    %c1_152 = arith.constant 1 : index
    %c1_153 = arith.constant 1 : index
    %c0_154 = arith.constant 0 : index
    %149 = vector.load %arg1[%c0_150, %c0_151, %c1_152, %c1_153, %c0_154] : memref<1x4x9x9x3xf32, #tpu.memory_space<vmem>>, vector<1x1x8x8x3xf32>
    %150 = vector.shape_cast %149 : vector<1x1x8x8x3xf32> to vector<8x8x3xf32>
    %151 = vector.shape_cast %150 : vector<8x8x3xf32> to vector<64x3xf32>
    %c7_155 = arith.constant 7 : index
    %c0_156 = arith.constant 0 : index
    %c0_157 = arith.constant 0 : index
    %152 = vector.load %arg2[%c7_155, %c0_156, %c0_157] : memref<9x3x32xbf16, #tpu.memory_space<vmem>>, vector<1x3x32xbf16>
    %153 = vector.shape_cast %152 : vector<1x3x32xbf16> to vector<3x32xbf16>
    %154 = arith.truncf %151 : vector<64x3xf32> to vector<64x3xbf16>
    %cst_158 = arith.constant dense<0.000000e+00> : vector<64x32xf32>
    %155 = tpu.matmul %154, %153, %cst_158 {dimension_numbers = #tpu.dot_dimension_numbers<[1], [0], [0], [1], [0, 0, 1, 1], [], []>} : vector<64x3xbf16>, vector<3x32xbf16>, vector<64x32xf32> -> vector<64x32xf32>
    %156 = arith.addf %148, %155 : vector<64x32xf32>
    %c0_159 = arith.constant 0 : index
    %c1_160 = arith.constant 1 : index
    %c1_161 = arith.constant 1 : index
    %c1_162 = arith.constant 1 : index
    %c0_163 = arith.constant 0 : index
    %157 = vector.load %arg1[%c0_159, %c1_160, %c1_161, %c1_162, %c0_163] : memref<1x4x9x9x3xf32, #tpu.memory_space<vmem>>, vector<1x1x8x8x3xf32>
    %158 = vector.shape_cast %157 : vector<1x1x8x8x3xf32> to vector<8x8x3xf32>
    %159 = vector.shape_cast %158 : vector<8x8x3xf32> to vector<64x3xf32>
    %c8_164 = arith.constant 8 : index
    %c0_165 = arith.constant 0 : index
    %c0_166 = arith.constant 0 : index
    %160 = vector.load %arg2[%c8_164, %c0_165, %c0_166] : memref<9x3x32xbf16, #tpu.memory_space<vmem>>, vector<1x3x32xbf16>
    %161 = vector.shape_cast %160 : vector<1x3x32xbf16> to vector<3x32xbf16>
    %162 = arith.truncf %159 : vector<64x3xf32> to vector<64x3xbf16>
    %cst_167 = arith.constant dense<0.000000e+00> : vector<64x32xf32>
    %163 = tpu.matmul %162, %161, %cst_167 {dimension_numbers = #tpu.dot_dimension_numbers<[1], [0], [0], [1], [0, 0, 1, 1], [], []>} : vector<64x3xbf16>, vector<3x32xbf16>, vector<64x32xf32> -> vector<64x32xf32>
    %164 = arith.addf %156, %163 : vector<64x32xf32>
    %c0_168 = arith.constant 0 : index
    %c0_169 = arith.constant 0 : index
    %165 = vector.load %arg3[%c0_168, %c0_169] : memref<1x32xf32, #tpu.memory_space<vmem>>, vector<1x32xf32>
    %166 = vector.broadcast %165 : vector<1x32xf32> to vector<64x32xf32>
    %167 = arith.addf %164, %166 : vector<64x32xf32>
    %cst_170 = arith.constant 2.000000e+01 : f32
    %168 = vector.broadcast %cst_170 : f32 to vector<64x32xf32>
    %169 = arith.minimumf %167, %168 : vector<64x32xf32>
    %170 = math.exp %169 : vector<64x32xf32>
    %cst_171 = arith.constant 2.000000e+00 : f32
    %171 = vector.broadcast %cst_171 : f32 to vector<64x32xf32>
    %172 = arith.addf %170, %171 : vector<64x32xf32>
    %173 = arith.mulf %170, %172 : vector<64x32xf32>
    %174 = arith.mulf %167, %173 : vector<64x32xf32>
    %cst_172 = arith.constant 2.000000e+00 : f32
    %175 = vector.broadcast %cst_172 : f32 to vector<64x32xf32>
    %176 = arith.addf %173, %175 : vector<64x32xf32>
    %177 = arith.divf %174, %176 : vector<64x32xf32>
    %178 = vector.shape_cast %177 : vector<64x32xf32> to vector<8x8x32xf32>
    %c2_173 = arith.constant 2 : index
    %c0_174 = arith.constant 0 : index
    %c1_175 = arith.constant 1 : index
    %c0_176 = arith.constant 0 : index
    %179 = vector.load %arg20[%c2_173, %c0_174, %c1_175, %c0_176] : memref<4x9x9x32xf32, #tpu.memory_space<vmem>>, vector<1x8x8x32xf32>
    %180 = vector.shape_cast %179 : vector<1x8x8x32xf32> to vector<8x8x32xf32>
    %181 = vector.shape_cast %178 : vector<8x8x32xf32> to vector<1x8x8x32xf32>
    tpu.vector_store %arg20[%c2_173, %c0_174, %c1_175, %c0_176], %181 {strides = array<i32>} : memref<4x9x9x32xf32, #tpu.memory_space<vmem>>, vector<1x8x8x32xf32>,
    %cst_177 = arith.constant 0.000000e+00 : f32
    %182 = vector.broadcast %cst_177 : f32 to vector<64x32xf32>
    %c0_178 = arith.constant 0 : index
    %c2_179 = arith.constant 2 : index
    %c0_180 = arith.constant 0 : index
    %c0_181 = arith.constant 0 : index
    %c0_182 = arith.constant 0 : index
    %183 = vector.load %arg1[%c0_178, %c2_179, %c0_180, %c0_181, %c0_182] : memref<1x4x9x9x3xf32, #tpu.memory_space<vmem>>, vector<1x1x8x8x3xf32>
    %184 = vector.shape_cast %183 : vector<1x1x8x8x3xf32> to vector<8x8x3xf32>
    %185 = vector.shape_cast %184 : vector<8x8x3xf32> to vector<64x3xf32>
    %c0_183 = arith.constant 0 : index
    %c0_184 = arith.constant 0 : index
    %c0_185 = arith.constant 0 : index
    %186 = vector.load %arg2[%c0_183, %c0_184, %c0_185] : memref<9x3x32xbf16, #tpu.memory_space<vmem>>, vector<1x3x32xbf16>
    %187 = vector.shape_cast %186 : vector<1x3x32xbf16> to vector<3x32xbf16>
    %188 = arith.truncf %185 : vector<64x3xf32> to vector<64x3xbf16>
    %cst_186 = arith.constant dense<0.000000e+00> : vector<64x32xf32>
    %189 = tpu.matmul %188, %187, %cst_186 {dimension_numbers = #tpu.dot_dimension_numbers<[1], [0], [0], [1], [0, 0, 1, 1], [], []>} : vector<64x3xbf16>, vector<3x32xbf16>, vector<64x32xf32> -> vector<64x32xf32>
    %190 = arith.addf %182, %189 : vector<64x32xf32>
    %c0_187 = arith.constant 0 : index
    %c3_188 = arith.constant 3 : index
    %c0_189 = arith.constant 0 : index
    %c0_190 = arith.constant 0 : index
    %c0_191 = arith.constant 0 : index
    %191 = vector.load %arg1[%c0_187, %c3_188, %c0_189, %c0_190, %c0_191] : memref<1x4x9x9x3xf32, #tpu.memory_space<vmem>>, vector<1x1x8x8x3xf32>
    %192 = vector.shape_cast %191 : vector<1x1x8x8x3xf32> to vector<8x8x3xf32>
    %193 = vector.shape_cast %192 : vector<8x8x3xf32> to vector<64x3xf32>
    %c1_192 = arith.constant 1 : index
    %c0_193 = arith.constant 0 : index
    %c0_194 = arith.constant 0 : index
    %194 = vector.load %arg2[%c1_192, %c0_193, %c0_194] : memref<9x3x32xbf16, #tpu.memory_space<vmem>>, vector<1x3x32xbf16>
    %195 = vector.shape_cast %194 : vector<1x3x32xbf16> to vector<3x32xbf16>
    %196 = arith.truncf %193 : vector<64x3xf32> to vector<64x3xbf16>
    %cst_195 = arith.constant dense<0.000000e+00> : vector<64x32xf32>
    %197 = tpu.matmul %196, %195, %cst_195 {dimension_numbers = #tpu.dot_dimension_numbers<[1], [0], [0], [1], [0, 0, 1, 1], [], []>} : vector<64x3xbf16>, vector<3x32xbf16>, vector<64x32xf32> -> vector<64x32xf32>
    %198 = arith.addf %190, %197 : vector<64x32xf32>
    %c0_196 = arith.constant 0 : index
    %c2_197 = arith.constant 2 : index
    %c0_198 = arith.constant 0 : index
    %c1_199 = arith.constant 1 : index
    %c0_200 = arith.constant 0 : index
    %199 = vector.load %arg1[%c0_196, %c2_197, %c0_198, %c1_199, %c0_200] : memref<1x4x9x9x3xf32, #tpu.memory_space<vmem>>, vector<1x1x8x8x3xf32>
    %200 = vector.shape_cast %199 : vector<1x1x8x8x3xf32> to vector<8x8x3xf32>
    %201 = vector.shape_cast %200 : vector<8x8x3xf32> to vector<64x3xf32>
    %c2_201 = arith.constant 2 : index
    %c0_202 = arith.constant 0 : index
    %c0_203 = arith.constant 0 : index
    %202 = vector.load %arg2[%c2_201, %c0_202, %c0_203] : memref<9x3x32xbf16, #tpu.memory_space<vmem>>, vector<1x3x32xbf16>
    %203 = vector.shape_cast %202 : vector<1x3x32xbf16> to vector<3x32xbf16>
    %204 = arith.truncf %201 : vector<64x3xf32> to vector<64x3xbf16>
    %cst_204 = arith.constant dense<0.000000e+00> : vector<64x32xf32>
    %205 = tpu.matmul %204, %203, %cst_204 {dimension_numbers = #tpu.dot_dimension_numbers<[1], [0], [0], [1], [0, 0, 1, 1], [], []>} : vector<64x3xbf16>, vector<3x32xbf16>, vector<64x32xf32> -> vector<64x32xf32>
    %206 = arith.addf %198, %205 : vector<64x32xf32>
    %c0_205 = arith.constant 0 : index
    %c0_206 = arith.constant 0 : index
    %c1_207 = arith.constant 1 : index
    %c0_208 = arith.constant 0 : index
    %c0_209 = arith.constant 0 : index
    %207 = vector.load %arg1[%c0_205, %c0_206, %c1_207, %c0_208, %c0_209] : memref<1x4x9x9x3xf32, #tpu.memory_space<vmem>>, vector<1x1x8x8x3xf32>
    %208 = vector.shape_cast %207 : vector<1x1x8x8x3xf32> to vector<8x8x3xf32>
    %209 = vector.shape_cast %208 : vector<8x8x3xf32> to vector<64x3xf32>
    %c3_210 = arith.constant 3 : index
    %c0_211 = arith.constant 0 : index
    %c0_212 = arith.constant 0 : index
    %210 = vector.load %arg2[%c3_210, %c0_211, %c0_212] : memref<9x3x32xbf16, #tpu.memory_space<vmem>>, vector<1x3x32xbf16>
    %211 = vector.shape_cast %210 : vector<1x3x32xbf16> to vector<3x32xbf16>
    %212 = arith.truncf %209 : vector<64x3xf32> to vector<64x3xbf16>
    %cst_213 = arith.constant dense<0.000000e+00> : vector<64x32xf32>
    %213 = tpu.matmul %212, %211, %cst_213 {dimension_numbers = #tpu.dot_dimension_numbers<[1], [0], [0], [1], [0, 0, 1, 1], [], []>} : vector<64x3xbf16>, vector<3x32xbf16>, vector<64x32xf32> -> vector<64x32xf32>
    %214 = arith.addf %206, %213 : vector<64x32xf32>
    %c0_214 = arith.constant 0 : index
    %c1_215 = arith.constant 1 : index
    %c1_216 = arith.constant 1 : index
    %c0_217 = arith.constant 0 : index
    %c0_218 = arith.constant 0 : index
    %215 = vector.load %arg1[%c0_214, %c1_215, %c1_216, %c0_217, %c0_218] : memref<1x4x9x9x3xf32, #tpu.memory_space<vmem>>, vector<1x1x8x8x3xf32>
    %216 = vector.shape_cast %215 : vector<1x1x8x8x3xf32> to vector<8x8x3xf32>
    %217 = vector.shape_cast %216 : vector<8x8x3xf32> to vector<64x3xf32>
    %c4_219 = arith.constant 4 : index
    %c0_220 = arith.constant 0 : index
    %c0_221 = arith.constant 0 : index
    %218 = vector.load %arg2[%c4_219, %c0_220, %c0_221] : memref<9x3x32xbf16, #tpu.memory_space<vmem>>, vector<1x3x32xbf16>
    %219 = vector.shape_cast %218 : vector<1x3x32xbf16> to vector<3x32xbf16>
    %220 = arith.truncf %217 : vector<64x3xf32> to vector<64x3xbf16>
    %cst_222 = arith.constant dense<0.000000e+00> : vector<64x32xf32>
    %221 = tpu.matmul %220, %219, %cst_222 {dimension_numbers = #tpu.dot_dimension_numbers<[1], [0], [0], [1], [0, 0, 1, 1], [], []>} : vector<64x3xbf16>, vector<3x32xbf16>, vector<64x32xf32> -> vector<64x32xf32>
    %222 = arith.addf %214, %221 : vector<64x32xf32>
    %c0_223 = arith.constant 0 : index
    %c0_224 = arith.constant 0 : index
    %c1_225 = arith.constant 1 : index
    %c1_226 = arith.constant 1 : index
    %c0_227 = arith.constant 0 : index
    %223 = vector.load %arg1[%c0_223, %c0_224, %c1_225, %c1_226, %c0_227] : memref<1x4x9x9x3xf32, #tpu.memory_space<vmem>>, vector<1x1x8x8x3xf32>
    %224 = vector.shape_cast %223 : vector<1x1x8x8x3xf32> to vector<8x8x3xf32>
    %225 = vector.shape_cast %224 : vector<8x8x3xf32> to vector<64x3xf32>
    %c5_228 = arith.constant 5 : index
    %c0_229 = arith.constant 0 : index
    %c0_230 = arith.constant 0 : index
    %226 = vector.load %arg2[%c5_228, %c0_229, %c0_230] : memref<9x3x32xbf16, #tpu.memory_space<vmem>>, vector<1x3x32xbf16>
    %227 = vector.shape_cast %226 : vector<1x3x32xbf16> to vector<3x32xbf16>
    %228 = arith.truncf %225 : vector<64x3xf32> to vector<64x3xbf16>
    %cst_231 = arith.constant dense<0.000000e+00> : vector<64x32xf32>
    %229 = tpu.matmul %228, %227, %cst_231 {dimension_numbers = #tpu.dot_dimension_numbers<[1], [0], [0], [1], [0, 0, 1, 1], [], []>} : vector<64x3xbf16>, vector<3x32xbf16>, vector<64x32xf32> -> vector<64x32xf32>
    %230 = arith.addf %222, %229 : vector<64x32xf32>
    %c0_232 = arith.constant 0 : index
    %c2_233 = arith.constant 2 : index
    %c1_234 = arith.constant 1 : index
    %c0_235 = arith.constant 0 : index
    %c0_236 = arith.constant 0 : index
    %231 = vector.load %arg1[%c0_232, %c2_233, %c1_234, %c0_235, %c0_236] : memref<1x4x9x9x3xf32, #tpu.memory_space<vmem>>, vector<1x1x8x8x3xf32>
    %232 = vector.shape_cast %231 : vector<1x1x8x8x3xf32> to vector<8x8x3xf32>
    %233 = vector.shape_cast %232 : vector<8x8x3xf32> to vector<64x3xf32>
    %c6_237 = arith.constant 6 : index
    %c0_238 = arith.constant 0 : index
    %c0_239 = arith.constant 0 : index
    %234 = vector.load %arg2[%c6_237, %c0_238, %c0_239] : memref<9x3x32xbf16, #tpu.memory_space<vmem>>, vector<1x3x32xbf16>
    %235 = vector.shape_cast %234 : vector<1x3x32xbf16> to vector<3x32xbf16>
    %236 = arith.truncf %233 : vector<64x3xf32> to vector<64x3xbf16>
    %cst_240 = arith.constant dense<0.000000e+00> : vector<64x32xf32>
    %237 = tpu.matmul %236, %235, %cst_240 {dimension_numbers = #tpu.dot_dimension_numbers<[1], [0], [0], [1], [0, 0, 1, 1], [], []>} : vector<64x3xbf16>, vector<3x32xbf16>, vector<64x32xf32> -> vector<64x32xf32>
    %238 = arith.addf %230, %237 : vector<64x32xf32>
    %c0_241 = arith.constant 0 : index
    %c3_242 = arith.constant 3 : index
    %c1_243 = arith.constant 1 : index
    %c0_244 = arith.constant 0 : index
    %c0_245 = arith.constant 0 : index
    %239 = vector.load %arg1[%c0_241, %c3_242, %c1_243, %c0_244, %c0_245] : memref<1x4x9x9x3xf32, #tpu.memory_space<vmem>>, vector<1x1x8x8x3xf32>
    %240 = vector.shape_cast %239 : vector<1x1x8x8x3xf32> to vector<8x8x3xf32>
    %241 = vector.shape_cast %240 : vector<8x8x3xf32> to vector<64x3xf32>
    %c7_246 = arith.constant 7 : index
    %c0_247 = arith.constant 0 : index
    %c0_248 = arith.constant 0 : index
    %242 = vector.load %arg2[%c7_246, %c0_247, %c0_248] : memref<9x3x32xbf16, #tpu.memory_space<vmem>>, vector<1x3x32xbf16>
    %243 = vector.shape_cast %242 : vector<1x3x32xbf16> to vector<3x32xbf16>
    %244 = arith.truncf %241 : vector<64x3xf32> to vector<64x3xbf16>
    %cst_249 = arith.constant dense<0.000000e+00> : vector<64x32xf32>
    %245 = tpu.matmul %244, %243, %cst_249 {dimension_numbers = #tpu.dot_dimension_numbers<[1], [0], [0], [1], [0, 0, 1, 1], [], []>} : vector<64x3xbf16>, vector<3x32xbf16>, vector<64x32xf32> -> vector<64x32xf32>
    %246 = arith.addf %238, %245 : vector<64x32xf32>
    %c0_250 = arith.constant 0 : index
    %c2_251 = arith.constant 2 : index
    %c1_252 = arith.constant 1 : index
    %c1_253 = arith.constant 1 : index
    %c0_254 = arith.constant 0 : index
    %247 = vector.load %arg1[%c0_250, %c2_251, %c1_252, %c1_253, %c0_254] : memref<1x4x9x9x3xf32, #tpu.memory_space<vmem>>, vector<1x1x8x8x3xf32>
    %248 = vector.shape_cast %247 : vector<1x1x8x8x3xf32> to vector<8x8x3xf32>
    %249 = vector.shape_cast %248 : vector<8x8x3xf32> to vector<64x3xf32>
    %c8_255 = arith.constant 8 : index
    %c0_256 = arith.constant 0 : index
    %c0_257 = arith.constant 0 : index
    %250 = vector.load %arg2[%c8_255, %c0_256, %c0_257] : memref<9x3x32xbf16, #tpu.memory_space<vmem>>, vector<1x3x32xbf16>
    %251 = vector.shape_cast %250 : vector<1x3x32xbf16> to vector<3x32xbf16>
    %252 = arith.truncf %249 : vector<64x3xf32> to vector<64x3xbf16>
    %cst_258 = arith.constant dense<0.000000e+00> : vector<64x32xf32>
    %253 = tpu.matmul %252, %251, %cst_258 {dimension_numbers = #tpu.dot_dimension_numbers<[1], [0], [0], [1], [0, 0, 1, 1], [], []>} : vector<64x3xbf16>, vector<3x32xbf16>, vector<64x32xf32> -> vector<64x32xf32>
    %254 = arith.addf %246, %253 : vector<64x32xf32>
    %c0_259 = arith.constant 0 : index
    %c0_260 = arith.constant 0 : index
    %255 = vector.load %arg3[%c0_259, %c0_260] : memref<1x32xf32, #tpu.memory_space<vmem>>, vector<1x32xf32>
    %256 = vector.broadcast %255 : vector<1x32xf32> to vector<64x32xf32>
    %257 = arith.addf %254, %256 : vector<64x32xf32>
    %cst_261 = arith.constant 2.000000e+01 : f32
    %258 = vector.broadcast %cst_261 : f32 to vector<64x32xf32>
    %259 = arith.minimumf %257, %258 : vector<64x32xf32>
    %260 = math.exp %259 : vector<64x32xf32>
    %cst_262 = arith.constant 2.000000e+00 : f32
    %261 = vector.broadcast %cst_262 : f32 to vector<64x32xf32>
    %262 = arith.addf %260, %261 : vector<64x32xf32>
    %263 = arith.mulf %260, %262 : vector<64x32xf32>
    %264 = arith.mulf %257, %263 : vector<64x32xf32>
    %cst_263 = arith.constant 2.000000e+00 : f32
    %265 = vector.broadcast %cst_263 : f32 to vector<64x32xf32>
    %266 = arith.addf %263, %265 : vector<64x32xf32>
    %267 = arith.divf %264, %266 : vector<64x32xf32>
    %268 = vector.shape_cast %267 : vector<64x32xf32> to vector<8x8x32xf32>
    %c1_264 = arith.constant 1 : index
    %c1_265 = arith.constant 1 : index
    %c0_266 = arith.constant 0 : index
    %c0_267 = arith.constant 0 : index
    %269 = vector.load %arg20[%c1_264, %c1_265, %c0_266, %c0_267] : memref<4x9x9x32xf32, #tpu.memory_space<vmem>>, vector<1x8x8x32xf32>
    %270 = vector.shape_cast %269 : vector<1x8x8x32xf32> to vector<8x8x32xf32>
    %271 = vector.shape_cast %268 : vector<8x8x32xf32> to vector<1x8x8x32xf32>
    tpu.vector_store %arg20[%c1_264, %c1_265, %c0_266, %c0_267], %271 {strides = array<i32>} : memref<4x9x9x32xf32, #tpu.memory_space<vmem>>, vector<1x8x8x32xf32>,
    %cst_268 = arith.constant 0.000000e+00 : f32
    %272 = vector.broadcast %cst_268 : f32 to vector<64x32xf32>
    %c0_269 = arith.constant 0 : index
    %c3_270 = arith.constant 3 : index
    %c0_271 = arith.constant 0 : index
    %c0_272 = arith.constant 0 : index
    %c0_273 = arith.constant 0 : index
    %273 = vector.load %arg1[%c0_269, %c3_270, %c0_271, %c0_272, %c0_273] : memref<1x4x9x9x3xf32, #tpu.memory_space<vmem>>, vector<1x1x8x8x3xf32>
    %274 = vector.shape_cast %273 : vector<1x1x8x8x3xf32> to vector<8x8x3xf32>
    %275 = vector.shape_cast %274 : vector<8x8x3xf32> to vector<64x3xf32>
    %c0_274 = arith.constant 0 : index
    %c0_275 = arith.constant 0 : index
    %c0_276 = arith.constant 0 : index
    %276 = vector.load %arg2[%c0_274, %c0_275, %c0_276] : memref<9x3x32xbf16, #tpu.memory_space<vmem>>, vector<1x3x32xbf16>
    %277 = vector.shape_cast %276 : vector<1x3x32xbf16> to vector<3x32xbf16>
    %278 = arith.truncf %275 : vector<64x3xf32> to vector<64x3xbf16>
    %cst_277 = arith.constant dense<0.000000e+00> : vector<64x32xf32>
    %279 = tpu.matmul %278, %277, %cst_277 {dimension_numbers = #tpu.dot_dimension_numbers<[1], [0], [0], [1], [0, 0, 1, 1], [], []>} : vector<64x3xbf16>, vector<3x32xbf16>, vector<64x32xf32> -> vector<64x32xf32>
    %280 = arith.addf %272, %279 : vector<64x32xf32>
    %c0_278 = arith.constant 0 : index
    %c2_279 = arith.constant 2 : index
    %c0_280 = arith.constant 0 : index
    %c1_281 = arith.constant 1 : index
    %c0_282 = arith.constant 0 : index
    %281 = vector.load %arg1[%c0_278, %c2_279, %c0_280, %c1_281, %c0_282] : memref<1x4x9x9x3xf32, #tpu.memory_space<vmem>>, vector<1x1x8x8x3xf32>
    %282 = vector.shape_cast %281 : vector<1x1x8x8x3xf32> to vector<8x8x3xf32>
    %283 = vector.shape_cast %282 : vector<8x8x3xf32> to vector<64x3xf32>
    %c1_283 = arith.constant 1 : index
    %c0_284 = arith.constant 0 : index
    %c0_285 = arith.constant 0 : index
    %284 = vector.load %arg2[%c1_283, %c0_284, %c0_285] : memref<9x3x32xbf16, #tpu.memory_space<vmem>>, vector<1x3x32xbf16>
    %285 = vector.shape_cast %284 : vector<1x3x32xbf16> to vector<3x32xbf16>
    %286 = arith.truncf %283 : vector<64x3xf32> to vector<64x3xbf16>
    %cst_286 = arith.constant dense<0.000000e+00> : vector<64x32xf32>
    %287 = tpu.matmul %286, %285, %cst_286 {dimension_numbers = #tpu.dot_dimension_numbers<[1], [0], [0], [1], [0, 0, 1, 1], [], []>} : vector<64x3xbf16>, vector<3x32xbf16>, vector<64x32xf32> -> vector<64x32xf32>
    %288 = arith.addf %280, %287 : vector<64x32xf32>
    %c0_287 = arith.constant 0 : index
    %c3_288 = arith.constant 3 : index
    %c0_289 = arith.constant 0 : index
    %c1_290 = arith.constant 1 : index
    %c0_291 = arith.constant 0 : index
    %289 = vector.load %arg1[%c0_287, %c3_288, %c0_289, %c1_290, %c0_291] : memref<1x4x9x9x3xf32, #tpu.memory_space<vmem>>, vector<1x1x8x8x3xf32>
    %290 = vector.shape_cast %289 : vector<1x1x8x8x3xf32> to vector<8x8x3xf32>
    %291 = vector.shape_cast %290 : vector<8x8x3xf32> to vector<64x3xf32>
    %c2_292 = arith.constant 2 : index
    %c0_293 = arith.constant 0 : index
    %c0_294 = arith.constant 0 : index
    %292 = vector.load %arg2[%c2_292, %c0_293, %c0_294] : memref<9x3x32xbf16, #tpu.memory_space<vmem>>, vector<1x3x32xbf16>
    %293 = vector.shape_cast %292 : vector<1x3x32xbf16> to vector<3x32xbf16>
    %294 = arith.truncf %291 : vector<64x3xf32> to vector<64x3xbf16>
    %cst_295 = arith.constant dense<0.000000e+00> : vector<64x32xf32>
    %295 = tpu.matmul %294, %293, %cst_295 {dimension_numbers = #tpu.dot_dimension_numbers<[1], [0], [0], [1], [0, 0, 1, 1], [], []>} : vector<64x3xbf16>, vector<3x32xbf16>, vector<64x32xf32> -> vector<64x32xf32>
    %296 = arith.addf %288, %295 : vector<64x32xf32>
    %c0_296 = arith.constant 0 : index
    %c1_297 = arith.constant 1 : index
    %c1_298 = arith.constant 1 : index
    %c0_299 = arith.constant 0 : index
    %c0_300 = arith.constant 0 : index
    %297 = vector.load %arg1[%c0_296, %c1_297, %c1_298, %c0_299, %c0_300] : memref<1x4x9x9x3xf32, #tpu.memory_space<vmem>>, vector<1x1x8x8x3xf32>
    %298 = vector.shape_cast %297 : vector<1x1x8x8x3xf32> to vector<8x8x3xf32>
    %299 = vector.shape_cast %298 : vector<8x8x3xf32> to vector<64x3xf32>
    %c3_301 = arith.constant 3 : index
    %c0_302 = arith.constant 0 : index
    %c0_303 = arith.constant 0 : index
    %300 = vector.load %arg2[%c3_301, %c0_302, %c0_303] : memref<9x3x32xbf16, #tpu.memory_space<vmem>>, vector<1x3x32xbf16>
    %301 = vector.shape_cast %300 : vector<1x3x32xbf16> to vector<3x32xbf16>
    %302 = arith.truncf %299 : vector<64x3xf32> to vector<64x3xbf16>
    %cst_304 = arith.constant dense<0.000000e+00> : vector<64x32xf32>
    %303 = tpu.matmul %302, %301, %cst_304 {dimension_numbers = #tpu.dot_dimension_numbers<[1], [0], [0], [1], [0, 0, 1, 1], [], []>} : vector<64x3xbf16>, vector<3x32xbf16>, vector<64x32xf32> -> vector<64x32xf32>
    %304 = arith.addf %296, %303 : vector<64x32xf32>
    %c0_305 = arith.constant 0 : index
    %c0_306 = arith.constant 0 : index
    %c1_307 = arith.constant 1 : index
    %c1_308 = arith.constant 1 : index
    %c0_309 = arith.constant 0 : index
    %305 = vector.load %arg1[%c0_305, %c0_306, %c1_307, %c1_308, %c0_309] : memref<1x4x9x9x3xf32, #tpu.memory_space<vmem>>, vector<1x1x8x8x3xf32>
    %306 = vector.shape_cast %305 : vector<1x1x8x8x3xf32> to vector<8x8x3xf32>
    %307 = vector.shape_cast %306 : vector<8x8x3xf32> to vector<64x3xf32>
    %c4_310 = arith.constant 4 : index
    %c0_311 = arith.constant 0 : index
    %c0_312 = arith.constant 0 : index
    %308 = vector.load %arg2[%c4_310, %c0_311, %c0_312] : memref<9x3x32xbf16, #tpu.memory_space<vmem>>, vector<1x3x32xbf16>
    %309 = vector.shape_cast %308 : vector<1x3x32xbf16> to vector<3x32xbf16>
    %310 = arith.truncf %307 : vector<64x3xf32> to vector<64x3xbf16>
    %cst_313 = arith.constant dense<0.000000e+00> : vector<64x32xf32>
    %311 = tpu.matmul %310, %309, %cst_313 {dimension_numbers = #tpu.dot_dimension_numbers<[1], [0], [0], [1], [0, 0, 1, 1], [], []>} : vector<64x3xbf16>, vector<3x32xbf16>, vector<64x32xf32> -> vector<64x32xf32>
    %312 = arith.addf %304, %311 : vector<64x32xf32>
    %c0_314 = arith.constant 0 : index
    %c1_315 = arith.constant 1 : index
    %c1_316 = arith.constant 1 : index
    %c1_317 = arith.constant 1 : index
    %c0_318 = arith.constant 0 : index
    %313 = vector.load %arg1[%c0_314, %c1_315, %c1_316, %c1_317, %c0_318] : memref<1x4x9x9x3xf32, #tpu.memory_space<vmem>>, vector<1x1x8x8x3xf32>
    %314 = vector.shape_cast %313 : vector<1x1x8x8x3xf32> to vector<8x8x3xf32>
    %315 = vector.shape_cast %314 : vector<8x8x3xf32> to vector<64x3xf32>
    %c5_319 = arith.constant 5 : index
    %c0_320 = arith.constant 0 : index
    %c0_321 = arith.constant 0 : index
    %316 = vector.load %arg2[%c5_319, %c0_320, %c0_321] : memref<9x3x32xbf16, #tpu.memory_space<vmem>>, vector<1x3x32xbf16>
    %317 = vector.shape_cast %316 : vector<1x3x32xbf16> to vector<3x32xbf16>
    %318 = arith.truncf %315 : vector<64x3xf32> to vector<64x3xbf16>
    %cst_322 = arith.constant dense<0.000000e+00> : vector<64x32xf32>
    %319 = tpu.matmul %318, %317, %cst_322 {dimension_numbers = #tpu.dot_dimension_numbers<[1], [0], [0], [1], [0, 0, 1, 1], [], []>} : vector<64x3xbf16>, vector<3x32xbf16>, vector<64x32xf32> -> vector<64x32xf32>
    %320 = arith.addf %312, %319 : vector<64x32xf32>
    %c0_323 = arith.constant 0 : index
    %c3_324 = arith.constant 3 : index
    %c1_325 = arith.constant 1 : index
    %c0_326 = arith.constant 0 : index
    %c0_327 = arith.constant 0 : index
    %321 = vector.load %arg1[%c0_323, %c3_324, %c1_325, %c0_326, %c0_327] : memref<1x4x9x9x3xf32, #tpu.memory_space<vmem>>, vector<1x1x8x8x3xf32>
    %322 = vector.shape_cast %321 : vector<1x1x8x8x3xf32> to vector<8x8x3xf32>
    %323 = vector.shape_cast %322 : vector<8x8x3xf32> to vector<64x3xf32>
    %c6_328 = arith.constant 6 : index
    %c0_329 = arith.constant 0 : index
    %c0_330 = arith.constant 0 : index
    %324 = vector.load %arg2[%c6_328, %c0_329, %c0_330] : memref<9x3x32xbf16, #tpu.memory_space<vmem>>, vector<1x3x32xbf16>
    %325 = vector.shape_cast %324 : vector<1x3x32xbf16> to vector<3x32xbf16>
    %326 = arith.truncf %323 : vector<64x3xf32> to vector<64x3xbf16>
    %cst_331 = arith.constant dense<0.000000e+00> : vector<64x32xf32>
    %327 = tpu.matmul %326, %325, %cst_331 {dimension_numbers = #tpu.dot_dimension_numbers<[1], [0], [0], [1], [0, 0, 1, 1], [], []>} : vector<64x3xbf16>, vector<3x32xbf16>, vector<64x32xf32> -> vector<64x32xf32>
    %328 = arith.addf %320, %327 : vector<64x32xf32>
    %c0_332 = arith.constant 0 : index
    %c2_333 = arith.constant 2 : index
    %c1_334 = arith.constant 1 : index
    %c1_335 = arith.constant 1 : index
    %c0_336 = arith.constant 0 : index
    %329 = vector.load %arg1[%c0_332, %c2_333, %c1_334, %c1_335, %c0_336] : memref<1x4x9x9x3xf32, #tpu.memory_space<vmem>>, vector<1x1x8x8x3xf32>
    %330 = vector.shape_cast %329 : vector<1x1x8x8x3xf32> to vector<8x8x3xf32>
    %331 = vector.shape_cast %330 : vector<8x8x3xf32> to vector<64x3xf32>
    %c7_337 = arith.constant 7 : index
    %c0_338 = arith.constant 0 : index
    %c0_339 = arith.constant 0 : index
    %332 = vector.load %arg2[%c7_337, %c0_338, %c0_339] : memref<9x3x32xbf16, #tpu.memory_space<vmem>>, vector<1x3x32xbf16>
    %333 = vector.shape_cast %332 : vector<1x3x32xbf16> to vector<3x32xbf16>
    %334 = arith.truncf %331 : vector<64x3xf32> to vector<64x3xbf16>
    %cst_340 = arith.constant dense<0.000000e+00> : vector<64x32xf32>
    %335 = tpu.matmul %334, %333, %cst_340 {dimension_numbers = #tpu.dot_dimension_numbers<[1], [0], [0], [1], [0, 0, 1, 1], [], []>} : vector<64x3xbf16>, vector<3x32xbf16>, vector<64x32xf32> -> vector<64x32xf32>
    %336 = arith.addf %328, %335 : vector<64x32xf32>
    %c0_341 = arith.constant 0 : index
    %c3_342 = arith.constant 3 : index
    %c1_343 = arith.constant 1 : index
    %c1_344 = arith.constant 1 : index
    %c0_345 = arith.constant 0 : index
    %337 = vector.load %arg1[%c0_341, %c3_342, %c1_343, %c1_344, %c0_345] : memref<1x4x9x9x3xf32, #tpu.memory_space<vmem>>, vector<1x1x8x8x3xf32>
    %338 = vector.shape_cast %337 : vector<1x1x8x8x3xf32> to vector<8x8x3xf32>
    %339 = vector.shape_cast %338 : vector<8x8x3xf32> to vector<64x3xf32>
    %c8_346 = arith.constant 8 : index
    %c0_347 = arith.constant 0 : index
    %c0_348 = arith.constant 0 : index
    %340 = vector.load %arg2[%c8_346, %c0_347, %c0_348] : memref<9x3x32xbf16, #tpu.memory_space<vmem>>, vector<1x3x32xbf16>
    %341 = vector.shape_cast %340 : vector<1x3x32xbf16> to vector<3x32xbf16>
    %342 = arith.truncf %339 : vector<64x3xf32> to vector<64x3xbf16>
    %cst_349 = arith.constant dense<0.000000e+00> : vector<64x32xf32>
    %343 = tpu.matmul %342, %341, %cst_349 {dimension_numbers = #tpu.dot_dimension_numbers<[1], [0], [0], [1], [0, 0, 1, 1], [], []>} : vector<64x3xbf16>, vector<3x32xbf16>, vector<64x32xf32> -> vector<64x32xf32>
    %344 = arith.addf %336, %343 : vector<64x32xf32>
    %c0_350 = arith.constant 0 : index
    %c0_351 = arith.constant 0 : index
    %345 = vector.load %arg3[%c0_350, %c0_351] : memref<1x32xf32, #tpu.memory_space<vmem>>, vector<1x32xf32>
    %346 = vector.broadcast %345 : vector<1x32xf32> to vector<64x32xf32>
    %347 = arith.addf %344, %346 : vector<64x32xf32>
    %cst_352 = arith.constant 2.000000e+01 : f32
    %348 = vector.broadcast %cst_352 : f32 to vector<64x32xf32>
    %349 = arith.minimumf %347, %348 : vector<64x32xf32>
    %350 = math.exp %349 : vector<64x32xf32>
    %cst_353 = arith.constant 2.000000e+00 : f32
    %351 = vector.broadcast %cst_353 : f32 to vector<64x32xf32>
    %352 = arith.addf %350, %351 : vector<64x32xf32>
    %353 = arith.mulf %350, %352 : vector<64x32xf32>
    %354 = arith.mulf %347, %353 : vector<64x32xf32>
    %cst_354 = arith.constant 2.000000e+00 : f32
    %355 = vector.broadcast %cst_354 : f32 to vector<64x32xf32>
    %356 = arith.addf %353, %355 : vector<64x32xf32>
    %357 = arith.divf %354, %356 : vector<64x32xf32>
    %358 = vector.shape_cast %357 : vector<64x32xf32> to vector<8x8x32xf32>
    %c0_355 = arith.constant 0 : index
    %c1_356 = arith.constant 1 : index
    %c1_357 = arith.constant 1 : index
    %c0_358 = arith.constant 0 : index
    %359 = vector.load %arg20[%c0_355, %c1_356, %c1_357, %c0_358] : memref<4x9x9x32xf32, #tpu.memory_space<vmem>>, vector<1x8x8x32xf32>
    %360 = vector.shape_cast %359 : vector<1x8x8x32xf32> to vector<8x8x32xf32>
    %361 = vector.shape_cast %358 : vector<8x8x32xf32> to vector<1x8x8x32xf32>
    tpu.vector_store %arg20[%c0_355, %c1_356, %c1_357, %c0_358], %361 {strides = array<i32>} : memref<4x9x9x32xf32, #tpu.memory_space<vmem>>, vector<1x8x8x32xf32>,
    %cst_359 = arith.constant 0.000000e+00 : f32
    %362 = vector.broadcast %cst_359 : f32 to vector<64x64xf32>
    %c0_360 = arith.constant 0 : index
    %c0_361 = arith.constant 0 : index
    %c0_362 = arith.constant 0 : index
    %c0_363 = arith.constant 0 : index
    %363 = vector.load %arg20[%c0_360, %c0_361, %c0_362, %c0_363] : memref<4x9x9x32xf32, #tpu.memory_space<vmem>>, vector<1x8x8x32xf32>
    %364 = vector.shape_cast %363 : vector<1x8x8x32xf32> to vector<8x8x32xf32>
    %365 = vector.shape_cast %364 : vector<8x8x32xf32> to vector<64x32xf32>
    %c0_364 = arith.constant 0 : index
    %c0_365 = arith.constant 0 : index
    %c0_366 = arith.constant 0 : index
    %366 = vector.load %arg4[%c0_364, %c0_365, %c0_366] : memref<9x32x64xbf16, #tpu.memory_space<vmem>>, vector<1x32x64xbf16>
    %367 = vector.shape_cast %366 : vector<1x32x64xbf16> to vector<32x64xbf16>
    %368 = arith.truncf %365 : vector<64x32xf32> to vector<64x32xbf16>
    %cst_367 = arith.constant dense<0.000000e+00> : vector<64x64xf32>
    %369 = tpu.matmul %368, %367, %cst_367 {dimension_numbers = #tpu.dot_dimension_numbers<[1], [0], [0], [1], [0, 0, 1, 1], [], []>} : vector<64x32xbf16>, vector<32x64xbf16>, vector<64x64xf32> -> vector<64x64xf32>
    %370 = arith.addf %362, %369 : vector<64x64xf32>
    %c1_368 = arith.constant 1 : index
    %c0_369 = arith.constant 0 : index
    %c0_370 = arith.constant 0 : index
    %c0_371 = arith.constant 0 : index
    %371 = vector.load %arg20[%c1_368, %c0_369, %c0_370, %c0_371] : memref<4x9x9x32xf32, #tpu.memory_space<vmem>>, vector<1x8x8x32xf32>
    %372 = vector.shape_cast %371 : vector<1x8x8x32xf32> to vector<8x8x32xf32>
    %373 = vector.shape_cast %372 : vector<8x8x32xf32> to vector<64x32xf32>
    %c1_372 = arith.constant 1 : index
    %c0_373 = arith.constant 0 : index
    %c0_374 = arith.constant 0 : index
    %374 = vector.load %arg4[%c1_372, %c0_373, %c0_374] : memref<9x32x64xbf16, #tpu.memory_space<vmem>>, vector<1x32x64xbf16>
    %375 = vector.shape_cast %374 : vector<1x32x64xbf16> to vector<32x64xbf16>
    %376 = arith.truncf %373 : vector<64x32xf32> to vector<64x32xbf16>
    %cst_375 = arith.constant dense<0.000000e+00> : vector<64x64xf32>
    %377 = tpu.matmul %376, %375, %cst_375 {dimension_numbers = #tpu.dot_dimension_numbers<[1], [0], [0], [1], [0, 0, 1, 1], [], []>} : vector<64x32xbf16>, vector<32x64xbf16>, vector<64x64xf32> -> vector<64x64xf32>
    %378 = arith.addf %370, %377 : vector<64x64xf32>
    %c0_376 = arith.constant 0 : index
    %c0_377 = arith.constant 0 : index
    %c1_378 = arith.constant 1 : index
    %c0_379 = arith.constant 0 : index
    %379 = vector.load %arg20[%c0_376, %c0_377, %c1_378, %c0_379] : memref<4x9x9x32xf32, #tpu.memory_space<vmem>>, vector<1x8x8x32xf32>
    %380 = vector.shape_cast %379 : vector<1x8x8x32xf32> to vector<8x8x32xf32>
    %381 = vector.shape_cast %380 : vector<8x8x32xf32> to vector<64x32xf32>
    %c2_380 = arith.constant 2 : index
    %c0_381 = arith.constant 0 : index
    %c0_382 = arith.constant 0 : index
    %382 = vector.load %arg4[%c2_380, %c0_381, %c0_382] : memref<9x32x64xbf16, #tpu.memory_space<vmem>>, vector<1x32x64xbf16>
    %383 = vector.shape_cast %382 : vector<1x32x64xbf16> to vector<32x64xbf16>
    %384 = arith.truncf %381 : vector<64x32xf32> to vector<64x32xbf16>
    %cst_383 = arith.constant dense<0.000000e+00> : vector<64x64xf32>
    %385 = tpu.matmul %384, %383, %cst_383 {dimension_numbers = #tpu.dot_dimension_numbers<[1], [0], [0], [1], [0, 0, 1, 1], [], []>} : vector<64x32xbf16>, vector<32x64xbf16>, vector<64x64xf32> -> vector<64x64xf32>
    %386 = arith.addf %378, %385 : vector<64x64xf32>
    %c2_384 = arith.constant 2 : index
    %c0_385 = arith.constant 0 : index
    %c0_386 = arith.constant 0 : index
    %c0_387 = arith.constant 0 : index
    %387 = vector.load %arg20[%c2_384, %c0_385, %c0_386, %c0_387] : memref<4x9x9x32xf32, #tpu.memory_space<vmem>>, vector<1x8x8x32xf32>
    %388 = vector.shape_cast %387 : vector<1x8x8x32xf32> to vector<8x8x32xf32>
    %389 = vector.shape_cast %388 : vector<8x8x32xf32> to vector<64x32xf32>
    %c3_388 = arith.constant 3 : index
    %c0_389 = arith.constant 0 : index
    %c0_390 = arith.constant 0 : index
    %390 = vector.load %arg4[%c3_388, %c0_389, %c0_390] : memref<9x32x64xbf16, #tpu.memory_space<vmem>>, vector<1x32x64xbf16>
    %391 = vector.shape_cast %390 : vector<1x32x64xbf16> to vector<32x64xbf16>
    %392 = arith.truncf %389 : vector<64x32xf32> to vector<64x32xbf16>
    %cst_391 = arith.constant dense<0.000000e+00> : vector<64x64xf32>
    %393 = tpu.matmul %392, %391, %cst_391 {dimension_numbers = #tpu.dot_dimension_numbers<[1], [0], [0], [1], [0, 0, 1, 1], [], []>} : vector<64x32xbf16>, vector<32x64xbf16>, vector<64x64xf32> -> vector<64x64xf32>
    %394 = arith.addf %386, %393 : vector<64x64xf32>
    %c3_392 = arith.constant 3 : index
    %c0_393 = arith.constant 0 : index
    %c0_394 = arith.constant 0 : index
    %c0_395 = arith.constant 0 : index
    %395 = vector.load %arg20[%c3_392, %c0_393, %c0_394, %c0_395] : memref<4x9x9x32xf32, #tpu.memory_space<vmem>>, vector<1x8x8x32xf32>
    %396 = vector.shape_cast %395 : vector<1x8x8x32xf32> to vector<8x8x32xf32>
    %397 = vector.shape_cast %396 : vector<8x8x32xf32> to vector<64x32xf32>
    %c4_396 = arith.constant 4 : index
    %c0_397 = arith.constant 0 : index
    %c0_398 = arith.constant 0 : index
    %398 = vector.load %arg4[%c4_396, %c0_397, %c0_398] : memref<9x32x64xbf16, #tpu.memory_space<vmem>>, vector<1x32x64xbf16>
    %399 = vector.shape_cast %398 : vector<1x32x64xbf16> to vector<32x64xbf16>
    %400 = arith.truncf %397 : vector<64x32xf32> to vector<64x32xbf16>
    %cst_399 = arith.constant dense<0.000000e+00> : vector<64x64xf32>
    %401 = tpu.matmul %400, %399, %cst_399 {dimension_numbers = #tpu.dot_dimension_numbers<[1], [0], [0], [1], [0, 0, 1, 1], [], []>} : vector<64x32xbf16>, vector<32x64xbf16>, vector<64x64xf32> -> vector<64x64xf32>
    %402 = arith.addf %394, %401 : vector<64x64xf32>
    %c2_400 = arith.constant 2 : index
    %c0_401 = arith.constant 0 : index
    %c1_402 = arith.constant 1 : index
    %c0_403 = arith.constant 0 : index
    %403 = vector.load %arg20[%c2_400, %c0_401, %c1_402, %c0_403] : memref<4x9x9x32xf32, #tpu.memory_space<vmem>>, vector<1x8x8x32xf32>
    %404 = vector.shape_cast %403 : vector<1x8x8x32xf32> to vector<8x8x32xf32>
    %405 = vector.shape_cast %404 : vector<8x8x32xf32> to vector<64x32xf32>
    %c5_404 = arith.constant 5 : index
    %c0_405 = arith.constant 0 : index
    %c0_406 = arith.constant 0 : index
    %406 = vector.load %arg4[%c5_404, %c0_405, %c0_406] : memref<9x32x64xbf16, #tpu.memory_space<vmem>>, vector<1x32x64xbf16>
    %407 = vector.shape_cast %406 : vector<1x32x64xbf16> to vector<32x64xbf16>
    %408 = arith.truncf %405 : vector<64x32xf32> to vector<64x32xbf16>
    %cst_407 = arith.constant dense<0.000000e+00> : vector<64x64xf32>
    %409 = tpu.matmul %408, %407, %cst_407 {dimension_numbers = #tpu.dot_dimension_numbers<[1], [0], [0], [1], [0, 0, 1, 1], [], []>} : vector<64x32xbf16>, vector<32x64xbf16>, vector<64x64xf32> -> vector<64x64xf32>
    %410 = arith.addf %402, %409 : vector<64x64xf32>
    %c0_408 = arith.constant 0 : index
    %c1_409 = arith.constant 1 : index
    %c0_410 = arith.constant 0 : index
    %c0_411 = arith.constant 0 : index
    %411 = vector.load %arg20[%c0_408, %c1_409, %c0_410, %c0_411] : memref<4x9x9x32xf32, #tpu.memory_space<vmem>>, vector<1x8x8x32xf32>
    %412 = vector.shape_cast %411 : vector<1x8x8x32xf32> to vector<8x8x32xf32>
    %413 = vector.shape_cast %412 : vector<8x8x32xf32> to vector<64x32xf32>
    %c6_412 = arith.constant 6 : index
    %c0_413 = arith.constant 0 : index
    %c0_414 = arith.constant 0 : index
    %414 = vector.load %arg4[%c6_412, %c0_413, %c0_414] : memref<9x32x64xbf16, #tpu.memory_space<vmem>>, vector<1x32x64xbf16>
    %415 = vector.shape_cast %414 : vector<1x32x64xbf16> to vector<32x64xbf16>
    %416 = arith.truncf %413 : vector<64x32xf32> to vector<64x32xbf16>
    %cst_415 = arith.constant dense<0.000000e+00> : vector<64x64xf32>
    %417 = tpu.matmul %416, %415, %cst_415 {dimension_numbers = #tpu.dot_dimension_numbers<[1], [0], [0], [1], [0, 0, 1, 1], [], []>} : vector<64x32xbf16>, vector<32x64xbf16>, vector<64x64xf32> -> vector<64x64xf32>
    %418 = arith.addf %410, %417 : vector<64x64xf32>
    %c1_416 = arith.constant 1 : index
    %c1_417 = arith.constant 1 : index
    %c0_418 = arith.constant 0 : index
    %c0_419 = arith.constant 0 : index
    %419 = vector.load %arg20[%c1_416, %c1_417, %c0_418, %c0_419] : memref<4x9x9x32xf32, #tpu.memory_space<vmem>>, vector<1x8x8x32xf32>
    %420 = vector.shape_cast %419 : vector<1x8x8x32xf32> to vector<8x8x32xf32>
    %421 = vector.shape_cast %420 : vector<8x8x32xf32> to vector<64x32xf32>
    %c7_420 = arith.constant 7 : index
    %c0_421 = arith.constant 0 : index
    %c0_422 = arith.constant 0 : index
    %422 = vector.load %arg4[%c7_420, %c0_421, %c0_422] : memref<9x32x64xbf16, #tpu.memory_space<vmem>>, vector<1x32x64xbf16>
    %423 = vector.shape_cast %422 : vector<1x32x64xbf16> to vector<32x64xbf16>
    %424 = arith.truncf %421 : vector<64x32xf32> to vector<64x32xbf16>
    %cst_423 = arith.constant dense<0.000000e+00> : vector<64x64xf32>
    %425 = tpu.matmul %424, %423, %cst_423 {dimension_numbers = #tpu.dot_dimension_numbers<[1], [0], [0], [1], [0, 0, 1, 1], [], []>} : vector<64x32xbf16>, vector<32x64xbf16>, vector<64x64xf32> -> vector<64x64xf32>
    %426 = arith.addf %418, %425 : vector<64x64xf32>
    %c0_424 = arith.constant 0 : index
    %c1_425 = arith.constant 1 : index
    %c1_426 = arith.constant 1 : index
    %c0_427 = arith.constant 0 : index
    %427 = vector.load %arg20[%c0_424, %c1_425, %c1_426, %c0_427] : memref<4x9x9x32xf32, #tpu.memory_space<vmem>>, vector<1x8x8x32xf32>
    %428 = vector.shape_cast %427 : vector<1x8x8x32xf32> to vector<8x8x32xf32>
    %429 = vector.shape_cast %428 : vector<8x8x32xf32> to vector<64x32xf32>
    %c8_428 = arith.constant 8 : index
    %c0_429 = arith.constant 0 : index
    %c0_430 = arith.constant 0 : index
    %430 = vector.load %arg4[%c8_428, %c0_429, %c0_430] : memref<9x32x64xbf16, #tpu.memory_space<vmem>>, vector<1x32x64xbf16>
    %431 = vector.shape_cast %430 : vector<1x32x64xbf16> to vector<32x64xbf16>
    %432 = arith.truncf %429 : vector<64x32xf32> to vector<64x32xbf16>
    %cst_431 = arith.constant dense<0.000000e+00> : vector<64x64xf32>
    %433 = tpu.matmul %432, %431, %cst_431 {dimension_numbers = #tpu.dot_dimension_numbers<[1], [0], [0], [1], [0, 0, 1, 1], [], []>} : vector<64x32xbf16>, vector<32x64xbf16>, vector<64x64xf32> -> vector<64x64xf32>
    %434 = arith.addf %426, %433 : vector<64x64xf32>
    %c0_432 = arith.constant 0 : index
    %c0_433 = arith.constant 0 : index
    %435 = vector.load %arg5[%c0_432, %c0_433] : memref<1x64xf32, #tpu.memory_space<vmem>>, vector<1x64xf32>
    %436 = vector.broadcast %435 : vector<1x64xf32> to vector<64x64xf32>
    %437 = arith.addf %434, %436 : vector<64x64xf32>
    %cst_434 = arith.constant 2.000000e+01 : f32
    %438 = vector.broadcast %cst_434 : f32 to vector<64x64xf32>
    %439 = arith.minimumf %437, %438 : vector<64x64xf32>
    %440 = math.exp %439 : vector<64x64xf32>
    %cst_435 = arith.constant 2.000000e+00 : f32
    %441 = vector.broadcast %cst_435 : f32 to vector<64x64xf32>
    %442 = arith.addf %440, %441 : vector<64x64xf32>
    %443 = arith.mulf %440, %442 : vector<64x64xf32>
    %444 = arith.mulf %437, %443 : vector<64x64xf32>
    %cst_436 = arith.constant 2.000000e+00 : f32
    %445 = vector.broadcast %cst_436 : f32 to vector<64x64xf32>
    %446 = arith.addf %443, %445 : vector<64x64xf32>
    %447 = arith.divf %444, %446 : vector<64x64xf32>
    %c0_437 = arith.constant 0 : index
    %c0_438 = arith.constant 0 : index
    %448 = vector.load %arg6[%c0_437, %c0_438] : memref<64x64xbf16, #tpu.memory_space<vmem>>, vector<64x64xbf16>
    %449 = arith.truncf %447 : vector<64x64xf32> to vector<64x64xbf16>
    %cst_439 = arith.constant dense<0.000000e+00> : vector<64x64xf32>
    %450 = tpu.matmul %449, %448, %cst_439 {dimension_numbers = #tpu.dot_dimension_numbers<[1], [0], [0], [1], [0, 0, 1, 1], [], []>} : vector<64x64xbf16>, vector<64x64xbf16>, vector<64x64xf32> -> vector<64x64xf32>
    %c0_440 = arith.constant 0 : index
    %c0_441 = arith.constant 0 : index
    %451 = vector.load %arg7[%c0_440, %c0_441] : memref<1x64xf32, #tpu.memory_space<vmem>>, vector<1x64xf32>
    %452 = vector.broadcast %451 : vector<1x64xf32> to vector<64x64xf32>
    %453 = arith.addf %450, %452 : vector<64x64xf32>
    %cst_442 = arith.constant 2.000000e+01 : f32
    %454 = vector.broadcast %cst_442 : f32 to vector<64x64xf32>
    %455 = arith.minimumf %453, %454 : vector<64x64xf32>
    %456 = math.exp %455 : vector<64x64xf32>
    %cst_443 = arith.constant 2.000000e+00 : f32
    %457 = vector.broadcast %cst_443 : f32 to vector<64x64xf32>
    %458 = arith.addf %456, %457 : vector<64x64xf32>
    %459 = arith.mulf %456, %458 : vector<64x64xf32>
    %460 = arith.mulf %453, %459 : vector<64x64xf32>
    %cst_444 = arith.constant 2.000000e+00 : f32
    %461 = vector.broadcast %cst_444 : f32 to vector<64x64xf32>
    %462 = arith.addf %459, %461 : vector<64x64xf32>
    %463 = arith.divf %460, %462 : vector<64x64xf32>
    %c0_445 = arith.constant 0 : index
    %c0_446 = arith.constant 0 : index
    %464 = vector.load %arg8[%c0_445, %c0_446] : memref<64x64xbf16, #tpu.memory_space<vmem>>, vector<64x64xbf16>
    %465 = arith.truncf %447 : vector<64x64xf32> to vector<64x64xbf16>
    %cst_447 = arith.constant dense<0.000000e+00> : vector<64x64xf32>
    %466 = tpu.matmul %465, %464, %cst_447 {dimension_numbers = #tpu.dot_dimension_numbers<[1], [0], [0], [1], [0, 0, 1, 1], [], []>} : vector<64x64xbf16>, vector<64x64xbf16>, vector<64x64xf32> -> vector<64x64xf32>
    %c0_448 = arith.constant 0 : index
    %c0_449 = arith.constant 0 : index
    %467 = vector.load %arg9[%c0_448, %c0_449] : memref<1x64xf32, #tpu.memory_space<vmem>>, vector<1x64xf32>
    %468 = vector.broadcast %467 : vector<1x64xf32> to vector<64x64xf32>
    %469 = arith.addf %466, %468 : vector<64x64xf32>
    %cst_450 = arith.constant 2.000000e+01 : f32
    %470 = vector.broadcast %cst_450 : f32 to vector<64x64xf32>
    %471 = arith.minimumf %469, %470 : vector<64x64xf32>
    %472 = math.exp %471 : vector<64x64xf32>
    %cst_451 = arith.constant 2.000000e+00 : f32
    %473 = vector.broadcast %cst_451 : f32 to vector<64x64xf32>
    %474 = arith.addf %472, %473 : vector<64x64xf32>
    %475 = arith.mulf %472, %474 : vector<64x64xf32>
    %476 = arith.mulf %469, %475 : vector<64x64xf32>
    %cst_452 = arith.constant 2.000000e+00 : f32
    %477 = vector.broadcast %cst_452 : f32 to vector<64x64xf32>
    %478 = arith.addf %475, %477 : vector<64x64xf32>
    %479 = arith.divf %476, %478 : vector<64x64xf32>
    %c0_453 = arith.constant 0 : index
    %c0_454 = arith.constant 0 : index
    %480 = vector.load %arg10[%c0_453, %c0_454] : memref<64x32xbf16, #tpu.memory_space<vmem>>, vector<64x32xbf16>
    %481 = arith.truncf %479 : vector<64x64xf32> to vector<64x64xbf16>
    %cst_455 = arith.constant dense<0.000000e+00> : vector<64x32xf32>
    %482 = tpu.matmul %481, %480, %cst_455 {dimension_numbers = #tpu.dot_dimension_numbers<[1], [0], [0], [1], [0, 0, 1, 1], [], []>} : vector<64x64xbf16>, vector<64x32xbf16>, vector<64x32xf32> -> vector<64x32xf32>
    %c0_456 = arith.constant 0 : index
    %c0_457 = arith.constant 0 : index
    %483 = vector.load %arg11[%c0_456, %c0_457] : memref<1x32xf32, #tpu.memory_space<vmem>>, vector<1x32xf32>
    %484 = vector.broadcast %483 : vector<1x32xf32> to vector<64x32xf32>
    %485 = arith.addf %482, %484 : vector<64x32xf32>
    %cst_458 = arith.constant 2.000000e+01 : f32
    %486 = vector.broadcast %cst_458 : f32 to vector<64x32xf32>
    %487 = arith.minimumf %485, %486 : vector<64x32xf32>
    %488 = math.exp %487 : vector<64x32xf32>
    %cst_459 = arith.constant 2.000000e+00 : f32
    %489 = vector.broadcast %cst_459 : f32 to vector<64x32xf32>
    %490 = arith.addf %488, %489 : vector<64x32xf32>
    %491 = arith.mulf %488, %490 : vector<64x32xf32>
    %492 = arith.mulf %485, %491 : vector<64x32xf32>
    %cst_460 = arith.constant 2.000000e+00 : f32
    %493 = vector.broadcast %cst_460 : f32 to vector<64x32xf32>
    %494 = arith.addf %491, %493 : vector<64x32xf32>
    %495 = arith.divf %492, %494 : vector<64x32xf32>
    %cst_461 = arith.constant 0.000000e+00 : f32
    %496 = vector.broadcast %cst_461 : f32 to vector<10x10x32xf32>
    %c0_462 = arith.constant 0 : index
    %c0_463 = arith.constant 0 : index
    %c0_464 = arith.constant 0 : index
    %497 = vector.load %arg21[%c0_462, %c0_463, %c0_464] : memref<10x10x32xf32, #tpu.memory_space<vmem>>, vector<10x10x32xf32>
    tpu.vector_store %arg21[%c0_462, %c0_463, %c0_464], %496 {strides = array<i32>} : memref<10x10x32xf32, #tpu.memory_space<vmem>>, vector<10x10x32xf32>,
    %498 = vector.shape_cast %495 : vector<64x32xf32> to vector<8x8x32xf32>
    %c1_465 = arith.constant 1 : index
    %c1_466 = arith.constant 1 : index
    %c0_467 = arith.constant 0 : index
    %499 = vector.load %arg21[%c1_465, %c1_466, %c0_467] : memref<10x10x32xf32, #tpu.memory_space<vmem>>, vector<8x8x32xf32>
    tpu.vector_store %arg21[%c1_465, %c1_466, %c0_467], %498 {strides = array<i32>} : memref<10x10x32xf32, #tpu.memory_space<vmem>>, vector<8x8x32xf32>,
    %cst_468 = arith.constant 0.000000e+00 : f32
    %500 = vector.broadcast %cst_468 : f32 to vector<64x64xf32>
    %c0_469 = arith.constant 0 : index
    %c0_470 = arith.constant 0 : index
    %c0_471 = arith.constant 0 : index
    %501 = vector.load %arg21[%c0_469, %c0_470, %c0_471] : memref<10x10x32xf32, #tpu.memory_space<vmem>>, vector<8x8x32xf32>
    %502 = vector.shape_cast %501 : vector<8x8x32xf32> to vector<64x32xf32>
    %c0_472 = arith.constant 0 : index
    %c0_473 = arith.constant 0 : index
    %c0_474 = arith.constant 0 : index
    %503 = vector.load %arg12[%c0_472, %c0_473, %c0_474] : memref<9x32x64xbf16, #tpu.memory_space<vmem>>, vector<1x32x64xbf16>
    %504 = vector.shape_cast %503 : vector<1x32x64xbf16> to vector<32x64xbf16>
    %505 = arith.truncf %502 : vector<64x32xf32> to vector<64x32xbf16>
    %cst_475 = arith.constant dense<0.000000e+00> : vector<64x64xf32>
    %506 = tpu.matmul %505, %504, %cst_475 {dimension_numbers = #tpu.dot_dimension_numbers<[1], [0], [0], [1], [0, 0, 1, 1], [], []>} : vector<64x32xbf16>, vector<32x64xbf16>, vector<64x64xf32> -> vector<64x64xf32>
    %507 = arith.addf %500, %506 : vector<64x64xf32>
    %c0_476 = arith.constant 0 : index
    %c1_477 = arith.constant 1 : index
    %c0_478 = arith.constant 0 : index
    %508 = vector.load %arg21[%c0_476, %c1_477, %c0_478] : memref<10x10x32xf32, #tpu.memory_space<vmem>>, vector<8x8x32xf32>
    %509 = vector.shape_cast %508 : vector<8x8x32xf32> to vector<64x32xf32>
    %c1_479 = arith.constant 1 : index
    %c0_480 = arith.constant 0 : index
    %c0_481 = arith.constant 0 : index
    %510 = vector.load %arg12[%c1_479, %c0_480, %c0_481] : memref<9x32x64xbf16, #tpu.memory_space<vmem>>, vector<1x32x64xbf16>
    %511 = vector.shape_cast %510 : vector<1x32x64xbf16> to vector<32x64xbf16>
    %512 = arith.truncf %509 : vector<64x32xf32> to vector<64x32xbf16>
    %cst_482 = arith.constant dense<0.000000e+00> : vector<64x64xf32>
    %513 = tpu.matmul %512, %511, %cst_482 {dimension_numbers = #tpu.dot_dimension_numbers<[1], [0], [0], [1], [0, 0, 1, 1], [], []>} : vector<64x32xbf16>, vector<32x64xbf16>, vector<64x64xf32> -> vector<64x64xf32>
    %514 = arith.addf %507, %513 : vector<64x64xf32>
    %c0_483 = arith.constant 0 : index
    %c2_484 = arith.constant 2 : index
    %c0_485 = arith.constant 0 : index
    %515 = vector.load %arg21[%c0_483, %c2_484, %c0_485] : memref<10x10x32xf32, #tpu.memory_space<vmem>>, vector<8x8x32xf32>
    %516 = vector.shape_cast %515 : vector<8x8x32xf32> to vector<64x32xf32>
    %c2_486 = arith.constant 2 : index
    %c0_487 = arith.constant 0 : index
    %c0_488 = arith.constant 0 : index
    %517 = vector.load %arg12[%c2_486, %c0_487, %c0_488] : memref<9x32x64xbf16, #tpu.memory_space<vmem>>, vector<1x32x64xbf16>
    %518 = vector.shape_cast %517 : vector<1x32x64xbf16> to vector<32x64xbf16>
    %519 = arith.truncf %516 : vector<64x32xf32> to vector<64x32xbf16>
    %cst_489 = arith.constant dense<0.000000e+00> : vector<64x64xf32>
    %520 = tpu.matmul %519, %518, %cst_489 {dimension_numbers = #tpu.dot_dimension_numbers<[1], [0], [0], [1], [0, 0, 1, 1], [], []>} : vector<64x32xbf16>, vector<32x64xbf16>, vector<64x64xf32> -> vector<64x64xf32>
    %521 = arith.addf %514, %520 : vector<64x64xf32>
    %c1_490 = arith.constant 1 : index
    %c0_491 = arith.constant 0 : index
    %c0_492 = arith.constant 0 : index
    %522 = vector.load %arg21[%c1_490, %c0_491, %c0_492] : memref<10x10x32xf32, #tpu.memory_space<vmem>>, vector<8x8x32xf32>
    %523 = vector.shape_cast %522 : vector<8x8x32xf32> to vector<64x32xf32>
    %c3_493 = arith.constant 3 : index
    %c0_494 = arith.constant 0 : index
    %c0_495 = arith.constant 0 : index
    %524 = vector.load %arg12[%c3_493, %c0_494, %c0_495] : memref<9x32x64xbf16, #tpu.memory_space<vmem>>, vector<1x32x64xbf16>
    %525 = vector.shape_cast %524 : vector<1x32x64xbf16> to vector<32x64xbf16>
    %526 = arith.truncf %523 : vector<64x32xf32> to vector<64x32xbf16>
    %cst_496 = arith.constant dense<0.000000e+00> : vector<64x64xf32>
    %527 = tpu.matmul %526, %525, %cst_496 {dimension_numbers = #tpu.dot_dimension_numbers<[1], [0], [0], [1], [0, 0, 1, 1], [], []>} : vector<64x32xbf16>, vector<32x64xbf16>, vector<64x64xf32> -> vector<64x64xf32>
    %528 = arith.addf %521, %527 : vector<64x64xf32>
    %c1_497 = arith.constant 1 : index
    %c1_498 = arith.constant 1 : index
    %c0_499 = arith.constant 0 : index
    %529 = vector.load %arg21[%c1_497, %c1_498, %c0_499] : memref<10x10x32xf32, #tpu.memory_space<vmem>>, vector<8x8x32xf32>
    %530 = vector.shape_cast %529 : vector<8x8x32xf32> to vector<64x32xf32>
    %c4_500 = arith.constant 4 : index
    %c0_501 = arith.constant 0 : index
    %c0_502 = arith.constant 0 : index
    %531 = vector.load %arg12[%c4_500, %c0_501, %c0_502] : memref<9x32x64xbf16, #tpu.memory_space<vmem>>, vector<1x32x64xbf16>
    %532 = vector.shape_cast %531 : vector<1x32x64xbf16> to vector<32x64xbf16>
    %533 = arith.truncf %530 : vector<64x32xf32> to vector<64x32xbf16>
    %cst_503 = arith.constant dense<0.000000e+00> : vector<64x64xf32>
    %534 = tpu.matmul %533, %532, %cst_503 {dimension_numbers = #tpu.dot_dimension_numbers<[1], [0], [0], [1], [0, 0, 1, 1], [], []>} : vector<64x32xbf16>, vector<32x64xbf16>, vector<64x64xf32> -> vector<64x64xf32>
    %535 = arith.addf %528, %534 : vector<64x64xf32>
    %c1_504 = arith.constant 1 : index
    %c2_505 = arith.constant 2 : index
    %c0_506 = arith.constant 0 : index
    %536 = vector.load %arg21[%c1_504, %c2_505, %c0_506] : memref<10x10x32xf32, #tpu.memory_space<vmem>>, vector<8x8x32xf32>
    %537 = vector.shape_cast %536 : vector<8x8x32xf32> to vector<64x32xf32>
    %c5_507 = arith.constant 5 : index
    %c0_508 = arith.constant 0 : index
    %c0_509 = arith.constant 0 : index
    %538 = vector.load %arg12[%c5_507, %c0_508, %c0_509] : memref<9x32x64xbf16, #tpu.memory_space<vmem>>, vector<1x32x64xbf16>
    %539 = vector.shape_cast %538 : vector<1x32x64xbf16> to vector<32x64xbf16>
    %540 = arith.truncf %537 : vector<64x32xf32> to vector<64x32xbf16>
    %cst_510 = arith.constant dense<0.000000e+00> : vector<64x64xf32>
    %541 = tpu.matmul %540, %539, %cst_510 {dimension_numbers = #tpu.dot_dimension_numbers<[1], [0], [0], [1], [0, 0, 1, 1], [], []>} : vector<64x32xbf16>, vector<32x64xbf16>, vector<64x64xf32> -> vector<64x64xf32>
    %542 = arith.addf %535, %541 : vector<64x64xf32>
    %c2_511 = arith.constant 2 : index
    %c0_512 = arith.constant 0 : index
    %c0_513 = arith.constant 0 : index
    %543 = vector.load %arg21[%c2_511, %c0_512, %c0_513] : memref<10x10x32xf32, #tpu.memory_space<vmem>>, vector<8x8x32xf32>
    %544 = vector.shape_cast %543 : vector<8x8x32xf32> to vector<64x32xf32>
    %c6_514 = arith.constant 6 : index
    %c0_515 = arith.constant 0 : index
    %c0_516 = arith.constant 0 : index
    %545 = vector.load %arg12[%c6_514, %c0_515, %c0_516] : memref<9x32x64xbf16, #tpu.memory_space<vmem>>, vector<1x32x64xbf16>
    %546 = vector.shape_cast %545 : vector<1x32x64xbf16> to vector<32x64xbf16>
    %547 = arith.truncf %544 : vector<64x32xf32> to vector<64x32xbf16>
    %cst_517 = arith.constant dense<0.000000e+00> : vector<64x64xf32>
    %548 = tpu.matmul %547, %546, %cst_517 {dimension_numbers = #tpu.dot_dimension_numbers<[1], [0], [0], [1], [0, 0, 1, 1], [], []>} : vector<64x32xbf16>, vector<32x64xbf16>, vector<64x64xf32> -> vector<64x64xf32>
    %549 = arith.addf %542, %548 : vector<64x64xf32>
    %c2_518 = arith.constant 2 : index
    %c1_519 = arith.constant 1 : index
    %c0_520 = arith.constant 0 : index
    %550 = vector.load %arg21[%c2_518, %c1_519, %c0_520] : memref<10x10x32xf32, #tpu.memory_space<vmem>>, vector<8x8x32xf32>
    %551 = vector.shape_cast %550 : vector<8x8x32xf32> to vector<64x32xf32>
    %c7_521 = arith.constant 7 : index
    %c0_522 = arith.constant 0 : index
    %c0_523 = arith.constant 0 : index
    %552 = vector.load %arg12[%c7_521, %c0_522, %c0_523] : memref<9x32x64xbf16, #tpu.memory_space<vmem>>, vector<1x32x64xbf16>
    %553 = vector.shape_cast %552 : vector<1x32x64xbf16> to vector<32x64xbf16>
    %554 = arith.truncf %551 : vector<64x32xf32> to vector<64x32xbf16>
    %cst_524 = arith.constant dense<0.000000e+00> : vector<64x64xf32>
    %555 = tpu.matmul %554, %553, %cst_524 {dimension_numbers = #tpu.dot_dimension_numbers<[1], [0], [0], [1], [0, 0, 1, 1], [], []>} : vector<64x32xbf16>, vector<32x64xbf16>, vector<64x64xf32> -> vector<64x64xf32>
    %556 = arith.addf %549, %555 : vector<64x64xf32>
    %c2_525 = arith.constant 2 : index
    %c2_526 = arith.constant 2 : index
    %c0_527 = arith.constant 0 : index
    %557 = vector.load %arg21[%c2_525, %c2_526, %c0_527] : memref<10x10x32xf32, #tpu.memory_space<vmem>>, vector<8x8x32xf32>
    %558 = vector.shape_cast %557 : vector<8x8x32xf32> to vector<64x32xf32>
    %c8_528 = arith.constant 8 : index
    %c0_529 = arith.constant 0 : index
    %c0_530 = arith.constant 0 : index
    %559 = vector.load %arg12[%c8_528, %c0_529, %c0_530] : memref<9x32x64xbf16, #tpu.memory_space<vmem>>, vector<1x32x64xbf16>
    %560 = vector.shape_cast %559 : vector<1x32x64xbf16> to vector<32x64xbf16>
    %561 = arith.truncf %558 : vector<64x32xf32> to vector<64x32xbf16>
    %cst_531 = arith.constant dense<0.000000e+00> : vector<64x64xf32>
    %562 = tpu.matmul %561, %560, %cst_531 {dimension_numbers = #tpu.dot_dimension_numbers<[1], [0], [0], [1], [0, 0, 1, 1], [], []>} : vector<64x32xbf16>, vector<32x64xbf16>, vector<64x64xf32> -> vector<64x64xf32>
    %563 = arith.addf %556, %562 : vector<64x64xf32>
    %c0_532 = arith.constant 0 : index
    %c0_533 = arith.constant 0 : index
    %564 = vector.load %arg13[%c0_532, %c0_533] : memref<1x64xf32, #tpu.memory_space<vmem>>, vector<1x64xf32>
    %565 = vector.broadcast %564 : vector<1x64xf32> to vector<64x64xf32>
    %566 = arith.addf %563, %565 : vector<64x64xf32>
    %cst_534 = arith.constant 2.000000e+01 : f32
    %567 = vector.broadcast %cst_534 : f32 to vector<64x64xf32>
    %568 = arith.minimumf %566, %567 : vector<64x64xf32>
    %569 = math.exp %568 : vector<64x64xf32>
    %cst_535 = arith.constant 2.000000e+00 : f32
    %570 = vector.broadcast %cst_535 : f32 to vector<64x64xf32>
    %571 = arith.addf %569, %570 : vector<64x64xf32>
    %572 = arith.mulf %569, %571 : vector<64x64xf32>
    %573 = arith.mulf %566, %572 : vector<64x64xf32>
    %cst_536 = arith.constant 2.000000e+00 : f32
    %574 = vector.broadcast %cst_536 : f32 to vector<64x64xf32>
    %575 = arith.addf %572, %574 : vector<64x64xf32>
    %576 = arith.divf %573, %575 : vector<64x64xf32>
    %577 = arith.addf %576, %479 : vector<64x64xf32>
    %c0_537 = arith.constant 0 : index
    %c0_538 = arith.constant 0 : index
    %578 = vector.load %arg14[%c0_537, %c0_538] : memref<64x64xbf16, #tpu.memory_space<vmem>>, vector<64x64xbf16>
    %579 = arith.truncf %577 : vector<64x64xf32> to vector<64x64xbf16>
    %cst_539 = arith.constant dense<0.000000e+00> : vector<64x64xf32>
    %580 = tpu.matmul %579, %578, %cst_539 {dimension_numbers = #tpu.dot_dimension_numbers<[1], [0], [0], [1], [0, 0, 1, 1], [], []>} : vector<64x64xbf16>, vector<64x64xbf16>, vector<64x64xf32> -> vector<64x64xf32>
    %c0_540 = arith.constant 0 : index
    %c0_541 = arith.constant 0 : index
    %581 = vector.load %arg15[%c0_540, %c0_541] : memref<1x64xf32, #tpu.memory_space<vmem>>, vector<1x64xf32>
    %582 = vector.broadcast %581 : vector<1x64xf32> to vector<64x64xf32>
    %583 = arith.addf %580, %582 : vector<64x64xf32>
    %cst_542 = arith.constant 2.000000e+01 : f32
    %584 = vector.broadcast %cst_542 : f32 to vector<64x64xf32>
    %585 = arith.minimumf %583, %584 : vector<64x64xf32>
    %586 = math.exp %585 : vector<64x64xf32>
    %cst_543 = arith.constant 2.000000e+00 : f32
    %587 = vector.broadcast %cst_543 : f32 to vector<64x64xf32>
    %588 = arith.addf %586, %587 : vector<64x64xf32>
    %589 = arith.mulf %586, %588 : vector<64x64xf32>
    %590 = arith.mulf %583, %589 : vector<64x64xf32>
    %cst_544 = arith.constant 2.000000e+00 : f32
    %591 = vector.broadcast %cst_544 : f32 to vector<64x64xf32>
    %592 = arith.addf %589, %591 : vector<64x64xf32>
    %593 = arith.divf %590, %592 : vector<64x64xf32>
    %c0_545 = arith.constant 0 : index
    %c0_546 = arith.constant 0 : index
    %594 = vector.load %arg16[%c0_545, %c0_546] : memref<64x64xbf16, #tpu.memory_space<vmem>>, vector<64x64xbf16>
    %595 = arith.truncf %593 : vector<64x64xf32> to vector<64x64xbf16>
    %cst_547 = arith.constant dense<0.000000e+00> : vector<64x64xf32>
    %596 = tpu.matmul %595, %594, %cst_547 {dimension_numbers = #tpu.dot_dimension_numbers<[1], [0], [0], [1], [0, 0, 1, 1], [], []>} : vector<64x64xbf16>, vector<64x64xbf16>, vector<64x64xf32> -> vector<64x64xf32>
    %c0_548 = arith.constant 0 : index
    %c0_549 = arith.constant 0 : index
    %597 = vector.load %arg17[%c0_548, %c0_549] : memref<64x64xbf16, #tpu.memory_space<vmem>>, vector<64x64xbf16>
    %598 = arith.truncf %463 : vector<64x64xf32> to vector<64x64xbf16>
    %cst_550 = arith.constant dense<0.000000e+00> : vector<64x64xf32>
    %599 = tpu.matmul %598, %597, %cst_550 {dimension_numbers = #tpu.dot_dimension_numbers<[1], [0], [0], [1], [0, 0, 1, 1], [], []>} : vector<64x64xbf16>, vector<64x64xbf16>, vector<64x64xf32> -> vector<64x64xf32>
    %600 = arith.addf %596, %599 : vector<64x64xf32>
    %c0_551 = arith.constant 0 : index
    %c0_552 = arith.constant 0 : index
    %601 = vector.load %arg18[%c0_551, %c0_552] : memref<1x64xf32, #tpu.memory_space<vmem>>, vector<1x64xf32>
    %602 = vector.broadcast %601 : vector<1x64xf32> to vector<64x64xf32>
    %603 = arith.addf %600, %602 : vector<64x64xf32>
    %cst_553 = arith.constant 2.000000e+01 : f32
    %604 = vector.broadcast %cst_553 : f32 to vector<64x64xf32>
    %605 = arith.minimumf %603, %604 : vector<64x64xf32>
    %606 = math.exp %605 : vector<64x64xf32>
    %cst_554 = arith.constant 2.000000e+00 : f32
    %607 = vector.broadcast %cst_554 : f32 to vector<64x64xf32>
    %608 = arith.addf %606, %607 : vector<64x64xf32>
    %609 = arith.mulf %606, %608 : vector<64x64xf32>
    %610 = arith.mulf %603, %609 : vector<64x64xf32>
    %cst_555 = arith.constant 2.000000e+00 : f32
    %611 = vector.broadcast %cst_555 : f32 to vector<64x64xf32>
    %612 = arith.addf %609, %611 : vector<64x64xf32>
    %613 = arith.divf %610, %612 : vector<64x64xf32>
    %c0_556 = arith.constant 0 : index
    %c0_557 = arith.constant 0 : index
    %c0_558 = arith.constant 0 : index
    %614 = vector.load %arg19[%c0_556, %c0_557, %c0_558] : memref<1x64x64xf32, #tpu.memory_space<vmem>>, vector<1x64x64xf32>
    %615 = vector.shape_cast %614 : vector<1x64x64xf32> to vector<64x64xf32>
    %616 = vector.shape_cast %613 : vector<64x64xf32> to vector<1x64x64xf32>
    tpu.vector_store %arg19[%c0_556, %c0_557, %c0_558], %616 {strides = array<i32>} : memref<1x64x64xf32, #tpu.memory_space<vmem>>, vector<1x64x64xf32>,
    return
  }
  func.func @transform_0(%arg0: i32) -> (i32, i32, i32, i32, i32) {
    %c0_i32 = arith.constant 0 : i32
    %c0_i32_0 = arith.constant 0 : i32
    %c0_i32_1 = arith.constant 0 : i32
    %c0_i32_2 = arith.constant 0 : i32
    %c0_i32_3 = arith.constant 0 : i32
    return %arg0, %c0_i32, %c0_i32_0, %c0_i32_1, %c0_i32_2 : i32, i32, i32, i32, i32
  }
  func.func @transform_1(%arg0: i32) -> (i32, i32, i32) {
    %c0_i32 = arith.constant 0 : i32
    %c0_i32_0 = arith.constant 0 : i32
    %c0_i32_1 = arith.constant 0 : i32
    %c0_i32_2 = arith.constant 0 : i32
    return %c0_i32, %c0_i32_0, %c0_i32_1 : i32, i32, i32
  }
  func.func @transform_2(%arg0: i32) -> (i32, i32) {
    %c0_i32 = arith.constant 0 : i32
    %c0_i32_0 = arith.constant 0 : i32
    %c0_i32_1 = arith.constant 0 : i32
    return %c0_i32, %c0_i32_0 : i32, i32
  }
  func.func @transform_3(%arg0: i32) -> (i32, i32, i32) {
    %c0_i32 = arith.constant 0 : i32
    %c0_i32_0 = arith.constant 0 : i32
    %c0_i32_1 = arith.constant 0 : i32
    %c0_i32_2 = arith.constant 0 : i32
    return %c0_i32, %c0_i32_0, %c0_i32_1 : i32, i32, i32
  }
  func.func @transform_4(%arg0: i32) -> (i32, i32) {
    %c0_i32 = arith.constant 0 : i32
    %c0_i32_0 = arith.constant 0 : i32
    %c0_i32_1 = arith.constant 0 : i32
    return %c0_i32, %c0_i32_0 : i32, i32
  }
  func.func @transform_5(%arg0: i32) -> (i32, i32) {
    %c0_i32 = arith.constant 0 : i32
    %c0_i32_0 = arith.constant 0 : i32
    %c0_i32_1 = arith.constant 0 : i32
    return %c0_i32, %c0_i32_0 : i32, i32
  }
  func.func @transform_6(%arg0: i32) -> (i32, i32) {
    %c0_i32 = arith.constant 0 : i32
    %c0_i32_0 = arith.constant 0 : i32
    %c0_i32_1 = arith.constant 0 : i32
    return %c0_i32, %c0_i32_0 : i32, i32
  }
  func.func @transform_7(%arg0: i32) -> (i32, i32) {
    %c0_i32 = arith.constant 0 : i32
    %c0_i32_0 = arith.constant 0 : i32
    %c0_i32_1 = arith.constant 0 : i32
    return %c0_i32, %c0_i32_0 : i32, i32
  }
  func.func @transform_8(%arg0: i32) -> (i32, i32) {
    %c0_i32 = arith.constant 0 : i32
    %c0_i32_0 = arith.constant 0 : i32
    %c0_i32_1 = arith.constant 0 : i32
    return %c0_i32, %c0_i32_0 : i32, i32
  }
  func.func @transform_9(%arg0: i32) -> (i32, i32) {
    %c0_i32 = arith.constant 0 : i32
    %c0_i32_0 = arith.constant 0 : i32
    %c0_i32_1 = arith.constant 0 : i32
    return %c0_i32, %c0_i32_0 : i32, i32
  }
  func.func @transform_10(%arg0: i32) -> (i32, i32) {
    %c0_i32 = arith.constant 0 : i32
    %c0_i32_0 = arith.constant 0 : i32
    %c0_i32_1 = arith.constant 0 : i32
    return %c0_i32, %c0_i32_0 : i32, i32
  }
  func.func @transform_11(%arg0: i32) -> (i32, i32, i32) {
    %c0_i32 = arith.constant 0 : i32
    %c0_i32_0 = arith.constant 0 : i32
    %c0_i32_1 = arith.constant 0 : i32
    %c0_i32_2 = arith.constant 0 : i32
    return %c0_i32, %c0_i32_0, %c0_i32_1 : i32, i32, i32
  }
  func.func @transform_12(%arg0: i32) -> (i32, i32) {
    %c0_i32 = arith.constant 0 : i32
    %c0_i32_0 = arith.constant 0 : i32
    %c0_i32_1 = arith.constant 0 : i32
    return %c0_i32, %c0_i32_0 : i32, i32
  }
  func.func @transform_13(%arg0: i32) -> (i32, i32) {
    %c0_i32 = arith.constant 0 : i32
    %c0_i32_0 = arith.constant 0 : i32
    %c0_i32_1 = arith.constant 0 : i32
    return %c0_i32, %c0_i32_0 : i32, i32
  }
  func.func @transform_14(%arg0: i32) -> (i32, i32) {
    %c0_i32 = arith.constant 0 : i32
    %c0_i32_0 = arith.constant 0 : i32
    %c0_i32_1 = arith.constant 0 : i32
    return %c0_i32, %c0_i32_0 : i32, i32
  }
  func.func @transform_15(%arg0: i32) -> (i32, i32) {
    %c0_i32 = arith.constant 0 : i32
    %c0_i32_0 = arith.constant 0 : i32
    %c0_i32_1 = arith.constant 0 : i32
    return %c0_i32, %c0_i32_0 : i32, i32
  }
  func.func @transform_16(%arg0: i32) -> (i32, i32) {
    %c0_i32 = arith.constant 0 : i32
    %c0_i32_0 = arith.constant 0 : i32
    %c0_i32_1 = arith.constant 0 : i32
    return %c0_i32, %c0_i32_0 : i32, i32
  }
  func.func @transform_17(%arg0: i32) -> (i32, i32) {
    %c0_i32 = arith.constant 0 : i32
    %c0_i32_0 = arith.constant 0 : i32
    %c0_i32_1 = arith.constant 0 : i32
    return %c0_i32, %c0_i32_0 : i32, i32
  }
  func.func @transform_18(%arg0: i32) -> (i32, i32, i32) {
    %c0_i32 = arith.constant 0 : i32
    %c0_i32_0 = arith.constant 0 : i32
    %c0_i32_1 = arith.constant 0 : i32
    return %arg0, %c0_i32, %c0_i32_0 : i32, i32, i32
  }
}

</mosaic_0001>

<bundles_post_ra>
// kernel: _lambda_.1
= control target key start
LH: loop header
LB: loop body
LE: loop exit
PB: predicated region body
PF: predicated region fallthrough
CT: control target
= control target key end

     0   :  { %s13047_s0 = inlined_call_operand.vmem [shape: f32[2,4,9,9,3], index: 0, kind: input, shape index: {}]   ;;  %s13048_s1 = inlined_call_operand.vmem [shape: bf16[9,3,32], index: 1, kind: input, shape index: {}]   ;;  %s13049_s2 = inlined_call_operand.vmem [shape: f32[1,32], index: 2, kind: input, shape index: {}]   ;;  %s13050_s3 = inlined_call_operand.vmem [shape: bf16[9,32,64], index: 3, kind: input, shape index: {}]   ;;  %s13051_s4 = inlined_call_operand.vmem [shape: f32[1,64], index: 4, kind: input, shape index: {}]   ;;  %s13052_s5 = inlined_call_operand.vmem [shape: bf16[64,64], index: 5, kind: input, shape index: {}]   ;;  %s13053_s6 = inlined_call_operand.vmem [shape: f32[1,64], index: 6, kind: input, shape index: {}]   ;;  %s13054_s7 = inlined_call_operand.vmem [shape: bf16[64,64], index: 7, kind: input, shape index: {}]   ;;  %s13055_s8 = inlined_call_operand.vmem [shape: f32[1,64], index: 8, kind: input, shape index: {}]   ;;  %s13056_s9 = inlined_call_operand.vmem [shape: bf16[64,32], index: 9, kind: input, shape index: {}]   ;;  %s13057_s10 = inlined_call_operand.vmem [shape: f32[1,32], index: 10, kind: input, shape index: {}]   ;;  %s13058_s11 = inlined_call_operand.vmem [shape: bf16[9,32,64], index: 11, kind: input, shape index: {}]   ;;  %s13059_s12 = inlined_call_operand.vmem [shape: f32[1,64], index: 12, kind: input, shape index: {}]   ;;  %s13060_s13 = inlined_call_operand.vmem [shape: bf16[64,64], index: 13, kind: input, shape index: {}]   ;;  %s13061_s14 = inlined_call_operand.vmem [shape: f32[1,64], index: 14, kind: input, shape index: {}]   ;;  %s13062_s15 = inlined_call_operand.vmem [shape: bf16[64,64], index: 15, kind: input, shape index: {}]   ;;  %s13063_s16 = inlined_call_operand.vmem [shape: bf16[64,64], index: 16, kind: input, shape index: {}]   ;;  %s13064_s17 = inlined_call_operand.vmem [shape: f32[1,64], index: 17, kind: input, shape index: {}]   ;;  %s13065_s18 = inlined_call_operand.hbm [shape: f32[2,64,64], index: 18, kind: output, shape index: {}]  }
   0x1   :  { %13095 = sst [smem:[#allocation22_spill]] %s13047_s0 }
   0x2   :  { %13096 = sst [smem:[#allocation23_spill]] %s13048_s1 }
   0x3   :  { %13097 = sst [smem:[#allocation24_spill]] %s13049_s2 }
   0x4   :  { %13098 = sst [smem:[#allocation25_spill]] %s13050_s3 }
   0x5   :  { %13099 = sst [smem:[#allocation26_spill]] %s13051_s4 }
   0x6   :  { %13100 = sst [smem:[#allocation27_spill]] %s13052_s5 }
   0x7   :  { %23 = vsyncpa [#allocation5], 0 }
   0x8   :  { %25 = vsyncpa [#allocation5 + $0x1], 0  ;;  %s10316_s27 = smov 0   ;;  %s10318_s28 = smov 0  }
   0x9   :  { %s10320_s29 = smov 0   ;;  %s10322_s30 = smov 0  }
   0xa LB: > { %13101 = sst [smem:[#allocation7_spill]] %s10210_s29  ;;  %s10337_s0 = sadd.s32 4294967295, %s10214_s30   ;;  %s10214_s30 = sphi %s10322_s30, %s13174_s30   ;;  %s10210_s29 = sphi %s10320_s29, %s13176_s29   ;;  %s10206_s28 = sphi %s10318_s28, %s13178_s28   ;;  %s10202_s27 = sphi %s10316_s27, %s13177_s27  }
   0xb   : > { %s8007_s19 = sadd.s32 4294967294, %s10214_s30   ;;  %s10341_s1 = sadd.s32 1, %s10214_s30  }
   0xc   : > { %13102 = sst [smem:[#allocation8_spill]] %s10341_s1  ;;  %s421_s20 = sadd.s32 1, %s10210_s29 }
   0xd   : > { %s418_s21 = ssub.s32 %s10214_s30, %s10341_s1  ;;  %p431_p0 = scmp.ne.s32.totalorder %s10210_s29, %s10206_s28 }
   0xe   : > { %p419_p1 = scmp.eq.s32.totalorder %s418_s21, 0  ;;  %p432_p2 = scmp.eq.s32.totalorder %s10337_s0, 1 }
   0xf   : > { %p437_p3 = scmp.ne.s32.totalorder %s10206_s28, %s10202_s27  ;;  %p438_p4 = scmp.eq.s32.totalorder %s8007_s19, 1 }
  0x10   : > { %s10352_s22 = scalar_select %p419_p1, %s10210_s29, %s421_s20  }
  0x11   : > { %p10354_p5 = por %p432_p2, %p431_p0  ;;  %p10358_p6 = por %p438_p4, %p437_p3 }
  0x12   : > { %13103 = sst [smem:[#allocation9_spill]] %s10352_s22  ;;  %p8010_p7 = scmp.ge.s32.totalorder %s10214_s30, 1 }
  0x13   : > { %s13105_s23 = scalar_select %p10358_p6, 1, 0 }
  0x14   : > { %p515_p8 = scmp.lt.s32.totalorder %s10214_s30, 3 }
  0x15   : > { %13106 = sst [smem:[#allocation10_spill]] %s13105_s23 }
  0x16   : > { %p516_p9 = pnand %p8010_p7, %p515_p8 }
  0x18   : > { %519 = sbr.rel (%p516_p9) target bundleno = 2186 (0x88a), region = 92 }
  0x1d   : > { %s13107_s26 = sld [smem:[#allocation23_spill]]  ;;  %vm690_vm0 = vcmask 1040384   ;;  %vm691_vm1 = vcmask 1041408   ;;  %p569_p10 = scmp.lt.s32.totalorder %s10337_s0, 1  ;;  %v10216_v1 = vmov 65535   ;;  %vm677_vm2 = vcmask 23552  }
  0x1e   : > { %v692_v2 = vsel %vm690_vm0, 4294967295, %v10216_v1  ;;  %s13108_s21 = sld [smem:[#allocation22_spill]]  ;;  %vm575_vm3 = vcmask 261120   ;;  %vm577_vm4 = vcmask 253952   ;;  %vm5765_vm5 = vcmask 523264  }
  0x1f   : > { %v10374_v5 = vsel %vm691_vm1, %v692_v2, 0  ;;  %s570_s29 = scalar_select %p569_p10, %s10337_s0, 1  ;;  %vm6284_vm6 = vcmask 254976  }
  0x20   : > { %s13139_s25 = sld [smem:[#allocation24_spill]] }
  0x21   : > { %s9698_s19 = smul.u32 576, %s570_s29  ;;  %s13145_s3 = sld [smem:[#allocation25_spill]] }
  0x22   : > { %s13148_s5 = sld [smem:[#allocation27_spill]] }
  0x23   : > { %v8021_v0 = vld [vmem:[%s13107_s26 + $0x2] sm:$0x3]  ;;  %v657_v3 = vld [vmem:[%s13107_s26] sm:$0x3]  ;;  %v8030_v4 = vld [vmem:[%s13107_s26 + $0x4] sm:$0x3] }
  0x24   : > { %v8043_v6 = vld [vmem:[%s13107_s26 + $0x6] sm:$0x3]  ;;  %v695_v7 = vand.u32 %v8021_v0, %v10374_v5  ;;  %v775_v8 = vand.u32 %v10374_v5, %v657_v3  ;;  %v869_v9 = vand.u32 %v8030_v4, %v10374_v5  ;;  %s10387_s1 = scalar_lea.vmem %s13108_s21, %s9698_s19  ;;  %v8056_v11 = vld [vmem:[%s13107_s26 + $0x8] sm:$0x3]  ;;  %v8069_v12 = vld [vmem:[%s13107_s26 + $0xa] sm:$0x3] }
  0x25   : > { %v972_v10 = vand.u32 %v8043_v6, %v10374_v5  ;;  %v8013_v13 = vld [vmem:[%s10387_s1 + $0x90] sm:$0xff]  ;;  %v10397_v14 = vld [vmem:[%s10387_s1 + $0xa0] sm:$0xff]  ;;  %v1075_v29 = vand.u32 %v8056_v11, %v10374_v5  ;;  %v1177_v32 = vand.u32 %v8069_v12, %v10374_v5  ;;  %v8082_v54 = vld [vmem:[%s13107_s26 + $0xc] sm:$0x3]  ;;  %s13149_s4 = sld [smem:[#allocation26_spill]]  ;;  %s8689_s19 = sshll.u32 %s10337_s0, 10 }
  0x26   : > { %9026 = vmatprep.subr.bf16.mxu0 %v695_v7  ;;  %9036 = vmatprep.subr.bf16.mxu1 %v775_v8  ;;  %v649_v15 = vld [vmem:[%s10387_s1] sm:$0xff]  ;;  %v10401_v16 = vpack.c.bf16 %v10397_v14, %v8013_v13  ;;  %v10404_v17 = vld [vmem:[%s10387_s1 + $0x10] sm:$0xff]  ;;  %v8095_v56 = vld [vmem:[%s13107_s26 + $0xe] sm:$0x3]  ;;  %v1280_v59 = vand.u32 %v8082_v54, %v10374_v5  ;;  %s12997_s24 = scalar_lea.hbm %s13065_s18, %s8689_s19  ;;  %s10218_s19 = smov [#allocation4]  }
  0x27   : > { %9027 = vmatpush3.bf16.msra.mxu0 %v695_v7  ;;  %9037 = vmatpush3.bf16.msra.mxu1 %v775_v8  ;;  %v10407_v18 = vld [vmem:[%s10387_s1 + $0xb0] sm:$0xff]  ;;  %v10410_v19 = vld [vmem:[%s10387_s1 + $0xc0] sm:$0xff]  ;;  %v658_v20 = vpack.c.bf16 %v10404_v17, %v649_v15  ;;  %v1383_v60 = vand.u32 %v8095_v56, %v10374_v5  ;;  %s10158_s20 = sshll.u32 %s10218_s19, 4  ;;  %s10159_s20 = int_to_ptr.vmem [resolvable:$false] %s10158_s20 }
  0x28   : > { %9046 = vmatprep.subr.bf16.mxu0 %v869_v9  ;;  %9056 = vmatprep.subr.bf16.mxu1 %v972_v10  ;;  %v10415_v21 = vpack.c.bf16 %v10410_v19, %v10407_v18  ;;  %v10418_v22 = vld [vmem:[%s10387_s1 + $0x20] sm:$0xff]  ;;  %v10421_v23 = vld [vmem:[%s10387_s1 + $0x30] sm:$0xff]  ;;  %s10160_s21 = scalar_lea.vmem %s10159_s20, 2048 }
  0x29   : > { %v10424_v24 = vld [vmem:[%s10387_s1 + $0xd0] sm:$0xff]  ;;  %9028 = vmatprep.mubr.msk.bf16.mxu0 %vm677_vm2, %v10401_v16  ;;  %v659_v25 = vpack.c.bf16 %v10421_v23, %v10418_v22  ;;  %v10431_v26 = vld [vmem:[%s10387_s1 + $0xe0] sm:$0xff]  ;;  %9038 = vmatprep.mubr.msk.bf16.mxu1 %vm677_vm2, %v658_v20 }
  0x2a   : > { %v10434_v27 = vld [vmem:[%s10387_s1 + $0x40] sm:$0xff]  ;;  %v10437_v28 = vld [vmem:[%s10387_s1 + $0x50] sm:$0xff]  ;;  %9029 = vmatmul.mubr.msk.bf16.vlgmr.msra.gmra.mxu0 %vm677_vm2, %v10415_v21  ;;  %v10445_v30 = vpack.c.bf16 %v10431_v26, %v10424_v24 }
  0x2b   : > { %v660_v31 = vpack.c.bf16 %v10437_v28, %v10434_v27  ;;  %9039 = vmatmul.mubr.msk.bf16.vlgmr.msra.gmra.mxu1 %vm677_vm2, %v659_v25  ;;  %9047 = vmatpush3.bf16.msra.mxu0 %v869_v9  ;;  %v10452_v33 = vld [vmem:[%s10387_s1 + $0xf0] sm:$0xff]  ;;  %v10455_v34 = vld [vmem:[%s10387_s1 + $0x100] sm:$0xff] }
  0x2c   : > { %v10458_v35 = vld [vmem:[%s10387_s1 + $0x60] sm:$0xff]  ;;  %9057 = vmatpush3.bf16.msra.mxu1 %v972_v10  ;;  %9032 = vmatprep.mubr.msk.bf16.mxu0 %vm677_vm2, %v10445_v30  ;;  %v10463_v36 = vld [vmem:[%s10387_s1 + $0x70] sm:$0xff]  ;;  %v10476_v41 = vpack.c.bf16 %v10455_v34, %v10452_v33 }
  0x2d   : > { %v842_v37 = vld [vmem:[%s10387_s1 + $0x1] sm:$0xff]  ;;  %v10467_v38 = vld [vmem:[%s10387_s1 + $0x11] sm:$0xff]  ;;  %9042 = vmatprep.mubr.msk.bf16.mxu1 %vm677_vm2, %v660_v31  ;;  %9066 = vmatprep.subr.bf16.mxu0 %v1075_v29  ;;  %v661_v42 = vpack.c.bf16 %v10463_v36, %v10458_v35 }
  0x2e   : > { %v8035_v39 = vld [vmem:[%s10387_s1 + $0x120] sm:$0xff]  ;;  %v10472_v40 = vld [vmem:[%s10387_s1 + $0x130] sm:$0xff]  ;;  %9076 = vmatprep.subr.bf16.mxu1 %v1177_v32  ;;  %v10481_v43 = vpack.c.bf16 %v10467_v38, %v842_v37 }
  0x2f   : > { %v10484_v44 = vpack.c.bf16 %v10472_v40, %v8035_v39  ;;  %v10492_v45 = vld [vmem:[%s10387_s1 + $0x21] sm:$0xff]  ;;  %v10495_v46 = vld [vmem:[%s10387_s1 + $0x31] sm:$0xff] }
  0x30   : > { %v10500_v47 = vld [vmem:[%s10387_s1 + $0x140] sm:$0xff]  ;;  %v10503_v48 = vld [vmem:[%s10387_s1 + $0x150] sm:$0xff]  ;;  %v10513_v51 = vpack.c.bf16 %v10495_v46, %v10492_v45 }
  0x31   : > { %v10506_v49 = vld [vmem:[%s10387_s1 + $0x41] sm:$0xff]  ;;  %v10509_v50 = vld [vmem:[%s10387_s1 + $0x51] sm:$0xff]  ;;  %v10526_v55 = vpack.c.bf16 %v10503_v48, %v10500_v47 }
  0x32   : > { %9033 = vmatmul.mubr.msk.bf16.gmra.mxu0 %vm677_vm2, %v10476_v41  ;;  %v10516_v52 = vld [vmem:[%s10387_s1 + $0x160] sm:$0xff]  ;;  %v10519_v53 = vld [vmem:[%s10387_s1 + $0x170] sm:$0xff]  ;;  %v10533_v57 = vpack.c.bf16 %v10509_v50, %v10506_v49 }
  0x33   : > { %9043 = vmatmul.mubr.msk.bf16.gmra.mxu1 %vm677_vm2, %v661_v42  ;;  %9048 = vmatprep.mubr.msk.bf16.mxu0 %vm677_vm2, %v10481_v43  ;;  %v10537_v58 = vpack.c.bf16 %v10519_v53, %v10516_v52  ;;  %v10546_v61 = vld [vmem:[%s10387_s1 + $0x61] sm:$0xff]  ;;  %v10549_v62 = vld [vmem:[%s10387_s1 + $0x71] sm:$0xff] }
  0x34   : > { %9058 = vmatprep.mubr.msk.bf16.mxu1 %vm677_vm2, %v10484_v44  ;;  %v10552_v63 = vld [vmem:[%s10387_s1 + $0x180] sm:$0xff]  ;;  %v10557_v0 = vld [vmem:[%s10387_s1 + $0x190] sm:$0xff]  ;;  %v10571_v6 = vpack.c.bf16 %v10549_v62, %v10546_v61 }
  0x35   : > { %v8048_v1 = vld [vmem:[%s10387_s1 + $0x1b0] sm:$0xff]  ;;  %v10561_v2 = vld [vmem:[%s10387_s1 + $0x1c0] sm:$0xff]  ;;  %v10575_v7 = vpack.c.bf16 %v10557_v0, %v10552_v63 }
  0x36   : > { %v8061_v3 = vld [vmem:[%s10387_s1 + $0x121] sm:$0xff]  ;;  %v10567_v4 = vld [vmem:[%s10387_s1 + $0x131] sm:$0xff]  ;;  %v10578_v8 = vpack.c.bf16 %v10561_v2, %v8048_v1 }
  0x37   : > { %13109 = vst [vmem:[#allocation11_spill] sm:$0xff] %v10567_v4  ;;  %v10581_v9 = vpack.c.bf16 %v10567_v4, %v8061_v3  ;;  %v10584_v10 = vld [vmem:[%s10387_s1 + $0x1d0] sm:$0xff]  ;;  %v10587_v11 = vld [vmem:[%s10387_s1 + $0x1e0] sm:$0xff] }
  0x38   : > { %v10592_v12 = vld [vmem:[%s10387_s1 + $0x141] sm:$0xff]  ;;  %v10595_v13 = vld [vmem:[%s10387_s1 + $0x151] sm:$0xff]  ;;  %v10623_v37 = vpack.c.bf16 %v10587_v11, %v10584_v10 }
  0x39   : > { %13110 = vst [vmem:[#allocation12_spill] sm:$0xff] %v10592_v12  ;;  %13111 = vst [vmem:[#allocation13_spill] sm:$0xff] %v10595_v13  ;;  %v10602_v15 = vld [vmem:[%s10387_s1 + $0x1f0] sm:$0xff]  ;;  %v10605_v20 = vld [vmem:[%s10387_s1 + $0x200] sm:$0xff]  ;;  %v10627_v39 = vpack.c.bf16 %v10595_v13, %v10592_v12 }
  0x3a   : > { %9049 = vmatmul.mubr.msk.bf16.vlgmr.msra.gmra.mxu0 %vm677_vm2, %v10513_v51  ;;  %v10610_v25 = vld [vmem:[%s10387_s1 + $0x161] sm:$0xff]  ;;  %v8108_v31 = vld [vmem:[%s13107_s26 + $0x10] sm:$0x3]  ;;  %v10631_v42 = vpack.c.bf16 %v10605_v20, %v10602_v15 }
  0x3b   : > { %9059 = vmatmul.mubr.msk.bf16.vlgmr.msra.gmra.mxu1 %vm677_vm2, %v10526_v55  ;;  %9067 = vmatpush3.bf16.msra.mxu0 %v1075_v29  ;;  %13112 = vst [vmem:[#allocation14_spill] sm:$0xff] %v10610_v25  ;;  %v10613_v29 = vld [vmem:[%s10387_s1 + $0x171] sm:$0xff]  ;;  %v10641_v1 = vld [vmem:[%s10387_s1 + $0x220] sm:$0xff]  ;;  %v1485_v3 = vand.u32 %v8108_v31, %v10374_v5 }
  0x3c   : > { %9077 = vmatpush3.bf16.msra.mxu1 %v1177_v32  ;;  %9052 = vmatprep.mubr.msk.bf16.mxu0 %vm677_vm2, %v10533_v57  ;;  %13113 = vst [vmem:[#allocation15_spill] sm:$0xff] %v10613_v29  ;;  %v8122_v32 = vld [vmem:[%s13107_s26 + $0x2] sm:$0x3]  ;;  %v10635_v54 = vpack.c.bf16 %v10613_v29, %v10610_v25  ;;  %v10638_v56 = vld [vmem:[%s10387_s1 + $0x210] sm:$0xff] }
  0x3d   : > { %9062 = vmatprep.mubr.msk.bf16.mxu1 %vm677_vm2, %v10537_v58  ;;  %9086 = vmatprep.subr.bf16.mxu0 %v1280_v59  ;;  %v10647_v4 = vld [vmem:[%s10387_s1 + $0x181] sm:$0xff]  ;;  %v1695_v13 = vand.u32 %v8122_v32, %v10374_v5  ;;  %v10653_v12 = vld [vmem:[%s10387_s1 + $0x191] sm:$0xff]  ;;  %v10661_v31 = vpack.c.bf16 %v10641_v1, %v10638_v56 }
  0x3e   : > { %9096 = vmatprep.subr.bf16.mxu1 %v1383_v60  ;;  %13114 = vst [vmem:[#allocation16_spill] sm:$0xff] %v10647_v4  ;;  %13115 = vst [vmem:[#allocation17_spill] sm:$0xff] %v10653_v12  ;;  %v10665_v32 = vpack.c.bf16 %v10653_v12, %v10647_v4  ;;  %v10699_v12 = vpack.c.bf16 %v10458_v35, %v10437_v28  ;;  %v10703_v4 = vpack.c.bf16 %v10452_v33, %v10431_v26  ;;  %v8081_v29 = vld [vmem:[%s10387_s1 + $0x80] sm:$0xff]  ;;  %v8165_v35 = vld [vmem:[%s13107_s26 + $0x8] sm:$0x3] }
  0x3f   : > { %v3245_v28 = vpack.c.bf16 %v10500_v47, %v10472_v40  ;;  %v3347_v33 = vpack.c.bf16 %v10584_v10, %v10561_v2  ;;  %v8307_v10 = vld [vmem:[%s10387_s1 + $0x1a0] sm:$0xff] }
  0x42   : > { %9053 = vmatmul.mubr.msk.bf16.gmra.mxu0 %vm677_vm2, %v10571_v6 }
  0x43   : > { %9063 = vmatmul.mubr.msk.bf16.gmra.mxu1 %vm677_vm2, %v10575_v7  ;;  %9068 = vmatprep.mubr.msk.bf16.mxu0 %vm677_vm2, %v10578_v8 }
  0x44   : > { %9078 = vmatprep.mubr.msk.bf16.mxu1 %vm677_vm2, %v10581_v9 }
  0x4a   : > { %9069 = vmatmul.mubr.msk.bf16.vlgmr.msra.gmra.mxu0 %vm677_vm2, %v10623_v37 }
  0x4b   : > { %9079 = vmatmul.mubr.msk.bf16.vlgmr.msra.gmra.mxu1 %vm677_vm2, %v10627_v39  ;;  %9087 = vmatpush3.bf16.msra.mxu0 %v1280_v59  ;;  %v10669_v59 = vpack.c.bf16 %v10418_v22, %v10404_v17  ;;  %v1664_v17 = vld [vmem:[%s13107_s26] sm:$0x3]  ;;  %v10695_v22 = vpack.c.bf16 %v10424_v24, %v10410_v19  ;;  %v8094_v19 = vld [vmem:[%s10387_s1 + $0x110] sm:$0xff]  ;;  %v10718_v24 = vpack.c.bf16 %v8081_v29, %v10463_v36 }
  0x4c   : > { %9097 = vmatpush3.bf16.msra.mxu1 %v1383_v60  ;;  %9072 = vmatprep.mubr.msk.bf16.mxu0 %vm677_vm2, %v10631_v42  ;;  %v10673_v60 = vpack.c.bf16 %v10407_v18, %v10397_v14  ;;  %v8139_v14 = vld [vmem:[%s13107_s26 + $0x4] sm:$0x3]  ;;  %v10691_v18 = vpack.c.bf16 %v10434_v27, %v10421_v23  ;;  %v1775_v25 = vand.u32 %v1664_v17, %v10374_v5  ;;  %v10794_v17 = vld [vmem:[%s10387_s1 + $0xd1] sm:$0xff] }
  0x4d   : > { %9082 = vmatprep.mubr.msk.bf16.mxu1 %vm677_vm2, %v10635_v54  ;;  %9106 = vmatprep.subr.bf16.mxu0 %v1485_v3  ;;  %v1868_v23 = vand.u32 %v8139_v14, %v10374_v5  ;;  %v10721_v26 = vpack.c.bf16 %v8094_v19, %v10455_v34  ;;  %v10725_v27 = vpack.c.bf16 %v10492_v45, %v10467_v38  ;;  %v8152_v34 = vld [vmem:[%s13107_s26 + $0x6] sm:$0x3] }
  0x4e   : > { %9116 = vmatprep.subr.bf16.mxu1 %v1695_v13  ;;  %v10747_v36 = vpack.c.bf16 %v10506_v49, %v10495_v46  ;;  %v10751_v38 = vpack.c.bf16 %v10546_v61, %v10509_v50  ;;  %v3246_v45 = vpack.c.bf16 %v10516_v52, %v10503_v48  ;;  %v2070_v29 = vand.u32 %v8165_v35, %v10374_v5  ;;  %v8107_v46 = vld [vmem:[%s10387_s1 + $0x81] sm:$0xff]  ;;  %v8131_v49 = vld [vmem:[%s10387_s1 + $0x91] sm:$0xff] }
  0x4f   : > { %v10770_v50 = vld [vmem:[%s10387_s1 + $0xa1] sm:$0xff]  ;;  %v10773_v61 = vpack.c.bf16 %v8107_v46, %v10549_v62  ;;  %v10817_v46 = vld [vmem:[%s10387_s1 + $0xf1] sm:$0xff] }
  0x50   : > { %v10791_v62 = vld [vmem:[%s10387_s1 + $0xc1] sm:$0xff]  ;;  %v11126_v48 = vld [vmem:[%s10387_s1 + $0x230] sm:$0xff] }
  0x51   : > { %v10797_v14 = vld [vmem:[%s10387_s1 + $0xe1] sm:$0xff]  ;;  %13116 = vst [vmem:[#allocation18_spill] sm:$0xff] %v11126_v48 }
  0x52   : > { %9073 = vmatmul.mubr.msk.bf16.gmra.mxu0 %vm677_vm2, %v10661_v31  ;;  %v1853_v19 = vpack.c.bf16 %v10797_v14, %v10794_v17 }
  0x53   : > { %9083 = vmatmul.mubr.msk.bf16.gmra.mxu1 %vm677_vm2, %v10665_v32  ;;  %9088 = vmatprep.mubr.msk.bf16.mxu0 %vm677_vm2, %v10669_v59 }
  0x54   : > { %9098 = vmatprep.mubr.msk.bf16.mxu1 %vm677_vm2, %v10673_v60 }
  0x5a   : > { %9089 = vmatmul.mubr.msk.bf16.vlgmr.msra.gmra.mxu0 %vm677_vm2, %v10691_v18 }
  0x5b   : > { %9099 = vmatmul.mubr.msk.bf16.vlgmr.msra.gmra.mxu1 %vm677_vm2, %v10695_v22  ;;  %9107 = vmatpush3.bf16.msra.mxu0 %v1485_v3 }
  0x5c   : > { %9117 = vmatpush3.bf16.msra.mxu1 %v1695_v13  ;;  %9092 = vmatprep.mubr.msk.bf16.mxu0 %vm677_vm2, %v10699_v12  ;;  %v3348_v13 = vpack.c.bf16 %v10602_v15, %v10587_v11  ;;  %v3248_v11 = vpack.c.bf16 %v8307_v10, %v10557_v0  ;;  %v8412_v10 = vld [vmem:[%s13107_s26 + $0xa] sm:$0x3] }
  0x5d   : > { %9102 = vmatprep.mubr.msk.bf16.mxu1 %vm677_vm2, %v10703_v4  ;;  %9126 = vmatprep.subr.bf16.mxu0 %v1775_v25 }
  0x5e   : > { %9136 = vmatprep.subr.bf16.mxu1 %v1868_v23 }
  0x62   : > { %9093 = vmatmul.mubr.msk.bf16.gmra.mxu0 %vm677_vm2, %v10718_v24 }
  0x63   : > { %9103 = vmatmul.mubr.msk.bf16.gmra.mxu1 %vm677_vm2, %v10721_v26  ;;  %9108 = vmatprep.mubr.msk.bf16.mxu0 %vm677_vm2, %v10725_v27 }
  0x64   : > { %9118 = vmatprep.mubr.msk.bf16.mxu1 %vm677_vm2, %v10481_v43  ;;  %v1969_v43 = vand.u32 %v8152_v34, %v10374_v5 }
  0x6a   : > { %9109 = vmatmul.mubr.msk.bf16.vlgmr.msra.gmra.mxu0 %vm677_vm2, %v10747_v36 }
  0x6b   : > { %9119 = vmatmul.mubr.msk.bf16.vlgmr.msra.gmra.mxu1 %vm677_vm2, %v10513_v51  ;;  %9127 = vmatpush3.bf16.msra.mxu0 %v1775_v25  ;;  %v1851_v51 = vpack.c.bf16 %v10770_v50, %v8131_v49  ;;  %v3247_v25 = vpack.c.bf16 %v10552_v63, %v10519_v53  ;;  %v10820_v49 = vld [vmem:[%s10387_s1 + $0x101] sm:$0xff]  ;;  %v13117_v53 = vpack.c.bf16 %v10638_v56, %v10605_v20 }
  0x6c   : > { %9137 = vmatpush3.bf16.msra.mxu1 %v1868_v23  ;;  %9112 = vmatprep.mubr.msk.bf16.mxu0 %vm677_vm2, %v10751_v38  ;;  %v8178_v23 = vld [vmem:[%s13107_s26 + $0xa] sm:$0x3] }
  0x6d   : > { %9122 = vmatprep.mubr.msk.bf16.mxu1 %vm677_vm2, %v10533_v57  ;;  %9146 = vmatprep.subr.bf16.mxu0 %v1969_v43  ;;  %v10788_v57 = vld [vmem:[%s10387_s1 + $0xb1] sm:$0xff]  ;;  %v2171_v34 = vand.u32 %v8178_v23, %v10374_v5  ;;  %v8171_v23 = vld [vmem:[%s10387_s1 + $0x1c1] sm:$0xff] }
  0x6e   : > { %9156 = vmatprep.subr.bf16.mxu1 %v2070_v29 }
  0x72   : > { %9113 = vmatmul.mubr.msk.bf16.gmra.mxu0 %vm677_vm2, %v10773_v61 }
  0x73   : > { %9123 = vmatmul.mubr.msk.bf16.gmra.mxu1 %vm677_vm2, %v10571_v6  ;;  %9128 = vmatprep.mubr.msk.bf16.mxu0 %vm677_vm2, %v10401_v16  ;;  %v1852_v6 = vpack.c.bf16 %v10791_v62, %v10788_v57  ;;  %v8191_v16 = vld [vmem:[%s13107_s26 + $0xc] sm:$0x3] }
  0x74   : > { %9138 = vmatprep.mubr.msk.bf16.mxu1 %vm677_vm2, %v1851_v51  ;;  %v2272_v35 = vand.u32 %v8191_v16, %v10374_v5  ;;  %v8170_v51 = vld [vmem:[%s10387_s1 + $0x1b1] sm:$0xff] }
  0x75   : > { %v8172_v16 = vld [vmem:[%s10387_s1 + $0x1d1] sm:$0xff] }
  0x7a   : > { %9129 = vmatmul.mubr.msk.bf16.vlgmr.msra.gmra.mxu0 %vm677_vm2, %v10415_v21  ;;  %v1854_v21 = vpack.c.bf16 %v10820_v49, %v10817_v46 }
  0x7b   : > { %9139 = vmatmul.mubr.msk.bf16.vlgmr.msra.gmra.mxu1 %vm677_vm2, %v1852_v6  ;;  %9147 = vmatpush3.bf16.msra.mxu0 %v1969_v43  ;;  %v8217_v43 = vld [vmem:[%s13107_s26 + $0x10] sm:$0x3]  ;;  %v10850_v6 = vpack.c.bf16 %v8171_v23, %v8170_v51 }
  0x7c   : > { %9157 = vmatpush3.bf16.msra.mxu1 %v2070_v29  ;;  %9132 = vmatprep.mubr.msk.bf16.mxu0 %vm677_vm2, %v10445_v30  ;;  %v8204_v30 = vld [vmem:[%s13107_s26 + $0xe] sm:$0x3] }
  0x7d   : > { %9142 = vmatprep.mubr.msk.bf16.mxu1 %vm677_vm2, %v1853_v19  ;;  %9166 = vmatprep.subr.bf16.mxu0 %v2171_v34  ;;  %v2373_v29 = vand.u32 %v8204_v30, %v10374_v5  ;;  %v8173_v19 = vld [vmem:[%s10387_s1 + $0x1e1] sm:$0xff] }
  0x7e   : > { %9176 = vmatprep.subr.bf16.mxu1 %v2272_v35  ;;  %v8239_v30 = vld [vmem:[%s13107_s26 + $0x2] sm:$0x3] }
  0x7f   : > { %v2684_v23 = vand.u32 %v8239_v30, %v10374_v5 }
  0x82   : > { %9133 = vmatmul.mubr.msk.bf16.gmra.mxu0 %vm677_vm2, %v10476_v41  ;;  %v2474_v41 = vand.u32 %v8217_v43, %v10374_v5  ;;  %v2653_v43 = vld [vmem:[%s13107_s26] sm:$0x3] }
  0x83   : > { %9143 = vmatmul.mubr.msk.bf16.gmra.mxu1 %vm677_vm2, %v1854_v21  ;;  %9148 = vmatprep.mubr.msk.bf16.mxu0 %vm677_vm2, %v10578_v8  ;;  %v10864_v21 = vpack.c.bf16 %v8173_v19, %v8172_v16  ;;  %v2764_v3 = vand.u32 %v2653_v43, %v10374_v5  ;;  %v8176_v16 = vld [vmem:[%s10387_s1 + $0x211] sm:$0xff]  ;;  %v8177_v19 = vld [vmem:[%s10387_s1 + $0x221] sm:$0xff] }
  0x84   : > { %9158 = vmatprep.mubr.msk.bf16.mxu1 %vm677_vm2, %v10581_v9 }
  0x8a   : > { %9149 = vmatmul.mubr.msk.bf16.vlgmr.msra.gmra.mxu0 %vm677_vm2, %v10623_v37 }
  0x8b   : > { %9159 = vmatmul.mubr.msk.bf16.vlgmr.msra.gmra.mxu1 %vm677_vm2, %v10627_v39  ;;  %9167 = vmatpush3.bf16.msra.mxu0 %v2171_v34  ;;  %v8174_v34 = vld [vmem:[%s10387_s1 + $0x1f1] sm:$0xff] }
  0x8c   : > { %9177 = vmatpush3.bf16.msra.mxu1 %v2272_v35  ;;  %9152 = vmatprep.mubr.msk.bf16.mxu0 %vm677_vm2, %v10631_v42  ;;  %v8175_v35 = vld [vmem:[%s10387_s1 + $0x201] sm:$0xff] }
  0x8d   : > { %9162 = vmatprep.mubr.msk.bf16.mxu1 %vm677_vm2, %v10635_v54  ;;  %9186 = vmatprep.subr.bf16.mxu0 %v2373_v29  ;;  %v10872_v51 = vpack.c.bf16 %v8175_v35, %v8174_v34  ;;  %v10886_v34 = vpack.c.bf16 %v8177_v19, %v8176_v16  ;;  %v2457_v35 = vpack.c.bf16 %v10788_v57, %v10770_v50  ;;  %v8269_v50 = vld [vmem:[%s13107_s26 + $0x6] sm:$0x3]  ;;  %v13123_v19 = vld [vmem:[#allocation16_spill] sm:$0xff] }
  0x8e   : > { %9196 = vmatprep.subr.bf16.mxu1 %v2474_v41  ;;  %v2459_v57 = vpack.c.bf16 %v10817_v46, %v10797_v14  ;;  %v10913_v43 = vand.u32 %v8269_v50, %v10374_v5  ;;  %v8282_v14 = vld [vmem:[%s13107_s26 + $0x8] sm:$0x3]  ;;  %v8295_v46 = vld [vmem:[%s13107_s26 + $0xa] sm:$0x3]  ;;  %v13122_v16 = vld [vmem:[#allocation15_spill] sm:$0xff] }
  0x92   : > { %9153 = vmatmul.mubr.msk.bf16.gmra.mxu0 %vm677_vm2, %v10661_v31 }
  0x93   : > { %9163 = vmatmul.mubr.msk.bf16.gmra.mxu1 %vm677_vm2, %v10665_v32  ;;  %9168 = vmatprep.mubr.msk.bf16.mxu0 %vm677_vm2, %v10850_v6 }
  0x94   : > { %9178 = vmatprep.mubr.msk.bf16.mxu1 %vm677_vm2, %v10673_v60 }
  0x9a   : > { %9169 = vmatmul.mubr.msk.bf16.vlgmr.msra.gmra.mxu0 %vm677_vm2, %v10864_v21 }
  0x9b   : > { %9179 = vmatmul.mubr.msk.bf16.vlgmr.msra.gmra.mxu1 %vm677_vm2, %v10695_v22  ;;  %9187 = vmatpush3.bf16.msra.mxu0 %v2373_v29  ;;  %v8256_v29 = vld [vmem:[%s13107_s26 + $0x4] sm:$0x3] }
  0x9c   : > { %9197 = vmatpush3.bf16.msra.mxu1 %v2474_v41  ;;  %9172 = vmatprep.mubr.msk.bf16.mxu0 %vm677_vm2, %v10872_v51  ;;  %v2458_v41 = vpack.c.bf16 %v10794_v17, %v10791_v62  ;;  %v10908_v30 = vand.u32 %v8256_v29, %v10374_v5  ;;  %v8216_v62 = vld [vmem:[%s10387_s1 + $0x111] sm:$0xff]  ;;  %v13079_v17 = vmov 0.0  }
  0x9d   : > { %9182 = vmatprep.mubr.msk.bf16.mxu1 %vm677_vm2, %v10703_v4  ;;  %9206 = vmatprep.subr.bf16.mxu0 %v2684_v23  ;;  %635 = vst.msk [vmem:[#allocation2 + $0x1d0] sm:$0xff] %vm575_vm3, %v13079_v17  ;;  %576 = vst.msk [vmem:[#allocation2] sm:$0xff] %vm575_vm3, %v13079_v17 }
  0x9e   : > { %9216 = vmatprep.subr.bf16.mxu1 %v2764_v3  ;;  %579 = vst.msk [vmem:[#allocation2 + $0x10] sm:$0xff] %vm575_vm3, %v13079_v17  ;;  %581 = vst.msk [vmem:[#allocation2 + $0x20] sm:$0xff] %vm575_vm3, %v13079_v17 }
  0x9f   : > { %583 = vst.msk [vmem:[#allocation2 + $0x30] sm:$0xff] %vm575_vm3, %v13079_v17  ;;  %585 = vst.msk [vmem:[#allocation2 + $0x40] sm:$0xff] %vm575_vm3, %v13079_v17 }
  0xa0   : > { %587 = vst.msk [vmem:[#allocation2 + $0x50] sm:$0xff] %vm575_vm3, %v13079_v17  ;;  %589 = vst.msk [vmem:[#allocation2 + $0x60] sm:$0xff] %vm575_vm3, %v13079_v17 }
  0xa1   : > { %591 = vst.msk [vmem:[#allocation2 + $0x70] sm:$0xff] %vm575_vm3, %v13079_v17  ;;  %593 = vst.msk [vmem:[#allocation2 + $0x80] sm:$0xff] %vm575_vm3, %v13079_v17 }
  0xa2   : > { %9173 = vmatmul.mubr.msk.bf16.gmra.mxu0 %vm677_vm2, %v10886_v34  ;;  %595 = vst.msk [vmem:[#allocation2 + $0x90] sm:$0xff] %vm575_vm3, %v13079_v17  ;;  %597 = vst.msk [vmem:[#allocation2 + $0xa0] sm:$0xff] %vm575_vm3, %v13079_v17 }
  0xa3   : > { %9183 = vmatmul.mubr.msk.bf16.gmra.mxu1 %vm677_vm2, %v10721_v26  ;;  %9188 = vmatprep.mubr.msk.bf16.mxu0 %vm677_vm2, %v10725_v27  ;;  %599 = vst.msk [vmem:[#allocation2 + $0xb0] sm:$0xff] %vm575_vm3, %v13079_v17  ;;  %601 = vst.msk [vmem:[#allocation2 + $0xc0] sm:$0xff] %vm575_vm3, %v13079_v17 }
  0xa4   : > { %9198 = vmatprep.mubr.msk.bf16.mxu1 %vm677_vm2, %v2457_v35  ;;  %603 = vst.msk [vmem:[#allocation2 + $0xd0] sm:$0xff] %vm575_vm3, %v13079_v17  ;;  %605 = vst.msk [vmem:[#allocation2 + $0xe0] sm:$0xff] %vm575_vm3, %v13079_v17  ;;  %v3450_v35 = vpack.c.bf16 %v13123_v19, %v13122_v16  ;;  %v8378_v16 = vld [vmem:[%s10387_s1 + $0xa0] sm:$0xff]  ;;  %v8379_v19 = vld [vmem:[%s10387_s1 + $0xb0] sm:$0xff] }
  0xa5   : > { %607 = vst.msk [vmem:[#allocation2 + $0xf0] sm:$0xff] %vm575_vm3, %v13079_v17  ;;  %609 = vst.msk [vmem:[#allocation2 + $0x100] sm:$0xff] %vm575_vm3, %v13079_v17 }
  0xa6   : > { %611 = vst.msk [vmem:[#allocation2 + $0x110] sm:$0xff] %vm575_vm3, %v13079_v17  ;;  %613 = vst.msk [vmem:[#allocation2 + $0x120] sm:$0xff] %vm575_vm3, %v13079_v17 }
  0xa7   : > { %615 = vst.msk [vmem:[#allocation2 + $0x130] sm:$0xff] %vm575_vm3, %v13079_v17  ;;  %617 = vst.msk [vmem:[#allocation2 + $0x140] sm:$0xff] %vm575_vm3, %v13079_v17 }
  0xa8   : > { %619 = vst.msk [vmem:[#allocation2 + $0x150] sm:$0xff] %vm575_vm3, %v13079_v17  ;;  %621 = vst.msk [vmem:[#allocation2 + $0x160] sm:$0xff] %vm575_vm3, %v13079_v17 }
  0xa9   : > { %623 = vst.msk [vmem:[#allocation2 + $0x170] sm:$0xff] %vm575_vm3, %v13079_v17  ;;  %625 = vst.msk [vmem:[#allocation2 + $0x180] sm:$0xff] %vm575_vm3, %v13079_v17 }
  0xaa   : > { %9189 = vmatmul.mubr.msk.bf16.vlgmr.msra.gmra.mxu0 %vm677_vm2, %v10747_v36  ;;  %627 = vst.msk [vmem:[#allocation2 + $0x190] sm:$0xff] %vm575_vm3, %v13079_v17  ;;  %631 = vst.msk [vmem:[#allocation2 + $0x1b0] sm:$0xff] %vm575_vm3, %v13079_v17 }
  0xab   : > { %9199 = vmatmul.mubr.msk.bf16.vlgmr.msra.gmra.mxu1 %vm677_vm2, %v2458_v41  ;;  %9207 = vmatpush3.bf16.msra.mxu0 %v2684_v23  ;;  %633 = vst.msk [vmem:[#allocation2 + $0x1c0] sm:$0xff] %vm575_vm3, %v13079_v17  ;;  %637 = vst.msk [vmem:[#allocation2 + $0x1e0] sm:$0xff] %vm575_vm3, %v13079_v17  ;;  %v3160_v23 = vand.u32 %v8295_v46, %v10374_v5 }
  0xac   : > { %9217 = vmatpush3.bf16.msra.mxu1 %v2764_v3  ;;  %9192 = vmatprep.mubr.msk.bf16.mxu0 %vm677_vm2, %v10751_v38  ;;  %639 = vst.msk [vmem:[#allocation2 + $0x1f0] sm:$0xff] %vm575_vm3, %v13079_v17  ;;  %641 = vst.msk [vmem:[#allocation2 + $0x200] sm:$0xff] %vm575_vm3, %v13079_v17  ;;  %v2460_v3 = vpack.c.bf16 %v8216_v62, %v10820_v49  ;;  %v3059_v49 = vand.u32 %v8282_v14, %v10374_v5  ;;  %v11231_v14 = vld [vmem:[%s10387_s1 + $0x1c0] sm:$0xff] }
  0xad   : > { %643 = vst.msk [vmem:[#allocation2 + $0x210] sm:$0xff] %vm575_vm3, %v13079_v17  ;;  %645 = vst.msk [vmem:[#allocation2 + $0x220] sm:$0xff] %vm575_vm3, %v13079_v17  ;;  %9202 = vmatprep.mubr.msk.bf16.mxu1 %vm677_vm2, %v2459_v57  ;;  %9226 = vmatprep.subr.bf16.mxu0 %v10908_v30 }
  0xae   : > { %6283 = vst.msk [vmem:[#allocation3] sm:$0xff] %vm575_vm3, %v13079_v17  ;;  %6286 = vst.msk [vmem:[#allocation3 + $0x10] sm:$0xff] %vm575_vm3, %v13079_v17  ;;  %9236 = vmatprep.subr.bf16.mxu1 %v10913_v43 }
  0xaf   : > { %6288 = vst.msk [vmem:[#allocation3 + $0x20] sm:$0xff] %vm575_vm3, %v13079_v17  ;;  %6290 = vst.msk [vmem:[#allocation3 + $0x30] sm:$0xff] %vm575_vm3, %v13079_v17 }
  0xb0   : > { %6292 = vst.msk [vmem:[#allocation3 + $0x40] sm:$0xff] %vm575_vm3, %v13079_v17  ;;  %6294 = vst.msk [vmem:[#allocation3 + $0x50] sm:$0xff] %vm575_vm3, %v13079_v17 }
  0xb1   : > { %6296 = vst.msk [vmem:[#allocation3 + $0x60] sm:$0xff] %vm575_vm3, %v13079_v17  ;;  %6298 = vst.msk [vmem:[#allocation3 + $0x70] sm:$0xff] %vm575_vm3, %v13079_v17 }
  0xb2   : > { %6300 = vst.msk [vmem:[#allocation3 + $0x80] sm:$0xff] %vm575_vm3, %v13079_v17  ;;  %6302 = vst.msk [vmem:[#allocation3 + $0x90] sm:$0xff] %vm575_vm3, %v13079_v17  ;;  %9193 = vmatmul.mubr.msk.bf16.gmra.mxu0 %vm677_vm2, %v10773_v61 }
  0xb3   : > { %9203 = vmatmul.mubr.msk.bf16.gmra.mxu1 %vm677_vm2, %v2460_v3  ;;  %9208 = vmatprep.mubr.msk.bf16.mxu0 %vm677_vm2, %v10578_v8  ;;  %v8334_v8 = vld [vmem:[%s13107_s26 + $0x10] sm:$0x3]  ;;  %618 = vst.msk [vmem:[#allocation2 + $0x148] sm:$0x1] %vm577_vm4, %v13079_v17  ;;  %578 = vst.msk [vmem:[#allocation2 + $0x8] sm:$0x1] %vm577_vm4, %v13079_v17 }
  0xb4   : > { %9218 = vmatprep.mubr.msk.bf16.mxu1 %vm677_vm2, %v10484_v44  ;;  %v8308_v44 = vld [vmem:[%s13107_s26 + $0xc] sm:$0x3]  ;;  %580 = vst.msk [vmem:[#allocation2 + $0x18] sm:$0x1] %vm577_vm4, %v13079_v17  ;;  %582 = vst.msk [vmem:[#allocation2 + $0x28] sm:$0x1] %vm577_vm4, %v13079_v17 }
  0xb5   : > { %584 = vst.msk [vmem:[#allocation2 + $0x38] sm:$0x1] %vm577_vm4, %v13079_v17  ;;  %586 = vst.msk [vmem:[#allocation2 + $0x48] sm:$0x1] %vm577_vm4, %v13079_v17  ;;  %v8340_v3 = vld [vmem:[%s10387_s1 + $0x1b0] sm:$0xff] }
  0xb6   : > { %588 = vst.msk [vmem:[#allocation2 + $0x58] sm:$0x1] %vm577_vm4, %v13079_v17  ;;  %590 = vst.msk [vmem:[#allocation2 + $0x68] sm:$0x1] %vm577_vm4, %v13079_v17 }
  0xb7   : > { %592 = vst.msk [vmem:[#allocation2 + $0x78] sm:$0x1] %vm577_vm4, %v13079_v17  ;;  %594 = vst.msk [vmem:[#allocation2 + $0x88] sm:$0x1] %vm577_vm4, %v13079_v17 }
  0xb8   : > { %614 = vst.msk [vmem:[#allocation2 + $0x128] sm:$0x1] %vm577_vm4, %v13079_v17  ;;  %616 = vst.msk [vmem:[#allocation2 + $0x138] sm:$0x1] %vm577_vm4, %v13079_v17 }
  0xb9   : > { %620 = vst.msk [vmem:[#allocation2 + $0x158] sm:$0x1] %vm577_vm4, %v13079_v17  ;;  %622 = vst.msk [vmem:[#allocation2 + $0x168] sm:$0x1] %vm577_vm4, %v13079_v17 }
  0xba   : > { %9209 = vmatmul.mubr.msk.bf16.vlgmr.msra.gmra.mxu0 %vm677_vm2, %v10623_v37  ;;  %v3465_v37 = vand.u32 %v8334_v8, %v10374_v5  ;;  %624 = vst.msk [vmem:[#allocation2 + $0x178] sm:$0x1] %vm577_vm4, %v13079_v17  ;;  %626 = vst.msk [vmem:[#allocation2 + $0x188] sm:$0x1] %vm577_vm4, %v13079_v17 }
  0xbb   : > { %9219 = vmatmul.mubr.msk.bf16.vlgmr.msra.gmra.mxu1 %vm677_vm2, %v10526_v55  ;;  %9227 = vmatpush3.bf16.msra.mxu0 %v10908_v30  ;;  %v8321_v55 = vld [vmem:[%s13107_s26 + $0xe] sm:$0x3]  ;;  %628 = vst.msk [vmem:[#allocation2 + $0x198] sm:$0x1] %vm577_vm4, %v13079_v17 }
  0xbc   : > { %9237 = vmatpush3.bf16.msra.mxu1 %v10913_v43  ;;  %9212 = vmatprep.mubr.msk.bf16.mxu0 %vm677_vm2, %v10631_v42  ;;  %v11224_v43 = vld [vmem:[%s10387_s1 + $0x1a1] sm:$0xff] }
  0xbd   : > { %9222 = vmatprep.mubr.msk.bf16.mxu1 %vm677_vm2, %v10537_v58  ;;  %9246 = vmatprep.subr.bf16.mxu0 %v3059_v49  ;;  %v3262_v58 = vand.u32 %v8308_v44, %v10374_v5 }
  0xbe   : > { %9256 = vmatprep.subr.bf16.mxu1 %v3160_v23 }
  0xc2   : > { %9213 = vmatmul.mubr.msk.bf16.gmra.mxu0 %vm677_vm2, %v10661_v31  ;;  %v8373_v31 = vld [vmem:[%s13107_s26 + $0x4] sm:$0x3] }
  0xc3   : > { %9223 = vmatmul.mubr.msk.bf16.gmra.mxu1 %vm677_vm2, %v10575_v7  ;;  %9228 = vmatprep.mubr.msk.bf16.mxu0 %vm677_vm2, %v10581_v9  ;;  %v3364_v7 = vand.u32 %v8321_v55, %v10374_v5  ;;  %v3848_v47 = vand.u32 %v8373_v31, %v10374_v5  ;;  %v3645_v55 = vpack.c.bf16 %v11231_v14, %v8340_v3  ;;  %v11269_v31 = vld [vmem:[%s10387_s1 + $0x1f0] sm:$0xff] }
  0xc4   : > { %9238 = vmatprep.mubr.msk.bf16.mxu1 %vm677_vm2, %v10669_v59  ;;  %v8391_v3 = vld [vmem:[%s10387_s1 + $0x11] sm:$0xff] }
  0xca   : > { %9229 = vmatmul.mubr.msk.bf16.vlgmr.msra.gmra.mxu0 %vm677_vm2, %v10627_v39 }
  0xcb   : > { %9239 = vmatmul.mubr.msk.bf16.vlgmr.msra.gmra.mxu1 %vm677_vm2, %v10691_v18  ;;  %9247 = vmatpush3.bf16.msra.mxu0 %v3059_v49  ;;  %v3350_v18 = vpack.c.bf16 %v11126_v48, %v10641_v1  ;;  %v13125_v49 = vld [vmem:[#allocation17_spill] sm:$0xff] }
  0xcc   : > { %9257 = vmatpush3.bf16.msra.mxu1 %v3160_v23  ;;  %9232 = vmatprep.mubr.msk.bf16.mxu0 %vm677_vm2, %v10635_v54  ;;  %v3451_v23 = vpack.c.bf16 %v11224_v43, %v13125_v49 }
  0xcd   : > { %9242 = vmatprep.mubr.msk.bf16.mxu1 %vm677_vm2, %v10699_v12  ;;  %9266 = vmatprep.subr.bf16.mxu0 %v3262_v58  ;;  %v8356_v12 = vld [vmem:[%s13107_s26 + $0x2] sm:$0x3] }
  0xce   : > { %9276 = vmatprep.subr.bf16.mxu1 %v3364_v7  ;;  %v3675_v42 = vand.u32 %v8356_v12, %v10374_v5  ;;  %v11257_v12 = vld [vmem:[%s10387_s1 + $0x1d0] sm:$0xff] }
  0xd2   : > { %9233 = vmatmul.mubr.msk.bf16.gmra.mxu0 %vm677_vm2, %v10665_v32 }
  0xd3   : > { %9243 = vmatmul.mubr.msk.bf16.gmra.mxu1 %vm677_vm2, %v10718_v24  ;;  %9248 = vmatprep.mubr.msk.bf16.mxu0 %vm677_vm2, %v10673_v60  ;;  %v13119_v24 = vld [vmem:[#allocation12_spill] sm:$0xff] }
  0xd4   : > { %9258 = vmatprep.mubr.msk.bf16.mxu1 %vm677_vm2, %v10725_v27 }
  0xda   : > { %9249 = vmatmul.mubr.msk.bf16.vlgmr.msra.gmra.mxu0 %vm677_vm2, %v10695_v22  ;;  %v13118_v22 = vld [vmem:[#allocation11_spill] sm:$0xff] }
  0xdb   : > { %9259 = vmatmul.mubr.msk.bf16.vlgmr.msra.gmra.mxu1 %vm677_vm2, %v10747_v36  ;;  %9267 = vmatpush3.bf16.msra.mxu0 %v3262_v58  ;;  %v13120_v36 = vld [vmem:[#allocation13_spill] sm:$0xff]  ;;  %13124 = vst [vmem:[#allocation11_spill] sm:$0xff] %v11224_v43  ;;  %v8382_v43 = vld [vmem:[%s10387_s1 + $0xe0] sm:$0xff] }
  0xdc   : > { %9277 = vmatpush3.bf16.msra.mxu1 %v3364_v7  ;;  %9252 = vmatprep.mubr.msk.bf16.mxu0 %vm677_vm2, %v10703_v4  ;;  %v3644_v4 = vld [vmem:[%s13107_s26] sm:$0x3] }
  0xdd   : > { %9262 = vmatprep.mubr.msk.bf16.mxu1 %vm677_vm2, %v10751_v38  ;;  %9286 = vmatprep.subr.bf16.mxu0 %v3465_v37  ;;  %v11103_v59 = vand.u32 %v3644_v4, %v10374_v5  ;;  %v13121_v38 = vld [vmem:[#allocation14_spill] sm:$0xff] }
  0xde   : > { %9296 = vmatprep.subr.bf16.mxu1 %v3675_v42 }
  0xe2   : > { %9253 = vmatmul.mubr.msk.bf16.gmra.mxu0 %vm677_vm2, %v10721_v26  ;;  %v3448_v26 = vpack.c.bf16 %v13119_v24, %v13118_v22  ;;  %v11293_v24 = vand.u32 %v8412_v10, %v10374_v5 }
  0xe3   : > { %9263 = vmatmul.mubr.msk.bf16.gmra.mxu1 %vm677_vm2, %v10773_v61  ;;  %9268 = vmatprep.mubr.msk.bf16.mxu0 %vm677_vm2, %v3245_v28 }
  0xe4   : > { %9278 = vmatprep.mubr.msk.bf16.mxu1 %vm677_vm2, %v3347_v33 }
  0xea   : > { %v11105_v40 = vpop.f32.mrf.mxu0  ;;  %9269 = vmatmul.mubr.msk.bf16.vlgmr.msra.gmra.mxu0 %vm677_vm2, %v3246_v45  ;;  %v3449_v45 = vpack.c.bf16 %v13121_v38, %v13120_v36 }
  0xeb   : > { %v11112_v2 = vpop.f32.mrf.mxu1  ;;  %9279 = vmatmul.mubr.msk.bf16.vlgmr.msra.gmra.mxu1 %vm677_vm2, %v3348_v13  ;;  %9287 = vmatpush3.bf16.msra.mxu0 %v3465_v37  ;;  %v8386_v13 = vld [vmem:[%s13107_s26 + $0x6] sm:$0x3] }
  0xec   : > { %v11119_v60 = vpop.f32.mrf.mxu0  ;;  %9297 = vmatpush3.bf16.msra.mxu1 %v3675_v42  ;;  %9272 = vmatprep.mubr.msk.bf16.mxu0 %vm677_vm2, %v3247_v25  ;;  %v8399_v25 = vld [vmem:[%s13107_s26 + $0x8] sm:$0x3]  ;;  %v3949_v41 = vand.u32 %v8386_v13, %v10374_v5  ;;  %v11260_v37 = vld [vmem:[%s10387_s1 + $0x1e0] sm:$0xff] }
  0xed   : > { %v11162_v52 = vpop.f32.mrf.mxu1  ;;  %9282 = vmatprep.mubr.msk.bf16.mxu1 %vm677_vm2, %v13117_v53  ;;  %9306 = vmatprep.subr.bf16.mxu0 %v11103_v59  ;;  %v4050_v57 = vand.u32 %v8399_v25, %v10374_v5  ;;  %v11309_v13 = vld [vmem:[%s10387_s1 + $0x220] sm:$0xff] }
  0xee   : > { %v11169_v63 = vpop.f32.mrf.mxu0  ;;  %9316 = vmatprep.subr.bf16.mxu1 %v3848_v47  ;;  %13129 = vst [vmem:[#allocation15_spill] sm:$0xff] %v11309_v13 }
  0xef   : > { %v11172_v15 = vpop.f32.mrf.mxu1 }
  0xf0   : > { %v11178_v27 = vpop.f32.mrf.mxu0 }
  0xf1   : > { %v11180_v20 = vpop.f32.mrf.mxu1 }
  0xf2   : > { %v11182_v56 = vpop.f32.mrf.mxu0  ;;  %9273 = vmatmul.mubr.msk.bf16.gmra.mxu0 %vm677_vm2, %v3248_v11 }
  0xf3   : > { %v11185_v28 = vpop.f32.mrf.mxu1  ;;  %9283 = vmatmul.mubr.msk.bf16.gmra.mxu1 %vm677_vm2, %v3350_v18  ;;  %9288 = vmatprep.mubr.msk.bf16.mxu0 %vm677_vm2, %v3448_v26 }
  0xf4   : > { %v11189_v0 = vpop.f32.mrf.mxu0  ;;  %9298 = vmatprep.mubr.msk.bf16.mxu1 %vm677_vm2, %v10581_v9 }
  0xf5   : > { %v11193_v1 = vpop.f32.mrf.mxu1 }
  0xf6   : > { %v11195_v33 = vpop.f32.mrf.mxu0 }
  0xf7   : > { %v11202_v61 = vpop.f32.mrf.mxu1 }
  0xf8   : > { %v11207_v9 = vpop.f32.mrf.mxu0 }
  0xf9   : > { %v11211_v29 = vpop.f32.mrf.mxu1 }
  0xfa   : > { %v11214_v50 = vpop.f32.mrf.mxu0  ;;  %9289 = vmatmul.mubr.msk.bf16.vlgmr.msra.gmra.mxu0 %vm677_vm2, %v3449_v45  ;;  %v11306_v45 = vld [vmem:[%s10387_s1 + $0x210] sm:$0xff] }
  0xfb   : > { %v11218_v30 = vpop.f32.mrf.mxu1  ;;  %9299 = vmatmul.mubr.msk.bf16.vlgmr.msra.gmra.mxu1 %vm677_vm2, %v10627_v39  ;;  %9307 = vmatpush3.bf16.msra.mxu0 %v11103_v59  ;;  %v11272_v59 = vld [vmem:[%s10387_s1 + $0x200] sm:$0xff]  ;;  %13128 = vst [vmem:[#allocation14_spill] sm:$0xff] %v11306_v45 }
  0xfc   : > { %v11226_v62 = vpop.f32.mrf.mxu0  ;;  %9317 = vmatpush3.bf16.msra.mxu1 %v3848_v47  ;;  %9292 = vmatprep.mubr.msk.bf16.mxu0 %vm677_vm2, %v3450_v35  ;;  %13126 = vst [vmem:[#allocation12_spill] sm:$0xff] %v11272_v59  ;;  %v3647_v18 = vpack.c.bf16 %v11272_v59, %v11269_v31 }
  0xfd   : > { %v11233_v46 = vpop.f32.mrf.mxu1  ;;  %9302 = vmatprep.mubr.msk.bf16.mxu1 %vm677_vm2, %v10635_v54  ;;  %9326 = vmatprep.subr.bf16.mxu0 %v3949_v41 }
  0xfe   : > { %v11237_v39 = vpop.f32.mrf.mxu0  ;;  %9336 = vmatprep.subr.bf16.mxu1 %v4050_v57 }
  0xff   : > { %v11241_v44 = vpop.f32.mrf.mxu1 }
 0x100   : > { %v11244_v58 = vpop.f32.mrf.mxu0 }
 0x101   : > { %v11246_v7 = vpop.f32.mrf.mxu1 }
 0x102   : > { %v11248_v8 = vpop.f32.mrf.mxu0  ;;  %9293 = vmatmul.mubr.msk.bf16.gmra.mxu0 %vm677_vm2, %v3451_v23  ;;  %v3932_v23 = vpack.c.bf16 %v8379_v19, %v8378_v16  ;;  %v8381_v16 = vld [vmem:[%s10387_s1 + $0xd0] sm:$0xff] }
 0x103   : > { %v11251_v54 = vpop.f32.mrf.mxu1  ;;  %9303 = vmatmul.mubr.msk.bf16.gmra.mxu1 %vm677_vm2, %v10665_v32  ;;  %9308 = vmatprep.mubr.msk.bf16.mxu0 %vm677_vm2, %v3645_v55  ;;  %v3646_v32 = vpack.c.bf16 %v11260_v37, %v11257_v12 }
 0x104   : > { %v11262_v42 = vpop.f32.mrf.mxu0  ;;  %9318 = vmatprep.mubr.msk.bf16.mxu1 %vm677_vm2, %v10850_v6  ;;  %v8425_v6 = vld [vmem:[%s13107_s26 + $0xc] sm:$0x3] }
 0x105   : > { %v11266_v4 = vpop.f32.mrf.mxu1  ;;  %v11299_v36 = vand.u32 %v8425_v6, %v10374_v5 }
 0x106   : > { %v11274_v47 = vpop.f32.mrf.mxu0 }
 0x107   : > { %v11281_v53 = vpop.f32.mrf.mxu1 }
 0x108   : > { %v11286_v11 = vpop.f32.mrf.mxu0 }
 0x109   : > { %v11290_v22 = vpop.f32.mrf.mxu1 }
 0x10a   : > { %13127 = vst [vmem:[#allocation13_spill] sm:$0xff] %v11290_v22  ;;  %v11295_v26 = vpop.f32.mrf.mxu0  ;;  %9309 = vmatmul.mubr.msk.bf16.vlgmr.msra.gmra.mxu0 %vm677_vm2, %v3646_v32  ;;  %v820_v22 = vadd.f32 %v11112_v2, %v11105_v40 }
 0x10b   : > { %v11301_v38 = vpop.f32.mrf.mxu1  ;;  %9319 = vmatmul.mubr.msk.bf16.vlgmr.msra.gmra.mxu1 %vm677_vm2, %v10864_v21  ;;  %9327 = vmatpush3.bf16.msra.mxu0 %v3949_v41  ;;  %v8392_v21 = vld [vmem:[%s10387_s1 + $0x21] sm:$0xff] }
 0x10c   : > { %v11311_v25 = vpop.f32.mrf.mxu0  ;;  %9337 = vmatpush3.bf16.msra.mxu1 %v4050_v57  ;;  %9312 = vmatprep.mubr.msk.bf16.mxu0 %vm677_vm2, %v3647_v18  ;;  %v3648_v57 = vpack.c.bf16 %v11309_v13, %v11306_v45  ;;  %v4033_v55 = vpack.c.bf16 %v8392_v21, %v8391_v3  ;;  %v8380_v18 = vld [vmem:[%s10387_s1 + $0xc0] sm:$0xff]  ;;  %v8393_v3 = vld [vmem:[%s10387_s1 + $0x31] sm:$0xff] }
 0x10d   : > { %v11316_v35 = vpop.f32.mrf.mxu1  ;;  %9322 = vmatprep.mubr.msk.bf16.mxu1 %vm677_vm2, %v10872_v51  ;;  %9346 = vmatprep.subr.bf16.mxu0 %v11293_v24  ;;  %v8394_v21 = vld [vmem:[%s10387_s1 + $0x41] sm:$0xff]  ;;  %v3933_v13 = vpack.c.bf16 %v8381_v16, %v8380_v18  ;;  %v812_v16 = vadd.f32 %v11162_v52, %v11119_v60  ;;  %v823_v60 = vadd.f32 %v11172_v15, %v11169_v63 }
 0x10e   : > { %v11323_v41 = vpop.f32.mrf.mxu0  ;;  %9356 = vmatprep.subr.bf16.mxu1 %v11299_v36  ;;  %v4034_v45 = vpack.c.bf16 %v8394_v21, %v8393_v3  ;;  %v8384_v21 = vld [vmem:[%s10387_s1 + $0x100] sm:$0xff]  ;;  %v815_v63 = vadd.f32 %v11180_v20, %v11178_v27 }
 0x10f   : > { %v11328_v49 = vpop.f32.mrf.mxu1  ;;  %v936_v52 = vadd.f32 %v11226_v62, %v812_v16  ;;  %v939_v62 = vadd.f32 %v11237_v39, %v823_v60  ;;  %v828_v39 = vadd.f32 %v11193_v1, %v11189_v0 }
 0x110   : > { %v11330_v51 = vpop.f32.mrf.mxu0 }
 0x111   : > { %v11332_v32 = vpop.f32.mrf.mxu1 }
 0x112   : > { %13130 = vst [vmem:[#allocation16_spill] sm:$0xff] %v11332_v32  ;;  %v11334_v10 = vpop.f32.mrf.mxu0  ;;  %9313 = vmatmul.mubr.msk.bf16.gmra.mxu0 %vm677_vm2, %v3648_v57  ;;  %v8383_v57 = vld [vmem:[%s10387_s1 + $0xf0] sm:$0xff] }
 0x113   : > { %v11337_v6 = vpop.f32.mrf.mxu1  ;;  %9323 = vmatmul.mubr.msk.bf16.gmra.mxu1 %vm677_vm2, %v10886_v34  ;;  %9328 = vmatprep.mubr.msk.bf16.mxu0 %vm677_vm2, %v3932_v23  ;;  %v8396_v34 = vld [vmem:[%s10387_s1 + $0x61] sm:$0xff]  ;;  %v8438_v23 = vld [vmem:[%s13107_s26 + $0xe] sm:$0x3]  ;;  %v3934_v18 = vpack.c.bf16 %v8383_v57, %v8382_v43 }
 0x114   : > { %13131 = vst [vmem:[#allocation17_spill] sm:$0xff] %v11337_v6  ;;  %v11344_v19 = vpop.f32.mrf.mxu0  ;;  %9338 = vmatprep.mubr.msk.bf16.mxu1 %vm677_vm2, %v4033_v55  ;;  %v8395_v6 = vld [vmem:[%s10387_s1 + $0x51] sm:$0xff]  ;;  %v11375_v2 = vand.u32 %v8438_v23, %v10374_v5  ;;  %v8398_v57 = vld [vmem:[%s10387_s1 + $0x81] sm:$0xff]  ;;  %v1039_v23 = vadd.f32 %v11233_v46, %v936_v52  ;;  %v1042_v46 = vadd.f32 %v11241_v44, %v939_v62 }
 0x115   : > { %v11349_v17 = vpop.f32.mrf.mxu1  ;;  %v4035_v40 = vpack.c.bf16 %v8396_v34, %v8395_v6  ;;  %v8397_v6 = vld [vmem:[%s10387_s1 + $0x71] sm:$0xff]  ;;  %v8408_v52 = vld [vmem:[%s10387_s1 + $0xe1] sm:$0xff] }
 0x116   : > { %13132 = vst [vmem:[#allocation19_spill] sm:$0xff] %v11349_v17  ;;  %v11353_v48 = vpop.f32.mrf.mxu0  ;;  %v8451_v17 = vld [vmem:[%s13107_s26 + $0x10] sm:$0x3]  ;;  %v1145_v44 = vadd.f32 %v11323_v41, %v1042_v46 }
 0x117   : > { %13133 = vst [vmem:[#allocation20_spill] sm:$0xff] %v11353_v48  ;;  %v11362_v55 = vpop.f32.mrf.mxu1  ;;  %v938_v48 = vadd.f32 %v11214_v50, %v820_v22  ;;  %v11380_v43 = vand.u32 %v8451_v17, %v10374_v5  ;;  %v8385_v22 = vld [vmem:[%s10387_s1 + $0x110] sm:$0xff]  ;;  %v8404_v5 = vld [vmem:[%s10387_s1 + $0xa1] sm:$0xff] }
 0x118   : > { %v11367_v59 = vpop.f32.mrf.mxu0  ;;  %v8405_v17 = vld [vmem:[%s10387_s1 + $0xb1] sm:$0xff] }
 0x119   : > { %v11372_v32 = vpop.f32.mrf.mxu1  ;;  %v1041_v15 = vadd.f32 %v11218_v30, %v938_v48  ;;  %v4134_v20 = vpack.c.bf16 %v8405_v17, %v8404_v5  ;;  %v836_v30 = vadd.f32 %v11185_v28, %v11182_v56  ;;  %v940_v28 = vadd.f32 %v11262_v42, %v828_v39 }
 0x11a   : > { %v9090_v3 = vpop.f32.mrf.mxu0  ;;  %9329 = vmatmul.mubr.msk.bf16.vlgmr.msra.gmra.mxu0 %vm677_vm2, %v3933_v13  ;;  %v3935_v13 = vpack.c.bf16 %v8385_v22, %v8384_v21  ;;  %v839_v21 = vadd.f32 %v11202_v61, %v11195_v33  ;;  %v8406_v33 = vld [vmem:[%s10387_s1 + $0xc1] sm:$0xff]  ;;  %v8407_v61 = vld [vmem:[%s10387_s1 + $0xd1] sm:$0xff]  ;;  %v1247_v5 = vadd.f32 %v11328_v49, %v1145_v44 }
 0x11b   : > { %v11385_v50 = vpop.f32.mrf.mxu1  ;;  %9339 = vmatmul.mubr.msk.bf16.vlgmr.msra.gmra.mxu1 %vm677_vm2, %v4034_v45  ;;  %9347 = vmatpush3.bf16.msra.mxu0 %v11293_v24  ;;  %v1144_v27 = vadd.f32 %v11295_v26, %v1041_v15  ;;  %v942_v56 = vadd.f32 %v11248_v8, %v836_v30  ;;  %v831_v8 = vadd.f32 %v11211_v29, %v11207_v9  ;;  %v8409_v22 = vld [vmem:[%s10387_s1 + $0xf1] sm:$0xff] }
 0x11c   : > { %v1316_v34 = vpop.f32.mrf.mxu0  ;;  %9357 = vmatpush3.bf16.msra.mxu1 %v11299_v36  ;;  %9332 = vmatprep.mubr.msk.bf16.mxu0 %vm677_vm2, %v3934_v18  ;;  %v4036_v36 = vpack.c.bf16 %v8398_v57, %v8397_v6  ;;  %v937_v18 = vadd.f32 %v11244_v58, %v815_v63  ;;  %v1142_v58 = vadd.f32 %v11311_v25, %v1039_v23  ;;  %v11458_v63 = vld [vmem:[%s10387_s1 + $0x111] sm:$0xff] }
 0x11d   : > { %v11400_v45 = vpop.f32.mrf.mxu1  ;;  %9342 = vmatprep.mubr.msk.bf16.mxu1 %vm677_vm2, %v4035_v40  ;;  %9366 = vmatprep.subr.bf16.mxu0 %v11375_v2  ;;  %v4235_v40 = vpack.c.bf16 %v11257_v12, %v11231_v14  ;;  %v1246_v14 = vadd.f32 %v11301_v38, %v1144_v27  ;;  %v943_v42 = vadd.f32 %v11274_v47, %v839_v21  ;;  %v13136_v23 = vld [vmem:[#allocation14_spill] sm:$0xff]  ;;  %v13137_v27 = vld [vmem:[#allocation13_spill] sm:$0xff]  ;;  %v8431_v21 = vld [vmem:[%s10387_s1 + $0x141] sm:$0xff] }
 0x11e   : > { %v9091_v24 = vpop.f32.mrf.mxu0  ;;  %9376 = vmatprep.subr.bf16.mxu1 %v11380_v43  ;;  %v1040_v1 = vadd.f32 %v11246_v7, %v937_v18  ;;  %v1244_v38 = vadd.f32 %v11316_v35, %v1142_v58  ;;  %v1045_v6 = vadd.f32 %v11251_v54, %v942_v56  ;;  %v1043_v9 = vadd.f32 %v11266_v4, %v940_v28  ;;  %v8430_v58 = vld [vmem:[%s10387_s1 + $0x131] sm:$0xff] }
 0x11f   : > { %v11408_v48 = vpop.f32.mrf.mxu1  ;;  %v1349_v41 = vadd.f32 %v9090_v3, %v1246_v14  ;;  %v941_v29 = vadd.f32 %v11286_v11, %v831_v8  ;;  %v4135_v57 = vpack.c.bf16 %v8407_v61, %v8406_v33  ;;  %v11455_v3 = vld [vmem:[%s10387_s1 + $0x101] sm:$0xff]  ;;  %v1046_v54 = vadd.f32 %v11281_v53, %v943_v42  ;;  %v13140_v56 = vld [vmem:[#allocation17_spill] sm:$0xff]  ;;  %v13143_v42 = vld [vmem:[#allocation18_spill] sm:$0xff] }
 0x120   : > { %v1319_v16 = vpop.f32.mrf.mxu0  ;;  %v1143_v25 = vadd.f32 %v11330_v51, %v1040_v1  ;;  %v1347_v17 = vadd.f32 %v1316_v34, %v1244_v38  ;;  %v4236_v51 = vpack.c.bf16 %v11269_v31, %v11260_v37  ;;  %v1148_v4 = vadd.f32 %v11334_v10, %v1045_v6  ;;  %v13135_v31 = vld [vmem:[#allocation12_spill] sm:$0xff]  ;;  %v13141_v1 = vld [vmem:[#allocation19_spill] sm:$0xff] }
 0x121   : > { %v11418_v26 = vpop.f32.mrf.mxu1  ;;  %v1146_v11 = vadd.f32 %v11344_v19, %v1043_v9  ;;  %v4136_v62 = vpack.c.bf16 %v8409_v22, %v8408_v52  ;;  %v1452_v34 = vadd.f32 %v11385_v50, %v1349_v41  ;;  %v4237_v18 = vpack.c.bf16 %v13136_v23, %v13135_v31  ;;  %v11474_v19 = vld [vmem:[%s13139_s25] ss:$0 sm:$0xff] }
 0x122   : > { %v11424_v0 = vpop.f32.mrf.mxu0  ;;  %9333 = vmatmul.mubr.msk.bf16.gmra.mxu0 %vm677_vm2, %v3935_v13  ;;  %v13134_v13 = vld [vmem:[#allocation16_spill] sm:$0xff]  ;;  %v1044_v53 = vadd.f32 %v13137_v27, %v941_v29  ;;  %v4137_v50 = vpack.c.bf16 %v11458_v63, %v11455_v3  ;;  %v1250_v28 = vadd.f32 %v13140_v56, %v1148_v4  ;;  %v13142_v8 = vld [vmem:[#allocation15_spill] sm:$0xff]  ;;  %v8432_v4 = vld [vmem:[%s10387_s1 + $0x151] sm:$0xff] }
 0x123   : > { %v11430_v12 = vpop.f32.mrf.mxu1  ;;  %9343 = vmatmul.mubr.msk.bf16.gmra.mxu1 %vm677_vm2, %v4036_v36  ;;  %9348 = vmatprep.mubr.msk.bf16.mxu0 %vm677_vm2, %v4134_v20  ;;  %v1245_v49 = vadd.f32 %v13134_v13, %v1143_v25  ;;  %v1350_v36 = vadd.f32 %v9091_v24, %v1247_v5  ;;  %v13138_v20 = vld [vmem:[#allocation20_spill] sm:$0xff]  ;;  %v1450_v24 = vadd.f32 %v11400_v45, %v1347_v17 }
 0x124   : > { %v1332_v7 = vpop.f32.mrf.mxu0  ;;  %9358 = vmatprep.mubr.msk.bf16.mxu1 %vm677_vm2, %v4235_v40  ;;  %v1149_v10 = vadd.f32 %v13138_v20, %v1046_v54  ;;  %v1248_v14 = vadd.f32 %v13141_v1, %v1146_v11  ;;  %v1147_v44 = vadd.f32 %v11367_v59, %v1044_v53  ;;  %v4238_v38 = vpack.c.bf16 %v13143_v42, %v13142_v8  ;;  %v8443_v25 = vld [vmem:[%s10387_s1 + $0x1c1] sm:$0xff]  ;;  %v8444_v59 = vld [vmem:[%s10387_s1 + $0x1d1] sm:$0xff] }
 0x125   : > { %v11442_v60 = vpop.f32.mrf.mxu1  ;;  %v1348_v39 = vadd.f32 %v1319_v16, %v1245_v49  ;;  %v1453_v45 = vadd.f32 %v11408_v48, %v1350_v36  ;;  %v4336_v48 = vpack.c.bf16 %v8431_v21, %v8430_v58  ;;  %v8433_v11 = vld [vmem:[%s10387_s1 + $0x161] sm:$0xff] }
 0x126   : > { %v9095_v47 = vpop.f32.mrf.mxu0  ;;  %v1251_v41 = vadd.f32 %v11362_v55, %v1149_v10  ;;  %v1351_v52 = vadd.f32 %v1332_v7, %v1248_v14  ;;  %v1249_v17 = vadd.f32 %v11372_v32, %v1147_v44  ;;  %v4437_v7 = vpack.c.bf16 %v8444_v59, %v8443_v25  ;;  %v8445_v49 = vld [vmem:[%s10387_s1 + $0x1e1] sm:$0xff] }
 0x127   : > { %v11450_v35 = vpop.f32.mrf.mxu1  ;;  %v1451_v6 = vadd.f32 %v11418_v26, %v1348_v39  ;;  %v4337_v20 = vpack.c.bf16 %v8433_v11, %v8432_v4  ;;  %v8447_v39 = vld [vmem:[%s10387_s1 + $0x201] sm:$0xff] }
 0x128   : > { %v1335_v15 = vpop.f32.mrf.mxu0  ;;  %v1354_v55 = vadd.f32 %v9095_v47, %v1251_v41  ;;  %v1454_v47 = vadd.f32 %v11442_v60, %v1351_v52  ;;  %v8434_v60 = vld [vmem:[%s10387_s1 + $0x171] sm:$0xff] }
 0x129   : > { %v11465_v37 = vpop.f32.mrf.mxu1 }
 0x12a   : > { %v9110_v30 = vpop.f32.mrf.mxu0  ;;  %9349 = vmatmul.mubr.msk.bf16.vlgmr.msra.gmra.mxu0 %vm677_vm2, %v4135_v57 }
 0x12b   : > { %v1554_v40 = vadd.f32 %v9110_v30, %v1452_v34  ;;  %v11480_v46 = vpop.f32.mrf.mxu1  ;;  %9359 = vmatmul.mubr.msk.bf16.vlgmr.msra.gmra.mxu1 %vm677_vm2, %v4236_v51  ;;  %9367 = vmatpush3.bf16.msra.mxu0 %v11375_v2 }
 0x12c   : > { %v1521_v33 = vpop.f32.mrf.mxu0  ;;  %9377 = vmatpush3.bf16.msra.mxu1 %v11380_v43  ;;  %9352 = vmatprep.mubr.msk.bf16.mxu0 %vm677_vm2, %v4136_v62  ;;  %v1353_v43 = vadd.f32 %v11424_v0, %v1250_v28  ;;  %v1352_v62 = vadd.f32 %v1335_v15, %v1249_v17  ;;  %v8435_v15 = vld [vmem:[%s10387_s1 + $0x181] sm:$0xff]  ;;  %v8450_v17 = vld [vmem:[%s10387_s1 + $0x231] sm:$0xff] }
 0x12d   : > { %v11493_v16 = vadd.f32 %v11474_v19, %v1554_v40  ;;  %v1552_v2 = vadd.f32 %v1521_v33, %v1450_v24  ;;  %v11495_v61 = vpop.f32.mrf.mxu1  ;;  %9362 = vmatprep.mubr.msk.bf16.mxu1 %vm677_vm2, %v4237_v18  ;;  %v1457_v18 = vadd.f32 %v11450_v35, %v1354_v55  ;;  %v8448_v40 = vld [vmem:[%s10387_s1 + $0x211] sm:$0xff]  ;;  %v4338_v28 = vpack.c.bf16 %v8435_v15, %v8434_v60 }
 0x12e   : > { %v9111_v22 = vpop.f32.mrf.mxu0  ;;  %v1456_v32 = vadd.f32 %v11430_v12, %v1353_v43  ;;  %v8446_v12 = vld [vmem:[%s10387_s1 + $0x1f1] sm:$0xff]  ;;  %v1455_v58 = vadd.f32 %v11465_v37, %v1352_v62  ;;  %v4439_v8 = vpack.c.bf16 %v8448_v40, %v8447_v39 }
 0x12f   : > { %v1577_v9 = vmin.f32 %v11493_v16, 20.0  ;;  %v11507_v29 = vadd.f32 %v11474_v19, %v1552_v2  ;;  %v1555_v57 = vadd.f32 %v9111_v22, %v1453_v45  ;;  %v11509_v5 = vpop.f32.mrf.mxu1  ;;  %v4438_v56 = vpack.c.bf16 %v8446_v12, %v8445_v49 }
 0x130   : > { %v1524_v0 = vpop.f32.mrf.mxu0 }
 0x131   : > { %v1587_v51 = vmul.f32 1.442695, %v1577_v9  ;;  %v1575_v3 = vmin.f32 %v11507_v29, 20.0  ;;  %v11514_v63 = vadd.f32 %v11474_v19, %v1555_v57  ;;  %v1553_v26 = vadd.f32 %v1524_v0, %v1451_v6  ;;  %v11516_v54 = vpop.f32.mrf.mxu1  ;;  %v8436_v6 = vld [vmem:[%s10387_s1 + $0x191] sm:$0xff]  ;;  %v8449_v57 = vld [vmem:[%s10387_s1 + $0x221] sm:$0xff]  ;;  %s566_s1 = sand.u32 1, %s10206_s28  }
 0x132   : > { %v9114_v13 = vpop.f32.mrf.mxu0  ;;  %9353 = vmatmul.mubr.msk.bf16.gmra.mxu0 %vm677_vm2, %v4137_v50  ;;  %s8011_s29 = sshll.u32 %s566_s1, 6  ;;  %s13007_s0 = scalar_lea.sflag [#allocation5], %s566_s1 }
 0x133   : > { %9802 = vpow2.f32 %v1587_v51  ;;  %v1583_v34 = vmul.f32 1.442695, %v1575_v3  ;;  %v1578_v36 = vmin.f32 %v11514_v63, 20.0  ;;  %v11526_v31 = vadd.f32 %v11474_v19, %v1553_v26  ;;  %v11528_v23 = vpop.f32.mrf.mxu1  ;;  %9363 = vmatmul.mubr.msk.bf16.gmra.mxu1 %vm677_vm2, %v4238_v38  ;;  %9368 = vmatprep.mubr.msk.bf16.mxu0 %vm677_vm2, %v4336_v48  ;;  %v13144_v3 = vld [vmem:[#allocation11_spill] sm:$0xff]  ;;  %s12972_s23 = scalar_lea.vmem [#allocation4], %s8011_s29 }
 0x134   : > { %v1558_v27 = vadd.f32 %v9114_v13, %v1456_v32  ;;  %v1537_v53 = vpop.f32.mrf.mxu0  ;;  %9378 = vmatprep.mubr.msk.bf16.mxu1 %vm677_vm2, %v4437_v7  ;;  %v4339_v26 = vpack.c.bf16 %v13144_v3, %v8436_v6  ;;  %v4440_v32 = vpack.c.bf16 %v8450_v17, %v8449_v57  ;;  %s7945_s22 = sshll.u32 %s12972_s23, 4  ;;  %s12999_s22 = int_to_ptr.vmem [resolvable:$true] %s7945_s22 }
 0x135   : > { %9804 = vpow2.f32 %v1583_v34  ;;  %v1589_v10 = vmul.f32 1.442695, %v1578_v36  ;;  %v1576_v30 = vmin.f32 %v11526_v31, 20.0  ;;  %v1556_v50 = vadd.f32 %v1537_v53, %v1454_v47  ;;  %v11538_v24 = vpop.f32.mrf.mxu1  ;;  %s10154_s29 = scalar_lea.vmem %s12999_s22, 1024  ;;  %p10161_p0 = scmp.lt.s32.totalorder %s12999_s22, %s10159_s20 }
 0x136   : > { %v11544_v21 = vadd.f32 %v11474_v19, %v1558_v27  ;;  %v9115_v35 = vpop.f32.mrf.mxu0  ;;  %p10155_p11 = scmp.ne.s32.totalorder %s12999_s22, %s10154_s29  ;;  %p10162_p1 = scmp.lt.s32.totalorder %s10160_s21, %s10154_s29 }
 0x137   : > { %9806 = vpow2.f32 %v1589_v10  ;;  %v1585_v1 = vmul.f32 1.442695, %v1576_v30  ;;  %v11547_v14 = vadd.f32 %v11474_v19, %v1556_v50  ;;  %v1559_v44 = vadd.f32 %v9115_v35, %v1457_v18  ;;  %v11549_v33 = vpop.f32.mrf.mxu1 }
 0x138   : > { %v1581_v45 = vmin.f32 %v11544_v21, 20.0  ;;  %v1540_v2 = vpop.f32.mrf.mxu0  ;;  %p10156_p12 = pnand %p10155_p11, %p10354_p5  ;;  %p10163_p2 = por %p10162_p1, %p10161_p0 }
 0x139   : > { %9808 = vpow2.f32 %v1585_v1  ;;  %v1579_v37 = vmin.f32 %v11547_v14, 20.0  ;;  %v11554_v42 = vadd.f32 %v11474_v19, %v1559_v44  ;;  %v1557_v38 = vadd.f32 %v1540_v2, %v1455_v58  ;;  %v11556_v25 = vpop.f32.mrf.mxu1 }
 0x13a   : > { %v1595_v59 = vmul.f32 1.442695, %v1581_v45  ;;  %v11558_v41 = vpop.f32.mrf.mxu0  ;;  %9369 = vmatmul.mubr.msk.bf16.vlgmr.msra.gmra.mxu0 %vm677_vm2, %v4337_v20  ;;  %p10157_p13 = pneg %p10156_p12 }
 0x13b   : > { %v1591_v43 = vmul.f32 1.442695, %v1579_v37  ;;  %v1582_v52 = vmin.f32 %v11554_v42, 20.0  ;;  %v11563_v22 = vadd.f32 %v11474_v19, %v1557_v38  ;;  %v11565_v48 = vpop.f32.mrf.mxu1  ;;  %9379 = vmatmul.mubr.msk.bf16.vlgmr.msra.gmra.mxu1 %vm677_vm2, %v4438_v56  ;;  %9372 = vmatprep.mubr.msk.bf16.mxu0 %vm677_vm2, %v4338_v28 }
 0x13c   : > { %9810 = vpow2.f32 %v1595_v59  ;;  %v11570_v9 = vpop.f32.mrf.mxu0  ;;  %9382 = vmatprep.mubr.msk.bf16.mxu1 %vm677_vm2, %v4439_v8  ;;  %p10164_p3 = pnand %p10163_p2, %p10157_p13 }
 0x13d   : > { %9812 = vpow2.f32 %v1591_v43  ;;  %v1597_v55 = vmul.f32 1.442695, %v1582_v52  ;;  %v1580_v0 = vmin.f32 %v11563_v22, 20.0  ;;  %v11576_v7 = vpop.f32.mrf.mxu1 }
 0x13e   : > { %v11578_v51 = vpop.f32.mrf.mxu0 }
 0x13f   : > { %9814 = vpow2.f32 %v1597_v55  ;;  %v1593_v4 = vmul.f32 1.442695, %v1580_v0  ;;  %v11581_v11 = vpop.f32.mrf.mxu1 }
 0x140   : > { %v9803_v47 = vpop.eup %9802  ;;  %v11583_v62 = vpop.f32.mrf.mxu0 }
 0x141   : > { %v1601_v13 = vadd.f32 2.0, %v9803_v47  ;;  %9816 = vpow2.f32 %v1593_v4  ;;  %v11585_v49 = vpop.f32.mrf.mxu1 }
 0x142   : > { %v9805_v34 = vpop.eup %9804  ;;  %v11587_v36 = vpop.f32.mrf.mxu0  ;;  %9373 = vmatmul.mubr.msk.bf16.gmra.mxu0 %vm677_vm2, %v4339_v26 }
 0x143   : > { %v1609_v12 = vmul.f32 %v9803_v47, %v1601_v13  ;;  %v1599_v60 = vadd.f32 2.0, %v9805_v34  ;;  %v11590_v15 = vpop.f32.mrf.mxu1  ;;  %9383 = vmatmul.mubr.msk.bf16.gmra.mxu1 %vm677_vm2, %v4440_v32 }
 0x144   : > { %v9807_v18 = vpop.eup %9806  ;;  %v11593_v27 = vpop.f32.mrf.mxu0 }
 0x145   : > { %v1625_v53 = vadd.f32 2.0, %v1609_v12  ;;  %v1607_v20 = vmul.f32 %v9805_v34, %v1599_v60  ;;  %v1602_v10 = vadd.f32 2.0, %v9807_v18  ;;  %v11595_v30 = vpop.f32.mrf.mxu1 }
 0x146   : > { %v9809_v50 = vpop.eup %9808  ;;  %v11597_v39 = vpop.f32.mrf.mxu0 }
 0x147   : > { %9818 = vrcp.f32 %v1625_v53  ;;  %v1623_v40 = vadd.f32 2.0, %v1607_v20  ;;  %v1610_v58 = vmul.f32 %v9807_v18, %v1602_v10  ;;  %v11599_v35 = vpop.f32.mrf.mxu1  ;;  %v1600_v56 = vadd.f32 2.0, %v9809_v50 }
 0x148   : > { %v11601_v28 = vpop.f32.mrf.mxu0 }
 0x149   : > { %v9811_v1 = vpop.eup %9810  ;;  %9820 = vrcp.f32 %v1623_v40  ;;  %v1626_v44 = vadd.f32 2.0, %v1610_v58  ;;  %v11603_v45 = vpop.f32.mrf.mxu1  ;;  %v1608_v8 = vmul.f32 %v9809_v50, %v1600_v56  ;;  %v1617_v56 = vmul.f32 %v1609_v12, %v11493_v16 }
 0x14a   : > { %v9813_v2 = vpop.eup %9812  ;;  %v1605_v37 = vadd.f32 2.0, %v9811_v1  ;;  %v11605_v38 = vpop.f32.mrf.mxu0  ;;  %v1618_v16 = vmul.f32 %v1610_v58, %v11514_v63 }
 0x14b   : > { %9822 = vrcp.f32 %v1626_v44  ;;  %v1603_v59 = vadd.f32 2.0, %v9813_v2  ;;  %v11607_v43 = vpop.f32.mrf.mxu1  ;;  %v1624_v6 = vadd.f32 2.0, %v1608_v8 }
 0x14c   : > { %v9815_v52 = vpop.eup %9814  ;;  %v1613_v57 = vmul.f32 %v9811_v1, %v1605_v37  ;;  %v11609_v17 = vpop.f32.mrf.mxu0 }
 0x14d   : > { %v1611_v55 = vmul.f32 %v9813_v2, %v1603_v59  ;;  %v1606_v0 = vadd.f32 2.0, %v9815_v52  ;;  %v11611_v3 = vpop.f32.mrf.mxu1  ;;  %9824 = vrcp.f32 %v1624_v6 }
 0x14e   : > { %v9817_v26 = vpop.eup %9816  ;;  %v1629_v4 = vadd.f32 2.0, %v1613_v57  ;;  %v11613_v32 = vpop.f32.mrf.mxu0 }
 0x14f   : > { %v1627_v47 = vadd.f32 2.0, %v1611_v55  ;;  %v1614_v13 = vmul.f32 %v9815_v52, %v1606_v0  ;;  %v1604_v34 = vadd.f32 2.0, %v9817_v26  ;;  %v11615_v60 = vpop.f32.mrf.mxu1  ;;  %v1615_v52 = vmul.f32 %v1607_v20, %v11507_v29 }
 0x150   : > { %9826 = vrcp.f32 %v1629_v4  ;;  %v11617_v18 = vpop.f32.mrf.mxu0  ;;  %v1820_v29 = vadd.f32 %v11558_v41, %v11480_v46 }
 0x151   : > { %9828 = vrcp.f32 %v1627_v47  ;;  %v1630_v53 = vadd.f32 2.0, %v1614_v13  ;;  %v1612_v10 = vmul.f32 %v9817_v26, %v1604_v34  ;;  %v11619_v50 = vpop.f32.mrf.mxu1 }
 0x152   : > { %v11621_v40 = vpop.f32.mrf.mxu0  ;;  %v1937_v46 = vadd.f32 %v11565_v48, %v1820_v29 }
 0x153   : > { %9830 = vrcp.f32 %v1630_v53  ;;  %v1628_v1 = vadd.f32 2.0, %v1612_v10  ;;  %v11624_v44 = vpop.f32.mrf.mxu1  ;;  %v1620_v29 = vmul.f32 %v1612_v10, %v11563_v22 }
 0x154   : > { %v9819_v2 = vpop.eup %9818  ;;  %v11626_v37 = vpop.f32.mrf.mxu0 }
 0x155   : > { %v1636_v59 = vmul.f32 %v9819_v2, %v1617_v56  ;;  %9832 = vrcp.f32 %v1628_v1  ;;  %v11629_v6 = vpop.f32.mrf.mxu1  ;;  %v1616_v56 = vmul.f32 %v1608_v8, %v11526_v31  ;;  %v1812_v1 = vadd.f32 %v11570_v9, %v11495_v61 }
 0x156   : > { %v9821_v0 = vpop.eup %9820  ;;  %v11631_v26 = vpop.f32.mrf.mxu0  ;;  %v1823_v31 = vadd.f32 %v11578_v51, %v11509_v5 }
 0x157   : > { %1650 = vst.msk [vmem:[#allocation2 + $0x1d0] sm:$0xff] %vm575_vm3, %v1636_v59  ;;  %v1632_v4 = vmul.f32 %v9821_v0, %v1615_v52  ;;  %v11635_v12 = vpop.f32.mrf.mxu1  ;;  %v1621_v52 = vmul.f32 %v1613_v57, %v11544_v21  ;;  %v1935_v9 = vadd.f32 %v11576_v7, %v1812_v1  ;;  %v1622_v21 = vmul.f32 %v1614_v13, %v11554_v42 }
 0x158   : > { %v9823_v47 = vpop.eup %9822  ;;  %v11637_v34 = vpop.f32.mrf.mxu0  ;;  %v1815_v57 = vadd.f32 %v11583_v62, %v11516_v54  ;;  %v1938_v7 = vadd.f32 %v11581_v11, %v1823_v31  ;;  %v1836_v54 = vadd.f32 %v11587_v36, %v11528_v23  ;;  %v1828_v11 = vadd.f32 %v11593_v27, %v11538_v24 }
 0x159   : > { %1648 = vst.msk [vmem:[#allocation2 + $0x1b0] sm:$0xff] %vm575_vm3, %v1632_v4  ;;  %v1638_v53 = vmul.f32 %v9823_v47, %v1618_v16  ;;  %v11642_v20 = vpop.f32.mrf.mxu1  ;;  %v1619_v16 = vmul.f32 %v1611_v55, %v11547_v14  ;;  %v2038_v14 = vadd.f32 %v11605_v38, %v1937_v46 }
 0x15a   : > { %v9170_v2 = vpop.f32.mrf.mxu0  ;;  %v9825_v63 = vpop.eup %9824  ;;  %v1936_v1 = vadd.f32 %v11585_v49, %v1815_v57 }
 0x15b   : > { %1651 = vst.msk [vmem:[#allocation2 + $0x1e0] sm:$0xff] %vm575_vm3, %v1638_v53  ;;  %v9180_v58 = vpop.f32.mrf.mxu1  ;;  %v1634_v59 = vmul.f32 %v9825_v63, %v1616_v56  ;;  %v2036_v56 = vadd.f32 %v11609_v17, %v1935_v9  ;;  %v2139_v63 = vadd.f32 %v11607_v43, %v2038_v14  ;;  %v1839_v17 = vadd.f32 %v11597_v39, %v11549_v33 }
 0x15c   : > { %v2207_v0 = vpop.f32.mrf.mxu0  ;;  %v2037_v36 = vadd.f32 %v11617_v18, %v1936_v1  ;;  %v1941_v43 = vadd.f32 %v11590_v15, %v1836_v54  ;;  %v1939_v33 = vadd.f32 %v11595_v30, %v1828_v11 }
 0x15d   : > { %v9827_v4 = vpop.eup %9826  ;;  %v2308_v41 = vpop.f32.mrf.mxu1  ;;  %1649 = vst.msk [vmem:[#allocation2 + $0x1c0] sm:$0xff] %vm575_vm3, %v1634_v59  ;;  %v2039_v59 = vadd.f32 %v11613_v32, %v1938_v7  ;;  %v2137_v23 = vadd.f32 %v11611_v3, %v2036_v56  ;;  %v1831_v32 = vadd.f32 %v11601_v28, %v11556_v25  ;;  %v1942_v39 = vadd.f32 %v11599_v35, %v1839_v17 }
 0x15e   : > { %v9829_v8 = vpop.eup %9828  ;;  %v1644_v61 = vmul.f32 %v9827_v4, %v1621_v52  ;;  %v9171_v47 = vpop.f32.mrf.mxu0  ;;  %v2240_v52 = vadd.f32 %v9170_v2, %v2139_v63  ;;  %v2042_v3 = vadd.f32 %v11621_v40, %v1941_v43  ;;  %v2138_v18 = vadd.f32 %v11619_v50, %v2037_v36 }
 0x15f   : > { %v1640_v53 = vmul.f32 %v9829_v8, %v1619_v16  ;;  %v9181_v48 = vpop.f32.mrf.mxu1  ;;  %v2140_v24 = vadd.f32 %v11615_v60, %v2039_v59  ;;  %v2238_v27 = vadd.f32 %v2207_v0, %v2137_v23  ;;  %v1940_v8 = vadd.f32 %v11603_v45, %v1831_v32 }
 0x160   : > { %v9831_v55 = vpop.eup %9830  ;;  %1654 = vst.msk [vmem:[#allocation2 + $0x210] sm:$0xff] %vm575_vm3, %v1644_v61  ;;  %v2210_v5 = vpop.f32.mrf.mxu0  ;;  %v2341_v2 = vadd.f32 %v9180_v58, %v2240_v52  ;;  %v2040_v25 = vadd.f32 %v11626_v37, %v1939_v33  ;;  %v2043_v28 = vadd.f32 %v11631_v26, %v1942_v39  ;;  %v2143_v35 = vadd.f32 %v11624_v44, %v2042_v3 }
 0x161   : > { %1652 = vst.msk [vmem:[#allocation2 + $0x1f0] sm:$0xff] %vm575_vm3, %v1640_v53  ;;  %v1646_v51 = vmul.f32 %v9831_v55, %v1622_v21  ;;  %v2311_v42 = vpop.f32.mrf.mxu1  ;;  %v2241_v31 = vadd.f32 %v9171_v47, %v2140_v24  ;;  %v2339_v0 = vadd.f32 %v2308_v41, %v2238_v27  ;;  %v2239_v61 = vadd.f32 %v2210_v5, %v2138_v18  ;;  %v9742_v41 = vld [vmem:[%s13145_s3 + $0x18] sm:$0xff]  }
 0x162   : > { %v9833_v13 = vpop.eup %9832  ;;  %v9174_v62 = vpop.f32.mrf.mxu0  ;;  %v2041_v40 = vadd.f32 %v11637_v34, %v1940_v8  ;;  %v2141_v45 = vadd.f32 %v11629_v6, %v2040_v25  ;;  %v2144_v37 = vadd.f32 %v11635_v12, %v2043_v28  ;;  %9386 = vmatprep.subr.bf16.mxu0 %v9742_v41 }
 0x163   : > { %1655 = vst.msk [vmem:[#allocation2 + $0x220] sm:$0xff] %vm575_vm3, %v1646_v51  ;;  %v1642_v38 = vmul.f32 %v9833_v13, %v1620_v29  ;;  %v9184_v22 = vpop.f32.mrf.mxu1  ;;  %v2342_v50 = vadd.f32 %v9181_v48, %v2241_v31  ;;  %v2244_v57 = vadd.f32 %v9174_v62, %v2143_v35  ;;  %v2340_v14 = vadd.f32 %v2311_v42, %v2239_v61 }
 0x164   : > { %v2223_v10 = vpop.f32.mrf.mxu0  ;;  %v2142_v5 = vadd.f32 %v11642_v20, %v2041_v40  ;;  %9387 = vmatpush3.bf16.msra.mxu0 %v9742_v41  ;;  %v9743_v20 = vld [vmem:[%s13145_s3 + $0x10] sm:$0xff]  }
 0x165   : > { %1653 = vst.msk [vmem:[#allocation2 + $0x200] sm:$0xff] %vm575_vm3, %v1642_v38  ;;  %v2324_v49 = vpop.f32.mrf.mxu1  ;;  %v2242_v51 = vadd.f32 %v2223_v10, %v2141_v45  ;;  %v2345_v54 = vadd.f32 %v9184_v22, %v2244_v57  ;;  %9388 = vmatprep.subr.bf16.mxu0 %v9743_v20 }
 0x166   : > { %v9175_v4 = vpop.f32.mrf.mxu0 }
 0x167   : > { %v9185_v16 = vpop.f32.mrf.mxu1  ;;  %v2245_v29 = vadd.f32 %v9175_v4, %v2144_v37  ;;  %v2343_v10 = vadd.f32 %v2324_v49, %v2242_v51 }
 0x168   : > { %v2226_v46 = vpop.f32.mrf.mxu0  ;;  %9389 = vmatpush3.bf16.msra.mxu0 %v9743_v20 }
 0x169   : > { %v2327_v15 = vpop.f32.mrf.mxu1  ;;  %v2243_v62 = vadd.f32 %v2226_v46, %v2142_v5  ;;  %v2346_v23 = vadd.f32 %v9185_v16, %v2245_v29 }
 0x16a   : > { %v9190_v60 = vpop.f32.mrf.mxu0 }
 0x16b   : > { %v2442_v30 = vadd.f32 %v9190_v60, %v2341_v2  ;;  %v9200_v9 = vpop.f32.mrf.mxu1  ;;  %v2344_v24 = vadd.f32 %v2327_v15, %v2243_v62 }
 0x16c   : > { %v2409_v53 = vpop.f32.mrf.mxu0 }
 0x16d   : > { %v2543_v58 = vadd.f32 %v9200_v9, %v2442_v30  ;;  %v2440_v47 = vadd.f32 %v2409_v53, %v2339_v0  ;;  %v2510_v21 = vpop.f32.mrf.mxu1 }
 0x16e   : > { %v9191_v26 = vpop.f32.mrf.mxu0 }
 0x16f   : > { %v11696_v44 = vadd.f32 %v11474_v19, %v2543_v58  ;;  %v2541_v34 = vadd.f32 %v2510_v21, %v2440_v47  ;;  %v2443_v55 = vadd.f32 %v9191_v26, %v2342_v50  ;;  %v9201_v48 = vpop.f32.mrf.mxu1 }
 0x170   : > { %v2412_v6 = vpop.f32.mrf.mxu0 }
 0x171   : > { %v2566_v12 = vmin.f32 %v11696_v44, 20.0  ;;  %v11701_v7 = vadd.f32 %v11474_v19, %v2541_v34  ;;  %v2544_v56 = vadd.f32 %v9201_v48, %v2443_v55  ;;  %v2441_v13 = vadd.f32 %v2412_v6, %v2340_v14  ;;  %v2513_v42 = vpop.f32.mrf.mxu1 }
 0x172   : > { %v9194_v38 = vpop.f32.mrf.mxu0 }
 0x173   : > { %v2576_v1 = vmul.f32 1.442695, %v2566_v12  ;;  %v2564_v63 = vmin.f32 %v11701_v7, 20.0  ;;  %v11708_v59 = vadd.f32 %v11474_v19, %v2544_v56  ;;  %v2542_v11 = vadd.f32 %v2513_v42, %v2441_v13  ;;  %v9204_v17 = vpop.f32.mrf.mxu1 }
 0x174   : > { %v2446_v36 = vadd.f32 %v9194_v38, %v2345_v54  ;;  %v2425_v52 = vpop.f32.mrf.mxu0 }
 0x175   : > { %9834 = vpow2.f32 %v2576_v1  ;;  %v2572_v22 = vmul.f32 1.442695, %v2564_v63  ;;  %v2567_v43 = vmin.f32 %v11708_v59, 20.0  ;;  %v11712_v32 = vadd.f32 %v11474_v19, %v2542_v11  ;;  %v2526_v4 = vpop.f32.mrf.mxu1 }
 0x176   : > { %v2547_v27 = vadd.f32 %v9204_v17, %v2446_v36  ;;  %v2444_v33 = vadd.f32 %v2425_v52, %v2343_v10  ;;  %v9195_v39 = vpop.f32.mrf.mxu0 }
 0x177   : > { %9836 = vpow2.f32 %v2572_v22  ;;  %v2578_v3 = vmul.f32 1.442695, %v2567_v43  ;;  %v2565_v49 = vmin.f32 %v11712_v32, 20.0  ;;  %v2447_v16 = vadd.f32 %v9195_v39, %v2346_v23  ;;  %v9205_v46 = vpop.f32.mrf.mxu1 }
 0x178   : > { %v11716_v18 = vadd.f32 %v11474_v19, %v2547_v27  ;;  %v2545_v2 = vadd.f32 %v2526_v4, %v2444_v33  ;;  %v2428_v31 = vpop.f32.mrf.mxu0 }
 0x179   : > { %9838 = vpow2.f32 %v2578_v3  ;;  %v2574_v8 = vmul.f32 1.442695, %v2565_v49  ;;  %v2548_v25 = vadd.f32 %v9205_v46, %v2447_v16  ;;  %v2445_v28 = vadd.f32 %v2428_v31, %v2344_v24  ;;  %v2529_v60 = vpop.f32.mrf.mxu1 }
 0x17a   : > { %v2570_v15 = vmin.f32 %v11716_v18, 20.0  ;;  %v11720_v0 = vadd.f32 %v11474_v19, %v2545_v2  ;;  %v11722_v61 = vpop.f32.mrf.mxu0 }
 0x17b   : > { %9840 = vpow2.f32 %v2574_v8  ;;  %v11725_v30 = vadd.f32 %v11474_v19, %v2548_v25  ;;  %v2546_v9 = vadd.f32 %v2529_v60, %v2445_v28  ;;  %v11727_v35 = vpop.f32.mrf.mxu1 }
 0x17c   : > { %v2584_v40 = vmul.f32 1.442695, %v2570_v15  ;;  %v2568_v53 = vmin.f32 %v11720_v0, 20.0  ;;  %v11730_v50 = vpop.f32.mrf.mxu0 }
 0x17d   : > { %v2571_v58 = vmin.f32 %v11725_v30, 20.0  ;;  %v11734_v47 = vadd.f32 %v11474_v19, %v2546_v9  ;;  %v11736_v21 = vpop.f32.mrf.mxu1 }
 0x17e   : > { %9842 = vpow2.f32 %v2584_v40  ;;  %v2580_v45 = vmul.f32 1.442695, %v2568_v53  ;;  %v11738_v37 = vpop.f32.mrf.mxu0 }
 0x17f   : > { %v2586_v57 = vmul.f32 1.442695, %v2571_v58  ;;  %v2569_v26 = vmin.f32 %v11734_v47, 20.0  ;;  %v11741_v41 = vpop.f32.mrf.mxu1 }
 0x180   : > { %9844 = vpow2.f32 %v2580_v45  ;;  %v11743_v14 = vpop.f32.mrf.mxu0 }
 0x181   : > { %9846 = vpow2.f32 %v2586_v57  ;;  %v2582_v34 = vmul.f32 1.442695, %v2569_v26  ;;  %v11745_v55 = vpop.f32.mrf.mxu1 }
 0x182   : > { %v9835_v19 = vpop.eup %9834  ;;  %v11747_v48 = vpop.f32.mrf.mxu0 }
 0x183   : > { %v2590_v5 = vadd.f32 2.0, %v9835_v19  ;;  %9848 = vpow2.f32 %v2582_v34  ;;  %v11749_v51 = vpop.f32.mrf.mxu1 }
 0x184   : > { %v9837_v29 = vpop.eup %9836  ;;  %v11751_v6 = vpop.f32.mrf.mxu0 }
 0x185   : > { %v2598_v12 = vmul.f32 %v9835_v19, %v2590_v5  ;;  %v2588_v56 = vadd.f32 2.0, %v9837_v29  ;;  %v11753_v13 = vpop.f32.mrf.mxu1 }
 0x186   : > { %v9839_v42 = vpop.eup %9838  ;;  %v11755_v54 = vpop.f32.mrf.mxu0 }
 0x187   : > { %v2614_v62 = vadd.f32 2.0, %v2598_v12  ;;  %v2596_v38 = vmul.f32 %v9837_v29, %v2588_v56  ;;  %v2591_v20 = vadd.f32 2.0, %v9839_v42  ;;  %v11757_v1 = vpop.f32.mrf.mxu1  ;;  %v2606_v29 = vmul.f32 %v2598_v12, %v11696_v44 }
 0x188   : > { %v9841_v63 = vpop.eup %9840  ;;  %v11759_v11 = vpop.f32.mrf.mxu0 }
 0x189   : > { %9850 = vrcp.f32 %v2614_v62  ;;  %v2612_v17 = vadd.f32 2.0, %v2596_v38  ;;  %v2599_v10 = vmul.f32 %v9839_v42, %v2591_v20  ;;  %v11761_v23 = vpop.f32.mrf.mxu1  ;;  %v2589_v36 = vadd.f32 2.0, %v9841_v63 }
 0x18a   : > { %v11763_v52 = vpop.f32.mrf.mxu0 }
 0x18b   : > { %v9843_v22 = vpop.eup %9842  ;;  %9852 = vrcp.f32 %v2612_v17  ;;  %v2615_v43 = vadd.f32 2.0, %v2599_v10  ;;  %v11765_v4 = vpop.f32.mrf.mxu1  ;;  %v2597_v24 = vmul.f32 %v9841_v63, %v2589_v36  ;;  %v2604_v17 = vmul.f32 %v2596_v38, %v11701_v7 }
 0x18c   : > { %v2594_v27 = vadd.f32 2.0, %v9843_v22  ;;  %v11767_v33 = vpop.f32.mrf.mxu0  ;;  %v2607_v44 = vmul.f32 %v2599_v10, %v11708_v59 }
 0x18d   : > { %v9845_v39 = vpop.eup %9844  ;;  %9854 = vrcp.f32 %v2615_v43  ;;  %v11769_v3 = vpop.f32.mrf.mxu1  ;;  %v2613_v16 = vadd.f32 2.0, %v2597_v24  ;;  %v2605_v7 = vmul.f32 %v2597_v24, %v11712_v32 }
 0x18e   : > { %v9847_v49 = vpop.eup %9846  ;;  %v2602_v46 = vmul.f32 %v9843_v22, %v2594_v27  ;;  %v2592_v2 = vadd.f32 2.0, %v9845_v39  ;;  %v11771_v31 = vpop.f32.mrf.mxu0 }
 0x18f   : > { %v2595_v8 = vadd.f32 2.0, %v9847_v49  ;;  %v11773_v25 = vpop.f32.mrf.mxu1  ;;  %9856 = vrcp.f32 %v2613_v16 }
 0x190   : > { %v9849_v28 = vpop.eup %9848  ;;  %v2618_v60 = vadd.f32 2.0, %v2602_v46  ;;  %v2600_v15 = vmul.f32 %v9845_v39, %v2592_v2  ;;  %v11775_v9 = vpop.f32.mrf.mxu0  ;;  %v2610_v59 = vmul.f32 %v2602_v46, %v11716_v18 }
 0x191   : > { %v2603_v40 = vmul.f32 %v9847_v49, %v2595_v8  ;;  %v2593_v53 = vadd.f32 2.0, %v9849_v28  ;;  %v11777_v58 = vpop.f32.mrf.mxu1 }
 0x192   : > { %9858 = vrcp.f32 %v2618_v60  ;;  %v2616_v45 = vadd.f32 2.0, %v2600_v15  ;;  %v11779_v57 = vpop.f32.mrf.mxu0 }
 0x193   : > { %v2619_v26 = vadd.f32 2.0, %v2603_v40  ;;  %v2601_v34 = vmul.f32 %v9849_v28, %v2593_v53  ;;  %v11781_v19 = vpop.f32.mrf.mxu1  ;;  %v2611_v24 = vmul.f32 %v2603_v40, %v11725_v30 }
 0x194   : > { %9860 = vrcp.f32 %v2616_v45  ;;  %v11783_v5 = vpop.f32.mrf.mxu0 }
 0x195   : > { %9862 = vrcp.f32 %v2619_v26  ;;  %v2617_v56 = vadd.f32 2.0, %v2601_v34  ;;  %v11786_v42 = vpop.f32.mrf.mxu1 }
 0x196   : > { %v9851_v62 = vpop.eup %9850  ;;  %v11788_v20 = vpop.f32.mrf.mxu0 }
 0x197   : > { %v2625_v63 = vmul.f32 %v9851_v62, %v2606_v29  ;;  %9864 = vrcp.f32 %v2617_v56  ;;  %v11791_v36 = vpop.f32.mrf.mxu1  ;;  %v2608_v29 = vmul.f32 %v2600_v15, %v11720_v0 }
 0x198   : > { %v9853_v22 = vpop.eup %9852  ;;  %v11793_v43 = vpop.f32.mrf.mxu0 }
 0x199   : > { %2639 = vst.msk [vmem:[#allocation2 + $0x141] sm:$0xff] %vm575_vm3, %v2625_v63  ;;  %v2621_v27 = vmul.f32 %v9853_v22, %v2604_v17  ;;  %v11797_v12 = vpop.f32.mrf.mxu1  ;;  %v2609_v22 = vmul.f32 %v2601_v34, %v11734_v47 }
 0x19a   : > { %v9855_v39 = vpop.eup %9854  ;;  %v9250_v49 = vpop.f32.mrf.mxu0 }
 0x19b   : > { %2637 = vst.msk [vmem:[#allocation2 + $0x121] sm:$0xff] %vm575_vm3, %v2621_v27  ;;  %v2627_v16 = vmul.f32 %v9855_v39, %v2607_v44  ;;  %v11800_v2 = vpop.f32.mrf.mxu1  ;;  %v2809_v39 = vadd.f32 %v11727_v35, %v11722_v61  ;;  %v2804_v61 = vadd.f32 %v11745_v55, %v11743_v14  ;;  %v9744_v14 = vld [vmem:[%s13145_s3 + $0x8] sm:$0xff]  }
 0x19c   : > { %v3095_v38 = vpop.f32.mrf.mxu0  ;;  %v9857_v8 = vpop.eup %9856  ;;  %v11861_v55 = vld [vmem:[%s13145_s3 + $0x28] sm:$0xff]   ;;  %9398 = vmatprep.subr.bf16.mxu1 %v9744_v14 }
 0x19d   : > { %2640 = vst.msk [vmem:[#allocation2 + $0x151] sm:$0xff] %vm575_vm3, %v2627_v16  ;;  %v11804_v28 = vpop.f32.mrf.mxu1  ;;  %v2623_v60 = vmul.f32 %v9857_v8, %v2605_v7  ;;  %v2801_v16 = vadd.f32 %v11736_v21, %v11730_v50  ;;  %v2926_v7 = vadd.f32 %v11763_v52, %v2809_v39  ;;  %9410 = vmatprep.subr.bf16.mxu0 %v11861_v55 }
 0x19e   : > { %v9251_v10 = vpop.f32.mrf.mxu0  ;;  %9399 = vmatpush3.bf16.msra.mxu1 %v9744_v14 }
 0x19f   : > { %v9859_v53 = vpop.eup %9858  ;;  %v11807_v45 = vpop.f32.mrf.mxu1  ;;  %2638 = vst.msk [vmem:[#allocation2 + $0x131] sm:$0xff] %vm575_vm3, %v2623_v60  ;;  %v3027_v35 = vadd.f32 %v11765_v4, %v2926_v7 }
 0x1a0   : > { %v2633_v26 = vmul.f32 %v9859_v53, %v2610_v59  ;;  %v11811_v56 = vpop.f32.mrf.mxu0  ;;  %v2812_v59 = vadd.f32 %v11741_v41, %v11738_v37  ;;  %v2924_v53 = vadd.f32 %v11767_v33, %v2801_v16  ;;  %v2825_v37 = vadd.f32 %v11749_v51, %v11747_v48 }
 0x1a1   : > { %v9861_v32 = vpop.eup %9860  ;;  %v11814_v62 = vpop.f32.mrf.mxu1  ;;  %v2817_v41 = vadd.f32 %v11753_v13, %v11751_v6  ;;  %v2828_v48 = vadd.f32 %v11757_v1, %v11755_v54 }
 0x1a2   : > { %v9863_v63 = vpop.eup %9862  ;;  %2643 = vst.msk [vmem:[#allocation2 + $0x181] sm:$0xff] %vm575_vm3, %v2633_v26  ;;  %v2629_v18 = vmul.f32 %v9861_v32, %v2608_v29  ;;  %v11817_v46 = vpop.f32.mrf.mxu0  ;;  %v2927_v32 = vadd.f32 %v11771_v31, %v2812_v59  ;;  %v3025_v52 = vadd.f32 %v11769_v3, %v2924_v53  ;;  %v2930_v51 = vadd.f32 %v11779_v57, %v2825_v37  ;;  %v9746_v57 = vld [vmem:[%s13145_s3] sm:$0xff]  }
 0x1a3   : > { %v2635_v17 = vmul.f32 %v9863_v63, %v2611_v24  ;;  %v11820_v27 = vpop.f32.mrf.mxu1  ;;  %v2925_v24 = vadd.f32 %v11775_v9, %v2804_v61  ;;  %v3128_v63 = vadd.f32 %v9250_v49, %v3027_v35  ;;  %v2928_v6 = vadd.f32 %v11783_v5, %v2817_v41  ;;  %9400 = vmatprep.subr.bf16.mxu1 %v9746_v57 }
 0x1a4   : > { %v9865_v44 = vpop.eup %9864  ;;  %2641 = vst.msk [vmem:[#allocation2 + $0x161] sm:$0xff] %vm575_vm3, %v2629_v18  ;;  %v11823_v0 = vpop.f32.mrf.mxu0  ;;  %v3028_v4 = vadd.f32 %v11773_v25, %v2927_v32  ;;  %v3126_v3 = vadd.f32 %v3095_v38, %v3025_v52  ;;  %v2820_v25 = vadd.f32 %v11761_v23, %v11759_v11  ;;  %v2931_v54 = vadd.f32 %v11788_v20, %v2828_v48 }
 0x1a5   : > { %2644 = vst.msk [vmem:[#allocation2 + $0x191] sm:$0xff] %vm575_vm3, %v2635_v17  ;;  %v2631_v30 = vmul.f32 %v9865_v44, %v2609_v22  ;;  %v11826_v15 = vpop.f32.mrf.mxu1  ;;  %v3026_v9 = vadd.f32 %v11777_v58, %v2925_v24  ;;  %v3229_v49 = vadd.f32 %v11800_v2, %v3128_v63  ;;  %v3031_v2 = vadd.f32 %v11781_v19, %v2930_v51 }
 0x1a6   : > { %v11828_v40 = vpop.f32.mrf.mxu0  ;;  %v3129_v17 = vadd.f32 %v9251_v10, %v3028_v4  ;;  %v3227_v5 = vadd.f32 %v11804_v28, %v3126_v3  ;;  %v3029_v10 = vadd.f32 %v11786_v42, %v2928_v6  ;;  %9401 = vmatpush3.bf16.msra.mxu1 %v9746_v57  ;;  %v11886_v28 = vld [vmem:[%s13145_s3 + $0x38] sm:$0xff]  }
 0x1a7   : > { %2642 = vst.msk [vmem:[#allocation2 + $0x171] sm:$0xff] %vm575_vm3, %v2631_v30  ;;  %v11833_v47 = vpop.f32.mrf.mxu1  ;;  %v3127_v38 = vadd.f32 %v11811_v56, %v3026_v9  ;;  %v2929_v30 = vadd.f32 %v11793_v43, %v2820_v25  ;;  %13146 = vst [vmem:[#allocation16_spill] sm:$0xff] %v11886_v28  ;;  %v3032_v56 = vadd.f32 %v11791_v36, %v2931_v54  ;;  %9422 = vmatprep.subr.bf16.mxu1 %v11886_v28  ;;  %v11898_v36 = vld [vmem:[%s13139_s25] ss:$0 sm:$0xff] }
 0x1a8   : > { %v11835_v34 = vpop.f32.mrf.mxu0  ;;  %v3230_v23 = vadd.f32 %v11807_v45, %v3129_v17  ;;  %v3132_v19 = vadd.f32 %v11817_v46, %v3031_v2  ;;  %v3130_v42 = vadd.f32 %v11823_v0, %v3029_v10 }
 0x1a9   : > { %v11840_v8 = vpop.f32.mrf.mxu1  ;;  %v3228_v43 = vadd.f32 %v11814_v62, %v3127_v38  ;;  %v3030_v59 = vadd.f32 %v11797_v12, %v2929_v30  ;;  %v3133_v53 = vadd.f32 %v11828_v40, %v3032_v56 }
 0x1aa   : > { %v9270_v60 = vpop.f32.mrf.mxu0  ;;  %v3233_v62 = vadd.f32 %v11820_v27, %v3132_v19 }
 0x1ab   : > { %v9280_v26 = vpop.f32.mrf.mxu1  ;;  %v3331_v58 = vadd.f32 %v9270_v60, %v3229_v49  ;;  %v3131_v32 = vadd.f32 %v11835_v34, %v3030_v59 }
 0x1ac   : > { %v3298_v29 = vpop.f32.mrf.mxu0 }
 0x1ad   : > { %v3400_v50 = vpop.f32.mrf.mxu1  ;;  %v3329_v20 = vadd.f32 %v3298_v29, %v3227_v5  ;;  %v3433_v7 = vadd.f32 %v9280_v26, %v3331_v58  ;;  %v3231_v26 = vadd.f32 %v11826_v15, %v3130_v42 }
 0x1ae   : > { %v9271_v21 = vpop.f32.mrf.mxu0 }
 0x1af   : > { %v9281_v18 = vpop.f32.mrf.mxu1  ;;  %v3332_v60 = vadd.f32 %v9271_v21, %v3230_v23  ;;  %v3431_v46 = vadd.f32 %v3400_v50, %v3329_v20  ;;  %v3234_v50 = vadd.f32 %v11833_v47, %v3133_v53 }
 0x1b0   : > { %v3301_v33 = vpop.f32.mrf.mxu0 }
 0x1b1   : > { %v3403_v31 = vpop.f32.mrf.mxu1  ;;  %v3330_v0 = vadd.f32 %v3301_v33, %v3228_v43  ;;  %v3434_v21 = vadd.f32 %v9281_v18, %v3332_v60  ;;  %v3232_v18 = vadd.f32 %v11840_v8, %v3131_v32 }
 0x1b2   : > { %v9274_v13 = vpop.f32.mrf.mxu0 }
 0x1b3   : > { %v9284_v22 = vpop.f32.mrf.mxu1  ;;  %v3335_v63 = vadd.f32 %v9274_v13, %v3233_v62  ;;  %v3432_v33 = vadd.f32 %v3403_v31, %v3330_v0 }
 0x1b4   : > { %v3314_v1 = vpop.f32.mrf.mxu0 }
 0x1b5   : > { %v3416_v44 = vpop.f32.mrf.mxu1  ;;  %v3333_v37 = vadd.f32 %v3314_v1, %v3231_v26  ;;  %v3437_v13 = vadd.f32 %v9284_v22, %v3335_v63 }
 0x1b6   : > { %v9275_v11 = vpop.f32.mrf.mxu0 }
 0x1b7   : > { %v9285_v39 = vpop.f32.mrf.mxu1  ;;  %v3336_v4 = vadd.f32 %v9275_v11, %v3234_v50  ;;  %v3435_v9 = vadd.f32 %v3416_v44, %v3333_v37 }
 0x1b8   : > { %v3317_v16 = vpop.f32.mrf.mxu0 }
 0x1b9   : > { %v3419_v45 = vpop.f32.mrf.mxu1  ;;  %v3334_v49 = vadd.f32 %v3317_v16, %v3232_v18  ;;  %v3438_v57 = vadd.f32 %v9285_v39, %v3336_v4 }
 0x1ba   : > { %v9290_v29 = vpop.f32.mrf.mxu0 }
 0x1bb   : > { %v3534_v61 = vadd.f32 %v9290_v29, %v3433_v7  ;;  %v11900_v35 = vpop.f32.mrf.mxu1  ;;  %v3436_v10 = vadd.f32 %v3419_v45, %v3334_v49 }
 0x1bc   : > { %v3501_v12 = vpop.f32.mrf.mxu0 }
 0x1bd   : > { %v11906_v40 = vadd.f32 %v11898_v36, %v3534_v61  ;;  %v3532_v52 = vadd.f32 %v3501_v12, %v3431_v46  ;;  %v11908_v24 = vpop.f32.mrf.mxu1 }
 0x1be   : > { %v9291_v41 = vpop.f32.mrf.mxu0 }
 0x1bf   : > { %v3557_v27 = vmin.f32 %v11906_v40, 20.0  ;;  %v11913_v15 = vadd.f32 %v11898_v36, %v3532_v52  ;;  %v3535_v34 = vadd.f32 %v9291_v41, %v3434_v21  ;;  %v11915_v14 = vpop.f32.mrf.mxu1 }
 0x1c0   : > { %v3504_v3 = vpop.f32.mrf.mxu0 }
 0x1c1   : > { %v3567_v48 = vmul.f32 1.442695, %v3557_v27  ;;  %v3555_v51 = vmin.f32 %v11913_v15, 20.0  ;;  %v11920_v47 = vadd.f32 %v11898_v36, %v3535_v34  ;;  %v3533_v6 = vadd.f32 %v3504_v3, %v3432_v33  ;;  %v11922_v31 = vpop.f32.mrf.mxu1 }
 0x1c2   : > { %v9294_v17 = vpop.f32.mrf.mxu0 }
 0x1c3   : > { %9866 = vpow2.f32 %v3567_v48  ;;  %v3563_v25 = vmul.f32 1.442695, %v3555_v51  ;;  %v3558_v54 = vmin.f32 %v11920_v47, 20.0  ;;  %v11926_v8 = vadd.f32 %v11898_v36, %v3533_v6  ;;  %v11928_v1 = vpop.f32.mrf.mxu1 }
 0x1c4   : > { %v3538_v5 = vadd.f32 %v9294_v17, %v3437_v13  ;;  %v3517_v38 = vpop.f32.mrf.mxu0 }
 0x1c5   : > { %9868 = vpow2.f32 %v3563_v25  ;;  %v3569_v58 = vmul.f32 1.442695, %v3558_v54  ;;  %v3556_v2 = vmin.f32 %v11926_v8, 20.0  ;;  %v3536_v22 = vadd.f32 %v3517_v38, %v3435_v9  ;;  %v11931_v44 = vpop.f32.mrf.mxu1 }
 0x1c6   : > { %v11934_v30 = vadd.f32 %v11898_v36, %v3538_v5  ;;  %v9295_v11 = vpop.f32.mrf.mxu0 }
 0x1c7   : > { %9870 = vpow2.f32 %v3569_v58  ;;  %v3565_v23 = vmul.f32 1.442695, %v3556_v2  ;;  %v11937_v20 = vadd.f32 %v11898_v36, %v3536_v22  ;;  %v3539_v39 = vadd.f32 %v9295_v11, %v3438_v57  ;;  %v11939_v56 = vpop.f32.mrf.mxu1 }
 0x1c8   : > { %v3561_v19 = vmin.f32 %v11934_v30, 20.0  ;;  %v3520_v42 = vpop.f32.mrf.mxu0 }
 0x1c9   : > { %9872 = vpow2.f32 %v3565_v23  ;;  %v3559_v16 = vmin.f32 %v11937_v20, 20.0  ;;  %v11944_v43 = vadd.f32 %v11898_v36, %v3539_v39  ;;  %v3537_v7 = vadd.f32 %v3520_v42, %v3436_v10  ;;  %v11946_v60 = vpop.f32.mrf.mxu1 }
 0x1ca   : > { %v3575_v45 = vmul.f32 1.442695, %v3561_v19  ;;  %v11948_v59 = vpop.f32.mrf.mxu0 }
 0x1cb   : > { %v3571_v53 = vmul.f32 1.442695, %v3559_v16  ;;  %v3562_v29 = vmin.f32 %v11944_v43, 20.0  ;;  %v11952_v46 = vadd.f32 %v11898_v36, %v3537_v7  ;;  %v11954_v0 = vpop.f32.mrf.mxu1 }
 0x1cc   : > { %9874 = vpow2.f32 %v3575_v45  ;;  %v11956_v61 = vpop.f32.mrf.mxu0 }
 0x1cd   : > { %9876 = vpow2.f32 %v3571_v53  ;;  %v3577_v62 = vmul.f32 1.442695, %v3562_v29  ;;  %v3560_v26 = vmin.f32 %v11952_v46, 20.0  ;;  %v11959_v32 = vpop.f32.mrf.mxu1 }
 0x1ce   : > { %v11961_v12 = vpop.f32.mrf.mxu0 }
 0x1cf   : > { %9878 = vpow2.f32 %v3577_v62  ;;  %v3573_v21 = vmul.f32 1.442695, %v3560_v26  ;;  %v11963_v52 = vpop.f32.mrf.mxu1 }
 0x1d0   : > { %v9867_v50 = vpop.eup %9866  ;;  %v11965_v63 = vpop.f32.mrf.mxu0 }
 0x1d1   : > { %v3581_v37 = vadd.f32 2.0, %v9867_v50  ;;  %9880 = vpow2.f32 %v3573_v21  ;;  %v11967_v41 = vpop.f32.mrf.mxu1 }
 0x1d2   : > { %v9869_v33 = vpop.eup %9868  ;;  %v11969_v27 = vpop.f32.mrf.mxu0 }
 0x1d3   : > { %v3589_v34 = vmul.f32 %v9867_v50, %v3581_v37  ;;  %v3579_v18 = vadd.f32 2.0, %v9869_v33  ;;  %v11971_v4 = vpop.f32.mrf.mxu1 }
 0x1d4   : > { %v9871_v3 = vpop.eup %9870  ;;  %v11973_v48 = vpop.f32.mrf.mxu0 }
 0x1d5   : > { %v3605_v51 = vadd.f32 2.0, %v3589_v34  ;;  %v3587_v6 = vmul.f32 %v9869_v33, %v3579_v18  ;;  %v3582_v13 = vadd.f32 2.0, %v9871_v3  ;;  %v11975_v9 = vpop.f32.mrf.mxu1 }
 0x1d6   : > { %v9873_v49 = vpop.eup %9872  ;;  %v11977_v17 = vpop.f32.mrf.mxu0 }
 0x1d7   : > { %9882 = vrcp.f32 %v3605_v51  ;;  %v3603_v25 = vadd.f32 2.0, %v3587_v6  ;;  %v3590_v54 = vmul.f32 %v9871_v3, %v3582_v13  ;;  %v11979_v57 = vpop.f32.mrf.mxu1  ;;  %v3580_v5 = vadd.f32 2.0, %v9873_v49 }
 0x1d8   : > { %v11981_v38 = vpop.f32.mrf.mxu0 }
 0x1d9   : > { %v9875_v58 = vpop.eup %9874  ;;  %9884 = vrcp.f32 %v3603_v25  ;;  %v3606_v2 = vadd.f32 2.0, %v3590_v54  ;;  %v11983_v22 = vpop.f32.mrf.mxu1  ;;  %v3588_v11 = vmul.f32 %v9873_v49, %v3580_v5 }
 0x1da   : > { %v9877_v10 = vpop.eup %9876  ;;  %v3585_v23 = vadd.f32 2.0, %v9875_v58  ;;  %v11985_v39 = vpop.f32.mrf.mxu0 }
 0x1db   : > { %9886 = vrcp.f32 %v3606_v2  ;;  %v3583_v19 = vadd.f32 2.0, %v9877_v10  ;;  %v11987_v42 = vpop.f32.mrf.mxu1  ;;  %v3604_v7 = vadd.f32 2.0, %v3588_v11  ;;  %v3597_v2 = vmul.f32 %v3589_v34, %v11906_v40 }
 0x1dc   : > { %v9879_v16 = vpop.eup %9878  ;;  %v3593_v45 = vmul.f32 %v9875_v58, %v3585_v23  ;;  %v11989_v53 = vpop.f32.mrf.mxu0  ;;  %v3598_v40 = vmul.f32 %v3590_v54, %v11920_v47 }
 0x1dd   : > { %v3591_v29 = vmul.f32 %v9877_v10, %v3583_v19  ;;  %v3586_v62 = vadd.f32 2.0, %v9879_v16  ;;  %v11991_v26 = vpop.f32.mrf.mxu1  ;;  %9888 = vrcp.f32 %v3604_v7 }
 0x1de   : > { %v9881_v21 = vpop.eup %9880  ;;  %v3609_v50 = vadd.f32 2.0, %v3593_v45  ;;  %v11993_v37 = vpop.f32.mrf.mxu0 }
 0x1df   : > { %v3607_v33 = vadd.f32 2.0, %v3591_v29  ;;  %v3594_v18 = vmul.f32 %v9879_v16, %v3586_v62  ;;  %v3584_v3 = vadd.f32 2.0, %v9881_v21  ;;  %v11995_v51 = vpop.f32.mrf.mxu1  ;;  %v3595_v62 = vmul.f32 %v3587_v6, %v11913_v15 }
 0x1e0   : > { %9890 = vrcp.f32 %v3609_v50  ;;  %v11997_v13 = vpop.f32.mrf.mxu0  ;;  %v3800_v15 = vadd.f32 %v11948_v59, %v11900_v35 }
 0x1e1   : > { %9892 = vrcp.f32 %v3607_v33  ;;  %v3610_v49 = vadd.f32 2.0, %v3594_v18  ;;  %v3592_v25 = vmul.f32 %v9881_v21, %v3584_v3  ;;  %v11999_v5 = vpop.f32.mrf.mxu1 }
 0x1e2   : > { %v12001_v58 = vpop.f32.mrf.mxu0 }
 0x1e3   : > { %9894 = vrcp.f32 %v3610_v49  ;;  %v3608_v10 = vadd.f32 2.0, %v3592_v25  ;;  %v12004_v23 = vpop.f32.mrf.mxu1 }
 0x1e4   : > { %v9883_v19 = vpop.eup %9882  ;;  %v12006_v16 = vpop.f32.mrf.mxu0 }
 0x1e5   : > { %v3616_v7 = vmul.f32 %v9883_v19, %v3597_v2  ;;  %9896 = vrcp.f32 %v3608_v10  ;;  %v12009_v50 = vpop.f32.mrf.mxu1  ;;  %v3596_v10 = vmul.f32 %v3588_v11, %v11926_v8  ;;  %v3792_v19 = vadd.f32 %v11956_v61, %v11908_v24 }
 0x1e6   : > { %v9885_v21 = vpop.eup %9884  ;;  %v12011_v33 = vpop.f32.mrf.mxu0  ;;  %v3917_v8 = vadd.f32 %v11954_v0, %v3800_v15 }
 0x1e7   : > { %3630 = vst.msk [vmem:[#allocation2 + $0xc0] sm:$0xff] %vm575_vm3, %v3616_v7  ;;  %v3612_v3 = vmul.f32 %v9885_v21, %v3595_v62  ;;  %v12015_v34 = vpop.f32.mrf.mxu1  ;;  %v3601_v21 = vmul.f32 %v3593_v45, %v11934_v30  ;;  %v3602_v45 = vmul.f32 %v3594_v18, %v11944_v43 }
 0x1e8   : > { %v9887_v49 = vpop.eup %9886  ;;  %v12017_v28 = vpop.f32.mrf.mxu0 }
 0x1e9   : > { %3628 = vst.msk [vmem:[#allocation2 + $0xa0] sm:$0xff] %vm575_vm3, %v3612_v3  ;;  %v3618_v2 = vmul.f32 %v9887_v49, %v3598_v40  ;;  %v12022_v6 = vpop.f32.mrf.mxu1  ;;  %v3803_v3 = vadd.f32 %v11961_v12, %v11915_v14  ;;  %v3599_v40 = vmul.f32 %v3591_v29, %v11937_v20  ;;  %v3915_v49 = vadd.f32 %v11959_v32, %v3792_v19 }
 0x1ea   : > { %v9350_v7 = vpop.f32.mrf.mxu0  ;;  %v9889_v47 = vpop.eup %9888  ;;  %v3795_v14 = vadd.f32 %v11965_v63, %v11922_v31  ;;  %v4018_v20 = vadd.f32 %v11985_v39, %v3917_v8  ;;  %v3816_v32 = vadd.f32 %v11969_v27, %v11928_v1  ;;  %v3600_v31 = vmul.f32 %v3592_v25, %v11952_v46 }
 0x1eb   : > { %3631 = vst.msk [vmem:[#allocation2 + $0xd0] sm:$0xff] %vm575_vm3, %v3618_v2  ;;  %v12028_v54 = vpop.f32.mrf.mxu1  ;;  %v3614_v62 = vmul.f32 %v9889_v47, %v3596_v10  ;;  %v4642_v10 = vld [vmem:[#allocation2 + $0x90] sm:$0xff]  ;;  %v3918_v29 = vadd.f32 %v11963_v52, %v3803_v3  ;;  %v4016_v63 = vadd.f32 %v11989_v53, %v3915_v49  ;;  %v3808_v3 = vadd.f32 %v11973_v48, %v11931_v44 }
 0x1ec   : > { %v4187_v35 = vpop.f32.mrf.mxu0  ;;  %v3916_v46 = vadd.f32 %v11967_v41, %v3795_v14  ;;  %v4119_v53 = vadd.f32 %v11987_v42, %v4018_v20  ;;  %v3921_v41 = vadd.f32 %v11971_v4, %v3816_v32  ;;  %v3811_v44 = vadd.f32 %v11981_v38, %v11946_v60  ;;  %v9747_v4 = vld [vmem:[%s13145_s3 + $0x20] sm:$0xff]  }
 0x1ed   : > { %v9891_v59 = vpop.eup %9890  ;;  %v12035_v11 = vpop.f32.mrf.mxu1  ;;  %3629 = vst.msk [vmem:[#allocation2 + $0xb0] sm:$0xff] %vm575_vm3, %v3614_v62  ;;  %v4019_v52 = vadd.f32 %v11993_v37, %v3918_v29  ;;  %v4117_v42 = vadd.f32 %v11991_v26, %v4016_v63 }
 0x1ee   : > { %v9893_v24 = vpop.eup %9892  ;;  %v3624_v61 = vmul.f32 %v9891_v59, %v3601_v21  ;;  %v9351_v2 = vpop.f32.mrf.mxu0  ;;  %v12060_v1 = vld [vmem:[#allocation2 + $0xc0] sm:$0xff]  ;;  %v3819_v59 = vadd.f32 %v11977_v17, %v11939_v56  ;;  %v4017_v8 = vadd.f32 %v11997_v13, %v3916_v46  ;;  %v4022_v38 = vadd.f32 %v12001_v58, %v3921_v41 }
 0x1ef   : > { %v3620_v30 = vmul.f32 %v9893_v24, %v3599_v40  ;;  %v12043_v12 = vpop.f32.mrf.mxu1  ;;  %v4220_v24 = vadd.f32 %v9350_v7, %v4119_v53  ;;  %v4120_v48 = vadd.f32 %v11995_v51, %v4019_v52  ;;  %v4218_v13 = vadd.f32 %v4187_v35, %v4117_v42 }
 0x1f0   : > { %v9895_v0 = vpop.eup %9894  ;;  %3634 = vst.msk [vmem:[#allocation2 + $0x100] sm:$0xff] %vm575_vm3, %v3624_v61  ;;  %v4190_v15 = vpop.f32.mrf.mxu0  ;;  %v12049_v19 = vld [vmem:[#allocation2 + $0xa0] sm:$0xff]  ;;  %v3922_v60 = vadd.f32 %v11979_v57, %v3819_v59  ;;  %v4118_v14 = vadd.f32 %v11999_v5, %v4017_v8  ;;  %v12115_v5 = vld [vmem:[%s13145_s3 + $0x48] sm:$0xff]  }
 0x1f1   : > { %3632 = vst.msk [vmem:[#allocation2 + $0xe0] sm:$0xff] %vm575_vm3, %v3620_v30  ;;  %v3626_v43 = vmul.f32 %v9895_v0, %v3602_v45  ;;  %v12054_v39 = vpop.f32.mrf.mxu1  ;;  %v4655_v18 = vpack.c.bf16 %v12049_v19, %v4642_v10  ;;  %v3919_v10 = vadd.f32 %v11975_v9, %v3808_v3  ;;  %v4221_v51 = vadd.f32 %v9351_v2, %v4120_v48 }
 0x1f2   : > { %v9897_v47 = vpop.eup %9896  ;;  %v12058_v62 = vpop.f32.mrf.mxu0  ;;  %v12062_v27 = vld [vmem:[#allocation2 + $0xd0] sm:$0xff]  ;;  %v4321_v20 = vadd.f32 %v12028_v54, %v4220_v24  ;;  %v3920_v9 = vadd.f32 %v11983_v22, %v3811_v44  ;;  %v4023_v58 = vadd.f32 %v12011_v33, %v3922_v60  ;;  %v4319_v54 = vadd.f32 %v12035_v11, %v4218_v13 }
 0x1f3   : > { %3635 = vst.msk [vmem:[#allocation2 + $0x110] sm:$0xff] %vm575_vm3, %v3626_v43  ;;  %v3622_v21 = vmul.f32 %v9897_v47, %v3600_v31  ;;  %v12067_v25 = vpop.f32.mrf.mxu1  ;;  %9390 = vmatprep.mubr.msk.bf16.mxu0 %vm575_vm3, %v4655_v18  ;;  %v5421_v37 = vpack.c.bf16 %v12062_v27, %v12060_v1  ;;  %v4020_v57 = vadd.f32 %v12006_v16, %v3919_v10 }
 0x1f4   : > { %v4203_v40 = vpop.f32.mrf.mxu0  ;;  %v12082_v49 = vld [vmem:[#allocation2 + $0xb0] sm:$0xff]  ;;  %v4219_v29 = vadd.f32 %v4190_v15, %v4118_v14  ;;  %v4021_v22 = vadd.f32 %v12017_v28, %v3920_v9  ;;  %v4322_v16 = vadd.f32 %v12043_v12, %v4221_v51  ;;  %v4124_v28 = vadd.f32 %v12015_v34, %v4023_v58 }
 0x1f5   : > { %3633 = vst.msk [vmem:[#allocation2 + $0xf0] sm:$0xff] %vm575_vm3, %v3622_v21  ;;  %v12080_v61 = vpop.f32.mrf.mxu1  ;;  %v4656_v17 = vpack.c.bf16 %v12060_v1, %v12082_v49  ;;  %v5420_v26 = vpack.c.bf16 %v12082_v49, %v12049_v19  ;;  %v9760_v1 = vld [vmem:[%s13054_s7 + $0x18] sm:$0xff]  }
 0x1f6   : > { %v9355_v56 = vpop.f32.mrf.mxu0  ;;  %v4320_v46 = vadd.f32 %v12054_v39, %v4219_v29  ;;  %v4122_v42 = vadd.f32 %v12022_v6, %v4021_v22 }
 0x1f7   : > { %v12094_v7 = vpop.f32.mrf.mxu1  ;;  %9391 = vmatmul.mubr.msk.bf16.vlgmr.msra.gmra.mxu0 %vm575_vm3, %v4656_v17  ;;  %v12124_v63 = vld [vmem:[#allocation2 + $0x100] sm:$0xff]  ;;  %v4225_v24 = vadd.f32 %v9355_v56, %v4124_v28 }
 0x1f8   : > { %v4206_v30 = vpop.f32.mrf.mxu0  ;;  %v12100_v45 = vld [vmem:[#allocation2 + $0xe0] sm:$0xff]  ;;  %9411 = vmatpush3.bf16.msra.mxu0 %v11861_v55  ;;  %v4123_v55 = vadd.f32 %v12004_v23, %v4022_v38  ;;  %v4121_v23 = vadd.f32 %v12009_v50, %v4020_v57 }
 0x1f9   : > { %v12104_v0 = vpop.f32.mrf.mxu1  ;;  %v4657_v35 = vpack.c.bf16 %v12100_v45, %v12062_v27  ;;  %9412 = vmatprep.subr.bf16.mxu0 %v9747_v4  ;;  %v4326_v51 = vadd.f32 %v12094_v7, %v4225_v24  ;;  %v9761_v27 = vld [vmem:[%s13148_s5 + $0x18] sm:$0xff]  }
 0x1fa   : > { %v9370_v2 = vpop.f32.mrf.mxu0  ;;  %v4224_v12 = vadd.f32 %v12058_v62, %v4123_v55  ;;  %v4222_v8 = vadd.f32 %v4203_v40, %v4121_v23  ;;  %v5414_v19 = vld [vmem:[#allocation2 + $0x110] sm:$0xff] }
 0x1fb   : > { %v4422_v32 = vadd.f32 %v9370_v2, %v4321_v20  ;;  %v9380_v43 = vpop.f32.mrf.mxu1  ;;  %9394 = vmatprep.mubr.msk.bf16.mxu0 %vm575_vm3, %v4657_v35 }
 0x1fc   : > { %v4389_v33 = vpop.f32.mrf.mxu0  ;;  %v12122_v31 = vld [vmem:[#allocation2 + $0xf0] sm:$0xff]  ;;  %9413 = vmatpush3.bf16.msra.mxu0 %v9747_v4  ;;  %v4325_v17 = vadd.f32 %v12067_v25, %v4224_v12  ;;  %v4223_v4 = vadd.f32 %v4206_v30, %v4122_v42  ;;  %v4323_v38 = vadd.f32 %v12080_v61, %v4222_v8 }
 0x1fd   : > { %v4523_v18 = vadd.f32 %v9380_v43, %v4422_v32  ;;  %v4420_v47 = vadd.f32 %v4389_v33, %v4319_v54  ;;  %v4490_v52 = vpop.f32.mrf.mxu1  ;;  %v4658_v11 = vpack.c.bf16 %v12124_v63, %v12122_v31  ;;  %v5422_v15 = vpack.c.bf16 %v12122_v31, %v12100_v45  ;;  %9434 = vmatprep.subr.bf16.mxu0 %v12115_v5  ;;  %v9763_v45 = vld [vmem:[%s13148_s5 + $0x10] sm:$0xff]   ;;  %v9764_v31 = vld [vmem:[%s13054_s7 + $0x8] sm:$0xff]  }
 0x1fe   : > { %v9371_v21 = vpop.f32.mrf.mxu0  ;;  %v4324_v57 = vadd.f32 %v12104_v0, %v4223_v4 }
 0x1ff   : > { %v12136_v53 = vadd.f32 %v11898_v36, %v4523_v18  ;;  %v4521_v3 = vadd.f32 %v4490_v52, %v4420_v47  ;;  %v4423_v59 = vadd.f32 %v9371_v21, %v4322_v16  ;;  %v9381_v41 = vpop.f32.mrf.mxu1  ;;  %9395 = vmatmul.mubr.msk.bf16.gmra.mxu0 %vm575_vm3, %v4658_v11 }
 0x200   : > { %v4392_v50 = vpop.f32.mrf.mxu0 }
 0x201   : > { %v4546_v34 = vmin.f32 %v12136_v53, 20.0  ;;  %v12142_v62 = vadd.f32 %v11898_v36, %v4521_v3  ;;  %v4524_v44 = vadd.f32 %v9381_v41, %v4423_v59  ;;  %v4421_v39 = vadd.f32 %v4392_v50, %v4320_v46  ;;  %v4493_v48 = vpop.f32.mrf.mxu1 }
 0x202   : > { %v9374_v13 = vpop.f32.mrf.mxu0 }
 0x203   : > { %v4556_v10 = vmul.f32 1.442695, %v4546_v34  ;;  %v4544_v6 = vmin.f32 %v12142_v62, 20.0  ;;  %v12147_v40 = vadd.f32 %v11898_v36, %v4524_v44  ;;  %v4522_v56 = vadd.f32 %v4493_v48, %v4421_v39  ;;  %v9384_v60 = vpop.f32.mrf.mxu1 }
 0x204   : > { %v4426_v14 = vadd.f32 %v9374_v13, %v4325_v17  ;;  %v4405_v20 = vpop.f32.mrf.mxu0 }
 0x205   : > { %9898 = vpow2.f32 %v4556_v10  ;;  %v4552_v35 = vmul.f32 1.442695, %v4544_v6  ;;  %v4547_v25 = vmin.f32 %v12147_v40, 20.0  ;;  %v12153_v30 = vadd.f32 %v11898_v36, %v4522_v56  ;;  %v4506_v9 = vpop.f32.mrf.mxu1 }
 0x206   : > { %v4527_v58 = vadd.f32 %v9384_v60, %v4426_v14  ;;  %v4424_v2 = vadd.f32 %v4405_v20, %v4323_v38  ;;  %v9375_v54 = vpop.f32.mrf.mxu0 }
 0x207   : > { %9900 = vpow2.f32 %v4552_v35  ;;  %v4558_v29 = vmul.f32 1.442695, %v4547_v25  ;;  %v4545_v61 = vmin.f32 %v12153_v30, 20.0  ;;  %v4427_v7 = vadd.f32 %v9375_v54, %v4326_v51  ;;  %v9385_v32 = vpop.f32.mrf.mxu1 }
 0x208   : > { %v12158_v43 = vadd.f32 %v11898_v36, %v4527_v58  ;;  %v4525_v55 = vadd.f32 %v4506_v9, %v4424_v2  ;;  %v4408_v22 = vpop.f32.mrf.mxu0 }
 0x209   : > { %9902 = vpow2.f32 %v4558_v29  ;;  %v4554_v16 = vmul.f32 1.442695, %v4545_v61  ;;  %v4528_v33 = vadd.f32 %v9385_v32, %v4427_v7  ;;  %v4425_v18 = vadd.f32 %v4408_v22, %v4324_v57  ;;  %v4509_v52 = vpop.f32.mrf.mxu1 }
 0x20a   : > { %v4550_v0 = vmin.f32 %v12158_v43, 20.0  ;;  %v12162_v47 = vadd.f32 %v11898_v36, %v4525_v55 }
 0x20b   : > { %9904 = vpow2.f32 %v4554_v16  ;;  %v12165_v11 = vadd.f32 %v11898_v36, %v4528_v33  ;;  %v4526_v23 = vadd.f32 %v4509_v52, %v4425_v18 }
 0x20c   : > { %v4564_v28 = vmul.f32 1.442695, %v4550_v0  ;;  %v4548_v12 = vmin.f32 %v12162_v47, 20.0 }
 0x20d   : > { %v4551_v21 = vmin.f32 %v12165_v11, 20.0  ;;  %v12170_v46 = vadd.f32 %v11898_v36, %v4526_v23 }
 0x20e   : > { %9906 = vpow2.f32 %v4564_v28  ;;  %v4560_v3 = vmul.f32 1.442695, %v4548_v12 }
 0x20f   : > { %v4566_v59 = vmul.f32 1.442695, %v4551_v21  ;;  %v4549_v41 = vmin.f32 %v12170_v46, 20.0 }
 0x210   : > { %9908 = vpow2.f32 %v4560_v3 }
 0x211   : > { %9910 = vpow2.f32 %v4566_v59  ;;  %v4562_v42 = vmul.f32 1.442695, %v4549_v41 }
 0x212   : > { %v9899_v8 = vpop.eup %9898 }
 0x213   : > { %v4570_v24 = vadd.f32 2.0, %v9899_v8  ;;  %9912 = vpow2.f32 %v4562_v42 }
 0x214   : > { %v9901_v50 = vpop.eup %9900 }
 0x215   : > { %v4578_v34 = vmul.f32 %v9899_v8, %v4570_v24  ;;  %v4568_v44 = vadd.f32 2.0, %v9901_v50  ;;  %v4625_v24 = vld [vmem:[#allocation2] sm:$0xff] }
 0x216   : > { %v9903_v39 = vpop.eup %9902 }
 0x217   : > { %v4594_v48 = vadd.f32 2.0, %v4578_v34  ;;  %v4576_v17 = vmul.f32 %v9901_v50, %v4568_v44  ;;  %v4571_v4 = vadd.f32 2.0, %v9903_v39  ;;  %v4586_v22 = vmul.f32 %v4578_v34, %v12136_v53 }
 0x218   : > { %v9905_v36 = vpop.eup %9904 }
 0x219   : > { %9914 = vrcp.f32 %v4594_v48  ;;  %v4592_v13 = vadd.f32 2.0, %v4576_v17  ;;  %v4579_v10 = vmul.f32 %v9903_v39, %v4571_v4  ;;  %v4569_v6 = vadd.f32 2.0, %v9905_v36 }
 0x21a   : > { %v4584_v0 = vmul.f32 %v4576_v17, %v12142_v62 }
 0x21b   : > { %v9907_v56 = vpop.eup %9906  ;;  %9916 = vrcp.f32 %v4592_v13  ;;  %v4595_v60 = vadd.f32 2.0, %v4579_v10  ;;  %v4577_v38 = vmul.f32 %v9905_v36, %v4569_v6  ;;  %v4587_v28 = vmul.f32 %v4579_v10, %v12147_v40  ;;  %v4837_v40 = vld [vmem:[#allocation2 + $0x1] sm:$0xff] }
 0x21c   : > { %v4574_v51 = vadd.f32 2.0, %v9907_v56 }
 0x21d   : > { %v9909_v14 = vpop.eup %9908  ;;  %9918 = vrcp.f32 %v4595_v60  ;;  %v4593_v35 = vadd.f32 2.0, %v4577_v38  ;;  %v4585_v3 = vmul.f32 %v4577_v38, %v12153_v30  ;;  %v9750_v38 = vld [vmem:[%s13145_s3 + $0x30] sm:$0xff]  }
 0x21e   : > { %v9911_v20 = vpop.eup %9910  ;;  %v4582_v25 = vmul.f32 %v9907_v56, %v4574_v51  ;;  %v4572_v9 = vadd.f32 2.0, %v9909_v14  ;;  %v9751_v51 = vld [vmem:[%s13145_s3 + $0x40] sm:$0xff]  }
 0x21f   : > { %v4575_v57 = vadd.f32 2.0, %v9911_v20  ;;  %9920 = vrcp.f32 %v4593_v35 }
 0x220   : > { %v9913_v58 = vpop.eup %9912  ;;  %v4598_v2 = vadd.f32 2.0, %v4582_v25  ;;  %v4580_v54 = vmul.f32 %v9909_v14, %v4572_v9  ;;  %v4590_v41 = vmul.f32 %v4582_v25, %v12158_v43 }
 0x221   : > { %v4583_v29 = vmul.f32 %v9911_v20, %v4575_v57  ;;  %v4573_v61 = vadd.f32 2.0, %v9913_v58  ;;  %v13147_v20 = vld [vmem:[#allocation16_spill] sm:$0xff] }
 0x222   : > { %9922 = vrcp.f32 %v4598_v2  ;;  %v4596_v7 = vadd.f32 2.0, %v4580_v54  ;;  %v4588_v8 = vmul.f32 %v4580_v54, %v12162_v47  ;;  %v9752_v2 = vld [vmem:[%s13145_s3 + $0x58] sm:$0xff]  }
 0x223   : > { %v4599_v32 = vadd.f32 2.0, %v4583_v29  ;;  %v4581_v55 = vmul.f32 %v9913_v58, %v4573_v61  ;;  %v4591_v34 = vmul.f32 %v4583_v29, %v12165_v11  ;;  %v4952_v29 = vld [vmem:[#allocation2 + $0x130] sm:$0xff]  ;;  %v5066_v61 = vld [vmem:[#allocation2 + $0x1c0] sm:$0xff] }
 0x224   : > { %9924 = vrcp.f32 %v4596_v7 }
 0x225   : > { %9926 = vrcp.f32 %v4599_v32  ;;  %v4597_v16 = vadd.f32 2.0, %v4581_v55  ;;  %v4589_v17 = vmul.f32 %v4581_v55, %v12170_v46 }
 0x226   : > { %v9915_v33 = vpop.eup %9914 }
 0x227   : > { %v4605_v18 = vmul.f32 %v9915_v33, %v4586_v22  ;;  %9928 = vrcp.f32 %v4597_v16  ;;  %v4951_v33 = vld [vmem:[#allocation2 + $0x120] sm:$0xff] }
 0x228   : > { %v9917_v52 = vpop.eup %9916 }
 0x229   : > { %4619 = vst.msk [vmem:[#allocation2 + $0x31] sm:$0xff] %vm575_vm3, %v4605_v18  ;;  %v4601_v23 = vmul.f32 %v9917_v52, %v4584_v0  ;;  %v5065_v18 = vld [vmem:[#allocation2 + $0x1b0] sm:$0xff]  ;;  %v4964_v0 = vpack.c.bf16 %v4952_v29, %v4951_v33 }
 0x22a   : > { %v9919_v12 = vpop.eup %9918  ;;  %v5078_v52 = vpack.c.bf16 %v5066_v61, %v5065_v18 }
 0x22b   : > { %4617 = vst.msk [vmem:[#allocation2 + $0x11] sm:$0xff] %vm575_vm3, %v4601_v23  ;;  %v4607_v21 = vmul.f32 %v9919_v12, %v4587_v28  ;;  %v4954_v23 = vld [vmem:[#allocation2 + $0x150] sm:$0xff]  ;;  %v5068_v28 = vld [vmem:[#allocation2 + $0x1e0] sm:$0xff] }
 0x22c   : > { %v9921_v53 = vpop.eup %9920  ;;  %v4956_v12 = vld [vmem:[#allocation2 + $0x170] sm:$0xff] }
 0x22d   : > { %4620 = vst.msk [vmem:[#allocation2 + $0x41] sm:$0xff] %vm575_vm3, %v4607_v21  ;;  %v4603_v59 = vmul.f32 %v9921_v53, %v4585_v3  ;;  %v4953_v21 = vld [vmem:[#allocation2 + $0x140] sm:$0xff]  ;;  %v5067_v3 = vld [vmem:[#allocation2 + $0x1d0] sm:$0xff] }
 0x22e   : > { %v5070_v53 = vld [vmem:[#allocation2 + $0x200] sm:$0xff] }
 0x22f   : > { %v9923_v62 = vpop.eup %9922  ;;  %4618 = vst.msk [vmem:[#allocation2 + $0x21] sm:$0xff] %vm575_vm3, %v4603_v59  ;;  %v4965_v59 = vpack.c.bf16 %v4954_v23, %v4953_v21 }
 0x230   : > { %v4613_v42 = vmul.f32 %v9923_v62, %v4590_v41  ;;  %v12196_v13 = vld [vmem:[#allocation2 + $0x30] sm:$0xff]  ;;  %v5079_v41 = vpack.c.bf16 %v5068_v28, %v5067_v3  ;;  %v4955_v62 = vld [vmem:[#allocation2 + $0x160] sm:$0xff] }
 0x231   : > { %v9925_v50 = vpop.eup %9924  ;;  %v12203_v6 = vld [vmem:[#allocation2 + $0x31] sm:$0xff] }
 0x232   : > { %v9927_v44 = vpop.eup %9926  ;;  %4623 = vst.msk [vmem:[#allocation2 + $0x71] sm:$0xff] %vm575_vm3, %v4613_v42  ;;  %v4609_v30 = vmul.f32 %v9925_v50, %v4588_v8  ;;  %v12185_v39 = vld [vmem:[#allocation2 + $0x10] sm:$0xff]  ;;  %v4966_v42 = vpack.c.bf16 %v4956_v12, %v4955_v62 }
 0x233   : > { %v12187_v48 = vld [vmem:[#allocation2 + $0x11] sm:$0xff]  ;;  %v4615_v43 = vmul.f32 %v9927_v44, %v4591_v34  ;;  %v4637_v4 = vpack.c.bf16 %v12185_v39, %v4625_v24 }
 0x234   : > { %v4850_v47 = vpack.c.bf16 %v12187_v48, %v4837_v40  ;;  %v9929_v36 = vpop.eup %9928  ;;  %4621 = vst.msk [vmem:[#allocation2 + $0x51] sm:$0xff] %vm575_vm3, %v4609_v30  ;;  %v12217_v14 = vld [vmem:[#allocation2 + $0x40] sm:$0xff]  ;;  %v5069_v8 = vld [vmem:[#allocation2 + $0x1f0] sm:$0xff]  ;;  %v9756_v34 = vld [vmem:[%s13145_s3 + $0x78] sm:$0xff]  }
 0x235   : > { %4624 = vst.msk [vmem:[#allocation2 + $0x81] sm:$0xff] %vm575_vm3, %v4615_v43  ;;  %v4611_v11 = vmul.f32 %v9929_v36, %v4589_v17  ;;  %9402 = vmatprep.mubr.msk.bf16.mxu1 %vm575_vm3, %v4637_v4  ;;  %v12223_v25 = vld [vmem:[#allocation2 + $0x41] sm:$0xff]  ;;  %v9754_v24 = vld [vmem:[%s13145_s3 + $0x50] sm:$0xff]   ;;  %v5080_v50 = vpack.c.bf16 %v5070_v53, %v5069_v8 }
 0x236   : > { %9414 = vmatprep.mubr.msk.bf16.mxu0 %vm575_vm3, %v4850_v47  ;;  %v12199_v10 = vld [vmem:[#allocation2 + $0x20] sm:$0xff]  ;;  %v4958_v44 = vld [vmem:[#allocation2 + $0x190] sm:$0xff]  ;;  %v9757_v43 = vld [vmem:[%s13145_s3 + $0x88] sm:$0xff]  }
 0x237   : > { %4622 = vst.msk [vmem:[#allocation2 + $0x61] sm:$0xff] %vm575_vm3, %v4611_v11  ;;  %v12201_v46 = vld [vmem:[#allocation2 + $0x21] sm:$0xff]  ;;  %v4638_v56 = vpack.c.bf16 %v12196_v13, %v12199_v10  ;;  %v5180_v17 = vld [vmem:[#allocation2 + $0x131] sm:$0xff] }
 0x238   : > { %v4851_v60 = vpack.c.bf16 %v12203_v6, %v12201_v46  ;;  %v9755_v40 = vld [vmem:[%s13145_s3 + $0x60] sm:$0xff]   ;;  %v5071_v47 = vld [vmem:[#allocation2 + $0x210] sm:$0xff]  ;;  %v5534_v18 = vpack.c.bf16 %v12201_v46, %v12187_v48 }
 0x239   : > { %9403 = vmatmul.mubr.msk.bf16.vlgmr.msra.gmra.mxu1 %vm575_vm3, %v4638_v56  ;;  %v12237_v54 = vld [vmem:[#allocation2 + $0x70] sm:$0xff]  ;;  %v5072_v30 = vld [vmem:[#allocation2 + $0x220] sm:$0xff] }
 0x23a   : > { %9415 = vmatmul.mubr.msk.bf16.vlgmr.msra.gmra.mxu0 %vm575_vm3, %v4851_v60  ;;  %9423 = vmatpush3.bf16.msra.mxu1 %v13147_v20  ;;  %v12245_v55 = vld [vmem:[#allocation2 + $0x71] sm:$0xff]  ;;  %v4957_v4 = vld [vmem:[#allocation2 + $0x180] sm:$0xff]  ;;  %v5081_v11 = vpack.c.bf16 %v5072_v30, %v5071_v47 }
 0x23b   : > { %9435 = vmatpush3.bf16.msra.mxu0 %v12115_v5  ;;  %v12221_v35 = vld [vmem:[#allocation2 + $0x50] sm:$0xff]  ;;  %9424 = vmatprep.subr.bf16.mxu1 %v9750_v38  ;;  %v9753_v5 = vld [vmem:[%s13145_s3 + $0x68] sm:$0xff]   ;;  %v4967_v36 = vpack.c.bf16 %v4958_v44, %v4957_v4  ;;  %v9766_v46 = vld [vmem:[%s13054_s7] sm:$0xff]  }
 0x23c   : > { %v12225_v9 = vld [vmem:[#allocation2 + $0x51] sm:$0xff]  ;;  %v4639_v57 = vpack.c.bf16 %v12221_v35, %v12217_v14  ;;  %9436 = vmatprep.subr.bf16.mxu0 %v9751_v51  ;;  %v5179_v56 = vld [vmem:[#allocation2 + $0x121] sm:$0xff] }
 0x23d   : > { %v4852_v58 = vpack.c.bf16 %v12225_v9, %v12223_v25  ;;  %v5192_v60 = vpack.c.bf16 %v5180_v17, %v5179_v56  ;;  %v5184_v20 = vld [vmem:[#allocation2 + $0x171] sm:$0xff]  ;;  %v5528_v49 = vld [vmem:[#allocation2 + $0x81] sm:$0xff] }
 0x23e   : > { %9406 = vmatprep.mubr.msk.bf16.mxu1 %vm575_vm3, %v4639_v57  ;;  %v12241_v7 = vld [vmem:[#allocation2 + $0x60] sm:$0xff]  ;;  %9425 = vmatpush3.bf16.msra.mxu1 %v9750_v38  ;;  %v5306_v38 = vpack.c.bf16 %v12199_v10, %v12185_v39  ;;  %v9758_v39 = vld [vmem:[%s13145_s3 + $0x70] sm:$0xff]   ;;  %v5537_v48 = vpack.c.bf16 %v5528_v49, %v12245_v55 }
 0x23f   : > { %9418 = vmatprep.mubr.msk.bf16.mxu0 %vm575_vm3, %v4852_v58  ;;  %v12243_v32 = vld [vmem:[#allocation2 + $0x61] sm:$0xff]  ;;  %v4640_v22 = vpack.c.bf16 %v12237_v54, %v12241_v7  ;;  %9437 = vmatpush3.bf16.msra.mxu0 %v9751_v51  ;;  %v5182_v51 = vld [vmem:[#allocation2 + $0x151] sm:$0xff]  ;;  %v5308_v61 = vpack.c.bf16 %v12241_v7, %v12221_v35  ;;  %v5535_v35 = vpack.c.bf16 %v12223_v25, %v12203_v6 }
 0x240   : > { %v4853_v16 = vpack.c.bf16 %v12245_v55, %v12243_v32  ;;  %9446 = vmatprep.subr.bf16.mxu1 %v9752_v2  ;;  %9458 = vmatprep.subr.bf16.mxu0 %v9753_v5  ;;  %v5181_v57 = vld [vmem:[#allocation2 + $0x141] sm:$0xff] }
 0x241   : > { %9407 = vmatmul.mubr.msk.bf16.gmra.mxu1 %vm575_vm3, %v4640_v22  ;;  %v5193_v58 = vpack.c.bf16 %v5182_v51, %v5181_v57  ;;  %v9759_v10 = vld [vmem:[%s13145_s3 + $0x80] sm:$0xff]  }
 0x242   : > { %9419 = vmatmul.mubr.msk.bf16.gmra.mxu0 %vm575_vm3, %v4853_v16  ;;  %9426 = vmatprep.mubr.msk.bf16.mxu1 %vm575_vm3, %v4964_v0  ;;  %v5185_v22 = vld [vmem:[#allocation2 + $0x181] sm:$0xff] }
 0x243   : > { %9438 = vmatprep.mubr.msk.bf16.mxu0 %vm575_vm3, %v5078_v52  ;;  %v9767_v6 = vld [vmem:[%s13148_s5] sm:$0xff]  }
 0x249   : > { %9427 = vmatmul.mubr.msk.bf16.vlgmr.msra.gmra.mxu1 %vm575_vm3, %v4965_v59 }
 0x24a   : > { %9439 = vmatmul.mubr.msk.bf16.vlgmr.msra.gmra.mxu0 %vm575_vm3, %v5079_v41  ;;  %9447 = vmatpush3.bf16.msra.mxu1 %v9752_v2  ;;  %v5307_v2 = vpack.c.bf16 %v12217_v14, %v12196_v13  ;;  %v5186_v13 = vld [vmem:[#allocation2 + $0x191] sm:$0xff]  ;;  %v5300_v14 = vld [vmem:[#allocation2 + $0x80] sm:$0xff] }
 0x24b   : > { %9430 = vmatprep.mubr.msk.bf16.mxu1 %vm575_vm3, %v4966_v42  ;;  %9442 = vmatprep.mubr.msk.bf16.mxu0 %vm575_vm3, %v5080_v50  ;;  %v5195_v16 = vpack.c.bf16 %v5186_v13, %v5185_v22  ;;  %v5309_v33 = vpack.c.bf16 %v5300_v14, %v12237_v54  ;;  %v5536_v54 = vpack.c.bf16 %v12243_v32, %v12225_v9 }
 0x24c   : > { %9459 = vmatpush3.bf16.msra.mxu0 %v9753_v5  ;;  %9448 = vmatprep.subr.bf16.mxu1 %v9754_v24  ;;  %v5183_v5 = vld [vmem:[#allocation2 + $0x161] sm:$0xff] }
 0x24d   : > { %9460 = vmatprep.subr.bf16.mxu0 %v9755_v40  ;;  %v5194_v29 = vpack.c.bf16 %v5184_v20, %v5183_v5 }
 0x24e   : > { %9449 = vmatpush3.bf16.msra.mxu1 %v9754_v24 }
 0x24f   : > { %9470 = vmatprep.subr.bf16.mxu1 %v9756_v34 }
 0x250   : > { %9461 = vmatpush3.bf16.msra.mxu0 %v9755_v40 }
 0x251   : > { %9482 = vmatprep.subr.bf16.mxu0 %v9757_v43  ;;  %9431 = vmatmul.mubr.msk.bf16.gmra.mxu1 %vm575_vm3, %v4967_v36 }
 0x252   : > { %9443 = vmatmul.mubr.msk.bf16.gmra.mxu0 %vm575_vm3, %v5081_v11  ;;  %9450 = vmatprep.mubr.msk.bf16.mxu1 %vm575_vm3, %v5192_v60 }
 0x253   : > { %9462 = vmatprep.mubr.msk.bf16.mxu0 %vm575_vm3, %v5306_v38 }
 0x259   : > { %9451 = vmatmul.mubr.msk.bf16.vlgmr.msra.gmra.mxu1 %vm575_vm3, %v5193_v58 }
 0x25a   : > { %9463 = vmatmul.mubr.msk.bf16.vlgmr.msra.gmra.mxu0 %vm575_vm3, %v5307_v2  ;;  %9471 = vmatpush3.bf16.msra.mxu1 %v9756_v34 }
 0x25b   : > { %9454 = vmatprep.mubr.msk.bf16.mxu1 %vm575_vm3, %v5194_v29  ;;  %9466 = vmatprep.mubr.msk.bf16.mxu0 %vm575_vm3, %v5308_v61 }
 0x25c   : > { %9483 = vmatpush3.bf16.msra.mxu0 %v9757_v43  ;;  %9472 = vmatprep.subr.bf16.mxu1 %v9758_v39 }
 0x25d   : > { %9484 = vmatprep.subr.bf16.mxu0 %v9759_v10 }
 0x25e   : > { %9473 = vmatpush3.bf16.msra.mxu1 %v9758_v39 }
 0x25f   : > { %9494 = vmatprep.subr.bf16.mxu1 %v9761_v27 }
 0x260   : > { %9485 = vmatpush3.bf16.msra.mxu0 %v9759_v10 }
 0x261   : > { %9455 = vmatmul.mubr.msk.bf16.gmra.mxu1 %vm575_vm3, %v5195_v16  ;;  %9510 = vmatprep.subr.bf16.mxu0 %v9760_v1 }
 0x262   : > { %9467 = vmatmul.mubr.msk.bf16.gmra.mxu0 %vm575_vm3, %v5309_v33  ;;  %9474 = vmatprep.mubr.msk.bf16.mxu1 %vm575_vm3, %v5420_v26  ;;  %v5423_v26 = vpack.c.bf16 %v5414_v19, %v12124_v63  ;;  %v9765_v63 = vld [vmem:[%s13148_s5 + $0x8] sm:$0xff]  }
 0x263   : > { %9486 = vmatprep.mubr.msk.bf16.mxu0 %vm575_vm3, %v5534_v18 }
 0x269   : > { %9475 = vmatmul.mubr.msk.bf16.vlgmr.msra.gmra.mxu1 %vm575_vm3, %v5421_v37  ;;  %v9762_v37 = vld [vmem:[%s13054_s7 + $0x10] sm:$0xff]  }
 0x26a   : > { %9487 = vmatmul.mubr.msk.bf16.vlgmr.msra.gmra.mxu0 %vm575_vm3, %v5535_v35  ;;  %9478 = vmatprep.mubr.msk.bf16.mxu1 %vm575_vm3, %v5422_v15 }
 0x26b   : > { %9490 = vmatprep.mubr.msk.bf16.mxu0 %vm575_vm3, %v5536_v54  ;;  %9511 = vmatpush3.bf16.msra.mxu0 %v9760_v1 }
 0x26c   : > { %9495 = vmatpush3.bf16.msra.mxu1 %v9761_v27  ;;  %9512 = vmatprep.subr.bf16.mxu0 %v9762_v37 }
 0x26d   : > { %9496 = vmatprep.subr.bf16.mxu1 %v9763_v45 }
 0x26f   : > { %9513 = vmatpush3.bf16.msra.mxu0 %v9762_v37 }
 0x270   : > { %9497 = vmatpush3.bf16.msra.mxu1 %v9763_v45  ;;  %9514 = vmatprep.subr.bf16.mxu0 %v9764_v31 }
 0x271   : > { %9479 = vmatmul.mubr.msk.bf16.gmra.mxu1 %vm575_vm3, %v5423_v26  ;;  %9498 = vmatprep.subr.bf16.mxu1 %v9765_v63 }
 0x272   : > { %9491 = vmatmul.mubr.msk.bf16.gmra.mxu0 %vm575_vm3, %v5537_v48 }
 0x273   : > { %9515 = vmatpush3.bf16.msra.mxu0 %v9764_v31 }
 0x274   : > { %9499 = vmatpush3.bf16.msra.mxu1 %v9765_v63  ;;  %9516 = vmatprep.subr.bf16.mxu0 %v9766_v46 }
 0x275   : > { %9500 = vmatprep.subr.bf16.mxu1 %v9767_v6 }
 0x277   : > { %9517 = vmatpush3.bf16.msra.mxu0 %v9766_v46 }
 0x278   : > { %9501 = vmatpush3.bf16.msra.mxu1 %v9767_v6 }
 0x2b7   : > { %v9392_v15 = vpop.f32.mrf.mxu0 }
 0x2b9   : > { %v4717_v25 = vpop.f32.mrf.mxu0 }
 0x2bb   : > { %v9393_v9 = vpop.f32.mrf.mxu0 }
 0x2bd   : > { %v4720_v7 = vpop.f32.mrf.mxu0 }
 0x2bf   : > { %v9396_v32 = vpop.f32.mrf.mxu0 }
 0x2c1   : > { %v4733_v55 = vpop.f32.mrf.mxu0 }
 0x2c3   : > { %v9397_v0 = vpop.f32.mrf.mxu0 }
 0x2c5   : > { %v12343_v52 = vpop.f32.mrf.mxu0 }
 0x2f9   : > { %v9404_v23 = vpop.f32.mrf.mxu1 }
 0x2fa   : > { %v9416_v28 = vpop.f32.mrf.mxu0  ;;  %v4815_v29 = vadd.f32 %v9404_v23, %v9392_v15 }
 0x2fb   : > { %v4806_v12 = vpop.f32.mrf.mxu1 }
 0x2fc   : > { %v4912_v21 = vpop.f32.mrf.mxu0  ;;  %v4807_v61 = vadd.f32 %v4806_v12, %v4717_v25  ;;  %v4945_v22 = vadd.f32 %v9416_v28, %v4815_v29 }
 0x2fd   : > { %v9405_v3 = vpop.f32.mrf.mxu1 }
 0x2fe   : > { %v9417_v53 = vpop.f32.mrf.mxu0  ;;  %v4818_v16 = vadd.f32 %v9405_v3, %v9393_v9  ;;  %v4943_v35 = vadd.f32 %v4912_v21, %v4807_v61 }
 0x2ff   : > { %v4809_v59 = vpop.f32.mrf.mxu1 }
 0x300   : > { %v4915_v41 = vpop.f32.mrf.mxu0  ;;  %v4810_v54 = vadd.f32 %v4809_v59, %v4720_v7  ;;  %v4946_v48 = vadd.f32 %v9417_v53, %v4818_v16 }
 0x301   : > { %v9408_v62 = vpop.f32.mrf.mxu1 }
 0x302   : > { %v9420_v42 = vpop.f32.mrf.mxu0  ;;  %v4831_v27 = vadd.f32 %v9408_v62, %v9396_v32  ;;  %v4944_v31 = vadd.f32 %v4915_v41, %v4810_v54 }
 0x303   : > { %v4822_v8 = vpop.f32.mrf.mxu1 }
 0x304   : > { %v4928_v24 = vpop.f32.mrf.mxu0  ;;  %v4823_v46 = vadd.f32 %v4822_v8, %v4733_v55  ;;  %v4949_v21 = vadd.f32 %v9420_v42, %v4831_v27 }
 0x305   : > { %v9409_v40 = vpop.f32.mrf.mxu1 }
 0x306   : > { %v9421_v50 = vpop.f32.mrf.mxu0  ;;  %v4834_v6 = vadd.f32 %v9409_v40, %v9397_v0  ;;  %v4947_v32 = vadd.f32 %v4928_v24, %v4823_v46  ;;  %v12355_v24 = vld [vmem:[%s13149_s4] ss:$0 sm:$0xff] }
 0x307   : > { %v4825_v34 = vpop.f32.mrf.mxu1 }
 0x308   : > { %v4931_v44 = vpop.f32.mrf.mxu0  ;;  %v4826_v7 = vadd.f32 %v4825_v34, %v12343_v52  ;;  %v4950_v62 = vadd.f32 %v9421_v50, %v4834_v6 }
 0x309   : > { %v9428_v30 = vpop.f32.mrf.mxu1 }
 0x30a   : > { %v9440_v43 = vpop.f32.mrf.mxu0  ;;  %v5059_v19 = vadd.f32 %v9428_v30, %v4945_v22  ;;  %v4948_v8 = vadd.f32 %v4931_v44, %v4826_v7 }
 0x30b   : > { %v5026_v17 = vpop.f32.mrf.mxu1 }
 0x30c   : > { %v5140_v4 = vpop.f32.mrf.mxu0  ;;  %v5057_v1 = vadd.f32 %v5026_v17, %v4943_v35  ;;  %v5173_v63 = vadd.f32 %v9440_v43, %v5059_v19 }
 0x30d   : > { %v9429_v47 = vpop.f32.mrf.mxu1 }
 0x30e   : > { %v9441_v36 = vpop.f32.mrf.mxu0  ;;  %v5060_v15 = vadd.f32 %v9429_v47, %v4946_v48  ;;  %v5171_v9 = vadd.f32 %v5140_v4, %v5057_v1 }
 0x30f   : > { %v5029_v11 = vpop.f32.mrf.mxu1 }
 0x310   : > { %v5143_v56 = vpop.f32.mrf.mxu0  ;;  %v5058_v28 = vadd.f32 %v5029_v11, %v4944_v31  ;;  %v5174_v53 = vadd.f32 %v9441_v36, %v5060_v15 }
 0x311   : > { %v9432_v60 = vpop.f32.mrf.mxu1 }
 0x312   : > { %v9444_v38 = vpop.f32.mrf.mxu0  ;;  %v5063_v17 = vadd.f32 %v9432_v60, %v4949_v21  ;;  %v5172_v47 = vadd.f32 %v5143_v56, %v5058_v28 }
 0x313   : > { %v5042_v51 = vpop.f32.mrf.mxu1 }
 0x314   : > { %v12345_v20 = vpop.f32.mrf.mxu0  ;;  %v5061_v40 = vadd.f32 %v5042_v51, %v4947_v32  ;;  %v5177_v34 = vadd.f32 %v9444_v38, %v5063_v17 }
 0x315   : > { %v9433_v57 = vpop.f32.mrf.mxu1 }
 0x316   : > { %v12347_v58 = vpop.f32.mrf.mxu0  ;;  %v5064_v4 = vadd.f32 %v9433_v57, %v4950_v62  ;;  %v5175_v44 = vadd.f32 %v12345_v20, %v5061_v40 }
 0x317   : > { %v5045_v2 = vpop.f32.mrf.mxu1 }
 0x318   : > { %v12349_v5 = vpop.f32.mrf.mxu0  ;;  %v5062_v61 = vadd.f32 %v5045_v2, %v4948_v8  ;;  %v5178_v51 = vadd.f32 %v12347_v58, %v5064_v4 }
 0x319   : > { %v9452_v39 = vpop.f32.mrf.mxu1 }
 0x31a   : > { %v9464_v10 = vpop.f32.mrf.mxu0  ;;  %v5287_v12 = vadd.f32 %v9452_v39, %v5173_v63 }
 0x31b   : > { %v5254_v13 = vpop.f32.mrf.mxu1 }
 0x31c   : > { %v5368_v14 = vpop.f32.mrf.mxu0  ;;  %v5285_v30 = vadd.f32 %v5254_v13, %v5171_v9  ;;  %v5401_v55 = vadd.f32 %v9464_v10, %v5287_v12 }
 0x31d   : > { %v9453_v33 = vpop.f32.mrf.mxu1 }
 0x31e   : > { %v9465_v18 = vpop.f32.mrf.mxu0  ;;  %v5288_v0 = vadd.f32 %v9453_v33, %v5174_v53  ;;  %v5399_v42 = vadd.f32 %v5368_v14, %v5285_v30  ;;  %v5176_v33 = vadd.f32 %v12349_v5, %v5062_v61 }
 0x31f   : > { %v5257_v49 = vpop.f32.mrf.mxu1 }
 0x320   : > { %v5371_v26 = vpop.f32.mrf.mxu0  ;;  %v5286_v39 = vadd.f32 %v5257_v49, %v5172_v47  ;;  %v5402_v56 = vadd.f32 %v9465_v18, %v5288_v0 }
 0x321   : > { %v9456_v37 = vpop.f32.mrf.mxu1 }
 0x322   : > { %v9468_v45 = vpop.f32.mrf.mxu0  ;;  %v5291_v57 = vadd.f32 %v9456_v37, %v5177_v34  ;;  %v5400_v22 = vadd.f32 %v5371_v26, %v5286_v39 }
 0x323   : > { %v5270_v25 = vpop.f32.mrf.mxu1 }
 0x324   : > { %v5384_v23 = vpop.f32.mrf.mxu0  ;;  %v5289_v35 = vadd.f32 %v5270_v25, %v5175_v44  ;;  %v5405_v1 = vadd.f32 %v9468_v45, %v5291_v57 }
 0x325   : > { %v9457_v3 = vpop.f32.mrf.mxu1 }
 0x326   : > { %v9469_v59 = vpop.f32.mrf.mxu0  ;;  %v5292_v54 = vadd.f32 %v9457_v3, %v5178_v51  ;;  %v5403_v46 = vadd.f32 %v5384_v23, %v5289_v35 }
 0x327   : > { %v5273_v41 = vpop.f32.mrf.mxu1 }
 0x328   : > { %v5387_v43 = vpop.f32.mrf.mxu0  ;;  %v5290_v26 = vadd.f32 %v5273_v41, %v5176_v33  ;;  %v5406_v6 = vadd.f32 %v9469_v59, %v5292_v54 }
 0x329   : > { %v9476_v11 = vpop.f32.mrf.mxu1 }
 0x32a   : > { %v9488_v29 = vpop.f32.mrf.mxu0  ;;  %v5515_v52 = vadd.f32 %v9476_v11, %v5401_v55  ;;  %v5404_v7 = vadd.f32 %v5387_v43, %v5290_v26 }
 0x32b   : > { %v5482_v50 = vpop.f32.mrf.mxu1 }
 0x32c   : > { %v5596_v36 = vpop.f32.mrf.mxu0  ;;  %v5629_v60 = vadd.f32 %v9488_v29, %v5515_v52  ;;  %v5513_v10 = vadd.f32 %v5482_v50, %v5399_v42 }
 0x32d   : > { %v9477_v13 = vpop.f32.mrf.mxu1 }
 0x32e   : > { %v9489_v14 = vpop.f32.mrf.mxu0  ;;  %v12360_v38 = vadd.f32 %v12355_v24, %v5629_v60  ;;  %v5627_v2 = vadd.f32 %v5596_v36, %v5513_v10  ;;  %v5516_v16 = vadd.f32 %v9477_v13, %v5402_v56 }
 0x32f   : > { %v5485_v18 = vpop.f32.mrf.mxu1 }
 0x330   : > { %v5599_v19 = vpop.f32.mrf.mxu0  ;;  %v5652_v49 = vmin.f32 %v12360_v38, 20.0  ;;  %v12365_v20 = vadd.f32 %v12355_v24, %v5627_v2  ;;  %v5630_v58 = vadd.f32 %v9489_v14, %v5516_v16  ;;  %v5514_v48 = vadd.f32 %v5485_v18, %v5400_v22 }
 0x331   : > { %v9480_v27 = vpop.f32.mrf.mxu1 }
 0x332   : > { %v9492_v37 = vpop.f32.mrf.mxu0  ;;  %v5662_v31 = vmul.f32 1.442695, %v5652_v49  ;;  %v5650_v63 = vmin.f32 %v12365_v20, 20.0  ;;  %v12369_v5 = vadd.f32 %v12355_v24, %v5630_v58  ;;  %v5628_v15 = vadd.f32 %v5599_v19, %v5514_v48 }
 0x333   : > { %v5519_v25 = vadd.f32 %v9480_v27, %v5405_v1  ;;  %v5498_v9 = vpop.f32.mrf.mxu1 }
 0x334   : > { %v5612_v28 = vpop.f32.mrf.mxu0  ;;  %9930 = vpow2.f32 %v5662_v31  ;;  %v5658_v12 = vmul.f32 1.442695, %v5650_v63  ;;  %v5653_v21 = vmin.f32 %v12369_v5, 20.0  ;;  %v12373_v45 = vadd.f32 %v12355_v24, %v5628_v15 }
 0x335   : > { %v5633_v3 = vadd.f32 %v9492_v37, %v5519_v25  ;;  %v5517_v53 = vadd.f32 %v5498_v9, %v5403_v46  ;;  %v9481_v30 = vpop.f32.mrf.mxu1 }
 0x336   : > { %v9493_v32 = vpop.f32.mrf.mxu0  ;;  %9932 = vpow2.f32 %v5658_v12  ;;  %v5664_v62 = vmul.f32 1.442695, %v5653_v21  ;;  %v5651_v23 = vmin.f32 %v12373_v45, 20.0  ;;  %v5520_v59 = vadd.f32 %v9481_v30, %v5406_v6 }
 0x337   : > { %v12377_v17 = vadd.f32 %v12355_v24, %v5633_v3  ;;  %v5631_v41 = vadd.f32 %v5612_v28, %v5517_v53  ;;  %v5501_v47 = vpop.f32.mrf.mxu1 }
 0x338   : > { %9934 = vpow2.f32 %v5664_v62  ;;  %v5660_v55 = vmul.f32 1.442695, %v5651_v23  ;;  %v5634_v0 = vadd.f32 %v9493_v32, %v5520_v59  ;;  %v5518_v8 = vadd.f32 %v5501_v47, %v5404_v7  ;;  %v5615_v4 = vpop.f32.mrf.mxu0 }
 0x339   : > { %v5656_v43 = vmin.f32 %v12377_v17, 20.0  ;;  %v12381_v40 = vadd.f32 %v12355_v24, %v5631_v41 }
 0x33a   : > { %9936 = vpow2.f32 %v5660_v55  ;;  %v12384_v11 = vadd.f32 %v12355_v24, %v5634_v0  ;;  %v5632_v29 = vadd.f32 %v5615_v4, %v5518_v8 }
 0x33b   : > { %v5670_v42 = vmul.f32 1.442695, %v5656_v43  ;;  %v5654_v39 = vmin.f32 %v12381_v40, 20.0 }
 0x33c   : > { %v5657_v52 = vmin.f32 %v12384_v11, 20.0  ;;  %v12389_v34 = vadd.f32 %v12355_v24, %v5632_v29 }
 0x33d   : > { %9938 = vpow2.f32 %v5670_v42  ;;  %v5666_v61 = vmul.f32 1.442695, %v5654_v39 }
 0x33e   : > { %v5672_v50 = vmul.f32 1.442695, %v5657_v52  ;;  %v5655_v36 = vmin.f32 %v12389_v34, 20.0 }
 0x33f   : > { %9940 = vpow2.f32 %v5666_v61 }
 0x340   : > { %9942 = vpow2.f32 %v5672_v50  ;;  %v5668_v56 = vmul.f32 1.442695, %v5655_v36 }
 0x341   : > { %v9931_v60 = vpop.eup %9930 }
 0x342   : > { %v5676_v10 = vadd.f32 2.0, %v9931_v60  ;;  %9944 = vpow2.f32 %v5668_v56 }
 0x343   : > { %v9933_v44 = vpop.eup %9932 }
 0x344   : > { %v5674_v51 = vadd.f32 2.0, %v9933_v44  ;;  %v5684_v13 = vmul.f32 %v9931_v60, %v5676_v10  ;;  %v12423_v60 = vld [vmem:[%s13053_s6] ss:$0 sm:$0xff] }
 0x345   : > { %v9935_v57 = vpop.eup %9934  ;;  %v8553_v10 = vld [vmem:[%s13055_s8] ss:$0 sm:$0xff] }
 0x346   : > { %v5682_v14 = vmul.f32 %v9933_v44, %v5674_v51  ;;  %v5677_v22 = vadd.f32 2.0, %v9935_v57  ;;  %v5700_v54 = vadd.f32 2.0, %v5684_v13  ;;  %v5692_v23 = vmul.f32 %v5684_v13, %v12360_v38 }
 0x347   : > { %v9937_v2 = vpop.eup %9936 }
 0x348   : > { %v5685_v24 = vmul.f32 %v9935_v57, %v5677_v22  ;;  %v5698_v16 = vadd.f32 2.0, %v5682_v14  ;;  %v5675_v33 = vadd.f32 2.0, %v9937_v2  ;;  %v5690_v30 = vmul.f32 %v5682_v14, %v12365_v20 }
 0x34a   : > { %v9939_v35 = vpop.eup %9938  ;;  %v5701_v18 = vadd.f32 2.0, %v5685_v24  ;;  %v5683_v19 = vmul.f32 %v9937_v2, %v5675_v33  ;;  %v5693_v3 = vmul.f32 %v5685_v24, %v12369_v5 }
 0x34b   : > { %v5680_v49 = vadd.f32 2.0, %v9939_v35 }
 0x34c   : > { %v9941_v58 = vpop.eup %9940  ;;  %9946 = vrcp.f32 %v5701_v18  ;;  %v5699_v1 = vadd.f32 2.0, %v5683_v19  ;;  %v5691_v32 = vmul.f32 %v5683_v19, %v12373_v45 }
 0x34d   : > { %v9943_v48 = vpop.eup %9942  ;;  %9948 = vrcp.f32 %v5698_v16  ;;  %v5688_v26 = vmul.f32 %v9939_v35, %v5680_v49  ;;  %v5678_v27 = vadd.f32 2.0, %v9941_v58 }
 0x34e   : > { %9950 = vrcp.f32 %v5700_v54  ;;  %v5681_v37 = vadd.f32 2.0, %v9943_v48 }
 0x34f   : > { %v9945_v31 = vpop.eup %9944  ;;  %9952 = vrcp.f32 %v5699_v1  ;;  %v5686_v63 = vmul.f32 %v9941_v58, %v5678_v27  ;;  %v5704_v6 = vadd.f32 2.0, %v5688_v26  ;;  %v5696_v42 = vmul.f32 %v5688_v26, %v12377_v17  ;;  %v9769_v17 = vld [vmem:[%s13056_s9 + $0x10] sm:$0xff]  }
 0x350   : > { %v5689_v15 = vmul.f32 %v9943_v48, %v5681_v37  ;;  %v5679_v46 = vadd.f32 2.0, %v9945_v31 }
 0x351   : > { %v5702_v25 = vadd.f32 2.0, %v5686_v63  ;;  %v5694_v20 = vmul.f32 %v5686_v63, %v12381_v40  ;;  %v9768_v40 = vld [vmem:[%s13056_s9 + $0x18] sm:$0xff]  }
 0x352   : > { %v5705_v9 = vadd.f32 2.0, %v5689_v15  ;;  %v5687_v28 = vmul.f32 %v9945_v31, %v5679_v46  ;;  %v5697_v45 = vmul.f32 %v5689_v15, %v12384_v11  ;;  %9526 = vmatprep.subr.bf16.mxu1 %v9768_v40  ;;  %v9770_v11 = vld [vmem:[%s13056_s9 + $0x8] sm:$0xff]  }
 0x353   : > { %9954 = vrcp.f32 %v5702_v25 }
 0x354   : > { %9956 = vrcp.f32 %v5705_v9  ;;  %v5703_v12 = vadd.f32 2.0, %v5687_v28  ;;  %v5695_v38 = vmul.f32 %v5687_v28, %v12389_v34  ;;  %v9771_v34 = vld [vmem:[%s13056_s9] sm:$0xff]  }
 0x355   : > { %9958 = vrcp.f32 %v5704_v6 }
 0x356   : > { %9960 = vrcp.f32 %v5703_v12 }
 0x359   : > { %v9947_v21 = vpop.eup %9946 }
 0x35a   : > { %v9949_v7 = vpop.eup %9948  ;;  %v5713_v59 = vmul.f32 %v9947_v21, %v5693_v3 }
 0x35b   : > { %v9951_v53 = vpop.eup %9950  ;;  %v5707_v41 = vmul.f32 %v9949_v7, %v5690_v30 }
 0x35c   : > { %v9953_v62 = vpop.eup %9952  ;;  %v5711_v55 = vmul.f32 %v9951_v53, %v5692_v23 }
 0x35d   : > { %v5709_v47 = vmul.f32 %v9953_v62, %v5691_v32 }
 0x35e   : > { %v5731_v43 = vpack.c.bf16 %v5713_v59, %v5711_v55 }
 0x35f   : > { %v5730_v0 = vpack.c.bf16 %v5709_v47, %v5707_v41 }
 0x360   : > { %v9955_v8 = vpop.eup %9954 }
 0x361   : > { %v9957_v4 = vpop.eup %9956  ;;  %9502 = vmatprep.mubr.msk.bf16.mxu1 %vm5765_vm5, %v5730_v0  ;;  %9518 = vmatprep.mubr.msk.bf16.mxu0 %vm5765_vm5, %v5730_v0  ;;  %v5715_v39 = vmul.f32 %v9955_v8, %v5694_v20 }
 0x362   : > { %v9959_v5 = vpop.eup %9958  ;;  %9503 = vmatmul.mubr.msk.bf16.vlgmr.msra.gmra.mxu1 %vm5765_vm5, %v5731_v43  ;;  %9519 = vmatmul.mubr.msk.bf16.vlgmr.msra.gmra.mxu0 %vm5765_vm5, %v5731_v43  ;;  %v5721_v52 = vmul.f32 %v9957_v4, %v5697_v45 }
 0x363   : > { %v9961_v29 = vpop.eup %9960  ;;  %v5719_v50 = vmul.f32 %v9959_v5, %v5696_v42  ;;  %9527 = vmatpush3.bf16.msra.mxu1 %v9768_v40 }
 0x364   : > { %v5717_v61 = vmul.f32 %v9961_v29, %v5695_v38  ;;  %9528 = vmatprep.subr.bf16.mxu1 %v9769_v17 }
 0x365   : > { %v5733_v56 = vpack.c.bf16 %v5721_v52, %v5719_v50 }
 0x366   : > { %v5732_v36 = vpack.c.bf16 %v5717_v61, %v5715_v39 }
 0x367   : > { %9529 = vmatpush3.bf16.msra.mxu1 %v9769_v17 }
 0x368   : > { %9506 = vmatprep.mubr.msk.bf16.mxu1 %vm5765_vm5, %v5732_v36  ;;  %9522 = vmatprep.mubr.msk.bf16.mxu0 %vm5765_vm5, %v5732_v36 }
 0x369   : > { %9530 = vmatprep.subr.bf16.mxu1 %v9770_v11 }
 0x36a   : > { %9507 = vmatmul.mubr.msk.bf16.gmra.mxu1 %vm5765_vm5, %v5733_v56  ;;  %9523 = vmatmul.mubr.msk.bf16.gmra.mxu0 %vm5765_vm5, %v5733_v56 }
 0x36b   : > { %9531 = vmatpush3.bf16.msra.mxu1 %v9770_v11 }
 0x36c   : > { %9532 = vmatprep.subr.bf16.mxu1 %v9771_v34 }
 0x36f   : > { %9533 = vmatpush3.bf16.msra.mxu1 %v9771_v34 }
 0x422   : > { %v9504_v44 = vpop.f32.mrf.mxu1  ;;  %v9520_v51 = vpop.f32.mrf.mxu0 }
 0x423   : > { %v12429_v57 = vadd.f32 %v9504_v44, %v12423_v60  ;;  %v12431_v13 = vadd.f32 %v9520_v51, %v8553_v10 }
 0x424   : > { %v5812_v14 = vpop.f32.mrf.mxu1  ;;  %v5988_v22 = vpop.f32.mrf.mxu0 }
 0x425   : > { %v5845_v2 = vmin.f32 %v12429_v57, 20.0  ;;  %v6021_v24 = vmin.f32 %v12431_v13, 20.0  ;;  %v12436_v16 = vadd.f32 %v12423_v60, %v5812_v14  ;;  %v12438_v33 = vadd.f32 %v8553_v10, %v5988_v22 }
 0x426   : > { %v9505_v35 = vpop.f32.mrf.mxu1  ;;  %v9521_v54 = vpop.f32.mrf.mxu0 }
 0x427   : > { %v5855_v18 = vmul.f32 1.442695, %v5845_v2  ;;  %v6031_v19 = vmul.f32 1.442695, %v6021_v24  ;;  %v5843_v49 = vmin.f32 %v12436_v16, 20.0  ;;  %v6019_v58 = vmin.f32 %v12438_v33, 20.0 }
 0x428   : > { %v12443_v48 = vadd.f32 %v9505_v35, %v12423_v60  ;;  %v12445_v1 = vadd.f32 %v9521_v54, %v8553_v10  ;;  %v5815_v26 = vpop.f32.mrf.mxu1  ;;  %v5991_v27 = vpop.f32.mrf.mxu0 }
 0x429   : > { %9962 = vpow2.f32 %v5855_v18  ;;  %v5851_v37 = vmul.f32 1.442695, %v5843_v49  ;;  %v6027_v31 = vmul.f32 1.442695, %v6019_v58  ;;  %v12448_v63 = vadd.f32 %v12423_v60, %v5815_v26 }
 0x42a   : > { %9964 = vpow2.f32 %v6031_v19  ;;  %v5846_v15 = vmin.f32 %v12443_v48, 20.0  ;;  %v6022_v46 = vmin.f32 %v12445_v1, 20.0  ;;  %v12452_v6 = vadd.f32 %v8553_v10, %v5991_v27  ;;  %v9508_v25 = vpop.f32.mrf.mxu1  ;;  %v9524_v9 = vpop.f32.mrf.mxu0 }
 0x42b   : > { %9966 = vpow2.f32 %v5851_v37  ;;  %v5844_v28 = vmin.f32 %v12448_v63, 20.0  ;;  %v12456_v12 = vadd.f32 %v9508_v25, %v12423_v60  ;;  %v12458_v21 = vadd.f32 %v9524_v9, %v8553_v10 }
 0x42c   : > { %9968 = vpow2.f32 %v6027_v31  ;;  %v5857_v7 = vmul.f32 1.442695, %v5846_v15  ;;  %v6033_v3 = vmul.f32 1.442695, %v6022_v46  ;;  %v6020_v53 = vmin.f32 %v12452_v6, 20.0  ;;  %v12461_v30 = vpop.f32.mrf.mxu1  ;;  %v6004_v32 = vpop.f32.mrf.mxu0 }
 0x42d   : > { %v5853_v62 = vmul.f32 1.442695, %v5844_v28  ;;  %v5849_v23 = vmin.f32 %v12456_v12, 20.0  ;;  %v6025_v59 = vmin.f32 %v12458_v21, 20.0  ;;  %v12465_v47 = vadd.f32 %v8553_v10, %v6004_v32 }
 0x42e   : > { %9970 = vpow2.f32 %v5857_v7  ;;  %v6029_v41 = vmul.f32 1.442695, %v6020_v53  ;;  %v9509_v55 = vpop.f32.mrf.mxu1  ;;  %v9525_v0 = vpop.f32.mrf.mxu0 }
 0x42f   : > { %9972 = vpow2.f32 %v6033_v3  ;;  %v5863_v8 = vmul.f32 1.442695, %v5849_v23  ;;  %v6039_v43 = vmul.f32 1.442695, %v6025_v59  ;;  %v6023_v4 = vmin.f32 %v12465_v47, 20.0 }
 0x430   : > { %9974 = vpow2.f32 %v5853_v62  ;;  %v12469_v5 = vadd.f32 %v9509_v55, %v12423_v60  ;;  %v12471_v20 = vadd.f32 %v9525_v0, %v8553_v10  ;;  %v6007_v45 = vpop.f32.mrf.mxu0 }
 0x431   : > { %9976 = vpow2.f32 %v6029_v41  ;;  %v12473_v38 = vadd.f32 %v8553_v10, %v6007_v45  ;;  %v6035_v29 = vmul.f32 1.442695, %v6023_v4 }
 0x432   : > { %9978 = vpow2.f32 %v5863_v8  ;;  %v5850_v42 = vmin.f32 %v12469_v5, 20.0  ;;  %v6026_v39 = vmin.f32 %v12471_v20, 20.0 }
 0x433   : > { %9980 = vpow2.f32 %v6039_v43  ;;  %v6024_v52 = vmin.f32 %v12473_v38, 20.0 }
 0x434   : > { %v5865_v61 = vmul.f32 1.442695, %v5850_v42  ;;  %v6041_v50 = vmul.f32 1.442695, %v6026_v39  ;;  %9982 = vpow2.f32 %v6035_v29 }
 0x435   : > { %v6037_v36 = vmul.f32 1.442695, %v6024_v52 }
 0x436   : > { %v9963_v56 = vpop.eup %9962  ;;  %9984 = vpow2.f32 %v5865_v61 }
 0x437   : > { %v9965_v40 = vpop.eup %9964  ;;  %v5869_v17 = vadd.f32 2.0, %v9963_v56  ;;  %9986 = vpow2.f32 %v6041_v50 }
 0x438   : > { %v9967_v11 = vpop.eup %9966  ;;  %v6045_v34 = vadd.f32 2.0, %v9965_v40  ;;  %9988 = vpow2.f32 %v6037_v36 }
 0x439   : > { %v9969_v10 = vpop.eup %9968  ;;  %v12478_v44 = vmul.f32 %v9963_v56, %v5869_v17  ;;  %v5867_v51 = vadd.f32 2.0, %v9967_v11 }
 0x43a   : > { %v12480_v14 = vmul.f32 %v9965_v40, %v6045_v34  ;;  %v6043_v22 = vadd.f32 2.0, %v9969_v10 }
 0x43b   : > { %v9971_v2 = vpop.eup %9970  ;;  %v5893_v24 = vadd.f32 2.0, %v12478_v44  ;;  %v12483_v35 = vmul.f32 %v9967_v11, %v5867_v51 }
 0x43c   : > { %v9973_v54 = vpop.eup %9972  ;;  %v6069_v18 = vadd.f32 2.0, %v12480_v14  ;;  %v12486_v19 = vmul.f32 %v9969_v10, %v6043_v22  ;;  %v5870_v49 = vadd.f32 2.0, %v9971_v2 }
 0x43d   : > { %v9975_v58 = vpop.eup %9974  ;;  %v5891_v26 = vadd.f32 2.0, %v12483_v35  ;;  %v6046_v27 = vadd.f32 2.0, %v9973_v54  ;;  %9990 = vrcp.f32 %v5893_v24 }
 0x43e   : > { %v9977_v37 = vpop.eup %9976  ;;  %v5878_v31 = vmul.f32 %v9971_v2, %v5870_v49  ;;  %v5868_v25 = vadd.f32 2.0, %v9975_v58  ;;  %9992 = vrcp.f32 %v6069_v18  ;;  %v6067_v7 = vadd.f32 2.0, %v12486_v19 }
 0x43f   : > { %v9979_v15 = vpop.eup %9978  ;;  %v6054_v46 = vmul.f32 %v9973_v54, %v6046_v27  ;;  %v6044_v9 = vadd.f32 2.0, %v9977_v37  ;;  %9994 = vrcp.f32 %v5891_v26  ;;  %v5885_v54 = vmul.f32 %v12478_v44, %v12429_v57 }
 0x440   : > { %v9981_v28 = vpop.eup %9980  ;;  %v5894_v3 = vadd.f32 2.0, %v5878_v31  ;;  %v5873_v53 = vadd.f32 2.0, %v9979_v15  ;;  %v5876_v62 = vmul.f32 %v9975_v58, %v5868_v25  ;;  %v5886_v18 = vmul.f32 %v5878_v31, %v12443_v48 }
 0x441   : > { %v6070_v32 = vadd.f32 2.0, %v6054_v46  ;;  %v6052_v23 = vmul.f32 %v9977_v37, %v6044_v9  ;;  %v9983_v59 = vpop.eup %9982  ;;  %v6049_v8 = vadd.f32 2.0, %v9981_v28  ;;  %v5883_v25 = vmul.f32 %v12483_v35, %v12436_v16 }
 0x442   : > { %9996 = vrcp.f32 %v5894_v3  ;;  %v5881_v41 = vmul.f32 %v9979_v15, %v5873_v53  ;;  %v5892_v0 = vadd.f32 2.0, %v5876_v62  ;;  %v6047_v45 = vadd.f32 2.0, %v9983_v59 }
 0x443   : > { %v9985_v55 = vpop.eup %9984  ;;  %9998 = vrcp.f32 %v6070_v32  ;;  %v6068_v4 = vadd.f32 2.0, %v6052_v23  ;;  %v6057_v61 = vmul.f32 %v9981_v28, %v6049_v8  ;;  %v6062_v9 = vmul.f32 %v6054_v46, %v12445_v1 }
 0x444   : > { %v9987_v43 = vpop.eup %9986  ;;  %10000 = vrcp.f32 %v6067_v7  ;;  %v5874_v29 = vadd.f32 2.0, %v9985_v55  ;;  %v5897_v39 = vadd.f32 2.0, %v5881_v41  ;;  %v6055_v50 = vmul.f32 %v9983_v59, %v6047_v45 }
 0x445   : > { %10002 = vrcp.f32 %v5892_v0  ;;  %v9989_v42 = vpop.eup %9988  ;;  %v6050_v52 = vadd.f32 2.0, %v9987_v43  ;;  %v6073_v10 = vadd.f32 2.0, %v6057_v61  ;;  %v5884_v57 = vmul.f32 %v5876_v62, %v12448_v63 }
 0x446   : > { %10004 = vrcp.f32 %v6068_v4  ;;  %v5882_v36 = vmul.f32 %v9985_v55, %v5874_v29  ;;  %v6048_v40 = vadd.f32 2.0, %v9989_v42  ;;  %v6071_v17 = vadd.f32 2.0, %v6055_v50 }
 0x447   : > { %v6058_v56 = vmul.f32 %v9987_v43, %v6050_v52  ;;  %10006 = vrcp.f32 %v5897_v39  ;;  %v6059_v48 = vmul.f32 %v12486_v19, %v12438_v33  ;;  %v6060_v28 = vmul.f32 %v6052_v23, %v12452_v6 }
 0x448   : > { %v5898_v11 = vadd.f32 2.0, %v5882_v36  ;;  %v6056_v51 = vmul.f32 %v9989_v42, %v6048_v40  ;;  %v6061_v3 = vmul.f32 %v12480_v14, %v12431_v13  ;;  %v5889_v14 = vmul.f32 %v5881_v41, %v12456_v12  ;;  %v12585_v40 = vld [vmem:[%s13058_s11 + $0x38] sm:$0xff]  }
 0x449   : > { %v6074_v34 = vadd.f32 2.0, %v6058_v56  ;;  %v5890_v32 = vmul.f32 %v5882_v36, %v12469_v5  ;;  %v6066_v8 = vmul.f32 %v6058_v56, %v12471_v20  ;;  %v6063_v4 = vmul.f32 %v6055_v50, %v12465_v47  ;;  %v9773_v50 = vld [vmem:[%s13058_s11 + $0x10] sm:$0xff]   ;;  %v9775_v36 = vld [vmem:[%s13058_s11] sm:$0xff]   ;;  %v12579_v56 = vld [vmem:[%s13058_s11 + $0x28] sm:$0xff]  }
 0x44a   : > { %v9991_v22 = vpop.eup %9990  ;;  %10008 = vrcp.f32 %v5898_v11  ;;  %v6072_v49 = vadd.f32 2.0, %v6056_v51  ;;  %v6064_v5 = vmul.f32 %v6056_v51, %v12473_v38  ;;  %v6065_v45 = vmul.f32 %v6057_v61, %v12458_v21  ;;  %v9772_v38 = vld [vmem:[%s13058_s11 + $0x18] sm:$0xff]   ;;  %v9774_v61 = vld [vmem:[%s13058_s11 + $0x8] sm:$0xff]   ;;  %v8562_v11 = vld [vmem:[%s13057_s10] ss:$0 sm:$0xff] }
 0x44b   : > { %v9993_v2 = vpop.eup %9992  ;;  %10010 = vrcp.f32 %v6074_v34  ;;  %v12493_v27 = vmul.f32 %v9991_v22, %v5885_v54  ;;  %v13158_v21 = vmov 0.0   ;;  %9542 = vmatprep.subr.bf16.mxu0 %v9772_v38  ;;  %9554 = vmatprep.subr.bf16.mxu1 %v9774_v61 }
 0x44c   : > { %v9995_v24 = vpop.eup %9994  ;;  %10012 = vrcp.f32 %v6071_v17  ;;  %v12518_v33 = vmul.f32 %v9993_v2, %v6061_v3  ;;  %6291 = vst.msk [vmem:[#allocation3 + $0x38] sm:$0x3] %vm6284_vm6, %v13158_v21  ;;  %6285 = vst.msk [vmem:[#allocation3 + $0x8] sm:$0x3] %vm6284_vm6, %v13158_v21  ;;  %9543 = vmatpush3.bf16.msra.mxu0 %v9772_v38  ;;  %v12588_v17 = vpop.f32.mrf.mxu1 }
 0x44d   : > { %10014 = vrcp.f32 %v6073_v10  ;;  %v12508_v53 = vmul.f32 %v9995_v24, %v5883_v25  ;;  %6287 = vst.msk [vmem:[#allocation3 + $0x18] sm:$0x3] %vm6284_vm6, %v13158_v21  ;;  %6289 = vst.msk [vmem:[#allocation3 + $0x28] sm:$0x3] %vm6284_vm6, %v13158_v21  ;;  %9544 = vmatprep.subr.bf16.mxu0 %v9773_v50 }
 0x44e   : > { %10016 = vrcp.f32 %v6072_v49  ;;  %13153 = vst [vmem:[#allocation20_spill] sm:$0xff] %v12518_v33  ;;  %6293 = vst.msk [vmem:[#allocation3 + $0x48] sm:$0x3] %vm6284_vm6, %v13158_v21 }
 0x44f   : > { %v9997_v58 = vpop.eup %9996  ;;  %6295 = vst.msk [vmem:[#allocation3 + $0x58] sm:$0x3] %vm6284_vm6, %v13158_v21  ;;  %6297 = vst.msk [vmem:[#allocation3 + $0x68] sm:$0x3] %vm6284_vm6, %v13158_v21 }
 0x450   : > { %v9999_v26 = vpop.eup %9998  ;;  %v12495_v37 = vmul.f32 %v9997_v58, %v5886_v18  ;;  %6299 = vst.msk [vmem:[#allocation3 + $0x78] sm:$0x3] %vm6284_vm6, %v13158_v21  ;;  %6301 = vst.msk [vmem:[#allocation3 + $0x88] sm:$0x3] %vm6284_vm6, %v13158_v21  ;;  %9545 = vmatpush3.bf16.msra.mxu0 %v9773_v50 }
 0x451   : > { %v10001_v15 = vpop.eup %10000  ;;  %v12510_v16 = vmul.f32 %v9999_v26, %v6062_v9  ;;  %6303 = vst.msk [vmem:[#allocation3 + $0x98] sm:$0x3] %vm6284_vm6, %v13158_v21  ;;  %9566 = vmatprep.subr.bf16.mxu0 %v12579_v56 }
 0x452   : > { %v10003_v44 = vpop.eup %10002  ;;  %v7631_v31 = vpack.c.bf16 %v12495_v37, %v12493_v27  ;;  %v12514_v63 = vmul.f32 %v10001_v15, %v6059_v48  ;;  %v9796_v27 = vld [vmem:[%s13060_s13 + $0x8] sm:$0xff]   ;;  %v9797_v37 = vld [vmem:[%s13060_s13] sm:$0xff]  }
 0x453   : > { %v10005_v7 = vpop.eup %10004  ;;  %13150 = vst [vmem:[#allocation12_spill] sm:$0xff] %v12510_v16  ;;  %v12512_v1 = vmul.f32 %v10003_v44, %v5884_v57  ;;  %v6100_v13 = vpack.c.bf16 %v12510_v16, %v12518_v33 }
 0x454   : > { %13151 = vst [vmem:[#allocation14_spill] sm:$0xff] %v12514_v63  ;;  %v12516_v35 = vmul.f32 %v10005_v7, %v6060_v28  ;;  %v10007_v46 = vpop.eup %10006 }
 0x455   : > { %v7630_v19 = vpack.c.bf16 %v12512_v1, %v12508_v53  ;;  %v12530_v59 = vmul.f32 %v10007_v46, %v5889_v14  ;;  %v9794_v53 = vld [vmem:[%s13060_s13 + $0x18] sm:$0xff]   ;;  %v9795_v1 = vld [vmem:[%s13060_s13 + $0x10] sm:$0xff]  }
 0x456   : > { %13152 = vst [vmem:[#allocation13_spill] sm:$0xff] %v12516_v35  ;;  %v6099_v6 = vpack.c.bf16 %v12516_v35, %v12514_v63 }
 0x457   : > { %v10009_v62 = vpop.eup %10008 }
 0x458   : > { %9534 = vmatprep.mubr.msk.bf16.mxu1 %vm5765_vm5, %v6099_v6  ;;  %v10011_v23 = vpop.eup %10010  ;;  %v12532_v55 = vmul.f32 %v10009_v62, %v5890_v32 }
 0x459   : > { %9535 = vmatmul.mubr.msk.bf16.vlgmr.msra.gmra.mxu1 %vm5765_vm5, %v6100_v13  ;;  %v10013_v0 = vpop.eup %10012  ;;  %v12540_v29 = vmul.f32 %v10011_v23, %v6066_v8 }
 0x45a   : > { %v10015_v43 = vpop.eup %10014  ;;  %v7633_v12 = vpack.c.bf16 %v12532_v55, %v12530_v59  ;;  %v12542_v42 = vmul.f32 %v10013_v0, %v6063_v4  ;;  %9555 = vmatpush3.bf16.msra.mxu1 %v9774_v61 }
 0x45b   : > { %v10017_v41 = vpop.eup %10016  ;;  %13154 = vst [vmem:[#allocation17_spill] sm:$0xff] %v12540_v29  ;;  %v12546_v52 = vmul.f32 %v10015_v43, %v6065_v45  ;;  %9556 = vmatprep.subr.bf16.mxu1 %v9775_v36 }
 0x45c   : > { %13155 = vst [vmem:[#allocation19_spill] sm:$0xff] %v12542_v42  ;;  %v12544_v39 = vmul.f32 %v10017_v41, %v6064_v5 }
 0x45d   : > { %13157 = vst [vmem:[#allocation18_spill] sm:$0xff] %v12546_v52  ;;  %v6102_v47 = vpack.c.bf16 %v12540_v29, %v12546_v52 }
 0x45e   : > { %13156 = vst [vmem:[#allocation15_spill] sm:$0xff] %v12544_v39  ;;  %v6101_v20 = vpack.c.bf16 %v12544_v39, %v12542_v42  ;;  %9557 = vmatpush3.bf16.msra.mxu1 %v9775_v36 }
 0x45f   : > { %9578 = vmatprep.subr.bf16.mxu1 %v12585_v40 }
 0x460   : > { %9538 = vmatprep.mubr.msk.bf16.mxu1 %vm5765_vm5, %v6101_v20 }
 0x461   : > { %9539 = vmatmul.mubr.msk.bf16.gmra.mxu1 %vm5765_vm5, %v6102_v47 }
 0x519   : > { %v9536_v34 = vpop.f32.mrf.mxu1 }
 0x51a   : > { %v12593_v10 = vadd.f32 %v9536_v34, %v8562_v11 }
 0x51b   : > { %v6180_v51 = vpop.f32.mrf.mxu1 }
 0x51c   : > { %v6213_v22 = vmin.f32 %v12593_v10, 20.0  ;;  %v12596_v2 = vadd.f32 %v8562_v11, %v6180_v51 }
 0x51d   : > { %v9537_v24 = vpop.f32.mrf.mxu1 }
 0x51e   : > { %v6223_v54 = vmul.f32 1.442695, %v6213_v22  ;;  %v6211_v18 = vmin.f32 %v12596_v2, 20.0  ;;  %v12599_v49 = vadd.f32 %v9537_v24, %v8562_v11 }
 0x51f   : > { %v6183_v58 = vpop.f32.mrf.mxu1 }
 0x520   : > { %10018 = vpow2.f32 %v6223_v54  ;;  %v6219_v26 = vmul.f32 1.442695, %v6211_v18  ;;  %v6214_v15 = vmin.f32 %v12599_v49, 20.0  ;;  %v12602_v25 = vadd.f32 %v8562_v11, %v6183_v58 }
 0x521   : > { %v9540_v44 = vpop.f32.mrf.mxu1 }
 0x522   : > { %10020 = vpow2.f32 %v6219_v26  ;;  %v6225_v9 = vmul.f32 1.442695, %v6214_v15  ;;  %v6212_v57 = vmin.f32 %v12602_v25, 20.0  ;;  %v12605_v28 = vadd.f32 %v9540_v44, %v8562_v11 }
 0x523   : > { %v6196_v7 = vpop.f32.mrf.mxu1 }
 0x524   : > { %10022 = vpow2.f32 %v6225_v9  ;;  %v6221_v48 = vmul.f32 1.442695, %v6212_v57  ;;  %v6217_v3 = vmin.f32 %v12605_v28, 20.0  ;;  %v12608_v6 = vadd.f32 %v8562_v11, %v6196_v7 }
 0x525   : > { %v9541_v46 = vpop.f32.mrf.mxu1 }
 0x526   : > { %10024 = vpow2.f32 %v6221_v48  ;;  %v6231_v13 = vmul.f32 1.442695, %v6217_v3  ;;  %v6215_v14 = vmin.f32 %v12608_v6, 20.0  ;;  %v12611_v32 = vadd.f32 %v9541_v46, %v8562_v11 }
 0x527   : > { %v6199_v62 = vpop.f32.mrf.mxu1 }
 0x528   : > { %10026 = vpow2.f32 %v6231_v13  ;;  %v6227_v23 = vmul.f32 1.442695, %v6215_v14  ;;  %v6218_v0 = vmin.f32 %v12611_v32, 20.0  ;;  %v12614_v8 = vadd.f32 %v8562_v11, %v6199_v62 }
 0x52a   : > { %10028 = vpow2.f32 %v6227_v23  ;;  %v6233_v43 = vmul.f32 1.442695, %v6218_v0  ;;  %v6216_v4 = vmin.f32 %v12614_v8, 20.0 }
 0x52c   : > { %10030 = vpow2.f32 %v6233_v43  ;;  %v6229_v45 = vmul.f32 1.442695, %v6216_v4 }
 0x52d   : > { %v10019_v5 = vpop.eup %10018 }
 0x52e   : > { %v6237_v41 = vadd.f32 2.0, %v10019_v5  ;;  %10032 = vpow2.f32 %v6229_v45 }
 0x52f   : > { %v10021_v20 = vpop.eup %10020 }
 0x530   : > { %v6245_v47 = vmul.f32 %v10019_v5, %v6237_v41  ;;  %v6235_v21 = vadd.f32 2.0, %v10021_v20 }
 0x531   : > { %v10023_v38 = vpop.eup %10022 }
 0x532   : > { %v6261_v61 = vadd.f32 2.0, %v6245_v47  ;;  %v6243_v50 = vmul.f32 %v10021_v20, %v6235_v21  ;;  %v6238_v36 = vadd.f32 2.0, %v10023_v38  ;;  %v6253_v23 = vmul.f32 %v6245_v47, %v12593_v10 }
 0x533   : > { %v10025_v34 = vpop.eup %10024 }
 0x534   : > { %10034 = vrcp.f32 %v6261_v61  ;;  %v6259_v11 = vadd.f32 2.0, %v6243_v50  ;;  %v6246_v51 = vmul.f32 %v10023_v38, %v6238_v36  ;;  %v6236_v22 = vadd.f32 2.0, %v10025_v34 }
 0x535   : > { %v10027_v54 = vpop.eup %10026  ;;  %v6251_v41 = vmul.f32 %v6243_v50, %v12596_v2 }
 0x536   : > { %10036 = vrcp.f32 %v6259_v11  ;;  %v6262_v24 = vadd.f32 2.0, %v6246_v51  ;;  %v6244_v18 = vmul.f32 %v10025_v34, %v6236_v22  ;;  %v6241_v58 = vadd.f32 2.0, %v10027_v54  ;;  %v6329_v11 = vld [vmem:[#allocation3 + $0x1] sm:$0xff] }
 0x537   : > { %v10029_v26 = vpop.eup %10028  ;;  %v6254_v38 = vmul.f32 %v6246_v51, %v12599_v49  ;;  %v6313_v22 = vld [vmem:[#allocation3] sm:$0xff] }
 0x538   : > { %10038 = vrcp.f32 %v6262_v24  ;;  %v6260_v15 = vadd.f32 2.0, %v6244_v18  ;;  %v6249_v9 = vmul.f32 %v10027_v54, %v6241_v58  ;;  %v6239_v57 = vadd.f32 2.0, %v10029_v26 }
 0x539   : > { %v10031_v44 = vpop.eup %10030  ;;  %v6252_v47 = vmul.f32 %v6244_v18, %v12602_v25 }
 0x53a   : > { %10040 = vrcp.f32 %v6260_v15  ;;  %v6265_v48 = vadd.f32 2.0, %v6249_v9  ;;  %v6247_v7 = vmul.f32 %v10029_v26, %v6239_v57  ;;  %v6242_v3 = vadd.f32 2.0, %v10031_v44 }
 0x53b   : > { %v10033_v46 = vpop.eup %10032  ;;  %v6257_v2 = vmul.f32 %v6249_v9, %v12605_v28 }
 0x53c   : > { %10042 = vrcp.f32 %v6265_v48  ;;  %v6263_v13 = vadd.f32 2.0, %v6247_v7  ;;  %v6250_v14 = vmul.f32 %v10031_v44, %v6242_v3  ;;  %v6240_v62 = vadd.f32 2.0, %v10033_v46 }
 0x53d   : > { %v6255_v49 = vmul.f32 %v6247_v7, %v12608_v6 }
 0x53e   : > { %10044 = vrcp.f32 %v6263_v13  ;;  %v6266_v0 = vadd.f32 2.0, %v6250_v14  ;;  %v6248_v4 = vmul.f32 %v10033_v46, %v6240_v62  ;;  %v6258_v18 = vmul.f32 %v6250_v14, %v12611_v32  ;;  %v9779_v14 = vld [vmem:[%s13058_s11 + $0x30] sm:$0xff]  }
 0x540   : > { %10046 = vrcp.f32 %v6266_v0  ;;  %v6264_v20 = vadd.f32 2.0, %v6248_v4  ;;  %v6256_v6 = vmul.f32 %v6248_v4, %v12614_v8  ;;  %v9777_v8 = vld [vmem:[%s13058_s11 + $0x20] sm:$0xff]  }
 0x541   : > { %v10035_v43 = vpop.eup %10034 }
 0x542   : > { %v6272_v5 = vmul.f32 %v10035_v43, %v6253_v23  ;;  %10048 = vrcp.f32 %v6264_v20 }
 0x543   : > { %v10037_v45 = vpop.eup %10036 }
 0x544   : > { %6307 = vst.msk [vmem:[#allocation3 + $0x31] sm:$0xff] %vm575_vm3, %v6272_v5  ;;  %v6268_v21 = vmul.f32 %v10037_v45, %v6251_v41  ;;  %v6524_v45 = vld [vmem:[#allocation3 + $0x2] sm:$0xff] }
 0x545   : > { %v10039_v61 = vpop.eup %10038 }
 0x546   : > { %6305 = vst.msk [vmem:[#allocation3 + $0x11] sm:$0xff] %vm575_vm3, %v6268_v21  ;;  %v6274_v10 = vmul.f32 %v10039_v61, %v6254_v38 }
 0x547   : > { %v10041_v36 = vpop.eup %10040 }
 0x548   : > { %6308 = vst.msk [vmem:[#allocation3 + $0x41] sm:$0xff] %vm575_vm3, %v6274_v10  ;;  %v6270_v34 = vmul.f32 %v10041_v36, %v6252_v47 }
 0x549   : > { %v10043_v50 = vpop.eup %10042 }
 0x54a   : > { %6306 = vst.msk [vmem:[#allocation3 + $0x21] sm:$0xff] %vm575_vm3, %v6270_v34  ;;  %v6280_v24 = vmul.f32 %v10043_v50, %v6257_v2 }
 0x54b   : > { %v10045_v51 = vpop.eup %10044  ;;  %v12636_v57 = vld [vmem:[#allocation3 + $0x31] sm:$0xff] }
 0x54c   : > { %6311 = vst.msk [vmem:[#allocation3 + $0x71] sm:$0xff] %vm575_vm3, %v6280_v24  ;;  %v6276_v25 = vmul.f32 %v10045_v51, %v6255_v49  ;;  %v6316_v7 = vld [vmem:[#allocation3 + $0x30] sm:$0xff]  ;;  %v9781_v51 = vld [vmem:[%s13058_s11 + $0x40] sm:$0xff]  }
 0x54d   : > { %v12627_v54 = vld [vmem:[#allocation3 + $0x11] sm:$0xff]  ;;  %v10047_v15 = vpop.eup %10046 }
 0x54e   : > { %v6314_v58 = vld [vmem:[#allocation3 + $0x10] sm:$0xff]  ;;  %v6342_v26 = vpack.c.bf16 %v12627_v54, %v6329_v11  ;;  %6309 = vst.msk [vmem:[#allocation3 + $0x51] sm:$0xff] %vm575_vm3, %v6276_v25  ;;  %v6282_v9 = vmul.f32 %v10047_v15, %v6258_v18 }
 0x54f   : > { %v6325_v28 = vpack.c.bf16 %v6314_v58, %v6313_v22  ;;  %v10049_v44 = vpop.eup %10048  ;;  %v12659_v62 = vld [vmem:[#allocation3 + $0x41] sm:$0xff]  ;;  %v6525_v20 = vld [vmem:[#allocation3 + $0x12] sm:$0xff] }
 0x550   : > { %9546 = vmatprep.mubr.msk.bf16.mxu0 %vm575_vm3, %v6342_v26  ;;  %6312 = vst.msk [vmem:[#allocation3 + $0x81] sm:$0xff] %vm575_vm3, %v6282_v9  ;;  %v6278_v3 = vmul.f32 %v10049_v44, %v6256_v6  ;;  %v6317_v0 = vld [vmem:[#allocation3 + $0x40] sm:$0xff]  ;;  %v6537_v36 = vpack.c.bf16 %v6525_v20, %v6524_v45  ;;  %v6527_v11 = vld [vmem:[#allocation3 + $0x32] sm:$0xff]  ;;  %v9784_v26 = vld [vmem:[%s13058_s11 + $0x68] sm:$0xff]   ;;  %v12723_v6 = vadd.f32 %v12423_v60, %v12461_v30 }
 0x551   : > { %9558 = vmatprep.mubr.msk.bf16.mxu1 %vm575_vm3, %v6325_v28  ;;  %v12639_v48 = vld [vmem:[#allocation3 + $0x21] sm:$0xff]  ;;  %v6652_v24 = vpack.c.bf16 %v6317_v0, %v6316_v7  ;;  %v9783_v18 = vld [vmem:[%s13058_s11 + $0x50] sm:$0xff]   ;;  %v12717_v28 = vadd.f32 %v12423_v60, %v12588_v17  ;;  %v9786_v17 = vld [vmem:[%s13058_s11 + $0x78] sm:$0xff]  }
 0x552   : > { %v6315_v32 = vld [vmem:[#allocation3 + $0x20] sm:$0xff]  ;;  %v12643_v46 = vpack.c.bf16 %v12636_v57, %v12639_v48  ;;  %6310 = vst.msk [vmem:[#allocation3 + $0x61] sm:$0xff] %vm575_vm3, %v6278_v3  ;;  %v5847_v60 = vmin.f32 %v12723_v6, 20.0  ;;  %v9787_v45 = vld [vmem:[%s13058_s11 + $0x70] sm:$0xff]  }
 0x553   : > { %v12645_v13 = vpack.c.bf16 %v6316_v7, %v6315_v32  ;;  %v12680_v41 = vld [vmem:[#allocation3 + $0x71] sm:$0xff]  ;;  %v6651_v34 = vpack.c.bf16 %v6315_v32, %v6314_v58  ;;  %v6526_v2 = vld [vmem:[#allocation3 + $0x22] sm:$0xff]  ;;  %v5848_v3 = vmin.f32 %v12717_v28, 20.0 }
 0x554   : > { %9547 = vmatmul.mubr.msk.bf16.vlgmr.msra.gmra.mxu0 %vm575_vm3, %v12643_v46  ;;  %v6320_v61 = vld [vmem:[#allocation3 + $0x70] sm:$0xff]  ;;  %v12696_v22 = vpack.c.bf16 %v6527_v11, %v6526_v2  ;;  %v6528_v49 = vld [vmem:[#allocation3 + $0x42] sm:$0xff] }
 0x555   : > { %9559 = vmatmul.mubr.msk.bf16.vlgmr.msra.gmra.mxu1 %vm575_vm3, %v12645_v13  ;;  %9567 = vmatpush3.bf16.msra.mxu0 %v12579_v56  ;;  %v12662_v23 = vld [vmem:[#allocation3 + $0x51] sm:$0xff]  ;;  %v9780_v56 = vld [vmem:[%s13058_s11 + $0x48] sm:$0xff]   ;;  %v5861_v30 = vmul.f32 1.442695, %v5848_v3 }
 0x556   : > { %9579 = vmatpush3.bf16.msra.mxu1 %v12585_v40  ;;  %v6318_v43 = vld [vmem:[#allocation3 + $0x50] sm:$0xff]  ;;  %9568 = vmatprep.subr.bf16.mxu0 %v9777_v8  ;;  %v12666_v4 = vpack.c.bf16 %v12662_v23, %v12659_v62  ;;  %v9782_v40 = vld [vmem:[%s13058_s11 + $0x58] sm:$0xff]  }
 0x557   : > { %9580 = vmatprep.subr.bf16.mxu1 %v9779_v14  ;;  %v12668_v5 = vpack.c.bf16 %v6318_v43, %v6317_v0  ;;  %v6529_v50 = vld [vmem:[#allocation3 + $0x52] sm:$0xff]  ;;  %v12719_v9 = vld [vmem:[#allocation3 + $0x80] sm:$0xff]  ;;  %v5859_v0 = vmul.f32 1.442695, %v5847_v60  ;;  %10050 = vpow2.f32 %v5861_v30 }
 0x558   : > { %9550 = vmatprep.mubr.msk.bf16.mxu0 %vm575_vm3, %v12666_v4  ;;  %v12701_v58 = vpack.c.bf16 %v6529_v50, %v6528_v49  ;;  %v6531_v44 = vld [vmem:[#allocation3 + $0x72] sm:$0xff]  ;;  %v6654_v7 = vpack.c.bf16 %v12719_v9, %v6320_v61 }
 0x559   : > { %9562 = vmatprep.mubr.msk.bf16.mxu1 %vm575_vm3, %v12668_v5  ;;  %9569 = vmatpush3.bf16.msra.mxu0 %v9777_v8  ;;  %v12682_v21 = vld [vmem:[#allocation3 + $0x61] sm:$0xff]  ;;  %v6765_v8 = vpack.c.bf16 %v12639_v48, %v12627_v54  ;;  %v6880_v54 = vpack.c.bf16 %v6528_v49, %v6527_v11  ;;  %10052 = vpow2.f32 %v5859_v0 }
 0x55a   : > { %9581 = vmatpush3.bf16.msra.mxu1 %v9779_v14  ;;  %v6319_v38 = vld [vmem:[#allocation3 + $0x60] sm:$0xff]  ;;  %9590 = vmatprep.subr.bf16.mxu0 %v9780_v56  ;;  %v12686_v10 = vpack.c.bf16 %v12680_v41, %v12682_v21  ;;  %v6879_v14 = vpack.c.bf16 %v6526_v2, %v6525_v20  ;;  %v6988_v2 = vld [vmem:[#allocation3 + $0x90] sm:$0xff]  ;;  %v9792_v49 = vld [vmem:[%s13063_s16 + $0x8] sm:$0xff]  }
 0x55b   : > { %9602 = vmatprep.subr.bf16.mxu1 %v9782_v40  ;;  %v12688_v47 = vpack.c.bf16 %v6320_v61, %v6319_v38  ;;  %v6653_v25 = vpack.c.bf16 %v6319_v38, %v6318_v43  ;;  %v6530_v15 = vld [vmem:[#allocation3 + $0x62] sm:$0xff]  ;;  %v6766_v43 = vpack.c.bf16 %v12659_v62, %v12636_v57 }
 0x55c   : > { %9551 = vmatmul.mubr.msk.bf16.gmra.mxu0 %vm575_vm3, %v12686_v10  ;;  %v12725_v32 = vpack.c.bf16 %v6531_v44, %v6530_v15  ;;  %v9785_v48 = vld [vmem:[%s13058_s11 + $0x60] sm:$0xff]   ;;  %v9788_v57 = vld [vmem:[%s13058_s11 + $0x88] sm:$0xff]  }
 0x55d   : > { %9563 = vmatmul.mubr.msk.bf16.gmra.mxu1 %vm575_vm3, %v12688_v47  ;;  %9570 = vmatprep.mubr.msk.bf16.mxu0 %vm575_vm3, %v6537_v36  ;;  %v6759_v62 = vld [vmem:[#allocation3 + $0x81] sm:$0xff] }
 0x55e   : > { %9582 = vmatprep.mubr.msk.bf16.mxu1 %vm575_vm3, %v6651_v34  ;;  %v6768_v20 = vpack.c.bf16 %v6759_v62, %v12680_v41  ;;  %v9789_v36 = vld [vmem:[%s13058_s11 + $0x80] sm:$0xff]  }
 0x564   : > { %9571 = vmatmul.mubr.msk.bf16.vlgmr.msra.gmra.mxu0 %vm575_vm3, %v12696_v22  ;;  %v10051_v38 = vpop.eup %10050 }
 0x565   : > { %9583 = vmatmul.mubr.msk.bf16.vlgmr.msra.gmra.mxu1 %vm575_vm3, %v6652_v24  ;;  %9591 = vmatpush3.bf16.msra.mxu0 %v9780_v56  ;;  %v6767_v56 = vpack.c.bf16 %v12682_v21, %v12662_v23  ;;  %v6873_v23 = vld [vmem:[#allocation3 + $0x82] sm:$0xff]  ;;  %v5872_v41 = vadd.f32 2.0, %v10051_v38 }
 0x566   : > { %9574 = vmatprep.mubr.msk.bf16.mxu0 %vm575_vm3, %v12701_v58  ;;  %9586 = vmatprep.mubr.msk.bf16.mxu1 %vm575_vm3, %v6653_v25  ;;  %v6882_v21 = vpack.c.bf16 %v6873_v23, %v6531_v44  ;;  %v10053_v61 = vpop.eup %10052  ;;  %v9793_v25 = vld [vmem:[%s13063_s16] sm:$0xff]  }
 0x567   : > { %9592 = vmatprep.subr.bf16.mxu0 %v9781_v51  ;;  %9603 = vmatpush3.bf16.msra.mxu1 %v9782_v40  ;;  %v6881_v40 = vpack.c.bf16 %v6530_v15, %v6529_v50  ;;  %v5871_v34 = vadd.f32 2.0, %v10053_v61  ;;  %v7102_v50 = vld [vmem:[#allocation3 + $0x91] sm:$0xff] }
 0x568   : > { %9604 = vmatprep.subr.bf16.mxu1 %v9783_v18  ;;  %v7111_v11 = vpack.c.bf16 %v7102_v50, %v6759_v62 }
 0x569   : > { %9593 = vmatpush3.bf16.msra.mxu0 %v9781_v51  ;;  %v7216_v51 = vld [vmem:[#allocation3 + $0x92] sm:$0xff] }
 0x56a   : > { %9614 = vmatprep.subr.bf16.mxu0 %v9784_v26 }
 0x56b   : > { %9605 = vmatpush3.bf16.msra.mxu1 %v9783_v18 }
 0x56c   : > { %9575 = vmatmul.mubr.msk.bf16.gmra.mxu0 %vm575_vm3, %v12725_v32  ;;  %9626 = vmatprep.subr.bf16.mxu1 %v9786_v17 }
 0x56d   : > { %9587 = vmatmul.mubr.msk.bf16.gmra.mxu1 %vm575_vm3, %v6654_v7  ;;  %9594 = vmatprep.mubr.msk.bf16.mxu0 %vm575_vm3, %v6765_v8 }
 0x56e   : > { %9606 = vmatprep.mubr.msk.bf16.mxu1 %vm575_vm3, %v6879_v14 }
 0x574   : > { %9595 = vmatmul.mubr.msk.bf16.vlgmr.msra.gmra.mxu0 %vm575_vm3, %v6766_v43 }
 0x575   : > { %9607 = vmatmul.mubr.msk.bf16.vlgmr.msra.gmra.mxu1 %vm575_vm3, %v6880_v54  ;;  %9615 = vmatpush3.bf16.msra.mxu0 %v9784_v26 }
 0x576   : > { %9598 = vmatprep.mubr.msk.bf16.mxu0 %vm575_vm3, %v6767_v56  ;;  %9610 = vmatprep.mubr.msk.bf16.mxu1 %vm575_vm3, %v6881_v40 }
 0x577   : > { %9616 = vmatprep.subr.bf16.mxu0 %v9785_v48  ;;  %9627 = vmatpush3.bf16.msra.mxu1 %v9786_v17 }
 0x578   : > { %9628 = vmatprep.subr.bf16.mxu1 %v9787_v45 }
 0x579   : > { %9617 = vmatpush3.bf16.msra.mxu0 %v9785_v48 }
 0x57a   : > { %9638 = vmatprep.subr.bf16.mxu0 %v9788_v57 }
 0x57b   : > { %9629 = vmatpush3.bf16.msra.mxu1 %v9787_v45 }
 0x57c   : > { %9599 = vmatmul.mubr.msk.bf16.gmra.mxu0 %vm575_vm3, %v6768_v20  ;;  %9650 = vmatprep.subr.bf16.mxu1 %v9794_v53 }
 0x57d   : > { %9611 = vmatmul.mubr.msk.bf16.gmra.mxu1 %vm575_vm3, %v6882_v21  ;;  %9618 = vmatprep.mubr.msk.bf16.mxu0 %vm575_vm3, %v12645_v13  ;;  %v5880_v13 = vmul.f32 %v10051_v38, %v5872_v41 }
 0x57e   : > { %9630 = vmatprep.mubr.msk.bf16.mxu1 %vm575_vm3, %v12643_v46  ;;  %v9790_v46 = vld [vmem:[%s13063_s16 + $0x18] sm:$0xff]  }
 0x57f   : > { %v5896_v24 = vadd.f32 2.0, %v5880_v13 }
 0x581   : > { %10054 = vrcp.f32 %v5896_v24 }
 0x584   : > { %9619 = vmatmul.mubr.msk.bf16.vlgmr.msra.gmra.mxu0 %vm575_vm3, %v12668_v5  ;;  %v5879_v5 = vmul.f32 %v10053_v61, %v5871_v34 }
 0x585   : > { %9631 = vmatmul.mubr.msk.bf16.vlgmr.msra.gmra.mxu1 %vm575_vm3, %v12666_v4  ;;  %9639 = vmatpush3.bf16.msra.mxu0 %v9788_v57  ;;  %v6997_v4 = vpack.c.bf16 %v6988_v2, %v12719_v9 }
 0x586   : > { %9622 = vmatprep.mubr.msk.bf16.mxu0 %vm575_vm3, %v12688_v47  ;;  %9634 = vmatprep.mubr.msk.bf16.mxu1 %vm575_vm3, %v12686_v10  ;;  %v5895_v10 = vadd.f32 2.0, %v5879_v5  ;;  %v9791_v47 = vld [vmem:[%s13063_s16 + $0x10] sm:$0xff]   ;;  %v5887_v15 = vmul.f32 %v5879_v5, %v12723_v6 }
 0x587   : > { %9640 = vmatprep.subr.bf16.mxu0 %v9789_v36  ;;  %9651 = vmatpush3.bf16.msra.mxu1 %v9794_v53 }
 0x588   : > { %10056 = vrcp.f32 %v5895_v10  ;;  %9652 = vmatprep.subr.bf16.mxu1 %v9795_v1 }
 0x589   : > { %9641 = vmatpush3.bf16.msra.mxu0 %v9789_v36 }
 0x58a   : > { %9666 = vmatprep.subr.bf16.mxu0 %v9790_v46 }
 0x58b   : > { %9653 = vmatpush3.bf16.msra.mxu1 %v9795_v1 }
 0x58c   : > { %9623 = vmatmul.mubr.msk.bf16.gmra.mxu0 %vm575_vm3, %v6997_v4  ;;  %9654 = vmatprep.subr.bf16.mxu1 %v9796_v27 }
 0x58d   : > { %9635 = vmatmul.mubr.msk.bf16.gmra.mxu1 %vm575_vm3, %v7111_v11  ;;  %9642 = vmatprep.mubr.msk.bf16.mxu0 %vm575_vm3, %v12696_v22  ;;  %v7225_v22 = vpack.c.bf16 %v7216_v51, %v6873_v23 }
 0x58e   : > { %v10055_v18 = vpop.eup %10054 }
 0x58f   : > { %9655 = vmatpush3.bf16.msra.mxu1 %v9796_v27 }
 0x590   : > { %9656 = vmatprep.subr.bf16.mxu1 %v9797_v37 }
 0x593   : > { %9657 = vmatpush3.bf16.msra.mxu1 %v9797_v37 }
 0x594   : > { %9643 = vmatmul.mubr.msk.bf16.vlgmr.msra.gmra.mxu0 %vm575_vm3, %v12701_v58  ;;  %v5888_v58 = vmul.f32 %v5880_v13, %v12717_v28 }
 0x595   : > { %9646 = vmatprep.mubr.msk.bf16.mxu0 %vm575_vm3, %v12725_v32  ;;  %9667 = vmatpush3.bf16.msra.mxu0 %v9790_v46  ;;  %v10057_v26 = vpop.eup %10056 }
 0x596   : > { %9668 = vmatprep.subr.bf16.mxu0 %v9791_v47  ;;  %v5910_v9 = vmul.f32 %v10055_v18, %v5888_v58  ;;  %v5908_v44 = vmul.f32 %v10057_v26, %v5887_v15 }
 0x598   : > { %v7632_v32 = vpack.c.bf16 %v5910_v9, %v5908_v44 }
 0x599   : > { %9669 = vmatpush3.bf16.msra.mxu0 %v9791_v47 }
 0x59a   : > { %9670 = vmatprep.subr.bf16.mxu0 %v9792_v49 }
 0x59c   : > { %9647 = vmatmul.mubr.msk.bf16.gmra.mxu0 %vm575_vm3, %v7225_v22 }
 0x59d   : > { %9671 = vmatpush3.bf16.msra.mxu0 %v9792_v49  ;;  %9674 = vmatprep.mubr.msk.bf16.mxu0 %vm5765_vm5, %v7630_v19 }
 0x59e   : > { %9672 = vmatprep.subr.bf16.mxu0 %v9793_v25 }
 0x5a1   : > { %9673 = vmatpush3.bf16.msra.mxu0 %v9793_v25 }
 0x5a4   : > { %9675 = vmatmul.mubr.msk.bf16.vlgmr.msra.gmra.mxu0 %vm5765_vm5, %v7631_v31 }
 0x5a5   : > { %9678 = vmatprep.mubr.msk.bf16.mxu0 %vm5765_vm5, %v7632_v32 }
 0x5ac   : > { %9679 = vmatmul.mubr.msk.bf16.gmra.mxu0 %vm5765_vm5, %v7633_v12 }
 0x614   : > { %v9548_v31 = vpop.f32.mrf.mxu0 }
 0x615   : > { %v9560_v19 = vpop.f32.mrf.mxu1 }
 0x616   : > { %v6404_v59 = vpop.f32.mrf.mxu0  ;;  %v6502_v58 = vadd.f32 %v9560_v19, %v9548_v31 }
 0x617   : > { %v6493_v55 = vpop.f32.mrf.mxu1 }
 0x618   : > { %v9549_v12 = vpop.f32.mrf.mxu0  ;;  %v6494_v9 = vadd.f32 %v6493_v55, %v6404_v59 }
 0x619   : > { %v9561_v28 = vpop.f32.mrf.mxu1 }
 0x61a   : > { %v6407_v6 = vpop.f32.mrf.mxu0  ;;  %v6505_v1 = vadd.f32 %v9561_v28, %v9549_v12 }
 0x61b   : > { %v6496_v7 = vpop.f32.mrf.mxu1 }
 0x61c   : > { %v9552_v17 = vpop.f32.mrf.mxu0  ;;  %v6497_v52 = vadd.f32 %v6496_v7, %v6407_v6 }
 0x61d   : > { %v9564_v3 = vpop.f32.mrf.mxu1 }
 0x61e   : > { %v6420_v8 = vpop.f32.mrf.mxu0 }
 0x61f   : > { %v6509_v14 = vpop.f32.mrf.mxu1 }
 0x620   : > { %v9553_v60 = vpop.f32.mrf.mxu0  ;;  %v6510_v31 = vadd.f32 %v6509_v14, %v6420_v8 }
 0x621   : > { %v9565_v30 = vpop.f32.mrf.mxu1 }
 0x622   : > { %v12824_v0 = vpop.f32.mrf.mxu0  ;;  %v6521_v55 = vadd.f32 %v9565_v30, %v9553_v60 }
 0x623   : > { %v6512_v43 = vpop.f32.mrf.mxu1 }
 0x624   : > { %v9572_v54 = vpop.f32.mrf.mxu0  ;;  %v6513_v7 = vadd.f32 %v6512_v43, %v12824_v0 }
 0x625   : > { %v9584_v48 = vpop.f32.mrf.mxu1  ;;  %v6632_v44 = vadd.f32 %v9572_v54, %v6502_v58 }
 0x626   : > { %v6599_v56 = vpop.f32.mrf.mxu0 }
 0x627   : > { %v6713_v40 = vpop.f32.mrf.mxu1  ;;  %v6630_v27 = vadd.f32 %v6599_v56, %v6494_v9  ;;  %v6746_v39 = vadd.f32 %v9584_v48, %v6632_v44 }
 0x628   : > { %v9573_v45 = vpop.f32.mrf.mxu0 }
 0x629   : > { %v9585_v57 = vpop.f32.mrf.mxu1  ;;  %v6633_v29 = vadd.f32 %v9573_v45, %v6505_v1  ;;  %v6744_v35 = vadd.f32 %v6713_v40, %v6630_v27 }
 0x62a   : > { %v6602_v62 = vpop.f32.mrf.mxu0 }
 0x62b   : > { %v6716_v23 = vpop.f32.mrf.mxu1  ;;  %v6631_v63 = vadd.f32 %v6602_v62, %v6497_v52 }
 0x62c   : > { %v9576_v20 = vpop.f32.mrf.mxu0 }
 0x62d   : > { %v9588_v21 = vpop.f32.mrf.mxu1  ;;  %v6745_v28 = vadd.f32 %v6716_v23, %v6631_v63 }
 0x62e   : > { %v6615_v38 = vpop.f32.mrf.mxu0 }
 0x62f   : > { %v6729_v61 = vpop.f32.mrf.mxu1  ;;  %v6634_v58 = vadd.f32 %v6615_v38, %v6510_v31 }
 0x630   : > { %v9577_v36 = vpop.f32.mrf.mxu0 }
 0x631   : > { %v9589_v41 = vpop.f32.mrf.mxu1  ;;  %v6637_v48 = vadd.f32 %v9577_v36, %v6521_v55  ;;  %v6748_v8 = vadd.f32 %v6729_v61, %v6634_v58 }
 0x632   : > { %v6618_v34 = vpop.f32.mrf.mxu0 }
 0x633   : > { %v12826_v46 = vpop.f32.mrf.mxu1  ;;  %v6751_v30 = vadd.f32 %v9589_v41, %v6637_v48 }
 0x634   : > { %v9596_v13 = vpop.f32.mrf.mxu0 }
 0x635   : > { %v9608_v2 = vpop.f32.mrf.mxu1  ;;  %v6860_v16 = vadd.f32 %v9596_v13, %v6746_v39 }
 0x636   : > { %v6827_v50 = vpop.f32.mrf.mxu0 }
 0x637   : > { %v6941_v5 = vpop.f32.mrf.mxu1  ;;  %v6974_v56 = vadd.f32 %v9608_v2, %v6860_v16 }
 0x638   : > { %v9597_v4 = vpop.f32.mrf.mxu0 }
 0x639   : > { %v9609_v11 = vpop.f32.mrf.mxu1 }
 0x63a   : > { %v6830_v24 = vpop.f32.mrf.mxu0 }
 0x63b   : > { %v6944_v10 = vpop.f32.mrf.mxu1  ;;  %v6859_v52 = vadd.f32 %v6830_v24, %v6745_v28 }
 0x63c   : > { %v9600_v47 = vpop.f32.mrf.mxu0 }
 0x63d   : > { %v12828_v49 = vpop.f32.mrf.mxu1  ;;  %v6973_v16 = vadd.f32 %v6944_v10, %v6859_v52 }
 0x63e   : > { %v6843_v51 = vpop.f32.mrf.mxu0 }
 0x63f   : > { %v12830_v22 = vpop.f32.mrf.mxu1  ;;  %v6862_v62 = vadd.f32 %v6843_v51, %v6748_v8 }
 0x640   : > { %13159 = vst [vmem:[#allocation11_spill] sm:$0xff] %v12830_v22  ;;  %v9601_v25 = vpop.f32.mrf.mxu0  ;;  %v6747_v22 = vadd.f32 %v9585_v57, %v6633_v29  ;;  %v6635_v29 = vadd.f32 %v6618_v34, %v6513_v7 }
 0x641   : > { %v12832_v18 = vpop.f32.mrf.mxu1  ;;  %v6865_v38 = vadd.f32 %v9601_v25, %v6751_v30 }
 0x642   : > { %13160 = vst [vmem:[#allocation16_spill] sm:$0xff] %v12832_v18  ;;  %v6846_v26 = vpop.f32.mrf.mxu0  ;;  %v6518_v18 = vadd.f32 %v9564_v3, %v9552_v17  ;;  %v6861_v6 = vadd.f32 %v9597_v4, %v6747_v22  ;;  %v6749_v43 = vadd.f32 %v12826_v46, %v6635_v29 }
 0x643   : > { %v12834_v15 = vpop.f32.mrf.mxu1 }
 0x644   : > { %13161 = vst [vmem:[#allocation21_spill] sm:$0xff] %v12834_v15  ;;  %v9620_v32 = vpop.f32.mrf.mxu0  ;;  %v6858_v15 = vadd.f32 %v6827_v50, %v6744_v35  ;;  %v6636_v54 = vadd.f32 %v9576_v20, %v6518_v18  ;;  %v6975_v14 = vadd.f32 %v9609_v11, %v6861_v6 }
 0x645   : > { %v9632_v53 = vpop.f32.mrf.mxu1  ;;  %v7089_v39 = vadd.f32 %v9620_v32, %v6974_v56 }
 0x646   : > { %v7056_v37 = vpop.f32.mrf.mxu0  ;;  %v6972_v40 = vadd.f32 %v6941_v5, %v6858_v15  ;;  %v6750_v3 = vadd.f32 %v9588_v21, %v6636_v54  ;;  %v8657_v21 = vld [vmem:[%s13059_s12] ss:$0 sm:$0xff]  ;;  %v6863_v5 = vadd.f32 %v6846_v26, %v6749_v43 }
 0x647   : > { %v7170_v42 = vpop.f32.mrf.mxu1  ;;  %v7203_v23 = vadd.f32 %v9632_v53, %v7089_v39  ;;  %v13162_v2 = vld [vmem:[#allocation11_spill] sm:$0xff] }
 0x648   : > { %v9621_v33 = vpop.f32.mrf.mxu0  ;;  %v7087_v60 = vadd.f32 %v7056_v37, %v6972_v40  ;;  %v6864_v57 = vadd.f32 %v9600_v47, %v6750_v3  ;;  %v6976_v50 = vadd.f32 %v13162_v2, %v6862_v62 }
 0x649   : > { %v9633_v59 = vpop.f32.mrf.mxu1  ;;  %v7090_v20 = vadd.f32 %v9621_v33, %v6975_v14  ;;  %v13163_v10 = vld [vmem:[#allocation16_spill] sm:$0xff] }
 0x64a   : > { %v7059_v19 = vpop.f32.mrf.mxu0  ;;  %v7201_v61 = vadd.f32 %v7170_v42, %v7087_v60  ;;  %v6978_v41 = vadd.f32 %v12828_v49, %v6864_v57  ;;  %v6979_v47 = vadd.f32 %v13163_v10, %v6865_v38 }
 0x64b   : > { %v7173_v17 = vpop.f32.mrf.mxu1  ;;  %v7088_v34 = vadd.f32 %v7059_v19, %v6973_v16  ;;  %v7204_v11 = vadd.f32 %v9633_v59, %v7090_v20  ;;  %v13164_v9 = vld [vmem:[#allocation21_spill] sm:$0xff] }
 0x64c   : > { %v9624_v12 = vpop.f32.mrf.mxu0  ;;  %v6977_v44 = vadd.f32 %v13164_v9, %v6863_v5 }
 0x64d   : > { %v9636_v0 = vpop.f32.mrf.mxu1  ;;  %v7093_v51 = vadd.f32 %v9624_v12, %v6978_v41  ;;  %v7202_v18 = vadd.f32 %v7173_v17, %v7088_v34 }
 0x64e   : > { %v7072_v45 = vpop.f32.mrf.mxu0 }
 0x64f   : > { %v7186_v33 = vpop.f32.mrf.mxu1  ;;  %v7091_v22 = vadd.f32 %v7072_v45, %v6976_v50  ;;  %v7207_v19 = vadd.f32 %v9636_v0, %v7093_v51 }
 0x650   : > { %v9625_v35 = vpop.f32.mrf.mxu0 }
 0x651   : > { %v7094_v26 = vadd.f32 %v9625_v35, %v6979_v47  ;;  %v9637_v53 = vpop.f32.mrf.mxu1  ;;  %v7205_v59 = vadd.f32 %v7186_v33, %v7091_v22 }
 0x652   : > { %v7075_v63 = vpop.f32.mrf.mxu0 }
 0x653   : > { %v7092_v55 = vadd.f32 %v7075_v63, %v6977_v44  ;;  %v7208_v56 = vadd.f32 %v9637_v53, %v7094_v26  ;;  %v7189_v48 = vpop.f32.mrf.mxu1 }
 0x654   : > { %v9644_v36 = vpop.f32.mrf.mxu0 }
 0x655   : > { %v7317_v13 = vadd.f32 %v9644_v36, %v7203_v23  ;;  %v7206_v39 = vadd.f32 %v7189_v48, %v7092_v55 }
 0x656   : > { %v7284_v4 = vpop.f32.mrf.mxu0 }
 0x657   : > { %v12843_v24 = vadd.f32 %v8657_v21, %v7317_v13  ;;  %v7315_v46 = vadd.f32 %v7284_v4, %v7201_v61 }
 0x658   : > { %v9645_v25 = vpop.f32.mrf.mxu0 }
 0x659   : > { %v7340_v42 = vmin.f32 %v12843_v24, 20.0  ;;  %v12847_v15 = vadd.f32 %v8657_v21, %v7315_v46  ;;  %v7318_v49 = vadd.f32 %v9645_v25, %v7204_v11 }
 0x65a   : > { %v7287_v32 = vpop.f32.mrf.mxu0 }
 0x65b   : > { %v7350_v1 = vmul.f32 1.442695, %v7340_v42  ;;  %v7338_v27 = vmin.f32 %v12847_v15, 20.0  ;;  %v12851_v37 = vadd.f32 %v8657_v21, %v7318_v49  ;;  %v7316_v31 = vadd.f32 %v7287_v32, %v7202_v18 }
 0x65c   : > { %v9648_v54 = vpop.f32.mrf.mxu0 }
 0x65d   : > { %10058 = vpow2.f32 %v7350_v1  ;;  %v7346_v58 = vmul.f32 1.442695, %v7338_v27  ;;  %v7341_v12 = vmin.f32 %v12851_v37, 20.0  ;;  %v12854_v28 = vadd.f32 %v8657_v21, %v7316_v31 }
 0x65e   : > { %v7321_v6 = vadd.f32 %v9648_v54, %v7207_v19  ;;  %v7300_v7 = vpop.f32.mrf.mxu0 }
 0x65f   : > { %10060 = vpow2.f32 %v7346_v58  ;;  %v7352_v45 = vmul.f32 1.442695, %v7341_v12  ;;  %v7339_v40 = vmin.f32 %v12854_v28, 20.0  ;;  %v7319_v52 = vadd.f32 %v7300_v7, %v7205_v59 }
 0x660   : > { %v12857_v17 = vadd.f32 %v8657_v21, %v7321_v6  ;;  %v9649_v3 = vpop.f32.mrf.mxu0 }
 0x661   : > { %10062 = vpow2.f32 %v7352_v45  ;;  %v7348_v8 = vmul.f32 1.442695, %v7339_v40  ;;  %v12859_v29 = vadd.f32 %v8657_v21, %v7319_v52  ;;  %v7322_v35 = vadd.f32 %v9649_v3, %v7208_v56 }
 0x662   : > { %v7344_v14 = vmin.f32 %v12857_v17, 20.0  ;;  %v7303_v60 = vpop.f32.mrf.mxu0 }
 0x663   : > { %10064 = vpow2.f32 %v7348_v8  ;;  %v7342_v30 = vmin.f32 %v12859_v29, 20.0  ;;  %v12863_v57 = vadd.f32 %v8657_v21, %v7322_v35  ;;  %v7320_v62 = vadd.f32 %v7303_v60, %v7206_v39  ;;  %v13165_v8 = vld [vmem:[#allocation12_spill] sm:$0xff]  ;;  %v13166_v60 = vld [vmem:[#allocation14_spill] sm:$0xff] }
 0x664   : > { %v7358_v63 = vmul.f32 1.442695, %v7344_v14 }
 0x665   : > { %v7354_v16 = vmul.f32 1.442695, %v7342_v30  ;;  %v7345_v23 = vmin.f32 %v12863_v57, 20.0  ;;  %v12866_v20 = vadd.f32 %v8657_v21, %v7320_v62  ;;  %v13167_v62 = vld [vmem:[#allocation13_spill] sm:$0xff] }
 0x666   : > { %10066 = vpow2.f32 %v7358_v63 }
 0x667   : > { %10068 = vpow2.f32 %v7354_v16  ;;  %v7360_v0 = vmul.f32 1.442695, %v7345_v23  ;;  %v7343_v43 = vmin.f32 %v12866_v20, 20.0  ;;  %v13168_v16 = vld [vmem:[#allocation20_spill] sm:$0xff] }
 0x669   : > { %10070 = vpow2.f32 %v7360_v0  ;;  %v7356_v38 = vmul.f32 1.442695, %v7343_v43 }
 0x66a   : > { %v10059_v36 = vpop.eup %10058 }
 0x66b   : > { %v7364_v61 = vadd.f32 2.0, %v10059_v36  ;;  %10072 = vpow2.f32 %v7356_v38 }
 0x66c   : > { %v10061_v34 = vpop.eup %10060 }
 0x66d   : > { %v7372_v13 = vmul.f32 %v10059_v36, %v7364_v61  ;;  %v7362_v41 = vadd.f32 2.0, %v10061_v34 }
 0x66e   : > { %v10063_v2 = vpop.eup %10062 }
 0x66f   : > { %v7388_v50 = vadd.f32 2.0, %v7372_v13  ;;  %v7370_v5 = vmul.f32 %v10061_v34, %v7362_v41  ;;  %v7365_v4 = vadd.f32 2.0, %v10063_v2  ;;  %v7380_v7 = vmul.f32 %v7372_v13, %v12843_v24 }
 0x670   : > { %v10065_v11 = vpop.eup %10064 }
 0x671   : > { %v7386_v21 = vadd.f32 2.0, %v7370_v5  ;;  %v7373_v33 = vmul.f32 %v10063_v2, %v7365_v4  ;;  %v7363_v46 = vadd.f32 2.0, %v10065_v11  ;;  %10074 = vrcp.f32 %v7388_v50  ;;  %v13169_v50 = vld [vmem:[#allocation19_spill] sm:$0xff] }
 0x672   : > { %v7378_v6 = vmul.f32 %v7370_v5, %v12847_v15  ;;  %v13170_v5 = vld [vmem:[#allocation17_spill] sm:$0xff]  ;;  %v13171_v4 = vld [vmem:[#allocation15_spill] sm:$0xff] }
 0x673   : > { %v10067_v10 = vpop.eup %10066  ;;  %v7389_v47 = vadd.f32 2.0, %v7373_v33  ;;  %10076 = vrcp.f32 %v7386_v21  ;;  %v7371_v22 = vmul.f32 %v10065_v11, %v7363_v46  ;;  %v7381_v12 = vmul.f32 %v7373_v33, %v12851_v37 }
 0x674   : > { %v10069_v51 = vpop.eup %10068  ;;  %v7368_v25 = vadd.f32 2.0, %v10067_v10 }
 0x675   : > { %10078 = vrcp.f32 %v7389_v47  ;;  %v7366_v18 = vadd.f32 2.0, %v10069_v51  ;;  %v7387_v49 = vadd.f32 2.0, %v7371_v22  ;;  %v7379_v40 = vmul.f32 %v7371_v22, %v12854_v28  ;;  %v9800_v47 = vld [vmem:[%s13062_s15 + $0x8] sm:$0xff]   ;;  %v8658_v22 = vld [vmem:[%s13061_s14] ss:$0 sm:$0xff] }
 0x676   : > { %v10071_v42 = vpop.eup %10070  ;;  %v7376_v9 = vmul.f32 %v10067_v10, %v7368_v25  ;;  %v9799_v10 = vld [vmem:[%s13062_s15 + $0x10] sm:$0xff]  }
 0x677   : > { %v7374_v44 = vmul.f32 %v10069_v51, %v7366_v18  ;;  %v7369_v26 = vadd.f32 2.0, %v10071_v42  ;;  %10080 = vrcp.f32 %v7387_v49  ;;  %v9801_v51 = vld [vmem:[%s13062_s15] sm:$0xff]  }
 0x678   : > { %v10073_v32 = vpop.eup %10072  ;;  %v7392_v53 = vadd.f32 2.0, %v7376_v9  ;;  %v7384_v28 = vmul.f32 %v7376_v9, %v12857_v17  ;;  %v13172_v17 = vld [vmem:[#allocation18_spill] sm:$0xff] }
 0x679   : > { %v7390_v1 = vadd.f32 2.0, %v7374_v44  ;;  %v7377_v27 = vmul.f32 %v10071_v42, %v7369_v26  ;;  %v7367_v31 = vadd.f32 2.0, %v10073_v32  ;;  %v7382_v15 = vmul.f32 %v7374_v44, %v12859_v29 }
 0x67b   : > { %10082 = vrcp.f32 %v7390_v1  ;;  %v7393_v19 = vadd.f32 2.0, %v7377_v27  ;;  %v7375_v59 = vmul.f32 %v10073_v32, %v7367_v31  ;;  %v7385_v24 = vmul.f32 %v7377_v27, %v12863_v57 }
 0x67c   : > { %10084 = vrcp.f32 %v7392_v53 }
 0x67d   : > { %10086 = vrcp.f32 %v7393_v19  ;;  %v7391_v55 = vadd.f32 2.0, %v7375_v59  ;;  %v7383_v34 = vmul.f32 %v7375_v59, %v12866_v20  ;;  %v9798_v20 = vld [vmem:[%s13062_s15 + $0x18] sm:$0xff]  }
 0x67e   : > { %v10075_v54 = vpop.eup %10074  ;;  %9682 = vmatprep.subr.bf16.mxu1 %v9798_v20 }
 0x67f   : > { %10088 = vrcp.f32 %v7391_v55  ;;  %v7399_v39 = vmul.f32 %v10075_v54, %v7380_v7 }
 0x680   : > { %v10077_v58 = vpop.eup %10076 }
 0x681   : > { %v7395_v45 = vmul.f32 %v10077_v58, %v7378_v6  ;;  %v7412_v23 = vadd.f32 %v7399_v39, %v13168_v16 }
 0x682   : > { %v10079_v56 = vpop.eup %10078 }
 0x683   : > { %v7401_v48 = vmul.f32 %v10079_v56, %v7381_v12  ;;  %v7410_v30 = vadd.f32 %v7395_v45, %v13166_v60 }
 0x684   : > { %v10081_v52 = vpop.eup %10080 }
 0x685   : > { %v7397_v3 = vmul.f32 %v10081_v52, %v7379_v40  ;;  %v7413_v35 = vadd.f32 %v7401_v48, %v13165_v8 }
 0x687   : > { %v7411_v63 = vadd.f32 %v7397_v3, %v13167_v62  ;;  %v7427_v38 = vpack.c.bf16 %v7413_v35, %v7412_v23 }
 0x688   : > { %v10083_v14 = vpop.eup %10082 }
 0x689   : > { %v10085_v37 = vpop.eup %10084  ;;  %v7426_v43 = vpack.c.bf16 %v7411_v63, %v7410_v30  ;;  %v7403_v36 = vmul.f32 %v10083_v14, %v7382_v15 }
 0x68a   : > { %v10087_v0 = vpop.eup %10086  ;;  %v7407_v41 = vmul.f32 %v10085_v37, %v7384_v28 }
 0x68b   : > { %v7409_v61 = vmul.f32 %v10087_v0, %v7385_v24  ;;  %9658 = vmatprep.mubr.msk.bf16.mxu1 %vm5765_vm5, %v7426_v43  ;;  %v7414_v29 = vadd.f32 %v7403_v36, %v13169_v50 }
 0x68c   : > { %v10089_v13 = vpop.eup %10088  ;;  %9659 = vmatmul.mubr.msk.bf16.vlgmr.msra.gmra.mxu1 %vm5765_vm5, %v7427_v38  ;;  %v7416_v21 = vadd.f32 %v7407_v41, %v13172_v17 }
 0x68d   : > { %v7405_v2 = vmul.f32 %v10089_v13, %v7383_v34  ;;  %v7417_v57 = vadd.f32 %v7409_v61, %v13170_v5  ;;  %9683 = vmatpush3.bf16.msra.mxu1 %v9798_v20 }
 0x68e   : > { %9684 = vmatprep.subr.bf16.mxu1 %v9799_v10 }
 0x68f   : > { %v7415_v11 = vadd.f32 %v7405_v2, %v13171_v4  ;;  %v7429_v46 = vpack.c.bf16 %v7417_v57, %v7416_v21 }
 0x691   : > { %v7428_v33 = vpack.c.bf16 %v7415_v11, %v7414_v29  ;;  %9685 = vmatpush3.bf16.msra.mxu1 %v9799_v10 }
 0x692   : > { %9686 = vmatprep.subr.bf16.mxu1 %v9800_v47 }
 0x693   : > { %9662 = vmatprep.mubr.msk.bf16.mxu1 %vm5765_vm5, %v7428_v33 }
 0x694   : > { %9663 = vmatmul.mubr.msk.bf16.gmra.mxu1 %vm5765_vm5, %v7429_v46 }
 0x695   : > { %9687 = vmatpush3.bf16.msra.mxu1 %v9800_v47 }
 0x696   : > { %9688 = vmatprep.subr.bf16.mxu1 %v9801_v51 }
 0x699   : > { %9689 = vmatpush3.bf16.msra.mxu1 %v9801_v51 }
 0x74c   : > { %v9660_v25 = vpop.f32.mrf.mxu1 }
 0x74d   : > { %v12904_v18 = vadd.f32 %v9660_v25, %v8658_v22 }
 0x74e   : > { %v7507_v42 = vpop.f32.mrf.mxu1 }
 0x74f   : > { %v7540_v49 = vmin.f32 %v12904_v18, 20.0  ;;  %v12907_v9 = vadd.f32 %v8658_v22, %v7507_v42 }
 0x750   : > { %v9661_v44 = vpop.f32.mrf.mxu1 }
 0x751   : > { %v7550_v26 = vmul.f32 1.442695, %v7540_v49  ;;  %v7538_v32 = vmin.f32 %v12907_v9, 20.0  ;;  %v12910_v53 = vadd.f32 %v9661_v44, %v8658_v22 }
 0x752   : > { %v7510_v1 = vpop.f32.mrf.mxu1 }
 0x753   : > { %10090 = vpow2.f32 %v7550_v26  ;;  %v7546_v27 = vmul.f32 1.442695, %v7538_v32  ;;  %v7541_v31 = vmin.f32 %v12910_v53, 20.0  ;;  %v12913_v19 = vadd.f32 %v8658_v22, %v7510_v1 }
 0x754   : > { %v9664_v59 = vpop.f32.mrf.mxu1 }
 0x755   : > { %10092 = vpow2.f32 %v7546_v27  ;;  %v7552_v55 = vmul.f32 1.442695, %v7541_v31  ;;  %v7539_v54 = vmin.f32 %v12913_v19, 20.0  ;;  %v12916_v58 = vadd.f32 %v9664_v59, %v8658_v22 }
 0x756   : > { %v7523_v12 = vpop.f32.mrf.mxu1 }
 0x757   : > { %10094 = vpow2.f32 %v7552_v55  ;;  %v7548_v56 = vmul.f32 1.442695, %v7539_v54  ;;  %v7544_v6 = vmin.f32 %v12916_v58, 20.0  ;;  %v12919_v7 = vadd.f32 %v8658_v22, %v7523_v12 }
 0x758   : > { %v9665_v48 = vpop.f32.mrf.mxu1 }
 0x759   : > { %10096 = vpow2.f32 %v7548_v56  ;;  %v7558_v45 = vmul.f32 1.442695, %v7544_v6  ;;  %v7542_v40 = vmin.f32 %v12919_v7, 20.0  ;;  %v12922_v52 = vadd.f32 %v9665_v48, %v8658_v22 }
 0x75a   : > { %v7526_v39 = vpop.f32.mrf.mxu1 }
 0x75b   : > { %10098 = vpow2.f32 %v7558_v45  ;;  %v7554_v3 = vmul.f32 1.442695, %v7542_v40  ;;  %v7545_v8 = vmin.f32 %v12922_v52, 20.0  ;;  %v12925_v35 = vadd.f32 %v8658_v22, %v7526_v39 }
 0x75d   : > { %10100 = vpow2.f32 %v7554_v3  ;;  %v7560_v14 = vmul.f32 1.442695, %v7545_v8  ;;  %v7543_v60 = vmin.f32 %v12925_v35, 20.0 }
 0x75f   : > { %10102 = vpow2.f32 %v7560_v14  ;;  %v7556_v30 = vmul.f32 1.442695, %v7543_v60 }
 0x760   : > { %v10091_v62 = vpop.eup %10090 }
 0x761   : > { %v7564_v63 = vadd.f32 2.0, %v10091_v62  ;;  %10104 = vpow2.f32 %v7556_v30 }
 0x762   : > { %v10093_v37 = vpop.eup %10092 }
 0x763   : > { %v7562_v16 = vadd.f32 2.0, %v10093_v37  ;;  %v7572_v15 = vmul.f32 %v10091_v62, %v7564_v63 }
 0x764   : > { %v10095_v23 = vpop.eup %10094 }
 0x765   : > { %v7570_v24 = vmul.f32 %v10093_v37, %v7562_v16  ;;  %v7565_v0 = vadd.f32 2.0, %v10095_v23  ;;  %v7588_v34 = vadd.f32 2.0, %v7572_v15  ;;  %v7580_v27 = vmul.f32 %v7572_v15, %v12904_v18 }
 0x766   : > { %v10097_v28 = vpop.eup %10096 }
 0x767   : > { %v7573_v43 = vmul.f32 %v10095_v23, %v7565_v0  ;;  %v7586_v36 = vadd.f32 2.0, %v7570_v24  ;;  %v7563_v61 = vadd.f32 2.0, %v10097_v28  ;;  %v7578_v26 = vmul.f32 %v7570_v24, %v12907_v9 }
 0x768   : > { %v10099_v38 = vpop.eup %10098 }
 0x769   : > { %v7589_v13 = vadd.f32 2.0, %v7573_v43  ;;  %v7568_v41 = vadd.f32 2.0, %v10099_v38  ;;  %v7571_v50 = vmul.f32 %v10097_v28, %v7563_v61  ;;  %v7581_v49 = vmul.f32 %v7573_v43, %v12910_v53 }
 0x76a   : > { %v10101_v2 = vpop.eup %10100 }
 0x76b   : > { %10106 = vrcp.f32 %v7589_v13  ;;  %v7566_v29 = vadd.f32 2.0, %v10101_v2  ;;  %v7587_v57 = vadd.f32 2.0, %v7571_v50  ;;  %v7576_v4 = vmul.f32 %v10099_v38, %v7568_v41 }
 0x76c   : > { %v10103_v5 = vpop.eup %10102  ;;  %10108 = vrcp.f32 %v7586_v36  ;;  %v7579_v32 = vmul.f32 %v7571_v50, %v12913_v19 }
 0x76d   : > { %10110 = vrcp.f32 %v7588_v34  ;;  %v7574_v11 = vmul.f32 %v10101_v2, %v7566_v29  ;;  %v7569_v17 = vadd.f32 2.0, %v10103_v5  ;;  %v7592_v10 = vadd.f32 2.0, %v7576_v4 }
 0x76e   : > { %v10105_v21 = vpop.eup %10104  ;;  %10112 = vrcp.f32 %v7587_v57  ;;  %v7584_v40 = vmul.f32 %v7576_v4, %v12916_v58 }
 0x76f   : > { %v7577_v33 = vmul.f32 %v10103_v5, %v7569_v17  ;;  %v7590_v46 = vadd.f32 2.0, %v7574_v11  ;;  %v7567_v20 = vadd.f32 2.0, %v10105_v21  ;;  %v7582_v19 = vmul.f32 %v7574_v11, %v12919_v7 }
 0x771   : > { %v7593_v47 = vadd.f32 2.0, %v7577_v33  ;;  %v7575_v51 = vmul.f32 %v10105_v21, %v7567_v20  ;;  %v7585_v53 = vmul.f32 %v7577_v33, %v12922_v52  ;;  %v9676_v52 = vpop.f32.mrf.mxu0 }
 0x773   : > { %10114 = vrcp.f32 %v7593_v47  ;;  %v7591_v22 = vadd.f32 2.0, %v7575_v51  ;;  %v7583_v45 = vmul.f32 %v7575_v51, %v12925_v35  ;;  %v7704_v62 = vpop.f32.mrf.mxu0  ;;  %v8683_v35 = vld [vmem:[%s13064_s17] ss:$0 sm:$0xff] }
 0x774   : > { %10116 = vrcp.f32 %v7590_v46 }
 0x775   : > { %10118 = vrcp.f32 %v7592_v10  ;;  %v9677_v63 = vpop.f32.mrf.mxu0 }
 0x776   : > { %10120 = vrcp.f32 %v7591_v22 }
 0x777   : > { %v7707_v37 = vpop.f32.mrf.mxu0 }
 0x778   : > { %v10107_v25 = vpop.eup %10106 }
 0x779   : > { %v10109_v42 = vpop.eup %10108  ;;  %v7601_v31 = vmul.f32 %v10107_v25, %v7581_v49  ;;  %v9680_v16 = vpop.f32.mrf.mxu0 }
 0x77a   : > { %v10111_v44 = vpop.eup %10110  ;;  %v7595_v59 = vmul.f32 %v10109_v42, %v7578_v26 }
 0x77b   : > { %v10113_v1 = vpop.eup %10112  ;;  %v7599_v54 = vmul.f32 %v10111_v44, %v7580_v27  ;;  %v7720_v36 = vpop.f32.mrf.mxu0 }
 0x77c   : > { %v7597_v55 = vmul.f32 %v10113_v1, %v7579_v32 }
 0x77d   : > { %v7619_v56 = vpack.c.bf16 %v7601_v31, %v7599_v54  ;;  %v9681_v4 = vpop.f32.mrf.mxu0 }
 0x77e   : > { %v7618_v12 = vpack.c.bf16 %v7597_v55, %v7595_v59 }
 0x77f   : > { %v7723_v25 = vpop.f32.mrf.mxu0 }
 0x780   : > { %v10115_v6 = vpop.eup %10114  ;;  %9690 = vmatprep.mubr.msk.bf16.mxu1 %vm5765_vm5, %v7618_v12 }
 0x781   : > { %v10117_v48 = vpop.eup %10116  ;;  %9691 = vmatmul.mubr.msk.bf16.vlgmr.msra.gmra.mxu1 %vm5765_vm5, %v7619_v56  ;;  %v7609_v39 = vmul.f32 %v10115_v6, %v7585_v53 }
 0x782   : > { %v10119_v9 = vpop.eup %10118  ;;  %v7603_v3 = vmul.f32 %v10117_v48, %v7582_v19 }
 0x783   : > { %v10121_v18 = vpop.eup %10120  ;;  %v7607_v14 = vmul.f32 %v10119_v9, %v7584_v40 }
 0x784   : > { %v7605_v8 = vmul.f32 %v10121_v18, %v7583_v45 }
 0x785   : > { %v7621_v30 = vpack.c.bf16 %v7609_v39, %v7607_v14 }
 0x786   : > { %v7620_v60 = vpack.c.bf16 %v7605_v8, %v7603_v3 }
 0x788   : > { %9694 = vmatprep.mubr.msk.bf16.mxu1 %vm5765_vm5, %v7620_v60 }
 0x789   : > { %9695 = vmatmul.mubr.msk.bf16.gmra.mxu1 %vm5765_vm5, %v7621_v30 }
 0x841   : > { %v9692_v7 = vpop.f32.mrf.mxu1 }
 0x842   : > { %v7814_v58 = vadd.f32 %v9692_v7, %v9676_v52 }
 0x843   : > { %v7805_v23 = vpop.f32.mrf.mxu1 }
 0x844   : > { %v12943_v15 = vadd.f32 %v8683_v35, %v7814_v58  ;;  %v7806_v24 = vadd.f32 %v7805_v23, %v7704_v62 }
 0x845   : > { %v9693_v0 = vpop.f32.mrf.mxu1 }
 0x846   : > { %v7853_v28 = vmin.f32 %v12943_v15, 20.0  ;;  %v12946_v43 = vadd.f32 %v8683_v35, %v7806_v24  ;;  %v7817_v38 = vadd.f32 %v9693_v0, %v9677_v63 }
 0x847   : > { %v7808_v61 = vpop.f32.mrf.mxu1 }
 0x848   : > { %v7863_v34 = vmul.f32 1.442695, %v7853_v28  ;;  %v7851_v13 = vmin.f32 %v12946_v43, 20.0  ;;  %v12949_v41 = vadd.f32 %v8683_v35, %v7817_v38  ;;  %v7809_v2 = vadd.f32 %v7808_v61, %v7707_v37 }
 0x849   : > { %v9696_v50 = vpop.f32.mrf.mxu1 }
 0x84a   : > { %10122 = vpow2.f32 %v7863_v34  ;;  %v7859_v29 = vmul.f32 1.442695, %v7851_v13  ;;  %v7854_v5 = vmin.f32 %v12949_v41, 20.0  ;;  %v12952_v57 = vadd.f32 %v8683_v35, %v7809_v2 }
 0x84b   : > { %v7830_v11 = vadd.f32 %v9696_v50, %v9680_v16  ;;  %v7821_v17 = vpop.f32.mrf.mxu1 }
 0x84c   : > { %10124 = vpow2.f32 %v7859_v29  ;;  %v7865_v21 = vmul.f32 1.442695, %v7854_v5  ;;  %v7852_v33 = vmin.f32 %v12952_v57, 20.0  ;;  %v7822_v46 = vadd.f32 %v7821_v17, %v7720_v36 }
 0x84d   : > { %v12955_v20 = vadd.f32 %v8683_v35, %v7830_v11  ;;  %v9697_v10 = vpop.f32.mrf.mxu1 }
 0x84e   : > { %10126 = vpow2.f32 %v7865_v21  ;;  %v7861_v47 = vmul.f32 1.442695, %v7852_v33  ;;  %v12957_v51 = vadd.f32 %v8683_v35, %v7822_v46  ;;  %v7833_v22 = vadd.f32 %v9697_v10, %v9681_v4 }
 0x84f   : > { %v7857_v42 = vmin.f32 %v12955_v20, 20.0  ;;  %v7824_v49 = vpop.f32.mrf.mxu1 }
 0x850   : > { %10128 = vpow2.f32 %v7861_v47  ;;  %v7855_v44 = vmin.f32 %v12957_v51, 20.0  ;;  %v12961_v26 = vadd.f32 %v8683_v35, %v7833_v22  ;;  %v7825_v32 = vadd.f32 %v7824_v49, %v7723_v25 }
 0x851   : > { %v7871_v1 = vmul.f32 1.442695, %v7857_v42 }
 0x852   : > { %v7867_v27 = vmul.f32 1.442695, %v7855_v44  ;;  %v7858_v31 = vmin.f32 %v12961_v26, 20.0  ;;  %v12964_v59 = vadd.f32 %v8683_v35, %v7825_v32 }
 0x853   : > { %10130 = vpow2.f32 %v7871_v1 }
 0x854   : > { %10132 = vpow2.f32 %v7867_v27  ;;  %v7873_v55 = vmul.f32 1.442695, %v7858_v31  ;;  %v7856_v54 = vmin.f32 %v12964_v59, 20.0 }
 0x856   : > { %10134 = vpow2.f32 %v7873_v55  ;;  %v7869_v12 = vmul.f32 1.442695, %v7856_v54 }
 0x857   : > { %v10123_v56 = vpop.eup %10122 }
 0x858   : > { %v7877_v6 = vadd.f32 2.0, %v10123_v56  ;;  %10136 = vpow2.f32 %v7869_v12 }
 0x859   : > { %v10125_v48 = vpop.eup %10124 }
 0x85a   : > { %v7885_v53 = vmul.f32 %v10123_v56, %v7877_v6  ;;  %v7875_v9 = vadd.f32 2.0, %v10125_v48 }
 0x85b   : > { %v10127_v19 = vpop.eup %10126 }
 0x85c   : > { %v7901_v45 = vadd.f32 2.0, %v7885_v53  ;;  %v7883_v18 = vmul.f32 %v10125_v48, %v7875_v9  ;;  %v7878_v40 = vadd.f32 2.0, %v10127_v19  ;;  %v7893_v13 = vmul.f32 %v7885_v53, %v12943_v15 }
 0x85d   : > { %v10129_v39 = vpop.eup %10128 }
 0x85e   : > { %10138 = vrcp.f32 %v7901_v45  ;;  %v7899_v3 = vadd.f32 2.0, %v7883_v18  ;;  %v7886_v8 = vmul.f32 %v10127_v19, %v7878_v40  ;;  %v7876_v14 = vadd.f32 2.0, %v10129_v39 }
 0x85f   : > { %v7891_v5 = vmul.f32 %v7883_v18, %v12946_v43 }
 0x860   : > { %v10131_v60 = vpop.eup %10130  ;;  %10140 = vrcp.f32 %v7899_v3  ;;  %v7902_v30 = vadd.f32 2.0, %v7886_v8  ;;  %v7884_v62 = vmul.f32 %v10129_v39, %v7876_v14  ;;  %v7894_v17 = vmul.f32 %v7886_v8, %v12949_v41 }
 0x861   : > { %v10133_v52 = vpop.eup %10132  ;;  %v7881_v63 = vadd.f32 2.0, %v10131_v60 }
 0x862   : > { %10142 = vrcp.f32 %v7902_v30  ;;  %v7879_v37 = vadd.f32 2.0, %v10133_v52  ;;  %v7900_v35 = vadd.f32 2.0, %v7884_v62  ;;  %v7892_v43 = vmul.f32 %v7884_v62, %v12952_v57 }
 0x863   : > { %v10135_v7 = vpop.eup %10134  ;;  %v7889_v58 = vmul.f32 %v10131_v60, %v7881_v63 }
 0x864   : > { %v7887_v16 = vmul.f32 %v10133_v52, %v7879_v37  ;;  %v7882_v23 = vadd.f32 2.0, %v10135_v7  ;;  %10144 = vrcp.f32 %v7900_v35 }
 0x865   : > { %v10137_v24 = vpop.eup %10136  ;;  %v7905_v0 = vadd.f32 2.0, %v7889_v58  ;;  %v7897_v10 = vmul.f32 %v7889_v58, %v12955_v20 }
 0x866   : > { %v7903_v28 = vadd.f32 2.0, %v7887_v16  ;;  %v7890_v38 = vmul.f32 %v10135_v7, %v7882_v23  ;;  %v7880_v36 = vadd.f32 2.0, %v10137_v24  ;;  %v7895_v22 = vmul.f32 %v7887_v16, %v12957_v51 }
 0x867   : > { %10146 = vrcp.f32 %v7905_v0 }
 0x868   : > { %10148 = vrcp.f32 %v7903_v28  ;;  %v7906_v61 = vadd.f32 2.0, %v7890_v38  ;;  %v7888_v34 = vmul.f32 %v10137_v24, %v7880_v36  ;;  %v7898_v57 = vmul.f32 %v7890_v38, %v12961_v26 }
 0x86a   : > { %10150 = vrcp.f32 %v7906_v61  ;;  %v7904_v2 = vadd.f32 2.0, %v7888_v34  ;;  %v7896_v51 = vmul.f32 %v7888_v34, %v12964_v59 }
 0x86b   : > { %v10139_v50 = vpop.eup %10138 }
 0x86c   : > { %v7912_v29 = vmul.f32 %v10139_v50, %v7893_v13  ;;  %10152 = vrcp.f32 %v7904_v2 }
 0x86d   : > { %v10141_v4 = vpop.eup %10140 }
 0x86e   : > { %7925 = vst.msk [vmem:[%s12972_s23 + $0x10] sm:$0xff] %vm5765_vm5, %v7912_v29  ;;  %v7908_v11 = vmul.f32 %v10141_v4, %v7891_v5 }
 0x86f   : > { %v10143_v15 = vpop.eup %10142 }
 0x870   : > { %7923 = vst.msk [vmem:[%s12972_s23] sm:$0xff] %vm5765_vm5, %v7908_v11  ;;  %v7914_v21 = vmul.f32 %v10143_v15, %v7894_v17 }
 0x871   : > { %v10145_v33 = vpop.eup %10144 }
 0x872   : > { %7926 = vst.msk [vmem:[%s12972_s23 + $0x18] sm:$0xff] %vm5765_vm5, %v7914_v21  ;;  %v7910_v46 = vmul.f32 %v10145_v33, %v7892_v43 }
 0x874   : > { %v10147_v47 = vpop.eup %10146  ;;  %7924 = vst.msk [vmem:[%s12972_s23 + $0x8] sm:$0xff] %vm5765_vm5, %v7910_v46 }
 0x875   : > { %v10149_v41 = vpop.eup %10148  ;;  %v7920_v25 = vmul.f32 %v10147_v47, %v7897_v10 }
 0x876   : > { %v7916_v42 = vmul.f32 %v10149_v41, %v7895_v22 }
 0x877   : > { %v10151_v49 = vpop.eup %10150  ;;  %7929 = vst.msk [vmem:[%s12972_s23 + $0x30] sm:$0xff] %vm5765_vm5, %v7920_v25 }
 0x878   : > { %7927 = vst.msk [vmem:[%s12972_s23 + $0x20] sm:$0xff] %vm5765_vm5, %v7916_v42  ;;  %v7922_v20 = vmul.f32 %v10151_v49, %v7898_v57 }
 0x879   : > { %v10153_v44 = vpop.eup %10152 }
 0x87a   : > { %7930 = vst.msk [vmem:[%s12972_s23 + $0x38] sm:$0xff] %vm5765_vm5, %v7922_v20  ;;  %v7918_v26 = vmul.f32 %v10153_v44, %v7896_v51 }
 0x87c   : > { %7928 = vst.msk [vmem:[%s12972_s23 + $0x28] sm:$0xff] %vm5765_vm5, %v7918_v26 }
 0x87d   : > { %10167 = shalt.err (!%p10164_p3)
}
 0x87e   : > { %s10168_s1 = scalar_lea.hbm %s12997_s24, 1024  ;;  %s10172_s19 = scalar_lea.hbm %s13065_s18, 2048 }
 0x87f   : > { %p10169_p4 = scmp.ne.s32.totalorder %s12997_s24, %s10168_s1  ;;  %p10173_p9 = scmp.lt.s32.totalorder %s12997_s24, %s13065_s18 }
 0x880   : > { %p10174_p10 = scmp.lt.s32.totalorder %s10172_s19, %s10168_s1 }
 0x881   : > { %p10170_p7 = pnand %p10169_p4, %p10354_p5 }
 0x882   : > { %p10175_p11 = por %p10174_p10, %p10173_p9 }
 0x883   : > { %p10171_p8 = pneg %p10170_p7 }
 0x885   : > { %p10176_p12 = pnand %p10175_p11, %p10171_p8 }
 0x887   : > { %10179 = shalt.err (!%p10176_p12)
}
 0x888   : > { %s10219_s29 = smov 128   ;;  %s10220_s20 = smov 8  }
 0x889   : > { %9699 = dma.vmem_to_hbm [thread:$0]  (%p10354_p5), %s12999_s22, 1024, %s12997_s24, %s13007_s0, %s10219_s29, %s10219_s29, %s10220_s20  }
 0x88a PF: > { %p9705_p13 = scmp.ge.s32.totalorder %s10214_s30, 2  ;;  %s7960_s21 = sand.u32 1, %s10202_s27  }
 0x88b   : > { %s7961_s4 = scalar_lea.sflag [#allocation5], %s7960_s21 }
 0x88c   : > { %p9702_p0 = pnand %p9705_p13, %p10358_p6 }
 0x88e   : > { %p9703_p1 = pneg %p9702_p0 }
 0x890   : > { %10197 = dma.done.wait (%p9703_p1), %s7961_s4, 1024  }
 0x891   : > { %10199 = vsyncadd (%p9703_p1), %s7961_s4, 4294966272  ;;  %s13174_s30 = sld [smem:[#allocation8_spill]]  ;;  %s13177_s27 = smov %s10206_s28 }
 0x892   : > { %s13175_s5 = sld [smem:[#allocation7_spill]] }
 0x893   : > { %s13176_s29 = sld [smem:[#allocation9_spill]] }
 0x897   : > { %p28_p2 = scmp.ge.s32.totalorder %s13174_s30, 4  }
 0x898   : > { %s13178_s28 = smov %s13175_s5 }
 0x899   :  { %30 = sbr.rel (!%p28_p2) target bundleno = 10 (0xa), region = 165 }
 0x89e   :  { %7966 = vsyncpa [#allocation5], 1 }
 0x89f   :  { %7968 = vsyncpa [#allocation5 + $0x1], 1 }

</bundles_post_ra>
